<compile_context>
chip_gen: v7x
topology: tpu7x:2x2x1
jax: 0.10.0
libtpu: 0.0.40
codegen_flags: <defaults>
</compile_context>

<pallas_src>
import functools

import jax
import jax.numpy as jnp
import numpy as np
from jax.experimental import pallas as pl
from jax.experimental.pallas import tpu as pltpu

_LANE = 128


def _tree(vals, op):
    """Pairwise reduction tree over a python list of equal-shape arrays."""
    vals = list(vals)
    while len(vals) > 1:
        nxt = [op(vals[i], vals[i + 1]) for i in range(0, len(vals) - 1, 2)]
        if len(vals) % 2 == 1:
            nxt.append(vals[-1])
        vals = nxt
    return vals[0]


# ---------------------------------------------------------------------------
# Pallas kernel: one tile of `tile_n` windows per grid step (lane-dense).
#
# Ref layouts (2-D, flattened channel-major; row = channel * SS + window_pos):
#   qw_ref, kw_ref : (P * SS, tile_n)   q already carries the softmax scaling
#   vw_ref         : (O * SS, tile_n)
#   ww_ref         : (SS, 128)          window weight (same for every window)
#   o_ref          : (O * SS, tile_n)   f32
# ---------------------------------------------------------------------------
def _sow_window_attn_kernel(qw_ref, kw_ref, vw_ref, ww_ref, o_ref, *,
                            num_heads, ss, proj_ch, out_ch, n_chunks):
    d = proj_ch // num_heads
    od = out_ch // num_heads
    f32 = jnp.float32

    ww = ww_ref[...]                                # hoisted: loaded once per body

    for chunk in range(n_chunks):                   # static: live arrays stay (16,128)
        lanes = pl.ds(chunk * _LANE, _LANE)

        for h in range(num_heads):                  # static unroll (num_heads small)
            qb, ob = h * d, h * od

            # ---- scores s[ki]: (SS_q, 128); key index on the "major" axis ----
            # Contiguous tile-aligned (16,128) loads; the only cross-sublane work
            # is the row-ki register broadcast inherent to the tiny outer product.
            s = [None] * ss
            for c in range(d):
                qc = qw_ref[pl.ds((qb + c) * ss, ss), lanes].astype(f32)
                kc = kw_ref[pl.ds((qb + c) * ss, ss), lanes].astype(f32)
                for ki in range(ss):
                    t = qc * kc[ki:ki + 1, :]
                    s[ki] = t if s[ki] is None else s[ki] + t

            # ---- softmax over ki: major-axis VALU trees (no XLU reduction) ----
            m = _tree(s, jnp.maximum)
            e = [jnp.exp(s[ki] - m) for ki in range(ss)]     # unnormalized
            den = _tree(e, jnp.add)
            r = ww / den          # exact reciprocal; window weight folded once

            # ---- PV: accumulate unnormalized e, scale once (no `p` tensor) ----
            for oc in range(od):
                vc = vw_ref[pl.ds((ob + oc) * ss, ss), lanes].astype(f32)
                acc = None
                for ki in range(ss):
                    t = e[ki] * vc[ki:ki + 1, :]
                    acc = t if acc is None else acc + t
                o_ref[pl.ds((ob + oc) * ss, ss), lanes] = \
                    (acc * r).astype(o_ref.dtype)


def _choose_tile_n(n_windows, max_tile=512, min_grid=2):
    """Largest 128-multiple tile <= max_tile that keeps >= min_grid grid steps."""
    tile = _LANE
    while tile * 2 <= max_tile and pl.cdiv(n_windows, tile * 2) >= min_grid:
        tile *= 2
    return tile


def _windows_attention_pallas(qw, kw, vw, ww_row, num_heads, tile_n=None):
    """qw/kw: (P, SS, N); vw: (O, SS, N); ww_row: (SS,) -> (O, SS, N) f32."""
    P, SS, N = qw.shape
    O = vw.shape[0]
    if tile_n is None:
        tile_n = _choose_tile_n(N)
    assert tile_n % _LANE == 0
    n_tiles = pl.cdiv(N, tile_n)
    npad = n_tiles * tile_n

    def flat_pad(x):
        x = x.reshape(x.shape[0] * SS, N)
        return jnp.pad(x, ((0, 0), (0, npad - N))) if npad != N else x

    qw2, kw2, vw2 = flat_pad(qw), flat_pad(kw), flat_pad(vw)
    # pre-broadcast window weight so its block is a full (16,128) unmasked load
    ww2 = jnp.broadcast_to(ww_row.astype(jnp.float32).reshape(SS, 1), (SS, _LANE))

    d, od = P // num_heads, O // num_heads
    flops = int(npad) * num_heads * SS * SS * (2 * d + 2 * od + 6)
    transc = int(npad) * num_heads * SS * SS
    bytes_acc = int(npad) * SS * ((2 * P + O) * qw2.dtype.itemsize + O * 4)

    kernel = functools.partial(
        _sow_window_attn_kernel, num_heads=num_heads, ss=SS,
        proj_ch=P, out_ch=O, n_chunks=tile_n // _LANE)

    # Per-step double-buffered footprint at tile_n<=512 is <4 MiB, inside every
    # generation's scoped-VMEM default; raise vmem_limit_bytes before going
    # beyond max_tile=512.
    out = pl.pallas_call(
        kernel,
        out_shape=jax.ShapeDtypeStruct((O * SS, npad), jnp.float32),
        grid=(n_tiles,),
        in_specs=[
            pl.BlockSpec((P * SS, tile_n), lambda i: (0, i)),
            pl.BlockSpec((P * SS, tile_n), lambda i: (0, i)),
            pl.BlockSpec((O * SS, tile_n), lambda i: (0, i)),
            pl.BlockSpec((SS, _LANE), lambda i: (0, 0)),
        ],
        out_specs=pl.BlockSpec((O * SS, tile_n), lambda i: (0, i)),
        compiler_params=pltpu.CompilerParams(
            dimension_semantics=("parallel",)),
        cost_estimate=pl.CostEstimate(
            flops=flops, transcendentals=transc, bytes_accessed=bytes_acc),
    )(qw2, kw2, vw2, ww2)
    return out.reshape(O, SS, npad)[:, :, :N]


# ---------------------------------------------------------------------------
# Window (de)construction, channel-major with window index in the lane dim
# ---------------------------------------------------------------------------
def make_windows_cm(x, S):
    """(B, C, H, W) -> (C, S*S, B*(H/S)*(W/S)); window pos flattened hi*S+wi."""
    B, C, H, W = x.shape
    nH, nW = H // S, W // S
    x = x.reshape(B, C, nH, S, nW, S)
    x = x.transpose(1, 3, 5, 0, 2, 4)                # (C, hi, wi, B, nH, nW)
    return x.reshape(C, S * S, B * nH * nW)


def demake_windows_cm(ow, S, B, H, W):
    """(O, S*S, B*(H/S)*(W/S)) -> (B, O, H, W)."""
    O = ow.shape[0]
    nH, nW = H // S, W // S
    x = ow.reshape(O, S, S, B, nH, nW)
    x = x.transpose(3, 0, 4, 1, 5, 2)                # (B, O, nH, hi, nW, wi)
    return x.reshape(B, O, H, W)


# ---------------------------------------------------------------------------
# Parameters
# ---------------------------------------------------------------------------
def generate_window_weight(S):
    # NOTE: (half-1)**2 == 0 for window_size == 2 (degenerate in PyTorch too).
    half = S // 2
    yc = jnp.arange(half, dtype=jnp.float32)[:, None] * jnp.ones((1, half), jnp.float32)
    xc = jnp.ones((half, 1), jnp.float32) * jnp.arange(half, dtype=jnp.float32)[None, :]
    ww = xc * yc / float((half - 1) ** 2)
    ww = jnp.concatenate([ww, jnp.flip(ww, axis=0)], axis=0)
    ww = jnp.concatenate([ww, jnp.flip(ww, axis=1)], axis=1)
    return ww.reshape(S * S)


def init_params(key, in_channels, proj_channels, value_channels, out_channels,
                window_size):
    k_in = in_channels * 2 - 136            # quirk of the reference module
    keys = jax.random.split(key, 6)

    def u(k, shape, fan_in):
        bound = 1.0 / (fan_in ** 0.5)
        return jax.random.uniform(k, shape, jnp.float32, -bound, bound)

    return dict(
        Wq=u(keys[0], (in_channels, proj_channels), in_channels),
        bq=u(keys[1], (proj_channels,), in_channels),
        Wk=u(keys[2], (k_in, proj_channels), k_in),
        bk=u(keys[3], (proj_channels,), k_in),
        Wv=u(keys[4], (value_channels, out_channels), value_channels),
        bv=u(keys[5], (out_channels,), value_channels),
        ww=generate_window_weight(window_size),
    )


# ---------------------------------------------------------------------------
# SowAttention forward (Pallas hot path)
# ---------------------------------------------------------------------------
@functools.partial(jax.jit,
                   static_argnames=("window_size", "num_heads", "tile_n",
                                    "window_dtype"))
def sow_attention(fq, fk, fv, params, *, window_size, num_heads,
                  tile_n=None, window_dtype=jnp.bfloat16):
    S = window_size
    half = S // 2
    Wq, bq, Wk, bk, Wv, bv, ww = (params[k] for k in
                                  ("Wq", "bq", "Wk", "bk", "Wv", "bv", "ww"))
    B, _, H, W = fq.shape
    P = Wq.shape[1]
    O = Wv.shape[1]
    assert P % num_heads == 0 and O % num_heads == 0
    scaling = float((P // num_heads) ** (-0.5))

    # ---- pad once, project once (1x1 conv == pointwise matmul); softmax
    #      scale folded into the q projection -------------------------------
    pad = ((0, 0), (0, 0), (half, half), (half, half))
    fqp, fkp, fvp = jnp.pad(fq, pad), jnp.pad(fk, pad), jnp.pad(fv, pad)

    def proj(x, Wm, b):
        return jnp.einsum('bchw,cp->bphw', x, Wm) + b.reshape(1, -1, 1, 1)

    qp = proj(fqp, Wq * scaling, bq * scaling).astype(window_dtype)
    kp = proj(fkp, Wk, bk).astype(window_dtype)
    vp = proj(fvp, Wv, bv).astype(window_dtype)

    Hp, Wp = H + S, W + S
    # (spatial slice of the padded projected map, crop slice of that output)
    variants = [
        ((slice(half, half + H), slice(half, half + W)),     # out0: unpadded
         (slice(None), slice(None))),
        ((slice(0, Hp), slice(0, Wp)),                        # out1: pad H & W
         (slice(half, half + H), slice(half, half + W))),
        ((slice(0, Hp), slice(half, half + W)),               # out2: pad H only
         (slice(half, half + H), slice(None))),
        ((slice(half, half + H), slice(0, Wp)),               # out3: pad W only
         (slice(None), slice(half, half + W))),
    ]

    # TODO(synk): for very large feature maps the XLA window gather /
    # concatenate below is the remaining HBM-traffic hot spot; it could be
    # moved into the kernel by gridding over (variant, window-row) blocks of
    # the padded projected maps so the windowing happens in the BlockSpec DMA.
    qw_l, kw_l, vw_l, shapes = [], [], [], []
    for (hs, ws), _ in variants:
        qv, kv, vv = qp[:, :, hs, ws], kp[:, :, hs, ws], vp[:, :, hs, ws]
        qw_l.append(make_windows_cm(qv, S))
        kw_l.append(make_windows_cm(kv, S))
        vw_l.append(make_windows_cm(vv, S))
        shapes.append((qv.shape[2], qv.shape[3]))

    qw = jnp.concatenate(qw_l, axis=-1)
    kw = jnp.concatenate(kw_l, axis=-1)
    vw = jnp.concatenate(vw_l, axis=-1)

    out_w = _windows_attention_pallas(qw, kw, vw, ww, num_heads, tile_n)

    # de-window, crop and sum the 4 variants
    out = jnp.zeros((B, O, H, W), jnp.float32)
    off = 0
    for (_, (chs, cws)), (Hd, Wd) in zip(variants, shapes):
        nv = B * (Hd // S) * (Wd // S)
        o_img = demake_windows_cm(out_w[:, :, off:off + nv], S, B, Hd, Wd)
        out = out + o_img[:, :, chs, cws]
        off += nv
    return out


# ---------------------------------------------------------------------------
# Pure-JAX reference (for correctness check)
# ---------------------------------------------------------------------------
def make_windows(x, S):
    B, C, H, W = x.shape
    x = x.reshape(B, C, H // S, S, W // S, S)
    x = x.transpose(0, 2, 4, 3, 5, 1)
    return x.reshape(B, H // S, W // S, S * S, C)


def demake_windows(xw, S, H, W):
    B, nH, nW, SS, C = xw.shape
    x = xw.reshape(B, nH, nW, S, S, C)
    x = x.transpose(0, 5, 1, 3, 2, 4)
    return x.reshape(B, C, H, W)


def ref_window_attention(fq, fk, fv, params, S, num_heads):
    Wq, bq, Wk, bk, Wv, bv, ww = (params[k] for k in
                                  ("Wq", "bq", "Wk", "bk", "Wv", "bv", "ww"))

    def proj(x, Wm, b):
        return jnp.einsum('bchw,cp->bphw', x, Wm) + b.reshape(1, -1, 1, 1)

    q = proj(fq, Wq, bq)
    k = proj(fk, Wk, bk)
    v = proj(fv, Wv, bv)
    B, P, H, W = q.shape
    O = v.shape[1]
    d = P // num_heads
    od = O // num_heads
    scaling = d ** (-0.5)

    def mw(x, dh):
        xw = make_windows(x, S)
        B_, nH, nW, SS, _ = xw.shape
        xw = xw.reshape(B_, nH, nW, SS, num_heads, dh)
        return xw.transpose(0, 4, 1, 2, 3, 5)

    qh, kh, vh = mw(q, d), mw(k, d), mw(v, od)
    s = jnp.einsum('bhijqd,bhijkd->bhijqk', qh, kh) * scaling
    p = jax.nn.softmax(s, axis=-1)
    o = jnp.einsum('bhijqk,bhijkd->bhijqd', p, vh)
    o = o * ww.reshape(1, 1, 1, 1, S * S, 1)
    B_, _, nH, nW, SS, _ = o.shape
    o = o.transpose(0, 2, 3, 4, 1, 5).reshape(B_, nH, nW, SS, num_heads * od)
    return demake_windows(o, S, H, W)


def ref_sow_attention(fq, fk, fv, params, S, num_heads):
    half = S // 2
    wa = functools.partial(ref_window_attention, params=params, S=S,
                           num_heads=num_heads)
    out0 = wa(fq, fk, fv)
    pad = ((0, 0), (0, 0), (half, half), (half, half))
    pq, pk, pv = jnp.pad(fq, pad), jnp.pad(fk, pad), jnp.pad(fv, pad)
    out1 = wa(pq, pk, pv)[:, :, half:-half, half:-half]
    out2 = wa(pq[:, :, :, half:-half], pk[:, :, :, half:-half],
              pv[:, :, :, half:-half])[:, :, half:-half, :]
    out3 = wa(pq[:, :, half:-half, :], pk[:, :, half:-half, :],
              pv[:, :, half:-half, :])[:, :, :, half:-half]
    return out0 + out1 + out2 + out3


# ---------------------------------------------------------------------------
if __name__ == "__main__":
    window_size = 4
    in_channels = 72                      # k_proj in-channels = 2*72 - 136 = 8
    proj_channels = 16
    value_channels = 8
    out_channels = 16
    num_heads = 2
    B, H, W = 2, 16, 16                   # 162 windows over 4 variants -> grid (2,)

    key = jax.random.PRNGKey(0)
    kq, kk, kv, kp = jax.random.split(key, 4)
    fea_q = jax.random.normal(kq, (B, in_channels, H, W), jnp.float32)
    fea_k = jax.random.normal(kk, (B, in_channels * 2 - 136, H, W), jnp.float32)
    fea_v = jax.random.normal(kv, (B, value_channels, H, W), jnp.float32)

    params = init_params(kp, in_channels, proj_channels, value_channels,
                         out_channels, window_size)

    # default path: bf16 window storage, f32 compute / f32 output
    out = sow_attention(fea_q, fea_k, fea_v, params,
                        window_size=window_size, num_heads=num_heads)
    out = jax.block_until_ready(out)
    assert out.shape == (B, out_channels, H, W)

    # f32 window-storage path (tight numerics check of the kernel itself)
    out_f32 = sow_attention(fea_q, fea_k, fea_v, params,
                            window_size=window_size, num_heads=num_heads,
                            window_dtype=jnp.float32)
    out_f32 = jax.block_until_ready(out_f32)

    ref = np.asarray(jax.block_until_ready(
        ref_sow_attention(fea_q, fea_k, fea_v, params, window_size, num_heads)))

    np.testing.assert_allclose(np.asarray(out_f32), ref, rtol=5e-3, atol=1e-4)
    # bf16 storage tolerance (inputs rounded to bf16; compute is f32)
    np.testing.assert_allclose(np.asarray(out), ref, rtol=5e-2, atol=5e-2)
    print("KERNEL_OK")
</pallas_src>

<mosaic_0001>
module attributes {stable_mosaic.version = 11 : i64} {
  func.func @_sow_window_attn_kernel(%arg0: i32, %arg1: memref<256x128xbf16, #tpu.memory_space<vmem>>, %arg2: memref<256x128xbf16, #tpu.memory_space<vmem>>, %arg3: memref<256x128xbf16, #tpu.memory_space<vmem>>, %arg4: memref<16x128xf32, #tpu.memory_space<vmem>>, %arg5: memref<256x128xf32, #tpu.memory_space<vmem>>) attributes {dimension_semantics = [#tpu.dimension_semantics<parallel>], iteration_bounds = array<i64: 2>, scalar_prefetch = 0 : i64, scratch_operands = 0 : i64, tpu.core_type = #tpu.core_type<tc>, window_params = [{transform_indices = @transform_0, window_bounds = array<i64: 256, 128>}, {transform_indices = @transform_1, window_bounds = array<i64: 256, 128>}, {transform_indices = @transform_2, window_bounds = array<i64: 256, 128>}, {pipeline_mode = #tpu.pipeline_mode<synchronous>, transform_indices = @transform_3, window_bounds = array<i64: 16, 128>}, {transform_indices = @transform_4, window_bounds = array<i64: 256, 128>}]} {
    %c0 = arith.constant 0 : index
    %c0_0 = arith.constant 0 : index
    %0 = vector.load %arg4[%c0, %c0_0] : memref<16x128xf32, #tpu.memory_space<vmem>>, vector<16x128xf32>
    %c0_1 = arith.constant 0 : index
    %c0_2 = arith.constant 0 : index
    %1 = vector.load %arg1[%c0_1, %c0_2] : memref<256x128xbf16, #tpu.memory_space<vmem>>, vector<16x128xbf16>
    %2 = arith.extf %1 : vector<16x128xbf16> to vector<16x128xf32>
    %c0_3 = arith.constant 0 : index
    %c0_4 = arith.constant 0 : index
    %3 = vector.load %arg2[%c0_3, %c0_4] : memref<256x128xbf16, #tpu.memory_space<vmem>>, vector<16x128xbf16>
    %4 = arith.extf %3 : vector<16x128xbf16> to vector<16x128xf32>
    %5 = vector.extract_strided_slice %4 {offsets = [0, 0], sizes = [1, 128], strides = [1, 1]} : vector<16x128xf32> to vector<1x128xf32>
    %6 = vector.broadcast %5 : vector<1x128xf32> to vector<16x128xf32>
    %7 = arith.mulf %2, %6 : vector<16x128xf32>
    %8 = vector.extract_strided_slice %4 {offsets = [1, 0], sizes = [1, 128], strides = [1, 1]} : vector<16x128xf32> to vector<1x128xf32>
    %9 = vector.broadcast %8 : vector<1x128xf32> to vector<16x128xf32>
    %10 = arith.mulf %2, %9 : vector<16x128xf32>
    %11 = vector.extract_strided_slice %4 {offsets = [2, 0], sizes = [1, 128], strides = [1, 1]} : vector<16x128xf32> to vector<1x128xf32>
    %12 = vector.broadcast %11 : vector<1x128xf32> to vector<16x128xf32>
    %13 = arith.mulf %2, %12 : vector<16x128xf32>
    %14 = vector.extract_strided_slice %4 {offsets = [3, 0], sizes = [1, 128], strides = [1, 1]} : vector<16x128xf32> to vector<1x128xf32>
    %15 = vector.broadcast %14 : vector<1x128xf32> to vector<16x128xf32>
    %16 = arith.mulf %2, %15 : vector<16x128xf32>
    %17 = vector.extract_strided_slice %4 {offsets = [4, 0], sizes = [1, 128], strides = [1, 1]} : vector<16x128xf32> to vector<1x128xf32>
    %18 = vector.broadcast %17 : vector<1x128xf32> to vector<16x128xf32>
    %19 = arith.mulf %2, %18 : vector<16x128xf32>
    %20 = vector.extract_strided_slice %4 {offsets = [5, 0], sizes = [1, 128], strides = [1, 1]} : vector<16x128xf32> to vector<1x128xf32>
    %21 = vector.broadcast %20 : vector<1x128xf32> to vector<16x128xf32>
    %22 = arith.mulf %2, %21 : vector<16x128xf32>
    %23 = vector.extract_strided_slice %4 {offsets = [6, 0], sizes = [1, 128], strides = [1, 1]} : vector<16x128xf32> to vector<1x128xf32>
    %24 = vector.broadcast %23 : vector<1x128xf32> to vector<16x128xf32>
    %25 = arith.mulf %2, %24 : vector<16x128xf32>
    %26 = vector.extract_strided_slice %4 {offsets = [7, 0], sizes = [1, 128], strides = [1, 1]} : vector<16x128xf32> to vector<1x128xf32>
    %27 = vector.broadcast %26 : vector<1x128xf32> to vector<16x128xf32>
    %28 = arith.mulf %2, %27 : vector<16x128xf32>
    %29 = vector.extract_strided_slice %4 {offsets = [8, 0], sizes = [1, 128], strides = [1, 1]} : vector<16x128xf32> to vector<1x128xf32>
    %30 = vector.broadcast %29 : vector<1x128xf32> to vector<16x128xf32>
    %31 = arith.mulf %2, %30 : vector<16x128xf32>
    %32 = vector.extract_strided_slice %4 {offsets = [9, 0], sizes = [1, 128], strides = [1, 1]} : vector<16x128xf32> to vector<1x128xf32>
    %33 = vector.broadcast %32 : vector<1x128xf32> to vector<16x128xf32>
    %34 = arith.mulf %2, %33 : vector<16x128xf32>
    %35 = vector.extract_strided_slice %4 {offsets = [10, 0], sizes = [1, 128], strides = [1, 1]} : vector<16x128xf32> to vector<1x128xf32>
    %36 = vector.broadcast %35 : vector<1x128xf32> to vector<16x128xf32>
    %37 = arith.mulf %2, %36 : vector<16x128xf32>
    %38 = vector.extract_strided_slice %4 {offsets = [11, 0], sizes = [1, 128], strides = [1, 1]} : vector<16x128xf32> to vector<1x128xf32>
    %39 = vector.broadcast %38 : vector<1x128xf32> to vector<16x128xf32>
    %40 = arith.mulf %2, %39 : vector<16x128xf32>
    %41 = vector.extract_strided_slice %4 {offsets = [12, 0], sizes = [1, 128], strides = [1, 1]} : vector<16x128xf32> to vector<1x128xf32>
    %42 = vector.broadcast %41 : vector<1x128xf32> to vector<16x128xf32>
    %43 = arith.mulf %2, %42 : vector<16x128xf32>
    %44 = vector.extract_strided_slice %4 {offsets = [13, 0], sizes = [1, 128], strides = [1, 1]} : vector<16x128xf32> to vector<1x128xf32>
    %45 = vector.broadcast %44 : vector<1x128xf32> to vector<16x128xf32>
    %46 = arith.mulf %2, %45 : vector<16x128xf32>
    %47 = vector.extract_strided_slice %4 {offsets = [14, 0], sizes = [1, 128], strides = [1, 1]} : vector<16x128xf32> to vector<1x128xf32>
    %48 = vector.broadcast %47 : vector<1x128xf32> to vector<16x128xf32>
    %49 = arith.mulf %2, %48 : vector<16x128xf32>
    %50 = vector.extract_strided_slice %4 {offsets = [15, 0], sizes = [1, 128], strides = [1, 1]} : vector<16x128xf32> to vector<1x128xf32>
    %51 = vector.broadcast %50 : vector<1x128xf32> to vector<16x128xf32>
    %52 = arith.mulf %2, %51 : vector<16x128xf32>
    %c16 = arith.constant 16 : index
    %c0_5 = arith.constant 0 : index
    %53 = vector.load %arg1[%c16, %c0_5] : memref<256x128xbf16, #tpu.memory_space<vmem>>, vector<16x128xbf16>
    %54 = arith.extf %53 : vector<16x128xbf16> to vector<16x128xf32>
    %c16_6 = arith.constant 16 : index
    %c0_7 = arith.constant 0 : index
    %55 = vector.load %arg2[%c16_6, %c0_7] : memref<256x128xbf16, #tpu.memory_space<vmem>>, vector<16x128xbf16>
    %56 = arith.extf %55 : vector<16x128xbf16> to vector<16x128xf32>
    %57 = vector.extract_strided_slice %56 {offsets = [0, 0], sizes = [1, 128], strides = [1, 1]} : vector<16x128xf32> to vector<1x128xf32>
    %58 = vector.broadcast %57 : vector<1x128xf32> to vector<16x128xf32>
    %59 = arith.mulf %54, %58 : vector<16x128xf32>
    %60 = arith.addf %7, %59 : vector<16x128xf32>
    %61 = vector.extract_strided_slice %56 {offsets = [1, 0], sizes = [1, 128], strides = [1, 1]} : vector<16x128xf32> to vector<1x128xf32>
    %62 = vector.broadcast %61 : vector<1x128xf32> to vector<16x128xf32>
    %63 = arith.mulf %54, %62 : vector<16x128xf32>
    %64 = arith.addf %10, %63 : vector<16x128xf32>
    %65 = vector.extract_strided_slice %56 {offsets = [2, 0], sizes = [1, 128], strides = [1, 1]} : vector<16x128xf32> to vector<1x128xf32>
    %66 = vector.broadcast %65 : vector<1x128xf32> to vector<16x128xf32>
    %67 = arith.mulf %54, %66 : vector<16x128xf32>
    %68 = arith.addf %13, %67 : vector<16x128xf32>
    %69 = vector.extract_strided_slice %56 {offsets = [3, 0], sizes = [1, 128], strides = [1, 1]} : vector<16x128xf32> to vector<1x128xf32>
    %70 = vector.broadcast %69 : vector<1x128xf32> to vector<16x128xf32>
    %71 = arith.mulf %54, %70 : vector<16x128xf32>
    %72 = arith.addf %16, %71 : vector<16x128xf32>
    %73 = vector.extract_strided_slice %56 {offsets = [4, 0], sizes = [1, 128], strides = [1, 1]} : vector<16x128xf32> to vector<1x128xf32>
    %74 = vector.broadcast %73 : vector<1x128xf32> to vector<16x128xf32>
    %75 = arith.mulf %54, %74 : vector<16x128xf32>
    %76 = arith.addf %19, %75 : vector<16x128xf32>
    %77 = vector.extract_strided_slice %56 {offsets = [5, 0], sizes = [1, 128], strides = [1, 1]} : vector<16x128xf32> to vector<1x128xf32>
    %78 = vector.broadcast %77 : vector<1x128xf32> to vector<16x128xf32>
    %79 = arith.mulf %54, %78 : vector<16x128xf32>
    %80 = arith.addf %22, %79 : vector<16x128xf32>
    %81 = vector.extract_strided_slice %56 {offsets = [6, 0], sizes = [1, 128], strides = [1, 1]} : vector<16x128xf32> to vector<1x128xf32>
    %82 = vector.broadcast %81 : vector<1x128xf32> to vector<16x128xf32>
    %83 = arith.mulf %54, %82 : vector<16x128xf32>
    %84 = arith.addf %25, %83 : vector<16x128xf32>
    %85 = vector.extract_strided_slice %56 {offsets = [7, 0], sizes = [1, 128], strides = [1, 1]} : vector<16x128xf32> to vector<1x128xf32>
    %86 = vector.broadcast %85 : vector<1x128xf32> to vector<16x128xf32>
    %87 = arith.mulf %54, %86 : vector<16x128xf32>
    %88 = arith.addf %28, %87 : vector<16x128xf32>
    %89 = vector.extract_strided_slice %56 {offsets = [8, 0], sizes = [1, 128], strides = [1, 1]} : vector<16x128xf32> to vector<1x128xf32>
    %90 = vector.broadcast %89 : vector<1x128xf32> to vector<16x128xf32>
    %91 = arith.mulf %54, %90 : vector<16x128xf32>
    %92 = arith.addf %31, %91 : vector<16x128xf32>
    %93 = vector.extract_strided_slice %56 {offsets = [9, 0], sizes = [1, 128], strides = [1, 1]} : vector<16x128xf32> to vector<1x128xf32>
    %94 = vector.broadcast %93 : vector<1x128xf32> to vector<16x128xf32>
    %95 = arith.mulf %54, %94 : vector<16x128xf32>
    %96 = arith.addf %34, %95 : vector<16x128xf32>
    %97 = vector.extract_strided_slice %56 {offsets = [10, 0], sizes = [1, 128], strides = [1, 1]} : vector<16x128xf32> to vector<1x128xf32>
    %98 = vector.broadcast %97 : vector<1x128xf32> to vector<16x128xf32>
    %99 = arith.mulf %54, %98 : vector<16x128xf32>
    %100 = arith.addf %37, %99 : vector<16x128xf32>
    %101 = vector.extract_strided_slice %56 {offsets = [11, 0], sizes = [1, 128], strides = [1, 1]} : vector<16x128xf32> to vector<1x128xf32>
    %102 = vector.broadcast %101 : vector<1x128xf32> to vector<16x128xf32>
    %103 = arith.mulf %54, %102 : vector<16x128xf32>
    %104 = arith.addf %40, %103 : vector<16x128xf32>
    %105 = vector.extract_strided_slice %56 {offsets = [12, 0], sizes = [1, 128], strides = [1, 1]} : vector<16x128xf32> to vector<1x128xf32>
    %106 = vector.broadcast %105 : vector<1x128xf32> to vector<16x128xf32>
    %107 = arith.mulf %54, %106 : vector<16x128xf32>
    %108 = arith.addf %43, %107 : vector<16x128xf32>
    %109 = vector.extract_strided_slice %56 {offsets = [13, 0], sizes = [1, 128], strides = [1, 1]} : vector<16x128xf32> to vector<1x128xf32>
    %110 = vector.broadcast %109 : vector<1x128xf32> to vector<16x128xf32>
    %111 = arith.mulf %54, %110 : vector<16x128xf32>
    %112 = arith.addf %46, %111 : vector<16x128xf32>
    %113 = vector.extract_strided_slice %56 {offsets = [14, 0], sizes = [1, 128], strides = [1, 1]} : vector<16x128xf32> to vector<1x128xf32>
    %114 = vector.broadcast %113 : vector<1x128xf32> to vector<16x128xf32>
    %115 = arith.mulf %54, %114 : vector<16x128xf32>
    %116 = arith.addf %49, %115 : vector<16x128xf32>
    %117 = vector.extract_strided_slice %56 {offsets = [15, 0], sizes = [1, 128], strides = [1, 1]} : vector<16x128xf32> to vector<1x128xf32>
    %118 = vector.broadcast %117 : vector<1x128xf32> to vector<16x128xf32>
    %119 = arith.mulf %54, %118 : vector<16x128xf32>
    %120 = arith.addf %52, %119 : vector<16x128xf32>
    %c32 = arith.constant 32 : index
    %c0_8 = arith.constant 0 : index
    %121 = vector.load %arg1[%c32, %c0_8] : memref<256x128xbf16, #tpu.memory_space<vmem>>, vector<16x128xbf16>
    %122 = arith.extf %121 : vector<16x128xbf16> to vector<16x128xf32>
    %c32_9 = arith.constant 32 : index
    %c0_10 = arith.constant 0 : index
    %123 = vector.load %arg2[%c32_9, %c0_10] : memref<256x128xbf16, #tpu.memory_space<vmem>>, vector<16x128xbf16>
    %124 = arith.extf %123 : vector<16x128xbf16> to vector<16x128xf32>
    %125 = vector.extract_strided_slice %124 {offsets = [0, 0], sizes = [1, 128], strides = [1, 1]} : vector<16x128xf32> to vector<1x128xf32>
    %126 = vector.broadcast %125 : vector<1x128xf32> to vector<16x128xf32>
    %127 = arith.mulf %122, %126 : vector<16x128xf32>
    %128 = arith.addf %60, %127 : vector<16x128xf32>
    %129 = vector.extract_strided_slice %124 {offsets = [1, 0], sizes = [1, 128], strides = [1, 1]} : vector<16x128xf32> to vector<1x128xf32>
    %130 = vector.broadcast %129 : vector<1x128xf32> to vector<16x128xf32>
    %131 = arith.mulf %122, %130 : vector<16x128xf32>
    %132 = arith.addf %64, %131 : vector<16x128xf32>
    %133 = vector.extract_strided_slice %124 {offsets = [2, 0], sizes = [1, 128], strides = [1, 1]} : vector<16x128xf32> to vector<1x128xf32>
    %134 = vector.broadcast %133 : vector<1x128xf32> to vector<16x128xf32>
    %135 = arith.mulf %122, %134 : vector<16x128xf32>
    %136 = arith.addf %68, %135 : vector<16x128xf32>
    %137 = vector.extract_strided_slice %124 {offsets = [3, 0], sizes = [1, 128], strides = [1, 1]} : vector<16x128xf32> to vector<1x128xf32>
    %138 = vector.broadcast %137 : vector<1x128xf32> to vector<16x128xf32>
    %139 = arith.mulf %122, %138 : vector<16x128xf32>
    %140 = arith.addf %72, %139 : vector<16x128xf32>
    %141 = vector.extract_strided_slice %124 {offsets = [4, 0], sizes = [1, 128], strides = [1, 1]} : vector<16x128xf32> to vector<1x128xf32>
    %142 = vector.broadcast %141 : vector<1x128xf32> to vector<16x128xf32>
    %143 = arith.mulf %122, %142 : vector<16x128xf32>
    %144 = arith.addf %76, %143 : vector<16x128xf32>
    %145 = vector.extract_strided_slice %124 {offsets = [5, 0], sizes = [1, 128], strides = [1, 1]} : vector<16x128xf32> to vector<1x128xf32>
    %146 = vector.broadcast %145 : vector<1x128xf32> to vector<16x128xf32>
    %147 = arith.mulf %122, %146 : vector<16x128xf32>
    %148 = arith.addf %80, %147 : vector<16x128xf32>
    %149 = vector.extract_strided_slice %124 {offsets = [6, 0], sizes = [1, 128], strides = [1, 1]} : vector<16x128xf32> to vector<1x128xf32>
    %150 = vector.broadcast %149 : vector<1x128xf32> to vector<16x128xf32>
    %151 = arith.mulf %122, %150 : vector<16x128xf32>
    %152 = arith.addf %84, %151 : vector<16x128xf32>
    %153 = vector.extract_strided_slice %124 {offsets = [7, 0], sizes = [1, 128], strides = [1, 1]} : vector<16x128xf32> to vector<1x128xf32>
    %154 = vector.broadcast %153 : vector<1x128xf32> to vector<16x128xf32>
    %155 = arith.mulf %122, %154 : vector<16x128xf32>
    %156 = arith.addf %88, %155 : vector<16x128xf32>
    %157 = vector.extract_strided_slice %124 {offsets = [8, 0], sizes = [1, 128], strides = [1, 1]} : vector<16x128xf32> to vector<1x128xf32>
    %158 = vector.broadcast %157 : vector<1x128xf32> to vector<16x128xf32>
    %159 = arith.mulf %122, %158 : vector<16x128xf32>
    %160 = arith.addf %92, %159 : vector<16x128xf32>
    %161 = vector.extract_strided_slice %124 {offsets = [9, 0], sizes = [1, 128], strides = [1, 1]} : vector<16x128xf32> to vector<1x128xf32>
    %162 = vector.broadcast %161 : vector<1x128xf32> to vector<16x128xf32>
    %163 = arith.mulf %122, %162 : vector<16x128xf32>
    %164 = arith.addf %96, %163 : vector<16x128xf32>
    %165 = vector.extract_strided_slice %124 {offsets = [10, 0], sizes = [1, 128], strides = [1, 1]} : vector<16x128xf32> to vector<1x128xf32>
    %166 = vector.broadcast %165 : vector<1x128xf32> to vector<16x128xf32>
    %167 = arith.mulf %122, %166 : vector<16x128xf32>
    %168 = arith.addf %100, %167 : vector<16x128xf32>
    %169 = vector.extract_strided_slice %124 {offsets = [11, 0], sizes = [1, 128], strides = [1, 1]} : vector<16x128xf32> to vector<1x128xf32>
    %170 = vector.broadcast %169 : vector<1x128xf32> to vector<16x128xf32>
    %171 = arith.mulf %122, %170 : vector<16x128xf32>
    %172 = arith.addf %104, %171 : vector<16x128xf32>
    %173 = vector.extract_strided_slice %124 {offsets = [12, 0], sizes = [1, 128], strides = [1, 1]} : vector<16x128xf32> to vector<1x128xf32>
    %174 = vector.broadcast %173 : vector<1x128xf32> to vector<16x128xf32>
    %175 = arith.mulf %122, %174 : vector<16x128xf32>
    %176 = arith.addf %108, %175 : vector<16x128xf32>
    %177 = vector.extract_strided_slice %124 {offsets = [13, 0], sizes = [1, 128], strides = [1, 1]} : vector<16x128xf32> to vector<1x128xf32>
    %178 = vector.broadcast %177 : vector<1x128xf32> to vector<16x128xf32>
    %179 = arith.mulf %122, %178 : vector<16x128xf32>
    %180 = arith.addf %112, %179 : vector<16x128xf32>
    %181 = vector.extract_strided_slice %124 {offsets = [14, 0], sizes = [1, 128], strides = [1, 1]} : vector<16x128xf32> to vector<1x128xf32>
    %182 = vector.broadcast %181 : vector<1x128xf32> to vector<16x128xf32>
    %183 = arith.mulf %122, %182 : vector<16x128xf32>
    %184 = arith.addf %116, %183 : vector<16x128xf32>
    %185 = vector.extract_strided_slice %124 {offsets = [15, 0], sizes = [1, 128], strides = [1, 1]} : vector<16x128xf32> to vector<1x128xf32>
    %186 = vector.broadcast %185 : vector<1x128xf32> to vector<16x128xf32>
    %187 = arith.mulf %122, %186 : vector<16x128xf32>
    %188 = arith.addf %120, %187 : vector<16x128xf32>
    %c48 = arith.constant 48 : index
    %c0_11 = arith.constant 0 : index
    %189 = vector.load %arg1[%c48, %c0_11] : memref<256x128xbf16, #tpu.memory_space<vmem>>, vector<16x128xbf16>
    %190 = arith.extf %189 : vector<16x128xbf16> to vector<16x128xf32>
    %c48_12 = arith.constant 48 : index
    %c0_13 = arith.constant 0 : index
    %191 = vector.load %arg2[%c48_12, %c0_13] : memref<256x128xbf16, #tpu.memory_space<vmem>>, vector<16x128xbf16>
    %192 = arith.extf %191 : vector<16x128xbf16> to vector<16x128xf32>
    %193 = vector.extract_strided_slice %192 {offsets = [0, 0], sizes = [1, 128], strides = [1, 1]} : vector<16x128xf32> to vector<1x128xf32>
    %194 = vector.broadcast %193 : vector<1x128xf32> to vector<16x128xf32>
    %195 = arith.mulf %190, %194 : vector<16x128xf32>
    %196 = arith.addf %128, %195 : vector<16x128xf32>
    %197 = vector.extract_strided_slice %192 {offsets = [1, 0], sizes = [1, 128], strides = [1, 1]} : vector<16x128xf32> to vector<1x128xf32>
    %198 = vector.broadcast %197 : vector<1x128xf32> to vector<16x128xf32>
    %199 = arith.mulf %190, %198 : vector<16x128xf32>
    %200 = arith.addf %132, %199 : vector<16x128xf32>
    %201 = vector.extract_strided_slice %192 {offsets = [2, 0], sizes = [1, 128], strides = [1, 1]} : vector<16x128xf32> to vector<1x128xf32>
    %202 = vector.broadcast %201 : vector<1x128xf32> to vector<16x128xf32>
    %203 = arith.mulf %190, %202 : vector<16x128xf32>
    %204 = arith.addf %136, %203 : vector<16x128xf32>
    %205 = vector.extract_strided_slice %192 {offsets = [3, 0], sizes = [1, 128], strides = [1, 1]} : vector<16x128xf32> to vector<1x128xf32>
    %206 = vector.broadcast %205 : vector<1x128xf32> to vector<16x128xf32>
    %207 = arith.mulf %190, %206 : vector<16x128xf32>
    %208 = arith.addf %140, %207 : vector<16x128xf32>
    %209 = vector.extract_strided_slice %192 {offsets = [4, 0], sizes = [1, 128], strides = [1, 1]} : vector<16x128xf32> to vector<1x128xf32>
    %210 = vector.broadcast %209 : vector<1x128xf32> to vector<16x128xf32>
    %211 = arith.mulf %190, %210 : vector<16x128xf32>
    %212 = arith.addf %144, %211 : vector<16x128xf32>
    %213 = vector.extract_strided_slice %192 {offsets = [5, 0], sizes = [1, 128], strides = [1, 1]} : vector<16x128xf32> to vector<1x128xf32>
    %214 = vector.broadcast %213 : vector<1x128xf32> to vector<16x128xf32>
    %215 = arith.mulf %190, %214 : vector<16x128xf32>
    %216 = arith.addf %148, %215 : vector<16x128xf32>
    %217 = vector.extract_strided_slice %192 {offsets = [6, 0], sizes = [1, 128], strides = [1, 1]} : vector<16x128xf32> to vector<1x128xf32>
    %218 = vector.broadcast %217 : vector<1x128xf32> to vector<16x128xf32>
    %219 = arith.mulf %190, %218 : vector<16x128xf32>
    %220 = arith.addf %152, %219 : vector<16x128xf32>
    %221 = vector.extract_strided_slice %192 {offsets = [7, 0], sizes = [1, 128], strides = [1, 1]} : vector<16x128xf32> to vector<1x128xf32>
    %222 = vector.broadcast %221 : vector<1x128xf32> to vector<16x128xf32>
    %223 = arith.mulf %190, %222 : vector<16x128xf32>
    %224 = arith.addf %156, %223 : vector<16x128xf32>
    %225 = vector.extract_strided_slice %192 {offsets = [8, 0], sizes = [1, 128], strides = [1, 1]} : vector<16x128xf32> to vector<1x128xf32>
    %226 = vector.broadcast %225 : vector<1x128xf32> to vector<16x128xf32>
    %227 = arith.mulf %190, %226 : vector<16x128xf32>
    %228 = arith.addf %160, %227 : vector<16x128xf32>
    %229 = vector.extract_strided_slice %192 {offsets = [9, 0], sizes = [1, 128], strides = [1, 1]} : vector<16x128xf32> to vector<1x128xf32>
    %230 = vector.broadcast %229 : vector<1x128xf32> to vector<16x128xf32>
    %231 = arith.mulf %190, %230 : vector<16x128xf32>
    %232 = arith.addf %164, %231 : vector<16x128xf32>
    %233 = vector.extract_strided_slice %192 {offsets = [10, 0], sizes = [1, 128], strides = [1, 1]} : vector<16x128xf32> to vector<1x128xf32>
    %234 = vector.broadcast %233 : vector<1x128xf32> to vector<16x128xf32>
    %235 = arith.mulf %190, %234 : vector<16x128xf32>
    %236 = arith.addf %168, %235 : vector<16x128xf32>
    %237 = vector.extract_strided_slice %192 {offsets = [11, 0], sizes = [1, 128], strides = [1, 1]} : vector<16x128xf32> to vector<1x128xf32>
    %238 = vector.broadcast %237 : vector<1x128xf32> to vector<16x128xf32>
    %239 = arith.mulf %190, %238 : vector<16x128xf32>
    %240 = arith.addf %172, %239 : vector<16x128xf32>
    %241 = vector.extract_strided_slice %192 {offsets = [12, 0], sizes = [1, 128], strides = [1, 1]} : vector<16x128xf32> to vector<1x128xf32>
    %242 = vector.broadcast %241 : vector<1x128xf32> to vector<16x128xf32>
    %243 = arith.mulf %190, %242 : vector<16x128xf32>
    %244 = arith.addf %176, %243 : vector<16x128xf32>
    %245 = vector.extract_strided_slice %192 {offsets = [13, 0], sizes = [1, 128], strides = [1, 1]} : vector<16x128xf32> to vector<1x128xf32>
    %246 = vector.broadcast %245 : vector<1x128xf32> to vector<16x128xf32>
    %247 = arith.mulf %190, %246 : vector<16x128xf32>
    %248 = arith.addf %180, %247 : vector<16x128xf32>
    %249 = vector.extract_strided_slice %192 {offsets = [14, 0], sizes = [1, 128], strides = [1, 1]} : vector<16x128xf32> to vector<1x128xf32>
    %250 = vector.broadcast %249 : vector<1x128xf32> to vector<16x128xf32>
    %251 = arith.mulf %190, %250 : vector<16x128xf32>
    %252 = arith.addf %184, %251 : vector<16x128xf32>
    %253 = vector.extract_strided_slice %192 {offsets = [15, 0], sizes = [1, 128], strides = [1, 1]} : vector<16x128xf32> to vector<1x128xf32>
    %254 = vector.broadcast %253 : vector<1x128xf32> to vector<16x128xf32>
    %255 = arith.mulf %190, %254 : vector<16x128xf32>
    %256 = arith.addf %188, %255 : vector<16x128xf32>
    %c64 = arith.constant 64 : index
    %c0_14 = arith.constant 0 : index
    %257 = vector.load %arg1[%c64, %c0_14] : memref<256x128xbf16, #tpu.memory_space<vmem>>, vector<16x128xbf16>
    %258 = arith.extf %257 : vector<16x128xbf16> to vector<16x128xf32>
    %c64_15 = arith.constant 64 : index
    %c0_16 = arith.constant 0 : index
    %259 = vector.load %arg2[%c64_15, %c0_16] : memref<256x128xbf16, #tpu.memory_space<vmem>>, vector<16x128xbf16>
    %260 = arith.extf %259 : vector<16x128xbf16> to vector<16x128xf32>
    %261 = vector.extract_strided_slice %260 {offsets = [0, 0], sizes = [1, 128], strides = [1, 1]} : vector<16x128xf32> to vector<1x128xf32>
    %262 = vector.broadcast %261 : vector<1x128xf32> to vector<16x128xf32>
    %263 = arith.mulf %258, %262 : vector<16x128xf32>
    %264 = arith.addf %196, %263 : vector<16x128xf32>
    %265 = vector.extract_strided_slice %260 {offsets = [1, 0], sizes = [1, 128], strides = [1, 1]} : vector<16x128xf32> to vector<1x128xf32>
    %266 = vector.broadcast %265 : vector<1x128xf32> to vector<16x128xf32>
    %267 = arith.mulf %258, %266 : vector<16x128xf32>
    %268 = arith.addf %200, %267 : vector<16x128xf32>
    %269 = vector.extract_strided_slice %260 {offsets = [2, 0], sizes = [1, 128], strides = [1, 1]} : vector<16x128xf32> to vector<1x128xf32>
    %270 = vector.broadcast %269 : vector<1x128xf32> to vector<16x128xf32>
    %271 = arith.mulf %258, %270 : vector<16x128xf32>
    %272 = arith.addf %204, %271 : vector<16x128xf32>
    %273 = vector.extract_strided_slice %260 {offsets = [3, 0], sizes = [1, 128], strides = [1, 1]} : vector<16x128xf32> to vector<1x128xf32>
    %274 = vector.broadcast %273 : vector<1x128xf32> to vector<16x128xf32>
    %275 = arith.mulf %258, %274 : vector<16x128xf32>
    %276 = arith.addf %208, %275 : vector<16x128xf32>
    %277 = vector.extract_strided_slice %260 {offsets = [4, 0], sizes = [1, 128], strides = [1, 1]} : vector<16x128xf32> to vector<1x128xf32>
    %278 = vector.broadcast %277 : vector<1x128xf32> to vector<16x128xf32>
    %279 = arith.mulf %258, %278 : vector<16x128xf32>
    %280 = arith.addf %212, %279 : vector<16x128xf32>
    %281 = vector.extract_strided_slice %260 {offsets = [5, 0], sizes = [1, 128], strides = [1, 1]} : vector<16x128xf32> to vector<1x128xf32>
    %282 = vector.broadcast %281 : vector<1x128xf32> to vector<16x128xf32>
    %283 = arith.mulf %258, %282 : vector<16x128xf32>
    %284 = arith.addf %216, %283 : vector<16x128xf32>
    %285 = vector.extract_strided_slice %260 {offsets = [6, 0], sizes = [1, 128], strides = [1, 1]} : vector<16x128xf32> to vector<1x128xf32>
    %286 = vector.broadcast %285 : vector<1x128xf32> to vector<16x128xf32>
    %287 = arith.mulf %258, %286 : vector<16x128xf32>
    %288 = arith.addf %220, %287 : vector<16x128xf32>
    %289 = vector.extract_strided_slice %260 {offsets = [7, 0], sizes = [1, 128], strides = [1, 1]} : vector<16x128xf32> to vector<1x128xf32>
    %290 = vector.broadcast %289 : vector<1x128xf32> to vector<16x128xf32>
    %291 = arith.mulf %258, %290 : vector<16x128xf32>
    %292 = arith.addf %224, %291 : vector<16x128xf32>
    %293 = vector.extract_strided_slice %260 {offsets = [8, 0], sizes = [1, 128], strides = [1, 1]} : vector<16x128xf32> to vector<1x128xf32>
    %294 = vector.broadcast %293 : vector<1x128xf32> to vector<16x128xf32>
    %295 = arith.mulf %258, %294 : vector<16x128xf32>
    %296 = arith.addf %228, %295 : vector<16x128xf32>
    %297 = vector.extract_strided_slice %260 {offsets = [9, 0], sizes = [1, 128], strides = [1, 1]} : vector<16x128xf32> to vector<1x128xf32>
    %298 = vector.broadcast %297 : vector<1x128xf32> to vector<16x128xf32>
    %299 = arith.mulf %258, %298 : vector<16x128xf32>
    %300 = arith.addf %232, %299 : vector<16x128xf32>
    %301 = vector.extract_strided_slice %260 {offsets = [10, 0], sizes = [1, 128], strides = [1, 1]} : vector<16x128xf32> to vector<1x128xf32>
    %302 = vector.broadcast %301 : vector<1x128xf32> to vector<16x128xf32>
    %303 = arith.mulf %258, %302 : vector<16x128xf32>
    %304 = arith.addf %236, %303 : vector<16x128xf32>
    %305 = vector.extract_strided_slice %260 {offsets = [11, 0], sizes = [1, 128], strides = [1, 1]} : vector<16x128xf32> to vector<1x128xf32>
    %306 = vector.broadcast %305 : vector<1x128xf32> to vector<16x128xf32>
    %307 = arith.mulf %258, %306 : vector<16x128xf32>
    %308 = arith.addf %240, %307 : vector<16x128xf32>
    %309 = vector.extract_strided_slice %260 {offsets = [12, 0], sizes = [1, 128], strides = [1, 1]} : vector<16x128xf32> to vector<1x128xf32>
    %310 = vector.broadcast %309 : vector<1x128xf32> to vector<16x128xf32>
    %311 = arith.mulf %258, %310 : vector<16x128xf32>
    %312 = arith.addf %244, %311 : vector<16x128xf32>
    %313 = vector.extract_strided_slice %260 {offsets = [13, 0], sizes = [1, 128], strides = [1, 1]} : vector<16x128xf32> to vector<1x128xf32>
    %314 = vector.broadcast %313 : vector<1x128xf32> to vector<16x128xf32>
    %315 = arith.mulf %258, %314 : vector<16x128xf32>
    %316 = arith.addf %248, %315 : vector<16x128xf32>
    %317 = vector.extract_strided_slice %260 {offsets = [14, 0], sizes = [1, 128], strides = [1, 1]} : vector<16x128xf32> to vector<1x128xf32>
    %318 = vector.broadcast %317 : vector<1x128xf32> to vector<16x128xf32>
    %319 = arith.mulf %258, %318 : vector<16x128xf32>
    %320 = arith.addf %252, %319 : vector<16x128xf32>
    %321 = vector.extract_strided_slice %260 {offsets = [15, 0], sizes = [1, 128], strides = [1, 1]} : vector<16x128xf32> to vector<1x128xf32>
    %322 = vector.broadcast %321 : vector<1x128xf32> to vector<16x128xf32>
    %323 = arith.mulf %258, %322 : vector<16x128xf32>
    %324 = arith.addf %256, %323 : vector<16x128xf32>
    %c80 = arith.constant 80 : index
    %c0_17 = arith.constant 0 : index
    %325 = vector.load %arg1[%c80, %c0_17] : memref<256x128xbf16, #tpu.memory_space<vmem>>, vector<16x128xbf16>
    %326 = arith.extf %325 : vector<16x128xbf16> to vector<16x128xf32>
    %c80_18 = arith.constant 80 : index
    %c0_19 = arith.constant 0 : index
    %327 = vector.load %arg2[%c80_18, %c0_19] : memref<256x128xbf16, #tpu.memory_space<vmem>>, vector<16x128xbf16>
    %328 = arith.extf %327 : vector<16x128xbf16> to vector<16x128xf32>
    %329 = vector.extract_strided_slice %328 {offsets = [0, 0], sizes = [1, 128], strides = [1, 1]} : vector<16x128xf32> to vector<1x128xf32>
    %330 = vector.broadcast %329 : vector<1x128xf32> to vector<16x128xf32>
    %331 = arith.mulf %326, %330 : vector<16x128xf32>
    %332 = arith.addf %264, %331 : vector<16x128xf32>
    %333 = vector.extract_strided_slice %328 {offsets = [1, 0], sizes = [1, 128], strides = [1, 1]} : vector<16x128xf32> to vector<1x128xf32>
    %334 = vector.broadcast %333 : vector<1x128xf32> to vector<16x128xf32>
    %335 = arith.mulf %326, %334 : vector<16x128xf32>
    %336 = arith.addf %268, %335 : vector<16x128xf32>
    %337 = vector.extract_strided_slice %328 {offsets = [2, 0], sizes = [1, 128], strides = [1, 1]} : vector<16x128xf32> to vector<1x128xf32>
    %338 = vector.broadcast %337 : vector<1x128xf32> to vector<16x128xf32>
    %339 = arith.mulf %326, %338 : vector<16x128xf32>
    %340 = arith.addf %272, %339 : vector<16x128xf32>
    %341 = vector.extract_strided_slice %328 {offsets = [3, 0], sizes = [1, 128], strides = [1, 1]} : vector<16x128xf32> to vector<1x128xf32>
    %342 = vector.broadcast %341 : vector<1x128xf32> to vector<16x128xf32>
    %343 = arith.mulf %326, %342 : vector<16x128xf32>
    %344 = arith.addf %276, %343 : vector<16x128xf32>
    %345 = vector.extract_strided_slice %328 {offsets = [4, 0], sizes = [1, 128], strides = [1, 1]} : vector<16x128xf32> to vector<1x128xf32>
    %346 = vector.broadcast %345 : vector<1x128xf32> to vector<16x128xf32>
    %347 = arith.mulf %326, %346 : vector<16x128xf32>
    %348 = arith.addf %280, %347 : vector<16x128xf32>
    %349 = vector.extract_strided_slice %328 {offsets = [5, 0], sizes = [1, 128], strides = [1, 1]} : vector<16x128xf32> to vector<1x128xf32>
    %350 = vector.broadcast %349 : vector<1x128xf32> to vector<16x128xf32>
    %351 = arith.mulf %326, %350 : vector<16x128xf32>
    %352 = arith.addf %284, %351 : vector<16x128xf32>
    %353 = vector.extract_strided_slice %328 {offsets = [6, 0], sizes = [1, 128], strides = [1, 1]} : vector<16x128xf32> to vector<1x128xf32>
    %354 = vector.broadcast %353 : vector<1x128xf32> to vector<16x128xf32>
    %355 = arith.mulf %326, %354 : vector<16x128xf32>
    %356 = arith.addf %288, %355 : vector<16x128xf32>
    %357 = vector.extract_strided_slice %328 {offsets = [7, 0], sizes = [1, 128], strides = [1, 1]} : vector<16x128xf32> to vector<1x128xf32>
    %358 = vector.broadcast %357 : vector<1x128xf32> to vector<16x128xf32>
    %359 = arith.mulf %326, %358 : vector<16x128xf32>
    %360 = arith.addf %292, %359 : vector<16x128xf32>
    %361 = vector.extract_strided_slice %328 {offsets = [8, 0], sizes = [1, 128], strides = [1, 1]} : vector<16x128xf32> to vector<1x128xf32>
    %362 = vector.broadcast %361 : vector<1x128xf32> to vector<16x128xf32>
    %363 = arith.mulf %326, %362 : vector<16x128xf32>
    %364 = arith.addf %296, %363 : vector<16x128xf32>
    %365 = vector.extract_strided_slice %328 {offsets = [9, 0], sizes = [1, 128], strides = [1, 1]} : vector<16x128xf32> to vector<1x128xf32>
    %366 = vector.broadcast %365 : vector<1x128xf32> to vector<16x128xf32>
    %367 = arith.mulf %326, %366 : vector<16x128xf32>
    %368 = arith.addf %300, %367 : vector<16x128xf32>
    %369 = vector.extract_strided_slice %328 {offsets = [10, 0], sizes = [1, 128], strides = [1, 1]} : vector<16x128xf32> to vector<1x128xf32>
    %370 = vector.broadcast %369 : vector<1x128xf32> to vector<16x128xf32>
    %371 = arith.mulf %326, %370 : vector<16x128xf32>
    %372 = arith.addf %304, %371 : vector<16x128xf32>
    %373 = vector.extract_strided_slice %328 {offsets = [11, 0], sizes = [1, 128], strides = [1, 1]} : vector<16x128xf32> to vector<1x128xf32>
    %374 = vector.broadcast %373 : vector<1x128xf32> to vector<16x128xf32>
    %375 = arith.mulf %326, %374 : vector<16x128xf32>
    %376 = arith.addf %308, %375 : vector<16x128xf32>
    %377 = vector.extract_strided_slice %328 {offsets = [12, 0], sizes = [1, 128], strides = [1, 1]} : vector<16x128xf32> to vector<1x128xf32>
    %378 = vector.broadcast %377 : vector<1x128xf32> to vector<16x128xf32>
    %379 = arith.mulf %326, %378 : vector<16x128xf32>
    %380 = arith.addf %312, %379 : vector<16x128xf32>
    %381 = vector.extract_strided_slice %328 {offsets = [13, 0], sizes = [1, 128], strides = [1, 1]} : vector<16x128xf32> to vector<1x128xf32>
    %382 = vector.broadcast %381 : vector<1x128xf32> to vector<16x128xf32>
    %383 = arith.mulf %326, %382 : vector<16x128xf32>
    %384 = arith.addf %316, %383 : vector<16x128xf32>
    %385 = vector.extract_strided_slice %328 {offsets = [14, 0], sizes = [1, 128], strides = [1, 1]} : vector<16x128xf32> to vector<1x128xf32>
    %386 = vector.broadcast %385 : vector<1x128xf32> to vector<16x128xf32>
    %387 = arith.mulf %326, %386 : vector<16x128xf32>
    %388 = arith.addf %320, %387 : vector<16x128xf32>
    %389 = vector.extract_strided_slice %328 {offsets = [15, 0], sizes = [1, 128], strides = [1, 1]} : vector<16x128xf32> to vector<1x128xf32>
    %390 = vector.broadcast %389 : vector<1x128xf32> to vector<16x128xf32>
    %391 = arith.mulf %326, %390 : vector<16x128xf32>
    %392 = arith.addf %324, %391 : vector<16x128xf32>
    %c96 = arith.constant 96 : index
    %c0_20 = arith.constant 0 : index
    %393 = vector.load %arg1[%c96, %c0_20] : memref<256x128xbf16, #tpu.memory_space<vmem>>, vector<16x128xbf16>
    %394 = arith.extf %393 : vector<16x128xbf16> to vector<16x128xf32>
    %c96_21 = arith.constant 96 : index
    %c0_22 = arith.constant 0 : index
    %395 = vector.load %arg2[%c96_21, %c0_22] : memref<256x128xbf16, #tpu.memory_space<vmem>>, vector<16x128xbf16>
    %396 = arith.extf %395 : vector<16x128xbf16> to vector<16x128xf32>
    %397 = vector.extract_strided_slice %396 {offsets = [0, 0], sizes = [1, 128], strides = [1, 1]} : vector<16x128xf32> to vector<1x128xf32>
    %398 = vector.broadcast %397 : vector<1x128xf32> to vector<16x128xf32>
    %399 = arith.mulf %394, %398 : vector<16x128xf32>
    %400 = arith.addf %332, %399 : vector<16x128xf32>
    %401 = vector.extract_strided_slice %396 {offsets = [1, 0], sizes = [1, 128], strides = [1, 1]} : vector<16x128xf32> to vector<1x128xf32>
    %402 = vector.broadcast %401 : vector<1x128xf32> to vector<16x128xf32>
    %403 = arith.mulf %394, %402 : vector<16x128xf32>
    %404 = arith.addf %336, %403 : vector<16x128xf32>
    %405 = vector.extract_strided_slice %396 {offsets = [2, 0], sizes = [1, 128], strides = [1, 1]} : vector<16x128xf32> to vector<1x128xf32>
    %406 = vector.broadcast %405 : vector<1x128xf32> to vector<16x128xf32>
    %407 = arith.mulf %394, %406 : vector<16x128xf32>
    %408 = arith.addf %340, %407 : vector<16x128xf32>
    %409 = vector.extract_strided_slice %396 {offsets = [3, 0], sizes = [1, 128], strides = [1, 1]} : vector<16x128xf32> to vector<1x128xf32>
    %410 = vector.broadcast %409 : vector<1x128xf32> to vector<16x128xf32>
    %411 = arith.mulf %394, %410 : vector<16x128xf32>
    %412 = arith.addf %344, %411 : vector<16x128xf32>
    %413 = vector.extract_strided_slice %396 {offsets = [4, 0], sizes = [1, 128], strides = [1, 1]} : vector<16x128xf32> to vector<1x128xf32>
    %414 = vector.broadcast %413 : vector<1x128xf32> to vector<16x128xf32>
    %415 = arith.mulf %394, %414 : vector<16x128xf32>
    %416 = arith.addf %348, %415 : vector<16x128xf32>
    %417 = vector.extract_strided_slice %396 {offsets = [5, 0], sizes = [1, 128], strides = [1, 1]} : vector<16x128xf32> to vector<1x128xf32>
    %418 = vector.broadcast %417 : vector<1x128xf32> to vector<16x128xf32>
    %419 = arith.mulf %394, %418 : vector<16x128xf32>
    %420 = arith.addf %352, %419 : vector<16x128xf32>
    %421 = vector.extract_strided_slice %396 {offsets = [6, 0], sizes = [1, 128], strides = [1, 1]} : vector<16x128xf32> to vector<1x128xf32>
    %422 = vector.broadcast %421 : vector<1x128xf32> to vector<16x128xf32>
    %423 = arith.mulf %394, %422 : vector<16x128xf32>
    %424 = arith.addf %356, %423 : vector<16x128xf32>
    %425 = vector.extract_strided_slice %396 {offsets = [7, 0], sizes = [1, 128], strides = [1, 1]} : vector<16x128xf32> to vector<1x128xf32>
    %426 = vector.broadcast %425 : vector<1x128xf32> to vector<16x128xf32>
    %427 = arith.mulf %394, %426 : vector<16x128xf32>
    %428 = arith.addf %360, %427 : vector<16x128xf32>
    %429 = vector.extract_strided_slice %396 {offsets = [8, 0], sizes = [1, 128], strides = [1, 1]} : vector<16x128xf32> to vector<1x128xf32>
    %430 = vector.broadcast %429 : vector<1x128xf32> to vector<16x128xf32>
    %431 = arith.mulf %394, %430 : vector<16x128xf32>
    %432 = arith.addf %364, %431 : vector<16x128xf32>
    %433 = vector.extract_strided_slice %396 {offsets = [9, 0], sizes = [1, 128], strides = [1, 1]} : vector<16x128xf32> to vector<1x128xf32>
    %434 = vector.broadcast %433 : vector<1x128xf32> to vector<16x128xf32>
    %435 = arith.mulf %394, %434 : vector<16x128xf32>
    %436 = arith.addf %368, %435 : vector<16x128xf32>
    %437 = vector.extract_strided_slice %396 {offsets = [10, 0], sizes = [1, 128], strides = [1, 1]} : vector<16x128xf32> to vector<1x128xf32>
    %438 = vector.broadcast %437 : vector<1x128xf32> to vector<16x128xf32>
    %439 = arith.mulf %394, %438 : vector<16x128xf32>
    %440 = arith.addf %372, %439 : vector<16x128xf32>
    %441 = vector.extract_strided_slice %396 {offsets = [11, 0], sizes = [1, 128], strides = [1, 1]} : vector<16x128xf32> to vector<1x128xf32>
    %442 = vector.broadcast %441 : vector<1x128xf32> to vector<16x128xf32>
    %443 = arith.mulf %394, %442 : vector<16x128xf32>
    %444 = arith.addf %376, %443 : vector<16x128xf32>
    %445 = vector.extract_strided_slice %396 {offsets = [12, 0], sizes = [1, 128], strides = [1, 1]} : vector<16x128xf32> to vector<1x128xf32>
    %446 = vector.broadcast %445 : vector<1x128xf32> to vector<16x128xf32>
    %447 = arith.mulf %394, %446 : vector<16x128xf32>
    %448 = arith.addf %380, %447 : vector<16x128xf32>
    %449 = vector.extract_strided_slice %396 {offsets = [13, 0], sizes = [1, 128], strides = [1, 1]} : vector<16x128xf32> to vector<1x128xf32>
    %450 = vector.broadcast %449 : vector<1x128xf32> to vector<16x128xf32>
    %451 = arith.mulf %394, %450 : vector<16x128xf32>
    %452 = arith.addf %384, %451 : vector<16x128xf32>
    %453 = vector.extract_strided_slice %396 {offsets = [14, 0], sizes = [1, 128], strides = [1, 1]} : vector<16x128xf32> to vector<1x128xf32>
    %454 = vector.broadcast %453 : vector<1x128xf32> to vector<16x128xf32>
    %455 = arith.mulf %394, %454 : vector<16x128xf32>
    %456 = arith.addf %388, %455 : vector<16x128xf32>
    %457 = vector.extract_strided_slice %396 {offsets = [15, 0], sizes = [1, 128], strides = [1, 1]} : vector<16x128xf32> to vector<1x128xf32>
    %458 = vector.broadcast %457 : vector<1x128xf32> to vector<16x128xf32>
    %459 = arith.mulf %394, %458 : vector<16x128xf32>
    %460 = arith.addf %392, %459 : vector<16x128xf32>
    %c112 = arith.constant 112 : index
    %c0_23 = arith.constant 0 : index
    %461 = vector.load %arg1[%c112, %c0_23] : memref<256x128xbf16, #tpu.memory_space<vmem>>, vector<16x128xbf16>
    %462 = arith.extf %461 : vector<16x128xbf16> to vector<16x128xf32>
    %c112_24 = arith.constant 112 : index
    %c0_25 = arith.constant 0 : index
    %463 = vector.load %arg2[%c112_24, %c0_25] : memref<256x128xbf16, #tpu.memory_space<vmem>>, vector<16x128xbf16>
    %464 = arith.extf %463 : vector<16x128xbf16> to vector<16x128xf32>
    %465 = vector.extract_strided_slice %464 {offsets = [0, 0], sizes = [1, 128], strides = [1, 1]} : vector<16x128xf32> to vector<1x128xf32>
    %466 = vector.broadcast %465 : vector<1x128xf32> to vector<16x128xf32>
    %467 = arith.mulf %462, %466 : vector<16x128xf32>
    %468 = arith.addf %400, %467 : vector<16x128xf32>
    %469 = vector.extract_strided_slice %464 {offsets = [1, 0], sizes = [1, 128], strides = [1, 1]} : vector<16x128xf32> to vector<1x128xf32>
    %470 = vector.broadcast %469 : vector<1x128xf32> to vector<16x128xf32>
    %471 = arith.mulf %462, %470 : vector<16x128xf32>
    %472 = arith.addf %404, %471 : vector<16x128xf32>
    %473 = vector.extract_strided_slice %464 {offsets = [2, 0], sizes = [1, 128], strides = [1, 1]} : vector<16x128xf32> to vector<1x128xf32>
    %474 = vector.broadcast %473 : vector<1x128xf32> to vector<16x128xf32>
    %475 = arith.mulf %462, %474 : vector<16x128xf32>
    %476 = arith.addf %408, %475 : vector<16x128xf32>
    %477 = vector.extract_strided_slice %464 {offsets = [3, 0], sizes = [1, 128], strides = [1, 1]} : vector<16x128xf32> to vector<1x128xf32>
    %478 = vector.broadcast %477 : vector<1x128xf32> to vector<16x128xf32>
    %479 = arith.mulf %462, %478 : vector<16x128xf32>
    %480 = arith.addf %412, %479 : vector<16x128xf32>
    %481 = vector.extract_strided_slice %464 {offsets = [4, 0], sizes = [1, 128], strides = [1, 1]} : vector<16x128xf32> to vector<1x128xf32>
    %482 = vector.broadcast %481 : vector<1x128xf32> to vector<16x128xf32>
    %483 = arith.mulf %462, %482 : vector<16x128xf32>
    %484 = arith.addf %416, %483 : vector<16x128xf32>
    %485 = vector.extract_strided_slice %464 {offsets = [5, 0], sizes = [1, 128], strides = [1, 1]} : vector<16x128xf32> to vector<1x128xf32>
    %486 = vector.broadcast %485 : vector<1x128xf32> to vector<16x128xf32>
    %487 = arith.mulf %462, %486 : vector<16x128xf32>
    %488 = arith.addf %420, %487 : vector<16x128xf32>
    %489 = vector.extract_strided_slice %464 {offsets = [6, 0], sizes = [1, 128], strides = [1, 1]} : vector<16x128xf32> to vector<1x128xf32>
    %490 = vector.broadcast %489 : vector<1x128xf32> to vector<16x128xf32>
    %491 = arith.mulf %462, %490 : vector<16x128xf32>
    %492 = arith.addf %424, %491 : vector<16x128xf32>
    %493 = vector.extract_strided_slice %464 {offsets = [7, 0], sizes = [1, 128], strides = [1, 1]} : vector<16x128xf32> to vector<1x128xf32>
    %494 = vector.broadcast %493 : vector<1x128xf32> to vector<16x128xf32>
    %495 = arith.mulf %462, %494 : vector<16x128xf32>
    %496 = arith.addf %428, %495 : vector<16x128xf32>
    %497 = vector.extract_strided_slice %464 {offsets = [8, 0], sizes = [1, 128], strides = [1, 1]} : vector<16x128xf32> to vector<1x128xf32>
    %498 = vector.broadcast %497 : vector<1x128xf32> to vector<16x128xf32>
    %499 = arith.mulf %462, %498 : vector<16x128xf32>
    %500 = arith.addf %432, %499 : vector<16x128xf32>
    %501 = vector.extract_strided_slice %464 {offsets = [9, 0], sizes = [1, 128], strides = [1, 1]} : vector<16x128xf32> to vector<1x128xf32>
    %502 = vector.broadcast %501 : vector<1x128xf32> to vector<16x128xf32>
    %503 = arith.mulf %462, %502 : vector<16x128xf32>
    %504 = arith.addf %436, %503 : vector<16x128xf32>
    %505 = vector.extract_strided_slice %464 {offsets = [10, 0], sizes = [1, 128], strides = [1, 1]} : vector<16x128xf32> to vector<1x128xf32>
    %506 = vector.broadcast %505 : vector<1x128xf32> to vector<16x128xf32>
    %507 = arith.mulf %462, %506 : vector<16x128xf32>
    %508 = arith.addf %440, %507 : vector<16x128xf32>
    %509 = vector.extract_strided_slice %464 {offsets = [11, 0], sizes = [1, 128], strides = [1, 1]} : vector<16x128xf32> to vector<1x128xf32>
    %510 = vector.broadcast %509 : vector<1x128xf32> to vector<16x128xf32>
    %511 = arith.mulf %462, %510 : vector<16x128xf32>
    %512 = arith.addf %444, %511 : vector<16x128xf32>
    %513 = vector.extract_strided_slice %464 {offsets = [12, 0], sizes = [1, 128], strides = [1, 1]} : vector<16x128xf32> to vector<1x128xf32>
    %514 = vector.broadcast %513 : vector<1x128xf32> to vector<16x128xf32>
    %515 = arith.mulf %462, %514 : vector<16x128xf32>
    %516 = arith.addf %448, %515 : vector<16x128xf32>
    %517 = vector.extract_strided_slice %464 {offsets = [13, 0], sizes = [1, 128], strides = [1, 1]} : vector<16x128xf32> to vector<1x128xf32>
    %518 = vector.broadcast %517 : vector<1x128xf32> to vector<16x128xf32>
    %519 = arith.mulf %462, %518 : vector<16x128xf32>
    %520 = arith.addf %452, %519 : vector<16x128xf32>
    %521 = vector.extract_strided_slice %464 {offsets = [14, 0], sizes = [1, 128], strides = [1, 1]} : vector<16x128xf32> to vector<1x128xf32>
    %522 = vector.broadcast %521 : vector<1x128xf32> to vector<16x128xf32>
    %523 = arith.mulf %462, %522 : vector<16x128xf32>
    %524 = arith.addf %456, %523 : vector<16x128xf32>
    %525 = vector.extract_strided_slice %464 {offsets = [15, 0], sizes = [1, 128], strides = [1, 1]} : vector<16x128xf32> to vector<1x128xf32>
    %526 = vector.broadcast %525 : vector<1x128xf32> to vector<16x128xf32>
    %527 = arith.mulf %462, %526 : vector<16x128xf32>
    %528 = arith.addf %460, %527 : vector<16x128xf32>
    %529 = arith.maximumf %468, %472 : vector<16x128xf32>
    %530 = arith.maximumf %476, %480 : vector<16x128xf32>
    %531 = arith.maximumf %484, %488 : vector<16x128xf32>
    %532 = arith.maximumf %492, %496 : vector<16x128xf32>
    %533 = arith.maximumf %500, %504 : vector<16x128xf32>
    %534 = arith.maximumf %508, %512 : vector<16x128xf32>
    %535 = arith.maximumf %516, %520 : vector<16x128xf32>
    %536 = arith.maximumf %524, %528 : vector<16x128xf32>
    %537 = arith.maximumf %529, %530 : vector<16x128xf32>
    %538 = arith.maximumf %531, %532 : vector<16x128xf32>
    %539 = arith.maximumf %533, %534 : vector<16x128xf32>
    %540 = arith.maximumf %535, %536 : vector<16x128xf32>
    %541 = arith.maximumf %537, %538 : vector<16x128xf32>
    %542 = arith.maximumf %539, %540 : vector<16x128xf32>
    %543 = arith.maximumf %541, %542 : vector<16x128xf32>
    %544 = arith.subf %468, %543 : vector<16x128xf32>
    %545 = math.exp %544 : vector<16x128xf32>
    %546 = arith.subf %472, %543 : vector<16x128xf32>
    %547 = math.exp %546 : vector<16x128xf32>
    %548 = arith.subf %476, %543 : vector<16x128xf32>
    %549 = math.exp %548 : vector<16x128xf32>
    %550 = arith.subf %480, %543 : vector<16x128xf32>
    %551 = math.exp %550 : vector<16x128xf32>
    %552 = arith.subf %484, %543 : vector<16x128xf32>
    %553 = math.exp %552 : vector<16x128xf32>
    %554 = arith.subf %488, %543 : vector<16x128xf32>
    %555 = math.exp %554 : vector<16x128xf32>
    %556 = arith.subf %492, %543 : vector<16x128xf32>
    %557 = math.exp %556 : vector<16x128xf32>
    %558 = arith.subf %496, %543 : vector<16x128xf32>
    %559 = math.exp %558 : vector<16x128xf32>
    %560 = arith.subf %500, %543 : vector<16x128xf32>
    %561 = math.exp %560 : vector<16x128xf32>
    %562 = arith.subf %504, %543 : vector<16x128xf32>
    %563 = math.exp %562 : vector<16x128xf32>
    %564 = arith.subf %508, %543 : vector<16x128xf32>
    %565 = math.exp %564 : vector<16x128xf32>
    %566 = arith.subf %512, %543 : vector<16x128xf32>
    %567 = math.exp %566 : vector<16x128xf32>
    %568 = arith.subf %516, %543 : vector<16x128xf32>
    %569 = math.exp %568 : vector<16x128xf32>
    %570 = arith.subf %520, %543 : vector<16x128xf32>
    %571 = math.exp %570 : vector<16x128xf32>
    %572 = arith.subf %524, %543 : vector<16x128xf32>
    %573 = math.exp %572 : vector<16x128xf32>
    %574 = arith.subf %528, %543 : vector<16x128xf32>
    %575 = math.exp %574 : vector<16x128xf32>
    %576 = arith.addf %545, %547 : vector<16x128xf32>
    %577 = arith.addf %549, %551 : vector<16x128xf32>
    %578 = arith.addf %553, %555 : vector<16x128xf32>
    %579 = arith.addf %557, %559 : vector<16x128xf32>
    %580 = arith.addf %561, %563 : vector<16x128xf32>
    %581 = arith.addf %565, %567 : vector<16x128xf32>
    %582 = arith.addf %569, %571 : vector<16x128xf32>
    %583 = arith.addf %573, %575 : vector<16x128xf32>
    %584 = arith.addf %576, %577 : vector<16x128xf32>
    %585 = arith.addf %578, %579 : vector<16x128xf32>
    %586 = arith.addf %580, %581 : vector<16x128xf32>
    %587 = arith.addf %582, %583 : vector<16x128xf32>
    %588 = arith.addf %584, %585 : vector<16x128xf32>
    %589 = arith.addf %586, %587 : vector<16x128xf32>
    %590 = arith.addf %588, %589 : vector<16x128xf32>
    %591 = arith.divf %0, %590 : vector<16x128xf32>
    %c0_26 = arith.constant 0 : index
    %c0_27 = arith.constant 0 : index
    %592 = vector.load %arg3[%c0_26, %c0_27] : memref<256x128xbf16, #tpu.memory_space<vmem>>, vector<16x128xbf16>
    %593 = arith.extf %592 : vector<16x128xbf16> to vector<16x128xf32>
    %594 = vector.extract_strided_slice %593 {offsets = [0, 0], sizes = [1, 128], strides = [1, 1]} : vector<16x128xf32> to vector<1x128xf32>
    %595 = vector.broadcast %594 : vector<1x128xf32> to vector<16x128xf32>
    %596 = arith.mulf %545, %595 : vector<16x128xf32>
    %597 = vector.extract_strided_slice %593 {offsets = [1, 0], sizes = [1, 128], strides = [1, 1]} : vector<16x128xf32> to vector<1x128xf32>
    %598 = vector.broadcast %597 : vector<1x128xf32> to vector<16x128xf32>
    %599 = arith.mulf %547, %598 : vector<16x128xf32>
    %600 = arith.addf %596, %599 : vector<16x128xf32>
    %601 = vector.extract_strided_slice %593 {offsets = [2, 0], sizes = [1, 128], strides = [1, 1]} : vector<16x128xf32> to vector<1x128xf32>
    %602 = vector.broadcast %601 : vector<1x128xf32> to vector<16x128xf32>
    %603 = arith.mulf %549, %602 : vector<16x128xf32>
    %604 = arith.addf %600, %603 : vector<16x128xf32>
    %605 = vector.extract_strided_slice %593 {offsets = [3, 0], sizes = [1, 128], strides = [1, 1]} : vector<16x128xf32> to vector<1x128xf32>
    %606 = vector.broadcast %605 : vector<1x128xf32> to vector<16x128xf32>
    %607 = arith.mulf %551, %606 : vector<16x128xf32>
    %608 = arith.addf %604, %607 : vector<16x128xf32>
    %609 = vector.extract_strided_slice %593 {offsets = [4, 0], sizes = [1, 128], strides = [1, 1]} : vector<16x128xf32> to vector<1x128xf32>
    %610 = vector.broadcast %609 : vector<1x128xf32> to vector<16x128xf32>
    %611 = arith.mulf %553, %610 : vector<16x128xf32>
    %612 = arith.addf %608, %611 : vector<16x128xf32>
    %613 = vector.extract_strided_slice %593 {offsets = [5, 0], sizes = [1, 128], strides = [1, 1]} : vector<16x128xf32> to vector<1x128xf32>
    %614 = vector.broadcast %613 : vector<1x128xf32> to vector<16x128xf32>
    %615 = arith.mulf %555, %614 : vector<16x128xf32>
    %616 = arith.addf %612, %615 : vector<16x128xf32>
    %617 = vector.extract_strided_slice %593 {offsets = [6, 0], sizes = [1, 128], strides = [1, 1]} : vector<16x128xf32> to vector<1x128xf32>
    %618 = vector.broadcast %617 : vector<1x128xf32> to vector<16x128xf32>
    %619 = arith.mulf %557, %618 : vector<16x128xf32>
    %620 = arith.addf %616, %619 : vector<16x128xf32>
    %621 = vector.extract_strided_slice %593 {offsets = [7, 0], sizes = [1, 128], strides = [1, 1]} : vector<16x128xf32> to vector<1x128xf32>
    %622 = vector.broadcast %621 : vector<1x128xf32> to vector<16x128xf32>
    %623 = arith.mulf %559, %622 : vector<16x128xf32>
    %624 = arith.addf %620, %623 : vector<16x128xf32>
    %625 = vector.extract_strided_slice %593 {offsets = [8, 0], sizes = [1, 128], strides = [1, 1]} : vector<16x128xf32> to vector<1x128xf32>
    %626 = vector.broadcast %625 : vector<1x128xf32> to vector<16x128xf32>
    %627 = arith.mulf %561, %626 : vector<16x128xf32>
    %628 = arith.addf %624, %627 : vector<16x128xf32>
    %629 = vector.extract_strided_slice %593 {offsets = [9, 0], sizes = [1, 128], strides = [1, 1]} : vector<16x128xf32> to vector<1x128xf32>
    %630 = vector.broadcast %629 : vector<1x128xf32> to vector<16x128xf32>
    %631 = arith.mulf %563, %630 : vector<16x128xf32>
    %632 = arith.addf %628, %631 : vector<16x128xf32>
    %633 = vector.extract_strided_slice %593 {offsets = [10, 0], sizes = [1, 128], strides = [1, 1]} : vector<16x128xf32> to vector<1x128xf32>
    %634 = vector.broadcast %633 : vector<1x128xf32> to vector<16x128xf32>
    %635 = arith.mulf %565, %634 : vector<16x128xf32>
    %636 = arith.addf %632, %635 : vector<16x128xf32>
    %637 = vector.extract_strided_slice %593 {offsets = [11, 0], sizes = [1, 128], strides = [1, 1]} : vector<16x128xf32> to vector<1x128xf32>
    %638 = vector.broadcast %637 : vector<1x128xf32> to vector<16x128xf32>
    %639 = arith.mulf %567, %638 : vector<16x128xf32>
    %640 = arith.addf %636, %639 : vector<16x128xf32>
    %641 = vector.extract_strided_slice %593 {offsets = [12, 0], sizes = [1, 128], strides = [1, 1]} : vector<16x128xf32> to vector<1x128xf32>
    %642 = vector.broadcast %641 : vector<1x128xf32> to vector<16x128xf32>
    %643 = arith.mulf %569, %642 : vector<16x128xf32>
    %644 = arith.addf %640, %643 : vector<16x128xf32>
    %645 = vector.extract_strided_slice %593 {offsets = [13, 0], sizes = [1, 128], strides = [1, 1]} : vector<16x128xf32> to vector<1x128xf32>
    %646 = vector.broadcast %645 : vector<1x128xf32> to vector<16x128xf32>
    %647 = arith.mulf %571, %646 : vector<16x128xf32>
    %648 = arith.addf %644, %647 : vector<16x128xf32>
    %649 = vector.extract_strided_slice %593 {offsets = [14, 0], sizes = [1, 128], strides = [1, 1]} : vector<16x128xf32> to vector<1x128xf32>
    %650 = vector.broadcast %649 : vector<1x128xf32> to vector<16x128xf32>
    %651 = arith.mulf %573, %650 : vector<16x128xf32>
    %652 = arith.addf %648, %651 : vector<16x128xf32>
    %653 = vector.extract_strided_slice %593 {offsets = [15, 0], sizes = [1, 128], strides = [1, 1]} : vector<16x128xf32> to vector<1x128xf32>
    %654 = vector.broadcast %653 : vector<1x128xf32> to vector<16x128xf32>
    %655 = arith.mulf %575, %654 : vector<16x128xf32>
    %656 = arith.addf %652, %655 : vector<16x128xf32>
    %657 = arith.mulf %656, %591 : vector<16x128xf32>
    %c0_28 = arith.constant 0 : index
    %c0_29 = arith.constant 0 : index
    %658 = vector.load %arg5[%c0_28, %c0_29] : memref<256x128xf32, #tpu.memory_space<vmem>>, vector<16x128xf32>
    tpu.vector_store %arg5[%c0_28, %c0_29], %657 {strides = array<i32>} : memref<256x128xf32, #tpu.memory_space<vmem>>, vector<16x128xf32>,
    %c16_30 = arith.constant 16 : index
    %c0_31 = arith.constant 0 : index
    %659 = vector.load %arg3[%c16_30, %c0_31] : memref<256x128xbf16, #tpu.memory_space<vmem>>, vector<16x128xbf16>
    %660 = arith.extf %659 : vector<16x128xbf16> to vector<16x128xf32>
    %661 = vector.extract_strided_slice %660 {offsets = [0, 0], sizes = [1, 128], strides = [1, 1]} : vector<16x128xf32> to vector<1x128xf32>
    %662 = vector.broadcast %661 : vector<1x128xf32> to vector<16x128xf32>
    %663 = arith.mulf %545, %662 : vector<16x128xf32>
    %664 = vector.extract_strided_slice %660 {offsets = [1, 0], sizes = [1, 128], strides = [1, 1]} : vector<16x128xf32> to vector<1x128xf32>
    %665 = vector.broadcast %664 : vector<1x128xf32> to vector<16x128xf32>
    %666 = arith.mulf %547, %665 : vector<16x128xf32>
    %667 = arith.addf %663, %666 : vector<16x128xf32>
    %668 = vector.extract_strided_slice %660 {offsets = [2, 0], sizes = [1, 128], strides = [1, 1]} : vector<16x128xf32> to vector<1x128xf32>
    %669 = vector.broadcast %668 : vector<1x128xf32> to vector<16x128xf32>
    %670 = arith.mulf %549, %669 : vector<16x128xf32>
    %671 = arith.addf %667, %670 : vector<16x128xf32>
    %672 = vector.extract_strided_slice %660 {offsets = [3, 0], sizes = [1, 128], strides = [1, 1]} : vector<16x128xf32> to vector<1x128xf32>
    %673 = vector.broadcast %672 : vector<1x128xf32> to vector<16x128xf32>
    %674 = arith.mulf %551, %673 : vector<16x128xf32>
    %675 = arith.addf %671, %674 : vector<16x128xf32>
    %676 = vector.extract_strided_slice %660 {offsets = [4, 0], sizes = [1, 128], strides = [1, 1]} : vector<16x128xf32> to vector<1x128xf32>
    %677 = vector.broadcast %676 : vector<1x128xf32> to vector<16x128xf32>
    %678 = arith.mulf %553, %677 : vector<16x128xf32>
    %679 = arith.addf %675, %678 : vector<16x128xf32>
    %680 = vector.extract_strided_slice %660 {offsets = [5, 0], sizes = [1, 128], strides = [1, 1]} : vector<16x128xf32> to vector<1x128xf32>
    %681 = vector.broadcast %680 : vector<1x128xf32> to vector<16x128xf32>
    %682 = arith.mulf %555, %681 : vector<16x128xf32>
    %683 = arith.addf %679, %682 : vector<16x128xf32>
    %684 = vector.extract_strided_slice %660 {offsets = [6, 0], sizes = [1, 128], strides = [1, 1]} : vector<16x128xf32> to vector<1x128xf32>
    %685 = vector.broadcast %684 : vector<1x128xf32> to vector<16x128xf32>
    %686 = arith.mulf %557, %685 : vector<16x128xf32>
    %687 = arith.addf %683, %686 : vector<16x128xf32>
    %688 = vector.extract_strided_slice %660 {offsets = [7, 0], sizes = [1, 128], strides = [1, 1]} : vector<16x128xf32> to vector<1x128xf32>
    %689 = vector.broadcast %688 : vector<1x128xf32> to vector<16x128xf32>
    %690 = arith.mulf %559, %689 : vector<16x128xf32>
    %691 = arith.addf %687, %690 : vector<16x128xf32>
    %692 = vector.extract_strided_slice %660 {offsets = [8, 0], sizes = [1, 128], strides = [1, 1]} : vector<16x128xf32> to vector<1x128xf32>
    %693 = vector.broadcast %692 : vector<1x128xf32> to vector<16x128xf32>
    %694 = arith.mulf %561, %693 : vector<16x128xf32>
    %695 = arith.addf %691, %694 : vector<16x128xf32>
    %696 = vector.extract_strided_slice %660 {offsets = [9, 0], sizes = [1, 128], strides = [1, 1]} : vector<16x128xf32> to vector<1x128xf32>
    %697 = vector.broadcast %696 : vector<1x128xf32> to vector<16x128xf32>
    %698 = arith.mulf %563, %697 : vector<16x128xf32>
    %699 = arith.addf %695, %698 : vector<16x128xf32>
    %700 = vector.extract_strided_slice %660 {offsets = [10, 0], sizes = [1, 128], strides = [1, 1]} : vector<16x128xf32> to vector<1x128xf32>
    %701 = vector.broadcast %700 : vector<1x128xf32> to vector<16x128xf32>
    %702 = arith.mulf %565, %701 : vector<16x128xf32>
    %703 = arith.addf %699, %702 : vector<16x128xf32>
    %704 = vector.extract_strided_slice %660 {offsets = [11, 0], sizes = [1, 128], strides = [1, 1]} : vector<16x128xf32> to vector<1x128xf32>
    %705 = vector.broadcast %704 : vector<1x128xf32> to vector<16x128xf32>
    %706 = arith.mulf %567, %705 : vector<16x128xf32>
    %707 = arith.addf %703, %706 : vector<16x128xf32>
    %708 = vector.extract_strided_slice %660 {offsets = [12, 0], sizes = [1, 128], strides = [1, 1]} : vector<16x128xf32> to vector<1x128xf32>
    %709 = vector.broadcast %708 : vector<1x128xf32> to vector<16x128xf32>
    %710 = arith.mulf %569, %709 : vector<16x128xf32>
    %711 = arith.addf %707, %710 : vector<16x128xf32>
    %712 = vector.extract_strided_slice %660 {offsets = [13, 0], sizes = [1, 128], strides = [1, 1]} : vector<16x128xf32> to vector<1x128xf32>
    %713 = vector.broadcast %712 : vector<1x128xf32> to vector<16x128xf32>
    %714 = arith.mulf %571, %713 : vector<16x128xf32>
    %715 = arith.addf %711, %714 : vector<16x128xf32>
    %716 = vector.extract_strided_slice %660 {offsets = [14, 0], sizes = [1, 128], strides = [1, 1]} : vector<16x128xf32> to vector<1x128xf32>
    %717 = vector.broadcast %716 : vector<1x128xf32> to vector<16x128xf32>
    %718 = arith.mulf %573, %717 : vector<16x128xf32>
    %719 = arith.addf %715, %718 : vector<16x128xf32>
    %720 = vector.extract_strided_slice %660 {offsets = [15, 0], sizes = [1, 128], strides = [1, 1]} : vector<16x128xf32> to vector<1x128xf32>
    %721 = vector.broadcast %720 : vector<1x128xf32> to vector<16x128xf32>
    %722 = arith.mulf %575, %721 : vector<16x128xf32>
    %723 = arith.addf %719, %722 : vector<16x128xf32>
    %724 = arith.mulf %723, %591 : vector<16x128xf32>
    %c16_32 = arith.constant 16 : index
    %c0_33 = arith.constant 0 : index
    %725 = vector.load %arg5[%c16_32, %c0_33] : memref<256x128xf32, #tpu.memory_space<vmem>>, vector<16x128xf32>
    tpu.vector_store %arg5[%c16_32, %c0_33], %724 {strides = array<i32>} : memref<256x128xf32, #tpu.memory_space<vmem>>, vector<16x128xf32>,
    %c32_34 = arith.constant 32 : index
    %c0_35 = arith.constant 0 : index
    %726 = vector.load %arg3[%c32_34, %c0_35] : memref<256x128xbf16, #tpu.memory_space<vmem>>, vector<16x128xbf16>
    %727 = arith.extf %726 : vector<16x128xbf16> to vector<16x128xf32>
    %728 = vector.extract_strided_slice %727 {offsets = [0, 0], sizes = [1, 128], strides = [1, 1]} : vector<16x128xf32> to vector<1x128xf32>
    %729 = vector.broadcast %728 : vector<1x128xf32> to vector<16x128xf32>
    %730 = arith.mulf %545, %729 : vector<16x128xf32>
    %731 = vector.extract_strided_slice %727 {offsets = [1, 0], sizes = [1, 128], strides = [1, 1]} : vector<16x128xf32> to vector<1x128xf32>
    %732 = vector.broadcast %731 : vector<1x128xf32> to vector<16x128xf32>
    %733 = arith.mulf %547, %732 : vector<16x128xf32>
    %734 = arith.addf %730, %733 : vector<16x128xf32>
    %735 = vector.extract_strided_slice %727 {offsets = [2, 0], sizes = [1, 128], strides = [1, 1]} : vector<16x128xf32> to vector<1x128xf32>
    %736 = vector.broadcast %735 : vector<1x128xf32> to vector<16x128xf32>
    %737 = arith.mulf %549, %736 : vector<16x128xf32>
    %738 = arith.addf %734, %737 : vector<16x128xf32>
    %739 = vector.extract_strided_slice %727 {offsets = [3, 0], sizes = [1, 128], strides = [1, 1]} : vector<16x128xf32> to vector<1x128xf32>
    %740 = vector.broadcast %739 : vector<1x128xf32> to vector<16x128xf32>
    %741 = arith.mulf %551, %740 : vector<16x128xf32>
    %742 = arith.addf %738, %741 : vector<16x128xf32>
    %743 = vector.extract_strided_slice %727 {offsets = [4, 0], sizes = [1, 128], strides = [1, 1]} : vector<16x128xf32> to vector<1x128xf32>
    %744 = vector.broadcast %743 : vector<1x128xf32> to vector<16x128xf32>
    %745 = arith.mulf %553, %744 : vector<16x128xf32>
    %746 = arith.addf %742, %745 : vector<16x128xf32>
    %747 = vector.extract_strided_slice %727 {offsets = [5, 0], sizes = [1, 128], strides = [1, 1]} : vector<16x128xf32> to vector<1x128xf32>
    %748 = vector.broadcast %747 : vector<1x128xf32> to vector<16x128xf32>
    %749 = arith.mulf %555, %748 : vector<16x128xf32>
    %750 = arith.addf %746, %749 : vector<16x128xf32>
    %751 = vector.extract_strided_slice %727 {offsets = [6, 0], sizes = [1, 128], strides = [1, 1]} : vector<16x128xf32> to vector<1x128xf32>
    %752 = vector.broadcast %751 : vector<1x128xf32> to vector<16x128xf32>
    %753 = arith.mulf %557, %752 : vector<16x128xf32>
    %754 = arith.addf %750, %753 : vector<16x128xf32>
    %755 = vector.extract_strided_slice %727 {offsets = [7, 0], sizes = [1, 128], strides = [1, 1]} : vector<16x128xf32> to vector<1x128xf32>
    %756 = vector.broadcast %755 : vector<1x128xf32> to vector<16x128xf32>
    %757 = arith.mulf %559, %756 : vector<16x128xf32>
    %758 = arith.addf %754, %757 : vector<16x128xf32>
    %759 = vector.extract_strided_slice %727 {offsets = [8, 0], sizes = [1, 128], strides = [1, 1]} : vector<16x128xf32> to vector<1x128xf32>
    %760 = vector.broadcast %759 : vector<1x128xf32> to vector<16x128xf32>
    %761 = arith.mulf %561, %760 : vector<16x128xf32>
    %762 = arith.addf %758, %761 : vector<16x128xf32>
    %763 = vector.extract_strided_slice %727 {offsets = [9, 0], sizes = [1, 128], strides = [1, 1]} : vector<16x128xf32> to vector<1x128xf32>
    %764 = vector.broadcast %763 : vector<1x128xf32> to vector<16x128xf32>
    %765 = arith.mulf %563, %764 : vector<16x128xf32>
    %766 = arith.addf %762, %765 : vector<16x128xf32>
    %767 = vector.extract_strided_slice %727 {offsets = [10, 0], sizes = [1, 128], strides = [1, 1]} : vector<16x128xf32> to vector<1x128xf32>
    %768 = vector.broadcast %767 : vector<1x128xf32> to vector<16x128xf32>
    %769 = arith.mulf %565, %768 : vector<16x128xf32>
    %770 = arith.addf %766, %769 : vector<16x128xf32>
    %771 = vector.extract_strided_slice %727 {offsets = [11, 0], sizes = [1, 128], strides = [1, 1]} : vector<16x128xf32> to vector<1x128xf32>
    %772 = vector.broadcast %771 : vector<1x128xf32> to vector<16x128xf32>
    %773 = arith.mulf %567, %772 : vector<16x128xf32>
    %774 = arith.addf %770, %773 : vector<16x128xf32>
    %775 = vector.extract_strided_slice %727 {offsets = [12, 0], sizes = [1, 128], strides = [1, 1]} : vector<16x128xf32> to vector<1x128xf32>
    %776 = vector.broadcast %775 : vector<1x128xf32> to vector<16x128xf32>
    %777 = arith.mulf %569, %776 : vector<16x128xf32>
    %778 = arith.addf %774, %777 : vector<16x128xf32>
    %779 = vector.extract_strided_slice %727 {offsets = [13, 0], sizes = [1, 128], strides = [1, 1]} : vector<16x128xf32> to vector<1x128xf32>
    %780 = vector.broadcast %779 : vector<1x128xf32> to vector<16x128xf32>
    %781 = arith.mulf %571, %780 : vector<16x128xf32>
    %782 = arith.addf %778, %781 : vector<16x128xf32>
    %783 = vector.extract_strided_slice %727 {offsets = [14, 0], sizes = [1, 128], strides = [1, 1]} : vector<16x128xf32> to vector<1x128xf32>
    %784 = vector.broadcast %783 : vector<1x128xf32> to vector<16x128xf32>
    %785 = arith.mulf %573, %784 : vector<16x128xf32>
    %786 = arith.addf %782, %785 : vector<16x128xf32>
    %787 = vector.extract_strided_slice %727 {offsets = [15, 0], sizes = [1, 128], strides = [1, 1]} : vector<16x128xf32> to vector<1x128xf32>
    %788 = vector.broadcast %787 : vector<1x128xf32> to vector<16x128xf32>
    %789 = arith.mulf %575, %788 : vector<16x128xf32>
    %790 = arith.addf %786, %789 : vector<16x128xf32>
    %791 = arith.mulf %790, %591 : vector<16x128xf32>
    %c32_36 = arith.constant 32 : index
    %c0_37 = arith.constant 0 : index
    %792 = vector.load %arg5[%c32_36, %c0_37] : memref<256x128xf32, #tpu.memory_space<vmem>>, vector<16x128xf32>
    tpu.vector_store %arg5[%c32_36, %c0_37], %791 {strides = array<i32>} : memref<256x128xf32, #tpu.memory_space<vmem>>, vector<16x128xf32>,
    %c48_38 = arith.constant 48 : index
    %c0_39 = arith.constant 0 : index
    %793 = vector.load %arg3[%c48_38, %c0_39] : memref<256x128xbf16, #tpu.memory_space<vmem>>, vector<16x128xbf16>
    %794 = arith.extf %793 : vector<16x128xbf16> to vector<16x128xf32>
    %795 = vector.extract_strided_slice %794 {offsets = [0, 0], sizes = [1, 128], strides = [1, 1]} : vector<16x128xf32> to vector<1x128xf32>
    %796 = vector.broadcast %795 : vector<1x128xf32> to vector<16x128xf32>
    %797 = arith.mulf %545, %796 : vector<16x128xf32>
    %798 = vector.extract_strided_slice %794 {offsets = [1, 0], sizes = [1, 128], strides = [1, 1]} : vector<16x128xf32> to vector<1x128xf32>
    %799 = vector.broadcast %798 : vector<1x128xf32> to vector<16x128xf32>
    %800 = arith.mulf %547, %799 : vector<16x128xf32>
    %801 = arith.addf %797, %800 : vector<16x128xf32>
    %802 = vector.extract_strided_slice %794 {offsets = [2, 0], sizes = [1, 128], strides = [1, 1]} : vector<16x128xf32> to vector<1x128xf32>
    %803 = vector.broadcast %802 : vector<1x128xf32> to vector<16x128xf32>
    %804 = arith.mulf %549, %803 : vector<16x128xf32>
    %805 = arith.addf %801, %804 : vector<16x128xf32>
    %806 = vector.extract_strided_slice %794 {offsets = [3, 0], sizes = [1, 128], strides = [1, 1]} : vector<16x128xf32> to vector<1x128xf32>
    %807 = vector.broadcast %806 : vector<1x128xf32> to vector<16x128xf32>
    %808 = arith.mulf %551, %807 : vector<16x128xf32>
    %809 = arith.addf %805, %808 : vector<16x128xf32>
    %810 = vector.extract_strided_slice %794 {offsets = [4, 0], sizes = [1, 128], strides = [1, 1]} : vector<16x128xf32> to vector<1x128xf32>
    %811 = vector.broadcast %810 : vector<1x128xf32> to vector<16x128xf32>
    %812 = arith.mulf %553, %811 : vector<16x128xf32>
    %813 = arith.addf %809, %812 : vector<16x128xf32>
    %814 = vector.extract_strided_slice %794 {offsets = [5, 0], sizes = [1, 128], strides = [1, 1]} : vector<16x128xf32> to vector<1x128xf32>
    %815 = vector.broadcast %814 : vector<1x128xf32> to vector<16x128xf32>
    %816 = arith.mulf %555, %815 : vector<16x128xf32>
    %817 = arith.addf %813, %816 : vector<16x128xf32>
    %818 = vector.extract_strided_slice %794 {offsets = [6, 0], sizes = [1, 128], strides = [1, 1]} : vector<16x128xf32> to vector<1x128xf32>
    %819 = vector.broadcast %818 : vector<1x128xf32> to vector<16x128xf32>
    %820 = arith.mulf %557, %819 : vector<16x128xf32>
    %821 = arith.addf %817, %820 : vector<16x128xf32>
    %822 = vector.extract_strided_slice %794 {offsets = [7, 0], sizes = [1, 128], strides = [1, 1]} : vector<16x128xf32> to vector<1x128xf32>
    %823 = vector.broadcast %822 : vector<1x128xf32> to vector<16x128xf32>
    %824 = arith.mulf %559, %823 : vector<16x128xf32>
    %825 = arith.addf %821, %824 : vector<16x128xf32>
    %826 = vector.extract_strided_slice %794 {offsets = [8, 0], sizes = [1, 128], strides = [1, 1]} : vector<16x128xf32> to vector<1x128xf32>
    %827 = vector.broadcast %826 : vector<1x128xf32> to vector<16x128xf32>
    %828 = arith.mulf %561, %827 : vector<16x128xf32>
    %829 = arith.addf %825, %828 : vector<16x128xf32>
    %830 = vector.extract_strided_slice %794 {offsets = [9, 0], sizes = [1, 128], strides = [1, 1]} : vector<16x128xf32> to vector<1x128xf32>
    %831 = vector.broadcast %830 : vector<1x128xf32> to vector<16x128xf32>
    %832 = arith.mulf %563, %831 : vector<16x128xf32>
    %833 = arith.addf %829, %832 : vector<16x128xf32>
    %834 = vector.extract_strided_slice %794 {offsets = [10, 0], sizes = [1, 128], strides = [1, 1]} : vector<16x128xf32> to vector<1x128xf32>
    %835 = vector.broadcast %834 : vector<1x128xf32> to vector<16x128xf32>
    %836 = arith.mulf %565, %835 : vector<16x128xf32>
    %837 = arith.addf %833, %836 : vector<16x128xf32>
    %838 = vector.extract_strided_slice %794 {offsets = [11, 0], sizes = [1, 128], strides = [1, 1]} : vector<16x128xf32> to vector<1x128xf32>
    %839 = vector.broadcast %838 : vector<1x128xf32> to vector<16x128xf32>
    %840 = arith.mulf %567, %839 : vector<16x128xf32>
    %841 = arith.addf %837, %840 : vector<16x128xf32>
    %842 = vector.extract_strided_slice %794 {offsets = [12, 0], sizes = [1, 128], strides = [1, 1]} : vector<16x128xf32> to vector<1x128xf32>
    %843 = vector.broadcast %842 : vector<1x128xf32> to vector<16x128xf32>
    %844 = arith.mulf %569, %843 : vector<16x128xf32>
    %845 = arith.addf %841, %844 : vector<16x128xf32>
    %846 = vector.extract_strided_slice %794 {offsets = [13, 0], sizes = [1, 128], strides = [1, 1]} : vector<16x128xf32> to vector<1x128xf32>
    %847 = vector.broadcast %846 : vector<1x128xf32> to vector<16x128xf32>
    %848 = arith.mulf %571, %847 : vector<16x128xf32>
    %849 = arith.addf %845, %848 : vector<16x128xf32>
    %850 = vector.extract_strided_slice %794 {offsets = [14, 0], sizes = [1, 128], strides = [1, 1]} : vector<16x128xf32> to vector<1x128xf32>
    %851 = vector.broadcast %850 : vector<1x128xf32> to vector<16x128xf32>
    %852 = arith.mulf %573, %851 : vector<16x128xf32>
    %853 = arith.addf %849, %852 : vector<16x128xf32>
    %854 = vector.extract_strided_slice %794 {offsets = [15, 0], sizes = [1, 128], strides = [1, 1]} : vector<16x128xf32> to vector<1x128xf32>
    %855 = vector.broadcast %854 : vector<1x128xf32> to vector<16x128xf32>
    %856 = arith.mulf %575, %855 : vector<16x128xf32>
    %857 = arith.addf %853, %856 : vector<16x128xf32>
    %858 = arith.mulf %857, %591 : vector<16x128xf32>
    %c48_40 = arith.constant 48 : index
    %c0_41 = arith.constant 0 : index
    %859 = vector.load %arg5[%c48_40, %c0_41] : memref<256x128xf32, #tpu.memory_space<vmem>>, vector<16x128xf32>
    tpu.vector_store %arg5[%c48_40, %c0_41], %858 {strides = array<i32>} : memref<256x128xf32, #tpu.memory_space<vmem>>, vector<16x128xf32>,
    %c64_42 = arith.constant 64 : index
    %c0_43 = arith.constant 0 : index
    %860 = vector.load %arg3[%c64_42, %c0_43] : memref<256x128xbf16, #tpu.memory_space<vmem>>, vector<16x128xbf16>
    %861 = arith.extf %860 : vector<16x128xbf16> to vector<16x128xf32>
    %862 = vector.extract_strided_slice %861 {offsets = [0, 0], sizes = [1, 128], strides = [1, 1]} : vector<16x128xf32> to vector<1x128xf32>
    %863 = vector.broadcast %862 : vector<1x128xf32> to vector<16x128xf32>
    %864 = arith.mulf %545, %863 : vector<16x128xf32>
    %865 = vector.extract_strided_slice %861 {offsets = [1, 0], sizes = [1, 128], strides = [1, 1]} : vector<16x128xf32> to vector<1x128xf32>
    %866 = vector.broadcast %865 : vector<1x128xf32> to vector<16x128xf32>
    %867 = arith.mulf %547, %866 : vector<16x128xf32>
    %868 = arith.addf %864, %867 : vector<16x128xf32>
    %869 = vector.extract_strided_slice %861 {offsets = [2, 0], sizes = [1, 128], strides = [1, 1]} : vector<16x128xf32> to vector<1x128xf32>
    %870 = vector.broadcast %869 : vector<1x128xf32> to vector<16x128xf32>
    %871 = arith.mulf %549, %870 : vector<16x128xf32>
    %872 = arith.addf %868, %871 : vector<16x128xf32>
    %873 = vector.extract_strided_slice %861 {offsets = [3, 0], sizes = [1, 128], strides = [1, 1]} : vector<16x128xf32> to vector<1x128xf32>
    %874 = vector.broadcast %873 : vector<1x128xf32> to vector<16x128xf32>
    %875 = arith.mulf %551, %874 : vector<16x128xf32>
    %876 = arith.addf %872, %875 : vector<16x128xf32>
    %877 = vector.extract_strided_slice %861 {offsets = [4, 0], sizes = [1, 128], strides = [1, 1]} : vector<16x128xf32> to vector<1x128xf32>
    %878 = vector.broadcast %877 : vector<1x128xf32> to vector<16x128xf32>
    %879 = arith.mulf %553, %878 : vector<16x128xf32>
    %880 = arith.addf %876, %879 : vector<16x128xf32>
    %881 = vector.extract_strided_slice %861 {offsets = [5, 0], sizes = [1, 128], strides = [1, 1]} : vector<16x128xf32> to vector<1x128xf32>
    %882 = vector.broadcast %881 : vector<1x128xf32> to vector<16x128xf32>
    %883 = arith.mulf %555, %882 : vector<16x128xf32>
    %884 = arith.addf %880, %883 : vector<16x128xf32>
    %885 = vector.extract_strided_slice %861 {offsets = [6, 0], sizes = [1, 128], strides = [1, 1]} : vector<16x128xf32> to vector<1x128xf32>
    %886 = vector.broadcast %885 : vector<1x128xf32> to vector<16x128xf32>
    %887 = arith.mulf %557, %886 : vector<16x128xf32>
    %888 = arith.addf %884, %887 : vector<16x128xf32>
    %889 = vector.extract_strided_slice %861 {offsets = [7, 0], sizes = [1, 128], strides = [1, 1]} : vector<16x128xf32> to vector<1x128xf32>
    %890 = vector.broadcast %889 : vector<1x128xf32> to vector<16x128xf32>
    %891 = arith.mulf %559, %890 : vector<16x128xf32>
    %892 = arith.addf %888, %891 : vector<16x128xf32>
    %893 = vector.extract_strided_slice %861 {offsets = [8, 0], sizes = [1, 128], strides = [1, 1]} : vector<16x128xf32> to vector<1x128xf32>
    %894 = vector.broadcast %893 : vector<1x128xf32> to vector<16x128xf32>
    %895 = arith.mulf %561, %894 : vector<16x128xf32>
    %896 = arith.addf %892, %895 : vector<16x128xf32>
    %897 = vector.extract_strided_slice %861 {offsets = [9, 0], sizes = [1, 128], strides = [1, 1]} : vector<16x128xf32> to vector<1x128xf32>
    %898 = vector.broadcast %897 : vector<1x128xf32> to vector<16x128xf32>
    %899 = arith.mulf %563, %898 : vector<16x128xf32>
    %900 = arith.addf %896, %899 : vector<16x128xf32>
    %901 = vector.extract_strided_slice %861 {offsets = [10, 0], sizes = [1, 128], strides = [1, 1]} : vector<16x128xf32> to vector<1x128xf32>
    %902 = vector.broadcast %901 : vector<1x128xf32> to vector<16x128xf32>
    %903 = arith.mulf %565, %902 : vector<16x128xf32>
    %904 = arith.addf %900, %903 : vector<16x128xf32>
    %905 = vector.extract_strided_slice %861 {offsets = [11, 0], sizes = [1, 128], strides = [1, 1]} : vector<16x128xf32> to vector<1x128xf32>
    %906 = vector.broadcast %905 : vector<1x128xf32> to vector<16x128xf32>
    %907 = arith.mulf %567, %906 : vector<16x128xf32>
    %908 = arith.addf %904, %907 : vector<16x128xf32>
    %909 = vector.extract_strided_slice %861 {offsets = [12, 0], sizes = [1, 128], strides = [1, 1]} : vector<16x128xf32> to vector<1x128xf32>
    %910 = vector.broadcast %909 : vector<1x128xf32> to vector<16x128xf32>
    %911 = arith.mulf %569, %910 : vector<16x128xf32>
    %912 = arith.addf %908, %911 : vector<16x128xf32>
    %913 = vector.extract_strided_slice %861 {offsets = [13, 0], sizes = [1, 128], strides = [1, 1]} : vector<16x128xf32> to vector<1x128xf32>
    %914 = vector.broadcast %913 : vector<1x128xf32> to vector<16x128xf32>
    %915 = arith.mulf %571, %914 : vector<16x128xf32>
    %916 = arith.addf %912, %915 : vector<16x128xf32>
    %917 = vector.extract_strided_slice %861 {offsets = [14, 0], sizes = [1, 128], strides = [1, 1]} : vector<16x128xf32> to vector<1x128xf32>
    %918 = vector.broadcast %917 : vector<1x128xf32> to vector<16x128xf32>
    %919 = arith.mulf %573, %918 : vector<16x128xf32>
    %920 = arith.addf %916, %919 : vector<16x128xf32>
    %921 = vector.extract_strided_slice %861 {offsets = [15, 0], sizes = [1, 128], strides = [1, 1]} : vector<16x128xf32> to vector<1x128xf32>
    %922 = vector.broadcast %921 : vector<1x128xf32> to vector<16x128xf32>
    %923 = arith.mulf %575, %922 : vector<16x128xf32>
    %924 = arith.addf %920, %923 : vector<16x128xf32>
    %925 = arith.mulf %924, %591 : vector<16x128xf32>
    %c64_44 = arith.constant 64 : index
    %c0_45 = arith.constant 0 : index
    %926 = vector.load %arg5[%c64_44, %c0_45] : memref<256x128xf32, #tpu.memory_space<vmem>>, vector<16x128xf32>
    tpu.vector_store %arg5[%c64_44, %c0_45], %925 {strides = array<i32>} : memref<256x128xf32, #tpu.memory_space<vmem>>, vector<16x128xf32>,
    %c80_46 = arith.constant 80 : index
    %c0_47 = arith.constant 0 : index
    %927 = vector.load %arg3[%c80_46, %c0_47] : memref<256x128xbf16, #tpu.memory_space<vmem>>, vector<16x128xbf16>
    %928 = arith.extf %927 : vector<16x128xbf16> to vector<16x128xf32>
    %929 = vector.extract_strided_slice %928 {offsets = [0, 0], sizes = [1, 128], strides = [1, 1]} : vector<16x128xf32> to vector<1x128xf32>
    %930 = vector.broadcast %929 : vector<1x128xf32> to vector<16x128xf32>
    %931 = arith.mulf %545, %930 : vector<16x128xf32>
    %932 = vector.extract_strided_slice %928 {offsets = [1, 0], sizes = [1, 128], strides = [1, 1]} : vector<16x128xf32> to vector<1x128xf32>
    %933 = vector.broadcast %932 : vector<1x128xf32> to vector<16x128xf32>
    %934 = arith.mulf %547, %933 : vector<16x128xf32>
    %935 = arith.addf %931, %934 : vector<16x128xf32>
    %936 = vector.extract_strided_slice %928 {offsets = [2, 0], sizes = [1, 128], strides = [1, 1]} : vector<16x128xf32> to vector<1x128xf32>
    %937 = vector.broadcast %936 : vector<1x128xf32> to vector<16x128xf32>
    %938 = arith.mulf %549, %937 : vector<16x128xf32>
    %939 = arith.addf %935, %938 : vector<16x128xf32>
    %940 = vector.extract_strided_slice %928 {offsets = [3, 0], sizes = [1, 128], strides = [1, 1]} : vector<16x128xf32> to vector<1x128xf32>
    %941 = vector.broadcast %940 : vector<1x128xf32> to vector<16x128xf32>
    %942 = arith.mulf %551, %941 : vector<16x128xf32>
    %943 = arith.addf %939, %942 : vector<16x128xf32>
    %944 = vector.extract_strided_slice %928 {offsets = [4, 0], sizes = [1, 128], strides = [1, 1]} : vector<16x128xf32> to vector<1x128xf32>
    %945 = vector.broadcast %944 : vector<1x128xf32> to vector<16x128xf32>
    %946 = arith.mulf %553, %945 : vector<16x128xf32>
    %947 = arith.addf %943, %946 : vector<16x128xf32>
    %948 = vector.extract_strided_slice %928 {offsets = [5, 0], sizes = [1, 128], strides = [1, 1]} : vector<16x128xf32> to vector<1x128xf32>
    %949 = vector.broadcast %948 : vector<1x128xf32> to vector<16x128xf32>
    %950 = arith.mulf %555, %949 : vector<16x128xf32>
    %951 = arith.addf %947, %950 : vector<16x128xf32>
    %952 = vector.extract_strided_slice %928 {offsets = [6, 0], sizes = [1, 128], strides = [1, 1]} : vector<16x128xf32> to vector<1x128xf32>
    %953 = vector.broadcast %952 : vector<1x128xf32> to vector<16x128xf32>
    %954 = arith.mulf %557, %953 : vector<16x128xf32>
    %955 = arith.addf %951, %954 : vector<16x128xf32>
    %956 = vector.extract_strided_slice %928 {offsets = [7, 0], sizes = [1, 128], strides = [1, 1]} : vector<16x128xf32> to vector<1x128xf32>
    %957 = vector.broadcast %956 : vector<1x128xf32> to vector<16x128xf32>
    %958 = arith.mulf %559, %957 : vector<16x128xf32>
    %959 = arith.addf %955, %958 : vector<16x128xf32>
    %960 = vector.extract_strided_slice %928 {offsets = [8, 0], sizes = [1, 128], strides = [1, 1]} : vector<16x128xf32> to vector<1x128xf32>
    %961 = vector.broadcast %960 : vector<1x128xf32> to vector<16x128xf32>
    %962 = arith.mulf %561, %961 : vector<16x128xf32>
    %963 = arith.addf %959, %962 : vector<16x128xf32>
    %964 = vector.extract_strided_slice %928 {offsets = [9, 0], sizes = [1, 128], strides = [1, 1]} : vector<16x128xf32> to vector<1x128xf32>
    %965 = vector.broadcast %964 : vector<1x128xf32> to vector<16x128xf32>
    %966 = arith.mulf %563, %965 : vector<16x128xf32>
    %967 = arith.addf %963, %966 : vector<16x128xf32>
    %968 = vector.extract_strided_slice %928 {offsets = [10, 0], sizes = [1, 128], strides = [1, 1]} : vector<16x128xf32> to vector<1x128xf32>
    %969 = vector.broadcast %968 : vector<1x128xf32> to vector<16x128xf32>
    %970 = arith.mulf %565, %969 : vector<16x128xf32>
    %971 = arith.addf %967, %970 : vector<16x128xf32>
    %972 = vector.extract_strided_slice %928 {offsets = [11, 0], sizes = [1, 128], strides = [1, 1]} : vector<16x128xf32> to vector<1x128xf32>
    %973 = vector.broadcast %972 : vector<1x128xf32> to vector<16x128xf32>
    %974 = arith.mulf %567, %973 : vector<16x128xf32>
    %975 = arith.addf %971, %974 : vector<16x128xf32>
    %976 = vector.extract_strided_slice %928 {offsets = [12, 0], sizes = [1, 128], strides = [1, 1]} : vector<16x128xf32> to vector<1x128xf32>
    %977 = vector.broadcast %976 : vector<1x128xf32> to vector<16x128xf32>
    %978 = arith.mulf %569, %977 : vector<16x128xf32>
    %979 = arith.addf %975, %978 : vector<16x128xf32>
    %980 = vector.extract_strided_slice %928 {offsets = [13, 0], sizes = [1, 128], strides = [1, 1]} : vector<16x128xf32> to vector<1x128xf32>
    %981 = vector.broadcast %980 : vector<1x128xf32> to vector<16x128xf32>
    %982 = arith.mulf %571, %981 : vector<16x128xf32>
    %983 = arith.addf %979, %982 : vector<16x128xf32>
    %984 = vector.extract_strided_slice %928 {offsets = [14, 0], sizes = [1, 128], strides = [1, 1]} : vector<16x128xf32> to vector<1x128xf32>
    %985 = vector.broadcast %984 : vector<1x128xf32> to vector<16x128xf32>
    %986 = arith.mulf %573, %985 : vector<16x128xf32>
    %987 = arith.addf %983, %986 : vector<16x128xf32>
    %988 = vector.extract_strided_slice %928 {offsets = [15, 0], sizes = [1, 128], strides = [1, 1]} : vector<16x128xf32> to vector<1x128xf32>
    %989 = vector.broadcast %988 : vector<1x128xf32> to vector<16x128xf32>
    %990 = arith.mulf %575, %989 : vector<16x128xf32>
    %991 = arith.addf %987, %990 : vector<16x128xf32>
    %992 = arith.mulf %991, %591 : vector<16x128xf32>
    %c80_48 = arith.constant 80 : index
    %c0_49 = arith.constant 0 : index
    %993 = vector.load %arg5[%c80_48, %c0_49] : memref<256x128xf32, #tpu.memory_space<vmem>>, vector<16x128xf32>
    tpu.vector_store %arg5[%c80_48, %c0_49], %992 {strides = array<i32>} : memref<256x128xf32, #tpu.memory_space<vmem>>, vector<16x128xf32>,
    %c96_50 = arith.constant 96 : index
    %c0_51 = arith.constant 0 : index
    %994 = vector.load %arg3[%c96_50, %c0_51] : memref<256x128xbf16, #tpu.memory_space<vmem>>, vector<16x128xbf16>
    %995 = arith.extf %994 : vector<16x128xbf16> to vector<16x128xf32>
    %996 = vector.extract_strided_slice %995 {offsets = [0, 0], sizes = [1, 128], strides = [1, 1]} : vector<16x128xf32> to vector<1x128xf32>
    %997 = vector.broadcast %996 : vector<1x128xf32> to vector<16x128xf32>
    %998 = arith.mulf %545, %997 : vector<16x128xf32>
    %999 = vector.extract_strided_slice %995 {offsets = [1, 0], sizes = [1, 128], strides = [1, 1]} : vector<16x128xf32> to vector<1x128xf32>
    %1000 = vector.broadcast %999 : vector<1x128xf32> to vector<16x128xf32>
    %1001 = arith.mulf %547, %1000 : vector<16x128xf32>
    %1002 = arith.addf %998, %1001 : vector<16x128xf32>
    %1003 = vector.extract_strided_slice %995 {offsets = [2, 0], sizes = [1, 128], strides = [1, 1]} : vector<16x128xf32> to vector<1x128xf32>
    %1004 = vector.broadcast %1003 : vector<1x128xf32> to vector<16x128xf32>
    %1005 = arith.mulf %549, %1004 : vector<16x128xf32>
    %1006 = arith.addf %1002, %1005 : vector<16x128xf32>
    %1007 = vector.extract_strided_slice %995 {offsets = [3, 0], sizes = [1, 128], strides = [1, 1]} : vector<16x128xf32> to vector<1x128xf32>
    %1008 = vector.broadcast %1007 : vector<1x128xf32> to vector<16x128xf32>
    %1009 = arith.mulf %551, %1008 : vector<16x128xf32>
    %1010 = arith.addf %1006, %1009 : vector<16x128xf32>
    %1011 = vector.extract_strided_slice %995 {offsets = [4, 0], sizes = [1, 128], strides = [1, 1]} : vector<16x128xf32> to vector<1x128xf32>
    %1012 = vector.broadcast %1011 : vector<1x128xf32> to vector<16x128xf32>
    %1013 = arith.mulf %553, %1012 : vector<16x128xf32>
    %1014 = arith.addf %1010, %1013 : vector<16x128xf32>
    %1015 = vector.extract_strided_slice %995 {offsets = [5, 0], sizes = [1, 128], strides = [1, 1]} : vector<16x128xf32> to vector<1x128xf32>
    %1016 = vector.broadcast %1015 : vector<1x128xf32> to vector<16x128xf32>
    %1017 = arith.mulf %555, %1016 : vector<16x128xf32>
    %1018 = arith.addf %1014, %1017 : vector<16x128xf32>
    %1019 = vector.extract_strided_slice %995 {offsets = [6, 0], sizes = [1, 128], strides = [1, 1]} : vector<16x128xf32> to vector<1x128xf32>
    %1020 = vector.broadcast %1019 : vector<1x128xf32> to vector<16x128xf32>
    %1021 = arith.mulf %557, %1020 : vector<16x128xf32>
    %1022 = arith.addf %1018, %1021 : vector<16x128xf32>
    %1023 = vector.extract_strided_slice %995 {offsets = [7, 0], sizes = [1, 128], strides = [1, 1]} : vector<16x128xf32> to vector<1x128xf32>
    %1024 = vector.broadcast %1023 : vector<1x128xf32> to vector<16x128xf32>
    %1025 = arith.mulf %559, %1024 : vector<16x128xf32>
    %1026 = arith.addf %1022, %1025 : vector<16x128xf32>
    %1027 = vector.extract_strided_slice %995 {offsets = [8, 0], sizes = [1, 128], strides = [1, 1]} : vector<16x128xf32> to vector<1x128xf32>
    %1028 = vector.broadcast %1027 : vector<1x128xf32> to vector<16x128xf32>
    %1029 = arith.mulf %561, %1028 : vector<16x128xf32>
    %1030 = arith.addf %1026, %1029 : vector<16x128xf32>
    %1031 = vector.extract_strided_slice %995 {offsets = [9, 0], sizes = [1, 128], strides = [1, 1]} : vector<16x128xf32> to vector<1x128xf32>
    %1032 = vector.broadcast %1031 : vector<1x128xf32> to vector<16x128xf32>
    %1033 = arith.mulf %563, %1032 : vector<16x128xf32>
    %1034 = arith.addf %1030, %1033 : vector<16x128xf32>
    %1035 = vector.extract_strided_slice %995 {offsets = [10, 0], sizes = [1, 128], strides = [1, 1]} : vector<16x128xf32> to vector<1x128xf32>
    %1036 = vector.broadcast %1035 : vector<1x128xf32> to vector<16x128xf32>
    %1037 = arith.mulf %565, %1036 : vector<16x128xf32>
    %1038 = arith.addf %1034, %1037 : vector<16x128xf32>
    %1039 = vector.extract_strided_slice %995 {offsets = [11, 0], sizes = [1, 128], strides = [1, 1]} : vector<16x128xf32> to vector<1x128xf32>
    %1040 = vector.broadcast %1039 : vector<1x128xf32> to vector<16x128xf32>
    %1041 = arith.mulf %567, %1040 : vector<16x128xf32>
    %1042 = arith.addf %1038, %1041 : vector<16x128xf32>
    %1043 = vector.extract_strided_slice %995 {offsets = [12, 0], sizes = [1, 128], strides = [1, 1]} : vector<16x128xf32> to vector<1x128xf32>
    %1044 = vector.broadcast %1043 : vector<1x128xf32> to vector<16x128xf32>
    %1045 = arith.mulf %569, %1044 : vector<16x128xf32>
    %1046 = arith.addf %1042, %1045 : vector<16x128xf32>
    %1047 = vector.extract_strided_slice %995 {offsets = [13, 0], sizes = [1, 128], strides = [1, 1]} : vector<16x128xf32> to vector<1x128xf32>
    %1048 = vector.broadcast %1047 : vector<1x128xf32> to vector<16x128xf32>
    %1049 = arith.mulf %571, %1048 : vector<16x128xf32>
    %1050 = arith.addf %1046, %1049 : vector<16x128xf32>
    %1051 = vector.extract_strided_slice %995 {offsets = [14, 0], sizes = [1, 128], strides = [1, 1]} : vector<16x128xf32> to vector<1x128xf32>
    %1052 = vector.broadcast %1051 : vector<1x128xf32> to vector<16x128xf32>
    %1053 = arith.mulf %573, %1052 : vector<16x128xf32>
    %1054 = arith.addf %1050, %1053 : vector<16x128xf32>
    %1055 = vector.extract_strided_slice %995 {offsets = [15, 0], sizes = [1, 128], strides = [1, 1]} : vector<16x128xf32> to vector<1x128xf32>
    %1056 = vector.broadcast %1055 : vector<1x128xf32> to vector<16x128xf32>
    %1057 = arith.mulf %575, %1056 : vector<16x128xf32>
    %1058 = arith.addf %1054, %1057 : vector<16x128xf32>
    %1059 = arith.mulf %1058, %591 : vector<16x128xf32>
    %c96_52 = arith.constant 96 : index
    %c0_53 = arith.constant 0 : index
    %1060 = vector.load %arg5[%c96_52, %c0_53] : memref<256x128xf32, #tpu.memory_space<vmem>>, vector<16x128xf32>
    tpu.vector_store %arg5[%c96_52, %c0_53], %1059 {strides = array<i32>} : memref<256x128xf32, #tpu.memory_space<vmem>>, vector<16x128xf32>,
    %c112_54 = arith.constant 112 : index
    %c0_55 = arith.constant 0 : index
    %1061 = vector.load %arg3[%c112_54, %c0_55] : memref<256x128xbf16, #tpu.memory_space<vmem>>, vector<16x128xbf16>
    %1062 = arith.extf %1061 : vector<16x128xbf16> to vector<16x128xf32>
    %1063 = vector.extract_strided_slice %1062 {offsets = [0, 0], sizes = [1, 128], strides = [1, 1]} : vector<16x128xf32> to vector<1x128xf32>
    %1064 = vector.broadcast %1063 : vector<1x128xf32> to vector<16x128xf32>
    %1065 = arith.mulf %545, %1064 : vector<16x128xf32>
    %1066 = vector.extract_strided_slice %1062 {offsets = [1, 0], sizes = [1, 128], strides = [1, 1]} : vector<16x128xf32> to vector<1x128xf32>
    %1067 = vector.broadcast %1066 : vector<1x128xf32> to vector<16x128xf32>
    %1068 = arith.mulf %547, %1067 : vector<16x128xf32>
    %1069 = arith.addf %1065, %1068 : vector<16x128xf32>
    %1070 = vector.extract_strided_slice %1062 {offsets = [2, 0], sizes = [1, 128], strides = [1, 1]} : vector<16x128xf32> to vector<1x128xf32>
    %1071 = vector.broadcast %1070 : vector<1x128xf32> to vector<16x128xf32>
    %1072 = arith.mulf %549, %1071 : vector<16x128xf32>
    %1073 = arith.addf %1069, %1072 : vector<16x128xf32>
    %1074 = vector.extract_strided_slice %1062 {offsets = [3, 0], sizes = [1, 128], strides = [1, 1]} : vector<16x128xf32> to vector<1x128xf32>
    %1075 = vector.broadcast %1074 : vector<1x128xf32> to vector<16x128xf32>
    %1076 = arith.mulf %551, %1075 : vector<16x128xf32>
    %1077 = arith.addf %1073, %1076 : vector<16x128xf32>
    %1078 = vector.extract_strided_slice %1062 {offsets = [4, 0], sizes = [1, 128], strides = [1, 1]} : vector<16x128xf32> to vector<1x128xf32>
    %1079 = vector.broadcast %1078 : vector<1x128xf32> to vector<16x128xf32>
    %1080 = arith.mulf %553, %1079 : vector<16x128xf32>
    %1081 = arith.addf %1077, %1080 : vector<16x128xf32>
    %1082 = vector.extract_strided_slice %1062 {offsets = [5, 0], sizes = [1, 128], strides = [1, 1]} : vector<16x128xf32> to vector<1x128xf32>
    %1083 = vector.broadcast %1082 : vector<1x128xf32> to vector<16x128xf32>
    %1084 = arith.mulf %555, %1083 : vector<16x128xf32>
    %1085 = arith.addf %1081, %1084 : vector<16x128xf32>
    %1086 = vector.extract_strided_slice %1062 {offsets = [6, 0], sizes = [1, 128], strides = [1, 1]} : vector<16x128xf32> to vector<1x128xf32>
    %1087 = vector.broadcast %1086 : vector<1x128xf32> to vector<16x128xf32>
    %1088 = arith.mulf %557, %1087 : vector<16x128xf32>
    %1089 = arith.addf %1085, %1088 : vector<16x128xf32>
    %1090 = vector.extract_strided_slice %1062 {offsets = [7, 0], sizes = [1, 128], strides = [1, 1]} : vector<16x128xf32> to vector<1x128xf32>
    %1091 = vector.broadcast %1090 : vector<1x128xf32> to vector<16x128xf32>
    %1092 = arith.mulf %559, %1091 : vector<16x128xf32>
    %1093 = arith.addf %1089, %1092 : vector<16x128xf32>
    %1094 = vector.extract_strided_slice %1062 {offsets = [8, 0], sizes = [1, 128], strides = [1, 1]} : vector<16x128xf32> to vector<1x128xf32>
    %1095 = vector.broadcast %1094 : vector<1x128xf32> to vector<16x128xf32>
    %1096 = arith.mulf %561, %1095 : vector<16x128xf32>
    %1097 = arith.addf %1093, %1096 : vector<16x128xf32>
    %1098 = vector.extract_strided_slice %1062 {offsets = [9, 0], sizes = [1, 128], strides = [1, 1]} : vector<16x128xf32> to vector<1x128xf32>
    %1099 = vector.broadcast %1098 : vector<1x128xf32> to vector<16x128xf32>
    %1100 = arith.mulf %563, %1099 : vector<16x128xf32>
    %1101 = arith.addf %1097, %1100 : vector<16x128xf32>
    %1102 = vector.extract_strided_slice %1062 {offsets = [10, 0], sizes = [1, 128], strides = [1, 1]} : vector<16x128xf32> to vector<1x128xf32>
    %1103 = vector.broadcast %1102 : vector<1x128xf32> to vector<16x128xf32>
    %1104 = arith.mulf %565, %1103 : vector<16x128xf32>
    %1105 = arith.addf %1101, %1104 : vector<16x128xf32>
    %1106 = vector.extract_strided_slice %1062 {offsets = [11, 0], sizes = [1, 128], strides = [1, 1]} : vector<16x128xf32> to vector<1x128xf32>
    %1107 = vector.broadcast %1106 : vector<1x128xf32> to vector<16x128xf32>
    %1108 = arith.mulf %567, %1107 : vector<16x128xf32>
    %1109 = arith.addf %1105, %1108 : vector<16x128xf32>
    %1110 = vector.extract_strided_slice %1062 {offsets = [12, 0], sizes = [1, 128], strides = [1, 1]} : vector<16x128xf32> to vector<1x128xf32>
    %1111 = vector.broadcast %1110 : vector<1x128xf32> to vector<16x128xf32>
    %1112 = arith.mulf %569, %1111 : vector<16x128xf32>
    %1113 = arith.addf %1109, %1112 : vector<16x128xf32>
    %1114 = vector.extract_strided_slice %1062 {offsets = [13, 0], sizes = [1, 128], strides = [1, 1]} : vector<16x128xf32> to vector<1x128xf32>
    %1115 = vector.broadcast %1114 : vector<1x128xf32> to vector<16x128xf32>
    %1116 = arith.mulf %571, %1115 : vector<16x128xf32>
    %1117 = arith.addf %1113, %1116 : vector<16x128xf32>
    %1118 = vector.extract_strided_slice %1062 {offsets = [14, 0], sizes = [1, 128], strides = [1, 1]} : vector<16x128xf32> to vector<1x128xf32>
    %1119 = vector.broadcast %1118 : vector<1x128xf32> to vector<16x128xf32>
    %1120 = arith.mulf %573, %1119 : vector<16x128xf32>
    %1121 = arith.addf %1117, %1120 : vector<16x128xf32>
    %1122 = vector.extract_strided_slice %1062 {offsets = [15, 0], sizes = [1, 128], strides = [1, 1]} : vector<16x128xf32> to vector<1x128xf32>
    %1123 = vector.broadcast %1122 : vector<1x128xf32> to vector<16x128xf32>
    %1124 = arith.mulf %575, %1123 : vector<16x128xf32>
    %1125 = arith.addf %1121, %1124 : vector<16x128xf32>
    %1126 = arith.mulf %1125, %591 : vector<16x128xf32>
    %c112_56 = arith.constant 112 : index
    %c0_57 = arith.constant 0 : index
    %1127 = vector.load %arg5[%c112_56, %c0_57] : memref<256x128xf32, #tpu.memory_space<vmem>>, vector<16x128xf32>
    tpu.vector_store %arg5[%c112_56, %c0_57], %1126 {strides = array<i32>} : memref<256x128xf32, #tpu.memory_space<vmem>>, vector<16x128xf32>,
    %c128 = arith.constant 128 : index
    %c0_58 = arith.constant 0 : index
    %1128 = vector.load %arg1[%c128, %c0_58] : memref<256x128xbf16, #tpu.memory_space<vmem>>, vector<16x128xbf16>
    %1129 = arith.extf %1128 : vector<16x128xbf16> to vector<16x128xf32>
    %c128_59 = arith.constant 128 : index
    %c0_60 = arith.constant 0 : index
    %1130 = vector.load %arg2[%c128_59, %c0_60] : memref<256x128xbf16, #tpu.memory_space<vmem>>, vector<16x128xbf16>
    %1131 = arith.extf %1130 : vector<16x128xbf16> to vector<16x128xf32>
    %1132 = vector.extract_strided_slice %1131 {offsets = [0, 0], sizes = [1, 128], strides = [1, 1]} : vector<16x128xf32> to vector<1x128xf32>
    %1133 = vector.broadcast %1132 : vector<1x128xf32> to vector<16x128xf32>
    %1134 = arith.mulf %1129, %1133 : vector<16x128xf32>
    %1135 = vector.extract_strided_slice %1131 {offsets = [1, 0], sizes = [1, 128], strides = [1, 1]} : vector<16x128xf32> to vector<1x128xf32>
    %1136 = vector.broadcast %1135 : vector<1x128xf32> to vector<16x128xf32>
    %1137 = arith.mulf %1129, %1136 : vector<16x128xf32>
    %1138 = vector.extract_strided_slice %1131 {offsets = [2, 0], sizes = [1, 128], strides = [1, 1]} : vector<16x128xf32> to vector<1x128xf32>
    %1139 = vector.broadcast %1138 : vector<1x128xf32> to vector<16x128xf32>
    %1140 = arith.mulf %1129, %1139 : vector<16x128xf32>
    %1141 = vector.extract_strided_slice %1131 {offsets = [3, 0], sizes = [1, 128], strides = [1, 1]} : vector<16x128xf32> to vector<1x128xf32>
    %1142 = vector.broadcast %1141 : vector<1x128xf32> to vector<16x128xf32>
    %1143 = arith.mulf %1129, %1142 : vector<16x128xf32>
    %1144 = vector.extract_strided_slice %1131 {offsets = [4, 0], sizes = [1, 128], strides = [1, 1]} : vector<16x128xf32> to vector<1x128xf32>
    %1145 = vector.broadcast %1144 : vector<1x128xf32> to vector<16x128xf32>
    %1146 = arith.mulf %1129, %1145 : vector<16x128xf32>
    %1147 = vector.extract_strided_slice %1131 {offsets = [5, 0], sizes = [1, 128], strides = [1, 1]} : vector<16x128xf32> to vector<1x128xf32>
    %1148 = vector.broadcast %1147 : vector<1x128xf32> to vector<16x128xf32>
    %1149 = arith.mulf %1129, %1148 : vector<16x128xf32>
    %1150 = vector.extract_strided_slice %1131 {offsets = [6, 0], sizes = [1, 128], strides = [1, 1]} : vector<16x128xf32> to vector<1x128xf32>
    %1151 = vector.broadcast %1150 : vector<1x128xf32> to vector<16x128xf32>
    %1152 = arith.mulf %1129, %1151 : vector<16x128xf32>
    %1153 = vector.extract_strided_slice %1131 {offsets = [7, 0], sizes = [1, 128], strides = [1, 1]} : vector<16x128xf32> to vector<1x128xf32>
    %1154 = vector.broadcast %1153 : vector<1x128xf32> to vector<16x128xf32>
    %1155 = arith.mulf %1129, %1154 : vector<16x128xf32>
    %1156 = vector.extract_strided_slice %1131 {offsets = [8, 0], sizes = [1, 128], strides = [1, 1]} : vector<16x128xf32> to vector<1x128xf32>
    %1157 = vector.broadcast %1156 : vector<1x128xf32> to vector<16x128xf32>
    %1158 = arith.mulf %1129, %1157 : vector<16x128xf32>
    %1159 = vector.extract_strided_slice %1131 {offsets = [9, 0], sizes = [1, 128], strides = [1, 1]} : vector<16x128xf32> to vector<1x128xf32>
    %1160 = vector.broadcast %1159 : vector<1x128xf32> to vector<16x128xf32>
    %1161 = arith.mulf %1129, %1160 : vector<16x128xf32>
    %1162 = vector.extract_strided_slice %1131 {offsets = [10, 0], sizes = [1, 128], strides = [1, 1]} : vector<16x128xf32> to vector<1x128xf32>
    %1163 = vector.broadcast %1162 : vector<1x128xf32> to vector<16x128xf32>
    %1164 = arith.mulf %1129, %1163 : vector<16x128xf32>
    %1165 = vector.extract_strided_slice %1131 {offsets = [11, 0], sizes = [1, 128], strides = [1, 1]} : vector<16x128xf32> to vector<1x128xf32>
    %1166 = vector.broadcast %1165 : vector<1x128xf32> to vector<16x128xf32>
    %1167 = arith.mulf %1129, %1166 : vector<16x128xf32>
    %1168 = vector.extract_strided_slice %1131 {offsets = [12, 0], sizes = [1, 128], strides = [1, 1]} : vector<16x128xf32> to vector<1x128xf32>
    %1169 = vector.broadcast %1168 : vector<1x128xf32> to vector<16x128xf32>
    %1170 = arith.mulf %1129, %1169 : vector<16x128xf32>
    %1171 = vector.extract_strided_slice %1131 {offsets = [13, 0], sizes = [1, 128], strides = [1, 1]} : vector<16x128xf32> to vector<1x128xf32>
    %1172 = vector.broadcast %1171 : vector<1x128xf32> to vector<16x128xf32>
    %1173 = arith.mulf %1129, %1172 : vector<16x128xf32>
    %1174 = vector.extract_strided_slice %1131 {offsets = [14, 0], sizes = [1, 128], strides = [1, 1]} : vector<16x128xf32> to vector<1x128xf32>
    %1175 = vector.broadcast %1174 : vector<1x128xf32> to vector<16x128xf32>
    %1176 = arith.mulf %1129, %1175 : vector<16x128xf32>
    %1177 = vector.extract_strided_slice %1131 {offsets = [15, 0], sizes = [1, 128], strides = [1, 1]} : vector<16x128xf32> to vector<1x128xf32>
    %1178 = vector.broadcast %1177 : vector<1x128xf32> to vector<16x128xf32>
    %1179 = arith.mulf %1129, %1178 : vector<16x128xf32>
    %c144 = arith.constant 144 : index
    %c0_61 = arith.constant 0 : index
    %1180 = vector.load %arg1[%c144, %c0_61] : memref<256x128xbf16, #tpu.memory_space<vmem>>, vector<16x128xbf16>
    %1181 = arith.extf %1180 : vector<16x128xbf16> to vector<16x128xf32>
    %c144_62 = arith.constant 144 : index
    %c0_63 = arith.constant 0 : index
    %1182 = vector.load %arg2[%c144_62, %c0_63] : memref<256x128xbf16, #tpu.memory_space<vmem>>, vector<16x128xbf16>
    %1183 = arith.extf %1182 : vector<16x128xbf16> to vector<16x128xf32>
    %1184 = vector.extract_strided_slice %1183 {offsets = [0, 0], sizes = [1, 128], strides = [1, 1]} : vector<16x128xf32> to vector<1x128xf32>
    %1185 = vector.broadcast %1184 : vector<1x128xf32> to vector<16x128xf32>
    %1186 = arith.mulf %1181, %1185 : vector<16x128xf32>
    %1187 = arith.addf %1134, %1186 : vector<16x128xf32>
    %1188 = vector.extract_strided_slice %1183 {offsets = [1, 0], sizes = [1, 128], strides = [1, 1]} : vector<16x128xf32> to vector<1x128xf32>
    %1189 = vector.broadcast %1188 : vector<1x128xf32> to vector<16x128xf32>
    %1190 = arith.mulf %1181, %1189 : vector<16x128xf32>
    %1191 = arith.addf %1137, %1190 : vector<16x128xf32>
    %1192 = vector.extract_strided_slice %1183 {offsets = [2, 0], sizes = [1, 128], strides = [1, 1]} : vector<16x128xf32> to vector<1x128xf32>
    %1193 = vector.broadcast %1192 : vector<1x128xf32> to vector<16x128xf32>
    %1194 = arith.mulf %1181, %1193 : vector<16x128xf32>
    %1195 = arith.addf %1140, %1194 : vector<16x128xf32>
    %1196 = vector.extract_strided_slice %1183 {offsets = [3, 0], sizes = [1, 128], strides = [1, 1]} : vector<16x128xf32> to vector<1x128xf32>
    %1197 = vector.broadcast %1196 : vector<1x128xf32> to vector<16x128xf32>
    %1198 = arith.mulf %1181, %1197 : vector<16x128xf32>
    %1199 = arith.addf %1143, %1198 : vector<16x128xf32>
    %1200 = vector.extract_strided_slice %1183 {offsets = [4, 0], sizes = [1, 128], strides = [1, 1]} : vector<16x128xf32> to vector<1x128xf32>
    %1201 = vector.broadcast %1200 : vector<1x128xf32> to vector<16x128xf32>
    %1202 = arith.mulf %1181, %1201 : vector<16x128xf32>
    %1203 = arith.addf %1146, %1202 : vector<16x128xf32>
    %1204 = vector.extract_strided_slice %1183 {offsets = [5, 0], sizes = [1, 128], strides = [1, 1]} : vector<16x128xf32> to vector<1x128xf32>
    %1205 = vector.broadcast %1204 : vector<1x128xf32> to vector<16x128xf32>
    %1206 = arith.mulf %1181, %1205 : vector<16x128xf32>
    %1207 = arith.addf %1149, %1206 : vector<16x128xf32>
    %1208 = vector.extract_strided_slice %1183 {offsets = [6, 0], sizes = [1, 128], strides = [1, 1]} : vector<16x128xf32> to vector<1x128xf32>
    %1209 = vector.broadcast %1208 : vector<1x128xf32> to vector<16x128xf32>
    %1210 = arith.mulf %1181, %1209 : vector<16x128xf32>
    %1211 = arith.addf %1152, %1210 : vector<16x128xf32>
    %1212 = vector.extract_strided_slice %1183 {offsets = [7, 0], sizes = [1, 128], strides = [1, 1]} : vector<16x128xf32> to vector<1x128xf32>
    %1213 = vector.broadcast %1212 : vector<1x128xf32> to vector<16x128xf32>
    %1214 = arith.mulf %1181, %1213 : vector<16x128xf32>
    %1215 = arith.addf %1155, %1214 : vector<16x128xf32>
    %1216 = vector.extract_strided_slice %1183 {offsets = [8, 0], sizes = [1, 128], strides = [1, 1]} : vector<16x128xf32> to vector<1x128xf32>
    %1217 = vector.broadcast %1216 : vector<1x128xf32> to vector<16x128xf32>
    %1218 = arith.mulf %1181, %1217 : vector<16x128xf32>
    %1219 = arith.addf %1158, %1218 : vector<16x128xf32>
    %1220 = vector.extract_strided_slice %1183 {offsets = [9, 0], sizes = [1, 128], strides = [1, 1]} : vector<16x128xf32> to vector<1x128xf32>
    %1221 = vector.broadcast %1220 : vector<1x128xf32> to vector<16x128xf32>
    %1222 = arith.mulf %1181, %1221 : vector<16x128xf32>
    %1223 = arith.addf %1161, %1222 : vector<16x128xf32>
    %1224 = vector.extract_strided_slice %1183 {offsets = [10, 0], sizes = [1, 128], strides = [1, 1]} : vector<16x128xf32> to vector<1x128xf32>
    %1225 = vector.broadcast %1224 : vector<1x128xf32> to vector<16x128xf32>
    %1226 = arith.mulf %1181, %1225 : vector<16x128xf32>
    %1227 = arith.addf %1164, %1226 : vector<16x128xf32>
    %1228 = vector.extract_strided_slice %1183 {offsets = [11, 0], sizes = [1, 128], strides = [1, 1]} : vector<16x128xf32> to vector<1x128xf32>
    %1229 = vector.broadcast %1228 : vector<1x128xf32> to vector<16x128xf32>
    %1230 = arith.mulf %1181, %1229 : vector<16x128xf32>
    %1231 = arith.addf %1167, %1230 : vector<16x128xf32>
    %1232 = vector.extract_strided_slice %1183 {offsets = [12, 0], sizes = [1, 128], strides = [1, 1]} : vector<16x128xf32> to vector<1x128xf32>
    %1233 = vector.broadcast %1232 : vector<1x128xf32> to vector<16x128xf32>
    %1234 = arith.mulf %1181, %1233 : vector<16x128xf32>
    %1235 = arith.addf %1170, %1234 : vector<16x128xf32>
    %1236 = vector.extract_strided_slice %1183 {offsets = [13, 0], sizes = [1, 128], strides = [1, 1]} : vector<16x128xf32> to vector<1x128xf32>
    %1237 = vector.broadcast %1236 : vector<1x128xf32> to vector<16x128xf32>
    %1238 = arith.mulf %1181, %1237 : vector<16x128xf32>
    %1239 = arith.addf %1173, %1238 : vector<16x128xf32>
    %1240 = vector.extract_strided_slice %1183 {offsets = [14, 0], sizes = [1, 128], strides = [1, 1]} : vector<16x128xf32> to vector<1x128xf32>
    %1241 = vector.broadcast %1240 : vector<1x128xf32> to vector<16x128xf32>
    %1242 = arith.mulf %1181, %1241 : vector<16x128xf32>
    %1243 = arith.addf %1176, %1242 : vector<16x128xf32>
    %1244 = vector.extract_strided_slice %1183 {offsets = [15, 0], sizes = [1, 128], strides = [1, 1]} : vector<16x128xf32> to vector<1x128xf32>
    %1245 = vector.broadcast %1244 : vector<1x128xf32> to vector<16x128xf32>
    %1246 = arith.mulf %1181, %1245 : vector<16x128xf32>
    %1247 = arith.addf %1179, %1246 : vector<16x128xf32>
    %c160 = arith.constant 160 : index
    %c0_64 = arith.constant 0 : index
    %1248 = vector.load %arg1[%c160, %c0_64] : memref<256x128xbf16, #tpu.memory_space<vmem>>, vector<16x128xbf16>
    %1249 = arith.extf %1248 : vector<16x128xbf16> to vector<16x128xf32>
    %c160_65 = arith.constant 160 : index
    %c0_66 = arith.constant 0 : index
    %1250 = vector.load %arg2[%c160_65, %c0_66] : memref<256x128xbf16, #tpu.memory_space<vmem>>, vector<16x128xbf16>
    %1251 = arith.extf %1250 : vector<16x128xbf16> to vector<16x128xf32>
    %1252 = vector.extract_strided_slice %1251 {offsets = [0, 0], sizes = [1, 128], strides = [1, 1]} : vector<16x128xf32> to vector<1x128xf32>
    %1253 = vector.broadcast %1252 : vector<1x128xf32> to vector<16x128xf32>
    %1254 = arith.mulf %1249, %1253 : vector<16x128xf32>
    %1255 = arith.addf %1187, %1254 : vector<16x128xf32>
    %1256 = vector.extract_strided_slice %1251 {offsets = [1, 0], sizes = [1, 128], strides = [1, 1]} : vector<16x128xf32> to vector<1x128xf32>
    %1257 = vector.broadcast %1256 : vector<1x128xf32> to vector<16x128xf32>
    %1258 = arith.mulf %1249, %1257 : vector<16x128xf32>
    %1259 = arith.addf %1191, %1258 : vector<16x128xf32>
    %1260 = vector.extract_strided_slice %1251 {offsets = [2, 0], sizes = [1, 128], strides = [1, 1]} : vector<16x128xf32> to vector<1x128xf32>
    %1261 = vector.broadcast %1260 : vector<1x128xf32> to vector<16x128xf32>
    %1262 = arith.mulf %1249, %1261 : vector<16x128xf32>
    %1263 = arith.addf %1195, %1262 : vector<16x128xf32>
    %1264 = vector.extract_strided_slice %1251 {offsets = [3, 0], sizes = [1, 128], strides = [1, 1]} : vector<16x128xf32> to vector<1x128xf32>
    %1265 = vector.broadcast %1264 : vector<1x128xf32> to vector<16x128xf32>
    %1266 = arith.mulf %1249, %1265 : vector<16x128xf32>
    %1267 = arith.addf %1199, %1266 : vector<16x128xf32>
    %1268 = vector.extract_strided_slice %1251 {offsets = [4, 0], sizes = [1, 128], strides = [1, 1]} : vector<16x128xf32> to vector<1x128xf32>
    %1269 = vector.broadcast %1268 : vector<1x128xf32> to vector<16x128xf32>
    %1270 = arith.mulf %1249, %1269 : vector<16x128xf32>
    %1271 = arith.addf %1203, %1270 : vector<16x128xf32>
    %1272 = vector.extract_strided_slice %1251 {offsets = [5, 0], sizes = [1, 128], strides = [1, 1]} : vector<16x128xf32> to vector<1x128xf32>
    %1273 = vector.broadcast %1272 : vector<1x128xf32> to vector<16x128xf32>
    %1274 = arith.mulf %1249, %1273 : vector<16x128xf32>
    %1275 = arith.addf %1207, %1274 : vector<16x128xf32>
    %1276 = vector.extract_strided_slice %1251 {offsets = [6, 0], sizes = [1, 128], strides = [1, 1]} : vector<16x128xf32> to vector<1x128xf32>
    %1277 = vector.broadcast %1276 : vector<1x128xf32> to vector<16x128xf32>
    %1278 = arith.mulf %1249, %1277 : vector<16x128xf32>
    %1279 = arith.addf %1211, %1278 : vector<16x128xf32>
    %1280 = vector.extract_strided_slice %1251 {offsets = [7, 0], sizes = [1, 128], strides = [1, 1]} : vector<16x128xf32> to vector<1x128xf32>
    %1281 = vector.broadcast %1280 : vector<1x128xf32> to vector<16x128xf32>
    %1282 = arith.mulf %1249, %1281 : vector<16x128xf32>
    %1283 = arith.addf %1215, %1282 : vector<16x128xf32>
    %1284 = vector.extract_strided_slice %1251 {offsets = [8, 0], sizes = [1, 128], strides = [1, 1]} : vector<16x128xf32> to vector<1x128xf32>
    %1285 = vector.broadcast %1284 : vector<1x128xf32> to vector<16x128xf32>
    %1286 = arith.mulf %1249, %1285 : vector<16x128xf32>
    %1287 = arith.addf %1219, %1286 : vector<16x128xf32>
    %1288 = vector.extract_strided_slice %1251 {offsets = [9, 0], sizes = [1, 128], strides = [1, 1]} : vector<16x128xf32> to vector<1x128xf32>
    %1289 = vector.broadcast %1288 : vector<1x128xf32> to vector<16x128xf32>
    %1290 = arith.mulf %1249, %1289 : vector<16x128xf32>
    %1291 = arith.addf %1223, %1290 : vector<16x128xf32>
    %1292 = vector.extract_strided_slice %1251 {offsets = [10, 0], sizes = [1, 128], strides = [1, 1]} : vector<16x128xf32> to vector<1x128xf32>
    %1293 = vector.broadcast %1292 : vector<1x128xf32> to vector<16x128xf32>
    %1294 = arith.mulf %1249, %1293 : vector<16x128xf32>
    %1295 = arith.addf %1227, %1294 : vector<16x128xf32>
    %1296 = vector.extract_strided_slice %1251 {offsets = [11, 0], sizes = [1, 128], strides = [1, 1]} : vector<16x128xf32> to vector<1x128xf32>
    %1297 = vector.broadcast %1296 : vector<1x128xf32> to vector<16x128xf32>
    %1298 = arith.mulf %1249, %1297 : vector<16x128xf32>
    %1299 = arith.addf %1231, %1298 : vector<16x128xf32>
    %1300 = vector.extract_strided_slice %1251 {offsets = [12, 0], sizes = [1, 128], strides = [1, 1]} : vector<16x128xf32> to vector<1x128xf32>
    %1301 = vector.broadcast %1300 : vector<1x128xf32> to vector<16x128xf32>
    %1302 = arith.mulf %1249, %1301 : vector<16x128xf32>
    %1303 = arith.addf %1235, %1302 : vector<16x128xf32>
    %1304 = vector.extract_strided_slice %1251 {offsets = [13, 0], sizes = [1, 128], strides = [1, 1]} : vector<16x128xf32> to vector<1x128xf32>
    %1305 = vector.broadcast %1304 : vector<1x128xf32> to vector<16x128xf32>
    %1306 = arith.mulf %1249, %1305 : vector<16x128xf32>
    %1307 = arith.addf %1239, %1306 : vector<16x128xf32>
    %1308 = vector.extract_strided_slice %1251 {offsets = [14, 0], sizes = [1, 128], strides = [1, 1]} : vector<16x128xf32> to vector<1x128xf32>
    %1309 = vector.broadcast %1308 : vector<1x128xf32> to vector<16x128xf32>
    %1310 = arith.mulf %1249, %1309 : vector<16x128xf32>
    %1311 = arith.addf %1243, %1310 : vector<16x128xf32>
    %1312 = vector.extract_strided_slice %1251 {offsets = [15, 0], sizes = [1, 128], strides = [1, 1]} : vector<16x128xf32> to vector<1x128xf32>
    %1313 = vector.broadcast %1312 : vector<1x128xf32> to vector<16x128xf32>
    %1314 = arith.mulf %1249, %1313 : vector<16x128xf32>
    %1315 = arith.addf %1247, %1314 : vector<16x128xf32>
    %c176 = arith.constant 176 : index
    %c0_67 = arith.constant 0 : index
    %1316 = vector.load %arg1[%c176, %c0_67] : memref<256x128xbf16, #tpu.memory_space<vmem>>, vector<16x128xbf16>
    %1317 = arith.extf %1316 : vector<16x128xbf16> to vector<16x128xf32>
    %c176_68 = arith.constant 176 : index
    %c0_69 = arith.constant 0 : index
    %1318 = vector.load %arg2[%c176_68, %c0_69] : memref<256x128xbf16, #tpu.memory_space<vmem>>, vector<16x128xbf16>
    %1319 = arith.extf %1318 : vector<16x128xbf16> to vector<16x128xf32>
    %1320 = vector.extract_strided_slice %1319 {offsets = [0, 0], sizes = [1, 128], strides = [1, 1]} : vector<16x128xf32> to vector<1x128xf32>
    %1321 = vector.broadcast %1320 : vector<1x128xf32> to vector<16x128xf32>
    %1322 = arith.mulf %1317, %1321 : vector<16x128xf32>
    %1323 = arith.addf %1255, %1322 : vector<16x128xf32>
    %1324 = vector.extract_strided_slice %1319 {offsets = [1, 0], sizes = [1, 128], strides = [1, 1]} : vector<16x128xf32> to vector<1x128xf32>
    %1325 = vector.broadcast %1324 : vector<1x128xf32> to vector<16x128xf32>
    %1326 = arith.mulf %1317, %1325 : vector<16x128xf32>
    %1327 = arith.addf %1259, %1326 : vector<16x128xf32>
    %1328 = vector.extract_strided_slice %1319 {offsets = [2, 0], sizes = [1, 128], strides = [1, 1]} : vector<16x128xf32> to vector<1x128xf32>
    %1329 = vector.broadcast %1328 : vector<1x128xf32> to vector<16x128xf32>
    %1330 = arith.mulf %1317, %1329 : vector<16x128xf32>
    %1331 = arith.addf %1263, %1330 : vector<16x128xf32>
    %1332 = vector.extract_strided_slice %1319 {offsets = [3, 0], sizes = [1, 128], strides = [1, 1]} : vector<16x128xf32> to vector<1x128xf32>
    %1333 = vector.broadcast %1332 : vector<1x128xf32> to vector<16x128xf32>
    %1334 = arith.mulf %1317, %1333 : vector<16x128xf32>
    %1335 = arith.addf %1267, %1334 : vector<16x128xf32>
    %1336 = vector.extract_strided_slice %1319 {offsets = [4, 0], sizes = [1, 128], strides = [1, 1]} : vector<16x128xf32> to vector<1x128xf32>
    %1337 = vector.broadcast %1336 : vector<1x128xf32> to vector<16x128xf32>
    %1338 = arith.mulf %1317, %1337 : vector<16x128xf32>
    %1339 = arith.addf %1271, %1338 : vector<16x128xf32>
    %1340 = vector.extract_strided_slice %1319 {offsets = [5, 0], sizes = [1, 128], strides = [1, 1]} : vector<16x128xf32> to vector<1x128xf32>
    %1341 = vector.broadcast %1340 : vector<1x128xf32> to vector<16x128xf32>
    %1342 = arith.mulf %1317, %1341 : vector<16x128xf32>
    %1343 = arith.addf %1275, %1342 : vector<16x128xf32>
    %1344 = vector.extract_strided_slice %1319 {offsets = [6, 0], sizes = [1, 128], strides = [1, 1]} : vector<16x128xf32> to vector<1x128xf32>
    %1345 = vector.broadcast %1344 : vector<1x128xf32> to vector<16x128xf32>
    %1346 = arith.mulf %1317, %1345 : vector<16x128xf32>
    %1347 = arith.addf %1279, %1346 : vector<16x128xf32>
    %1348 = vector.extract_strided_slice %1319 {offsets = [7, 0], sizes = [1, 128], strides = [1, 1]} : vector<16x128xf32> to vector<1x128xf32>
    %1349 = vector.broadcast %1348 : vector<1x128xf32> to vector<16x128xf32>
    %1350 = arith.mulf %1317, %1349 : vector<16x128xf32>
    %1351 = arith.addf %1283, %1350 : vector<16x128xf32>
    %1352 = vector.extract_strided_slice %1319 {offsets = [8, 0], sizes = [1, 128], strides = [1, 1]} : vector<16x128xf32> to vector<1x128xf32>
    %1353 = vector.broadcast %1352 : vector<1x128xf32> to vector<16x128xf32>
    %1354 = arith.mulf %1317, %1353 : vector<16x128xf32>
    %1355 = arith.addf %1287, %1354 : vector<16x128xf32>
    %1356 = vector.extract_strided_slice %1319 {offsets = [9, 0], sizes = [1, 128], strides = [1, 1]} : vector<16x128xf32> to vector<1x128xf32>
    %1357 = vector.broadcast %1356 : vector<1x128xf32> to vector<16x128xf32>
    %1358 = arith.mulf %1317, %1357 : vector<16x128xf32>
    %1359 = arith.addf %1291, %1358 : vector<16x128xf32>
    %1360 = vector.extract_strided_slice %1319 {offsets = [10, 0], sizes = [1, 128], strides = [1, 1]} : vector<16x128xf32> to vector<1x128xf32>
    %1361 = vector.broadcast %1360 : vector<1x128xf32> to vector<16x128xf32>
    %1362 = arith.mulf %1317, %1361 : vector<16x128xf32>
    %1363 = arith.addf %1295, %1362 : vector<16x128xf32>
    %1364 = vector.extract_strided_slice %1319 {offsets = [11, 0], sizes = [1, 128], strides = [1, 1]} : vector<16x128xf32> to vector<1x128xf32>
    %1365 = vector.broadcast %1364 : vector<1x128xf32> to vector<16x128xf32>
    %1366 = arith.mulf %1317, %1365 : vector<16x128xf32>
    %1367 = arith.addf %1299, %1366 : vector<16x128xf32>
    %1368 = vector.extract_strided_slice %1319 {offsets = [12, 0], sizes = [1, 128], strides = [1, 1]} : vector<16x128xf32> to vector<1x128xf32>
    %1369 = vector.broadcast %1368 : vector<1x128xf32> to vector<16x128xf32>
    %1370 = arith.mulf %1317, %1369 : vector<16x128xf32>
    %1371 = arith.addf %1303, %1370 : vector<16x128xf32>
    %1372 = vector.extract_strided_slice %1319 {offsets = [13, 0], sizes = [1, 128], strides = [1, 1]} : vector<16x128xf32> to vector<1x128xf32>
    %1373 = vector.broadcast %1372 : vector<1x128xf32> to vector<16x128xf32>
    %1374 = arith.mulf %1317, %1373 : vector<16x128xf32>
    %1375 = arith.addf %1307, %1374 : vector<16x128xf32>
    %1376 = vector.extract_strided_slice %1319 {offsets = [14, 0], sizes = [1, 128], strides = [1, 1]} : vector<16x128xf32> to vector<1x128xf32>
    %1377 = vector.broadcast %1376 : vector<1x128xf32> to vector<16x128xf32>
    %1378 = arith.mulf %1317, %1377 : vector<16x128xf32>
    %1379 = arith.addf %1311, %1378 : vector<16x128xf32>
    %1380 = vector.extract_strided_slice %1319 {offsets = [15, 0], sizes = [1, 128], strides = [1, 1]} : vector<16x128xf32> to vector<1x128xf32>
    %1381 = vector.broadcast %1380 : vector<1x128xf32> to vector<16x128xf32>
    %1382 = arith.mulf %1317, %1381 : vector<16x128xf32>
    %1383 = arith.addf %1315, %1382 : vector<16x128xf32>
    %c192 = arith.constant 192 : index
    %c0_70 = arith.constant 0 : index
    %1384 = vector.load %arg1[%c192, %c0_70] : memref<256x128xbf16, #tpu.memory_space<vmem>>, vector<16x128xbf16>
    %1385 = arith.extf %1384 : vector<16x128xbf16> to vector<16x128xf32>
    %c192_71 = arith.constant 192 : index
    %c0_72 = arith.constant 0 : index
    %1386 = vector.load %arg2[%c192_71, %c0_72] : memref<256x128xbf16, #tpu.memory_space<vmem>>, vector<16x128xbf16>
    %1387 = arith.extf %1386 : vector<16x128xbf16> to vector<16x128xf32>
    %1388 = vector.extract_strided_slice %1387 {offsets = [0, 0], sizes = [1, 128], strides = [1, 1]} : vector<16x128xf32> to vector<1x128xf32>
    %1389 = vector.broadcast %1388 : vector<1x128xf32> to vector<16x128xf32>
    %1390 = arith.mulf %1385, %1389 : vector<16x128xf32>
    %1391 = arith.addf %1323, %1390 : vector<16x128xf32>
    %1392 = vector.extract_strided_slice %1387 {offsets = [1, 0], sizes = [1, 128], strides = [1, 1]} : vector<16x128xf32> to vector<1x128xf32>
    %1393 = vector.broadcast %1392 : vector<1x128xf32> to vector<16x128xf32>
    %1394 = arith.mulf %1385, %1393 : vector<16x128xf32>
    %1395 = arith.addf %1327, %1394 : vector<16x128xf32>
    %1396 = vector.extract_strided_slice %1387 {offsets = [2, 0], sizes = [1, 128], strides = [1, 1]} : vector<16x128xf32> to vector<1x128xf32>
    %1397 = vector.broadcast %1396 : vector<1x128xf32> to vector<16x128xf32>
    %1398 = arith.mulf %1385, %1397 : vector<16x128xf32>
    %1399 = arith.addf %1331, %1398 : vector<16x128xf32>
    %1400 = vector.extract_strided_slice %1387 {offsets = [3, 0], sizes = [1, 128], strides = [1, 1]} : vector<16x128xf32> to vector<1x128xf32>
    %1401 = vector.broadcast %1400 : vector<1x128xf32> to vector<16x128xf32>
    %1402 = arith.mulf %1385, %1401 : vector<16x128xf32>
    %1403 = arith.addf %1335, %1402 : vector<16x128xf32>
    %1404 = vector.extract_strided_slice %1387 {offsets = [4, 0], sizes = [1, 128], strides = [1, 1]} : vector<16x128xf32> to vector<1x128xf32>
    %1405 = vector.broadcast %1404 : vector<1x128xf32> to vector<16x128xf32>
    %1406 = arith.mulf %1385, %1405 : vector<16x128xf32>
    %1407 = arith.addf %1339, %1406 : vector<16x128xf32>
    %1408 = vector.extract_strided_slice %1387 {offsets = [5, 0], sizes = [1, 128], strides = [1, 1]} : vector<16x128xf32> to vector<1x128xf32>
    %1409 = vector.broadcast %1408 : vector<1x128xf32> to vector<16x128xf32>
    %1410 = arith.mulf %1385, %1409 : vector<16x128xf32>
    %1411 = arith.addf %1343, %1410 : vector<16x128xf32>
    %1412 = vector.extract_strided_slice %1387 {offsets = [6, 0], sizes = [1, 128], strides = [1, 1]} : vector<16x128xf32> to vector<1x128xf32>
    %1413 = vector.broadcast %1412 : vector<1x128xf32> to vector<16x128xf32>
    %1414 = arith.mulf %1385, %1413 : vector<16x128xf32>
    %1415 = arith.addf %1347, %1414 : vector<16x128xf32>
    %1416 = vector.extract_strided_slice %1387 {offsets = [7, 0], sizes = [1, 128], strides = [1, 1]} : vector<16x128xf32> to vector<1x128xf32>
    %1417 = vector.broadcast %1416 : vector<1x128xf32> to vector<16x128xf32>
    %1418 = arith.mulf %1385, %1417 : vector<16x128xf32>
    %1419 = arith.addf %1351, %1418 : vector<16x128xf32>
    %1420 = vector.extract_strided_slice %1387 {offsets = [8, 0], sizes = [1, 128], strides = [1, 1]} : vector<16x128xf32> to vector<1x128xf32>
    %1421 = vector.broadcast %1420 : vector<1x128xf32> to vector<16x128xf32>
    %1422 = arith.mulf %1385, %1421 : vector<16x128xf32>
    %1423 = arith.addf %1355, %1422 : vector<16x128xf32>
    %1424 = vector.extract_strided_slice %1387 {offsets = [9, 0], sizes = [1, 128], strides = [1, 1]} : vector<16x128xf32> to vector<1x128xf32>
    %1425 = vector.broadcast %1424 : vector<1x128xf32> to vector<16x128xf32>
    %1426 = arith.mulf %1385, %1425 : vector<16x128xf32>
    %1427 = arith.addf %1359, %1426 : vector<16x128xf32>
    %1428 = vector.extract_strided_slice %1387 {offsets = [10, 0], sizes = [1, 128], strides = [1, 1]} : vector<16x128xf32> to vector<1x128xf32>
    %1429 = vector.broadcast %1428 : vector<1x128xf32> to vector<16x128xf32>
    %1430 = arith.mulf %1385, %1429 : vector<16x128xf32>
    %1431 = arith.addf %1363, %1430 : vector<16x128xf32>
    %1432 = vector.extract_strided_slice %1387 {offsets = [11, 0], sizes = [1, 128], strides = [1, 1]} : vector<16x128xf32> to vector<1x128xf32>
    %1433 = vector.broadcast %1432 : vector<1x128xf32> to vector<16x128xf32>
    %1434 = arith.mulf %1385, %1433 : vector<16x128xf32>
    %1435 = arith.addf %1367, %1434 : vector<16x128xf32>
    %1436 = vector.extract_strided_slice %1387 {offsets = [12, 0], sizes = [1, 128], strides = [1, 1]} : vector<16x128xf32> to vector<1x128xf32>
    %1437 = vector.broadcast %1436 : vector<1x128xf32> to vector<16x128xf32>
    %1438 = arith.mulf %1385, %1437 : vector<16x128xf32>
    %1439 = arith.addf %1371, %1438 : vector<16x128xf32>
    %1440 = vector.extract_strided_slice %1387 {offsets = [13, 0], sizes = [1, 128], strides = [1, 1]} : vector<16x128xf32> to vector<1x128xf32>
    %1441 = vector.broadcast %1440 : vector<1x128xf32> to vector<16x128xf32>
    %1442 = arith.mulf %1385, %1441 : vector<16x128xf32>
    %1443 = arith.addf %1375, %1442 : vector<16x128xf32>
    %1444 = vector.extract_strided_slice %1387 {offsets = [14, 0], sizes = [1, 128], strides = [1, 1]} : vector<16x128xf32> to vector<1x128xf32>
    %1445 = vector.broadcast %1444 : vector<1x128xf32> to vector<16x128xf32>
    %1446 = arith.mulf %1385, %1445 : vector<16x128xf32>
    %1447 = arith.addf %1379, %1446 : vector<16x128xf32>
    %1448 = vector.extract_strided_slice %1387 {offsets = [15, 0], sizes = [1, 128], strides = [1, 1]} : vector<16x128xf32> to vector<1x128xf32>
    %1449 = vector.broadcast %1448 : vector<1x128xf32> to vector<16x128xf32>
    %1450 = arith.mulf %1385, %1449 : vector<16x128xf32>
    %1451 = arith.addf %1383, %1450 : vector<16x128xf32>
    %c208 = arith.constant 208 : index
    %c0_73 = arith.constant 0 : index
    %1452 = vector.load %arg1[%c208, %c0_73] : memref<256x128xbf16, #tpu.memory_space<vmem>>, vector<16x128xbf16>
    %1453 = arith.extf %1452 : vector<16x128xbf16> to vector<16x128xf32>
    %c208_74 = arith.constant 208 : index
    %c0_75 = arith.constant 0 : index
    %1454 = vector.load %arg2[%c208_74, %c0_75] : memref<256x128xbf16, #tpu.memory_space<vmem>>, vector<16x128xbf16>
    %1455 = arith.extf %1454 : vector<16x128xbf16> to vector<16x128xf32>
    %1456 = vector.extract_strided_slice %1455 {offsets = [0, 0], sizes = [1, 128], strides = [1, 1]} : vector<16x128xf32> to vector<1x128xf32>
    %1457 = vector.broadcast %1456 : vector<1x128xf32> to vector<16x128xf32>
    %1458 = arith.mulf %1453, %1457 : vector<16x128xf32>
    %1459 = arith.addf %1391, %1458 : vector<16x128xf32>
    %1460 = vector.extract_strided_slice %1455 {offsets = [1, 0], sizes = [1, 128], strides = [1, 1]} : vector<16x128xf32> to vector<1x128xf32>
    %1461 = vector.broadcast %1460 : vector<1x128xf32> to vector<16x128xf32>
    %1462 = arith.mulf %1453, %1461 : vector<16x128xf32>
    %1463 = arith.addf %1395, %1462 : vector<16x128xf32>
    %1464 = vector.extract_strided_slice %1455 {offsets = [2, 0], sizes = [1, 128], strides = [1, 1]} : vector<16x128xf32> to vector<1x128xf32>
    %1465 = vector.broadcast %1464 : vector<1x128xf32> to vector<16x128xf32>
    %1466 = arith.mulf %1453, %1465 : vector<16x128xf32>
    %1467 = arith.addf %1399, %1466 : vector<16x128xf32>
    %1468 = vector.extract_strided_slice %1455 {offsets = [3, 0], sizes = [1, 128], strides = [1, 1]} : vector<16x128xf32> to vector<1x128xf32>
    %1469 = vector.broadcast %1468 : vector<1x128xf32> to vector<16x128xf32>
    %1470 = arith.mulf %1453, %1469 : vector<16x128xf32>
    %1471 = arith.addf %1403, %1470 : vector<16x128xf32>
    %1472 = vector.extract_strided_slice %1455 {offsets = [4, 0], sizes = [1, 128], strides = [1, 1]} : vector<16x128xf32> to vector<1x128xf32>
    %1473 = vector.broadcast %1472 : vector<1x128xf32> to vector<16x128xf32>
    %1474 = arith.mulf %1453, %1473 : vector<16x128xf32>
    %1475 = arith.addf %1407, %1474 : vector<16x128xf32>
    %1476 = vector.extract_strided_slice %1455 {offsets = [5, 0], sizes = [1, 128], strides = [1, 1]} : vector<16x128xf32> to vector<1x128xf32>
    %1477 = vector.broadcast %1476 : vector<1x128xf32> to vector<16x128xf32>
    %1478 = arith.mulf %1453, %1477 : vector<16x128xf32>
    %1479 = arith.addf %1411, %1478 : vector<16x128xf32>
    %1480 = vector.extract_strided_slice %1455 {offsets = [6, 0], sizes = [1, 128], strides = [1, 1]} : vector<16x128xf32> to vector<1x128xf32>
    %1481 = vector.broadcast %1480 : vector<1x128xf32> to vector<16x128xf32>
    %1482 = arith.mulf %1453, %1481 : vector<16x128xf32>
    %1483 = arith.addf %1415, %1482 : vector<16x128xf32>
    %1484 = vector.extract_strided_slice %1455 {offsets = [7, 0], sizes = [1, 128], strides = [1, 1]} : vector<16x128xf32> to vector<1x128xf32>
    %1485 = vector.broadcast %1484 : vector<1x128xf32> to vector<16x128xf32>
    %1486 = arith.mulf %1453, %1485 : vector<16x128xf32>
    %1487 = arith.addf %1419, %1486 : vector<16x128xf32>
    %1488 = vector.extract_strided_slice %1455 {offsets = [8, 0], sizes = [1, 128], strides = [1, 1]} : vector<16x128xf32> to vector<1x128xf32>
    %1489 = vector.broadcast %1488 : vector<1x128xf32> to vector<16x128xf32>
    %1490 = arith.mulf %1453, %1489 : vector<16x128xf32>
    %1491 = arith.addf %1423, %1490 : vector<16x128xf32>
    %1492 = vector.extract_strided_slice %1455 {offsets = [9, 0], sizes = [1, 128], strides = [1, 1]} : vector<16x128xf32> to vector<1x128xf32>
    %1493 = vector.broadcast %1492 : vector<1x128xf32> to vector<16x128xf32>
    %1494 = arith.mulf %1453, %1493 : vector<16x128xf32>
    %1495 = arith.addf %1427, %1494 : vector<16x128xf32>
    %1496 = vector.extract_strided_slice %1455 {offsets = [10, 0], sizes = [1, 128], strides = [1, 1]} : vector<16x128xf32> to vector<1x128xf32>
    %1497 = vector.broadcast %1496 : vector<1x128xf32> to vector<16x128xf32>
    %1498 = arith.mulf %1453, %1497 : vector<16x128xf32>
    %1499 = arith.addf %1431, %1498 : vector<16x128xf32>
    %1500 = vector.extract_strided_slice %1455 {offsets = [11, 0], sizes = [1, 128], strides = [1, 1]} : vector<16x128xf32> to vector<1x128xf32>
    %1501 = vector.broadcast %1500 : vector<1x128xf32> to vector<16x128xf32>
    %1502 = arith.mulf %1453, %1501 : vector<16x128xf32>
    %1503 = arith.addf %1435, %1502 : vector<16x128xf32>
    %1504 = vector.extract_strided_slice %1455 {offsets = [12, 0], sizes = [1, 128], strides = [1, 1]} : vector<16x128xf32> to vector<1x128xf32>
    %1505 = vector.broadcast %1504 : vector<1x128xf32> to vector<16x128xf32>
    %1506 = arith.mulf %1453, %1505 : vector<16x128xf32>
    %1507 = arith.addf %1439, %1506 : vector<16x128xf32>
    %1508 = vector.extract_strided_slice %1455 {offsets = [13, 0], sizes = [1, 128], strides = [1, 1]} : vector<16x128xf32> to vector<1x128xf32>
    %1509 = vector.broadcast %1508 : vector<1x128xf32> to vector<16x128xf32>
    %1510 = arith.mulf %1453, %1509 : vector<16x128xf32>
    %1511 = arith.addf %1443, %1510 : vector<16x128xf32>
    %1512 = vector.extract_strided_slice %1455 {offsets = [14, 0], sizes = [1, 128], strides = [1, 1]} : vector<16x128xf32> to vector<1x128xf32>
    %1513 = vector.broadcast %1512 : vector<1x128xf32> to vector<16x128xf32>
    %1514 = arith.mulf %1453, %1513 : vector<16x128xf32>
    %1515 = arith.addf %1447, %1514 : vector<16x128xf32>
    %1516 = vector.extract_strided_slice %1455 {offsets = [15, 0], sizes = [1, 128], strides = [1, 1]} : vector<16x128xf32> to vector<1x128xf32>
    %1517 = vector.broadcast %1516 : vector<1x128xf32> to vector<16x128xf32>
    %1518 = arith.mulf %1453, %1517 : vector<16x128xf32>
    %1519 = arith.addf %1451, %1518 : vector<16x128xf32>
    %c224 = arith.constant 224 : index
    %c0_76 = arith.constant 0 : index
    %1520 = vector.load %arg1[%c224, %c0_76] : memref<256x128xbf16, #tpu.memory_space<vmem>>, vector<16x128xbf16>
    %1521 = arith.extf %1520 : vector<16x128xbf16> to vector<16x128xf32>
    %c224_77 = arith.constant 224 : index
    %c0_78 = arith.constant 0 : index
    %1522 = vector.load %arg2[%c224_77, %c0_78] : memref<256x128xbf16, #tpu.memory_space<vmem>>, vector<16x128xbf16>
    %1523 = arith.extf %1522 : vector<16x128xbf16> to vector<16x128xf32>
    %1524 = vector.extract_strided_slice %1523 {offsets = [0, 0], sizes = [1, 128], strides = [1, 1]} : vector<16x128xf32> to vector<1x128xf32>
    %1525 = vector.broadcast %1524 : vector<1x128xf32> to vector<16x128xf32>
    %1526 = arith.mulf %1521, %1525 : vector<16x128xf32>
    %1527 = arith.addf %1459, %1526 : vector<16x128xf32>
    %1528 = vector.extract_strided_slice %1523 {offsets = [1, 0], sizes = [1, 128], strides = [1, 1]} : vector<16x128xf32> to vector<1x128xf32>
    %1529 = vector.broadcast %1528 : vector<1x128xf32> to vector<16x128xf32>
    %1530 = arith.mulf %1521, %1529 : vector<16x128xf32>
    %1531 = arith.addf %1463, %1530 : vector<16x128xf32>
    %1532 = vector.extract_strided_slice %1523 {offsets = [2, 0], sizes = [1, 128], strides = [1, 1]} : vector<16x128xf32> to vector<1x128xf32>
    %1533 = vector.broadcast %1532 : vector<1x128xf32> to vector<16x128xf32>
    %1534 = arith.mulf %1521, %1533 : vector<16x128xf32>
    %1535 = arith.addf %1467, %1534 : vector<16x128xf32>
    %1536 = vector.extract_strided_slice %1523 {offsets = [3, 0], sizes = [1, 128], strides = [1, 1]} : vector<16x128xf32> to vector<1x128xf32>
    %1537 = vector.broadcast %1536 : vector<1x128xf32> to vector<16x128xf32>
    %1538 = arith.mulf %1521, %1537 : vector<16x128xf32>
    %1539 = arith.addf %1471, %1538 : vector<16x128xf32>
    %1540 = vector.extract_strided_slice %1523 {offsets = [4, 0], sizes = [1, 128], strides = [1, 1]} : vector<16x128xf32> to vector<1x128xf32>
    %1541 = vector.broadcast %1540 : vector<1x128xf32> to vector<16x128xf32>
    %1542 = arith.mulf %1521, %1541 : vector<16x128xf32>
    %1543 = arith.addf %1475, %1542 : vector<16x128xf32>
    %1544 = vector.extract_strided_slice %1523 {offsets = [5, 0], sizes = [1, 128], strides = [1, 1]} : vector<16x128xf32> to vector<1x128xf32>
    %1545 = vector.broadcast %1544 : vector<1x128xf32> to vector<16x128xf32>
    %1546 = arith.mulf %1521, %1545 : vector<16x128xf32>
    %1547 = arith.addf %1479, %1546 : vector<16x128xf32>
    %1548 = vector.extract_strided_slice %1523 {offsets = [6, 0], sizes = [1, 128], strides = [1, 1]} : vector<16x128xf32> to vector<1x128xf32>
    %1549 = vector.broadcast %1548 : vector<1x128xf32> to vector<16x128xf32>
    %1550 = arith.mulf %1521, %1549 : vector<16x128xf32>
    %1551 = arith.addf %1483, %1550 : vector<16x128xf32>
    %1552 = vector.extract_strided_slice %1523 {offsets = [7, 0], sizes = [1, 128], strides = [1, 1]} : vector<16x128xf32> to vector<1x128xf32>
    %1553 = vector.broadcast %1552 : vector<1x128xf32> to vector<16x128xf32>
    %1554 = arith.mulf %1521, %1553 : vector<16x128xf32>
    %1555 = arith.addf %1487, %1554 : vector<16x128xf32>
    %1556 = vector.extract_strided_slice %1523 {offsets = [8, 0], sizes = [1, 128], strides = [1, 1]} : vector<16x128xf32> to vector<1x128xf32>
    %1557 = vector.broadcast %1556 : vector<1x128xf32> to vector<16x128xf32>
    %1558 = arith.mulf %1521, %1557 : vector<16x128xf32>
    %1559 = arith.addf %1491, %1558 : vector<16x128xf32>
    %1560 = vector.extract_strided_slice %1523 {offsets = [9, 0], sizes = [1, 128], strides = [1, 1]} : vector<16x128xf32> to vector<1x128xf32>
    %1561 = vector.broadcast %1560 : vector<1x128xf32> to vector<16x128xf32>
    %1562 = arith.mulf %1521, %1561 : vector<16x128xf32>
    %1563 = arith.addf %1495, %1562 : vector<16x128xf32>
    %1564 = vector.extract_strided_slice %1523 {offsets = [10, 0], sizes = [1, 128], strides = [1, 1]} : vector<16x128xf32> to vector<1x128xf32>
    %1565 = vector.broadcast %1564 : vector<1x128xf32> to vector<16x128xf32>
    %1566 = arith.mulf %1521, %1565 : vector<16x128xf32>
    %1567 = arith.addf %1499, %1566 : vector<16x128xf32>
    %1568 = vector.extract_strided_slice %1523 {offsets = [11, 0], sizes = [1, 128], strides = [1, 1]} : vector<16x128xf32> to vector<1x128xf32>
    %1569 = vector.broadcast %1568 : vector<1x128xf32> to vector<16x128xf32>
    %1570 = arith.mulf %1521, %1569 : vector<16x128xf32>
    %1571 = arith.addf %1503, %1570 : vector<16x128xf32>
    %1572 = vector.extract_strided_slice %1523 {offsets = [12, 0], sizes = [1, 128], strides = [1, 1]} : vector<16x128xf32> to vector<1x128xf32>
    %1573 = vector.broadcast %1572 : vector<1x128xf32> to vector<16x128xf32>
    %1574 = arith.mulf %1521, %1573 : vector<16x128xf32>
    %1575 = arith.addf %1507, %1574 : vector<16x128xf32>
    %1576 = vector.extract_strided_slice %1523 {offsets = [13, 0], sizes = [1, 128], strides = [1, 1]} : vector<16x128xf32> to vector<1x128xf32>
    %1577 = vector.broadcast %1576 : vector<1x128xf32> to vector<16x128xf32>
    %1578 = arith.mulf %1521, %1577 : vector<16x128xf32>
    %1579 = arith.addf %1511, %1578 : vector<16x128xf32>
    %1580 = vector.extract_strided_slice %1523 {offsets = [14, 0], sizes = [1, 128], strides = [1, 1]} : vector<16x128xf32> to vector<1x128xf32>
    %1581 = vector.broadcast %1580 : vector<1x128xf32> to vector<16x128xf32>
    %1582 = arith.mulf %1521, %1581 : vector<16x128xf32>
    %1583 = arith.addf %1515, %1582 : vector<16x128xf32>
    %1584 = vector.extract_strided_slice %1523 {offsets = [15, 0], sizes = [1, 128], strides = [1, 1]} : vector<16x128xf32> to vector<1x128xf32>
    %1585 = vector.broadcast %1584 : vector<1x128xf32> to vector<16x128xf32>
    %1586 = arith.mulf %1521, %1585 : vector<16x128xf32>
    %1587 = arith.addf %1519, %1586 : vector<16x128xf32>
    %c240 = arith.constant 240 : index
    %c0_79 = arith.constant 0 : index
    %1588 = vector.load %arg1[%c240, %c0_79] : memref<256x128xbf16, #tpu.memory_space<vmem>>, vector<16x128xbf16>
    %1589 = arith.extf %1588 : vector<16x128xbf16> to vector<16x128xf32>
    %c240_80 = arith.constant 240 : index
    %c0_81 = arith.constant 0 : index
    %1590 = vector.load %arg2[%c240_80, %c0_81] : memref<256x128xbf16, #tpu.memory_space<vmem>>, vector<16x128xbf16>
    %1591 = arith.extf %1590 : vector<16x128xbf16> to vector<16x128xf32>
    %1592 = vector.extract_strided_slice %1591 {offsets = [0, 0], sizes = [1, 128], strides = [1, 1]} : vector<16x128xf32> to vector<1x128xf32>
    %1593 = vector.broadcast %1592 : vector<1x128xf32> to vector<16x128xf32>
    %1594 = arith.mulf %1589, %1593 : vector<16x128xf32>
    %1595 = arith.addf %1527, %1594 : vector<16x128xf32>
    %1596 = vector.extract_strided_slice %1591 {offsets = [1, 0], sizes = [1, 128], strides = [1, 1]} : vector<16x128xf32> to vector<1x128xf32>
    %1597 = vector.broadcast %1596 : vector<1x128xf32> to vector<16x128xf32>
    %1598 = arith.mulf %1589, %1597 : vector<16x128xf32>
    %1599 = arith.addf %1531, %1598 : vector<16x128xf32>
    %1600 = vector.extract_strided_slice %1591 {offsets = [2, 0], sizes = [1, 128], strides = [1, 1]} : vector<16x128xf32> to vector<1x128xf32>
    %1601 = vector.broadcast %1600 : vector<1x128xf32> to vector<16x128xf32>
    %1602 = arith.mulf %1589, %1601 : vector<16x128xf32>
    %1603 = arith.addf %1535, %1602 : vector<16x128xf32>
    %1604 = vector.extract_strided_slice %1591 {offsets = [3, 0], sizes = [1, 128], strides = [1, 1]} : vector<16x128xf32> to vector<1x128xf32>
    %1605 = vector.broadcast %1604 : vector<1x128xf32> to vector<16x128xf32>
    %1606 = arith.mulf %1589, %1605 : vector<16x128xf32>
    %1607 = arith.addf %1539, %1606 : vector<16x128xf32>
    %1608 = vector.extract_strided_slice %1591 {offsets = [4, 0], sizes = [1, 128], strides = [1, 1]} : vector<16x128xf32> to vector<1x128xf32>
    %1609 = vector.broadcast %1608 : vector<1x128xf32> to vector<16x128xf32>
    %1610 = arith.mulf %1589, %1609 : vector<16x128xf32>
    %1611 = arith.addf %1543, %1610 : vector<16x128xf32>
    %1612 = vector.extract_strided_slice %1591 {offsets = [5, 0], sizes = [1, 128], strides = [1, 1]} : vector<16x128xf32> to vector<1x128xf32>
    %1613 = vector.broadcast %1612 : vector<1x128xf32> to vector<16x128xf32>
    %1614 = arith.mulf %1589, %1613 : vector<16x128xf32>
    %1615 = arith.addf %1547, %1614 : vector<16x128xf32>
    %1616 = vector.extract_strided_slice %1591 {offsets = [6, 0], sizes = [1, 128], strides = [1, 1]} : vector<16x128xf32> to vector<1x128xf32>
    %1617 = vector.broadcast %1616 : vector<1x128xf32> to vector<16x128xf32>
    %1618 = arith.mulf %1589, %1617 : vector<16x128xf32>
    %1619 = arith.addf %1551, %1618 : vector<16x128xf32>
    %1620 = vector.extract_strided_slice %1591 {offsets = [7, 0], sizes = [1, 128], strides = [1, 1]} : vector<16x128xf32> to vector<1x128xf32>
    %1621 = vector.broadcast %1620 : vector<1x128xf32> to vector<16x128xf32>
    %1622 = arith.mulf %1589, %1621 : vector<16x128xf32>
    %1623 = arith.addf %1555, %1622 : vector<16x128xf32>
    %1624 = vector.extract_strided_slice %1591 {offsets = [8, 0], sizes = [1, 128], strides = [1, 1]} : vector<16x128xf32> to vector<1x128xf32>
    %1625 = vector.broadcast %1624 : vector<1x128xf32> to vector<16x128xf32>
    %1626 = arith.mulf %1589, %1625 : vector<16x128xf32>
    %1627 = arith.addf %1559, %1626 : vector<16x128xf32>
    %1628 = vector.extract_strided_slice %1591 {offsets = [9, 0], sizes = [1, 128], strides = [1, 1]} : vector<16x128xf32> to vector<1x128xf32>
    %1629 = vector.broadcast %1628 : vector<1x128xf32> to vector<16x128xf32>
    %1630 = arith.mulf %1589, %1629 : vector<16x128xf32>
    %1631 = arith.addf %1563, %1630 : vector<16x128xf32>
    %1632 = vector.extract_strided_slice %1591 {offsets = [10, 0], sizes = [1, 128], strides = [1, 1]} : vector<16x128xf32> to vector<1x128xf32>
    %1633 = vector.broadcast %1632 : vector<1x128xf32> to vector<16x128xf32>
    %1634 = arith.mulf %1589, %1633 : vector<16x128xf32>
    %1635 = arith.addf %1567, %1634 : vector<16x128xf32>
    %1636 = vector.extract_strided_slice %1591 {offsets = [11, 0], sizes = [1, 128], strides = [1, 1]} : vector<16x128xf32> to vector<1x128xf32>
    %1637 = vector.broadcast %1636 : vector<1x128xf32> to vector<16x128xf32>
    %1638 = arith.mulf %1589, %1637 : vector<16x128xf32>
    %1639 = arith.addf %1571, %1638 : vector<16x128xf32>
    %1640 = vector.extract_strided_slice %1591 {offsets = [12, 0], sizes = [1, 128], strides = [1, 1]} : vector<16x128xf32> to vector<1x128xf32>
    %1641 = vector.broadcast %1640 : vector<1x128xf32> to vector<16x128xf32>
    %1642 = arith.mulf %1589, %1641 : vector<16x128xf32>
    %1643 = arith.addf %1575, %1642 : vector<16x128xf32>
    %1644 = vector.extract_strided_slice %1591 {offsets = [13, 0], sizes = [1, 128], strides = [1, 1]} : vector<16x128xf32> to vector<1x128xf32>
    %1645 = vector.broadcast %1644 : vector<1x128xf32> to vector<16x128xf32>
    %1646 = arith.mulf %1589, %1645 : vector<16x128xf32>
    %1647 = arith.addf %1579, %1646 : vector<16x128xf32>
    %1648 = vector.extract_strided_slice %1591 {offsets = [14, 0], sizes = [1, 128], strides = [1, 1]} : vector<16x128xf32> to vector<1x128xf32>
    %1649 = vector.broadcast %1648 : vector<1x128xf32> to vector<16x128xf32>
    %1650 = arith.mulf %1589, %1649 : vector<16x128xf32>
    %1651 = arith.addf %1583, %1650 : vector<16x128xf32>
    %1652 = vector.extract_strided_slice %1591 {offsets = [15, 0], sizes = [1, 128], strides = [1, 1]} : vector<16x128xf32> to vector<1x128xf32>
    %1653 = vector.broadcast %1652 : vector<1x128xf32> to vector<16x128xf32>
    %1654 = arith.mulf %1589, %1653 : vector<16x128xf32>
    %1655 = arith.addf %1587, %1654 : vector<16x128xf32>
    %1656 = arith.maximumf %1595, %1599 : vector<16x128xf32>
    %1657 = arith.maximumf %1603, %1607 : vector<16x128xf32>
    %1658 = arith.maximumf %1611, %1615 : vector<16x128xf32>
    %1659 = arith.maximumf %1619, %1623 : vector<16x128xf32>
    %1660 = arith.maximumf %1627, %1631 : vector<16x128xf32>
    %1661 = arith.maximumf %1635, %1639 : vector<16x128xf32>
    %1662 = arith.maximumf %1643, %1647 : vector<16x128xf32>
    %1663 = arith.maximumf %1651, %1655 : vector<16x128xf32>
    %1664 = arith.maximumf %1656, %1657 : vector<16x128xf32>
    %1665 = arith.maximumf %1658, %1659 : vector<16x128xf32>
    %1666 = arith.maximumf %1660, %1661 : vector<16x128xf32>
    %1667 = arith.maximumf %1662, %1663 : vector<16x128xf32>
    %1668 = arith.maximumf %1664, %1665 : vector<16x128xf32>
    %1669 = arith.maximumf %1666, %1667 : vector<16x128xf32>
    %1670 = arith.maximumf %1668, %1669 : vector<16x128xf32>
    %1671 = arith.subf %1595, %1670 : vector<16x128xf32>
    %1672 = math.exp %1671 : vector<16x128xf32>
    %1673 = arith.subf %1599, %1670 : vector<16x128xf32>
    %1674 = math.exp %1673 : vector<16x128xf32>
    %1675 = arith.subf %1603, %1670 : vector<16x128xf32>
    %1676 = math.exp %1675 : vector<16x128xf32>
    %1677 = arith.subf %1607, %1670 : vector<16x128xf32>
    %1678 = math.exp %1677 : vector<16x128xf32>
    %1679 = arith.subf %1611, %1670 : vector<16x128xf32>
    %1680 = math.exp %1679 : vector<16x128xf32>
    %1681 = arith.subf %1615, %1670 : vector<16x128xf32>
    %1682 = math.exp %1681 : vector<16x128xf32>
    %1683 = arith.subf %1619, %1670 : vector<16x128xf32>
    %1684 = math.exp %1683 : vector<16x128xf32>
    %1685 = arith.subf %1623, %1670 : vector<16x128xf32>
    %1686 = math.exp %1685 : vector<16x128xf32>
    %1687 = arith.subf %1627, %1670 : vector<16x128xf32>
    %1688 = math.exp %1687 : vector<16x128xf32>
    %1689 = arith.subf %1631, %1670 : vector<16x128xf32>
    %1690 = math.exp %1689 : vector<16x128xf32>
    %1691 = arith.subf %1635, %1670 : vector<16x128xf32>
    %1692 = math.exp %1691 : vector<16x128xf32>
    %1693 = arith.subf %1639, %1670 : vector<16x128xf32>
    %1694 = math.exp %1693 : vector<16x128xf32>
    %1695 = arith.subf %1643, %1670 : vector<16x128xf32>
    %1696 = math.exp %1695 : vector<16x128xf32>
    %1697 = arith.subf %1647, %1670 : vector<16x128xf32>
    %1698 = math.exp %1697 : vector<16x128xf32>
    %1699 = arith.subf %1651, %1670 : vector<16x128xf32>
    %1700 = math.exp %1699 : vector<16x128xf32>
    %1701 = arith.subf %1655, %1670 : vector<16x128xf32>
    %1702 = math.exp %1701 : vector<16x128xf32>
    %1703 = arith.addf %1672, %1674 : vector<16x128xf32>
    %1704 = arith.addf %1676, %1678 : vector<16x128xf32>
    %1705 = arith.addf %1680, %1682 : vector<16x128xf32>
    %1706 = arith.addf %1684, %1686 : vector<16x128xf32>
    %1707 = arith.addf %1688, %1690 : vector<16x128xf32>
    %1708 = arith.addf %1692, %1694 : vector<16x128xf32>
    %1709 = arith.addf %1696, %1698 : vector<16x128xf32>
    %1710 = arith.addf %1700, %1702 : vector<16x128xf32>
    %1711 = arith.addf %1703, %1704 : vector<16x128xf32>
    %1712 = arith.addf %1705, %1706 : vector<16x128xf32>
    %1713 = arith.addf %1707, %1708 : vector<16x128xf32>
    %1714 = arith.addf %1709, %1710 : vector<16x128xf32>
    %1715 = arith.addf %1711, %1712 : vector<16x128xf32>
    %1716 = arith.addf %1713, %1714 : vector<16x128xf32>
    %1717 = arith.addf %1715, %1716 : vector<16x128xf32>
    %1718 = arith.divf %0, %1717 : vector<16x128xf32>
    %c128_82 = arith.constant 128 : index
    %c0_83 = arith.constant 0 : index
    %1719 = vector.load %arg3[%c128_82, %c0_83] : memref<256x128xbf16, #tpu.memory_space<vmem>>, vector<16x128xbf16>
    %1720 = arith.extf %1719 : vector<16x128xbf16> to vector<16x128xf32>
    %1721 = vector.extract_strided_slice %1720 {offsets = [0, 0], sizes = [1, 128], strides = [1, 1]} : vector<16x128xf32> to vector<1x128xf32>
    %1722 = vector.broadcast %1721 : vector<1x128xf32> to vector<16x128xf32>
    %1723 = arith.mulf %1672, %1722 : vector<16x128xf32>
    %1724 = vector.extract_strided_slice %1720 {offsets = [1, 0], sizes = [1, 128], strides = [1, 1]} : vector<16x128xf32> to vector<1x128xf32>
    %1725 = vector.broadcast %1724 : vector<1x128xf32> to vector<16x128xf32>
    %1726 = arith.mulf %1674, %1725 : vector<16x128xf32>
    %1727 = arith.addf %1723, %1726 : vector<16x128xf32>
    %1728 = vector.extract_strided_slice %1720 {offsets = [2, 0], sizes = [1, 128], strides = [1, 1]} : vector<16x128xf32> to vector<1x128xf32>
    %1729 = vector.broadcast %1728 : vector<1x128xf32> to vector<16x128xf32>
    %1730 = arith.mulf %1676, %1729 : vector<16x128xf32>
    %1731 = arith.addf %1727, %1730 : vector<16x128xf32>
    %1732 = vector.extract_strided_slice %1720 {offsets = [3, 0], sizes = [1, 128], strides = [1, 1]} : vector<16x128xf32> to vector<1x128xf32>
    %1733 = vector.broadcast %1732 : vector<1x128xf32> to vector<16x128xf32>
    %1734 = arith.mulf %1678, %1733 : vector<16x128xf32>
    %1735 = arith.addf %1731, %1734 : vector<16x128xf32>
    %1736 = vector.extract_strided_slice %1720 {offsets = [4, 0], sizes = [1, 128], strides = [1, 1]} : vector<16x128xf32> to vector<1x128xf32>
    %1737 = vector.broadcast %1736 : vector<1x128xf32> to vector<16x128xf32>
    %1738 = arith.mulf %1680, %1737 : vector<16x128xf32>
    %1739 = arith.addf %1735, %1738 : vector<16x128xf32>
    %1740 = vector.extract_strided_slice %1720 {offsets = [5, 0], sizes = [1, 128], strides = [1, 1]} : vector<16x128xf32> to vector<1x128xf32>
    %1741 = vector.broadcast %1740 : vector<1x128xf32> to vector<16x128xf32>
    %1742 = arith.mulf %1682, %1741 : vector<16x128xf32>
    %1743 = arith.addf %1739, %1742 : vector<16x128xf32>
    %1744 = vector.extract_strided_slice %1720 {offsets = [6, 0], sizes = [1, 128], strides = [1, 1]} : vector<16x128xf32> to vector<1x128xf32>
    %1745 = vector.broadcast %1744 : vector<1x128xf32> to vector<16x128xf32>
    %1746 = arith.mulf %1684, %1745 : vector<16x128xf32>
    %1747 = arith.addf %1743, %1746 : vector<16x128xf32>
    %1748 = vector.extract_strided_slice %1720 {offsets = [7, 0], sizes = [1, 128], strides = [1, 1]} : vector<16x128xf32> to vector<1x128xf32>
    %1749 = vector.broadcast %1748 : vector<1x128xf32> to vector<16x128xf32>
    %1750 = arith.mulf %1686, %1749 : vector<16x128xf32>
    %1751 = arith.addf %1747, %1750 : vector<16x128xf32>
    %1752 = vector.extract_strided_slice %1720 {offsets = [8, 0], sizes = [1, 128], strides = [1, 1]} : vector<16x128xf32> to vector<1x128xf32>
    %1753 = vector.broadcast %1752 : vector<1x128xf32> to vector<16x128xf32>
    %1754 = arith.mulf %1688, %1753 : vector<16x128xf32>
    %1755 = arith.addf %1751, %1754 : vector<16x128xf32>
    %1756 = vector.extract_strided_slice %1720 {offsets = [9, 0], sizes = [1, 128], strides = [1, 1]} : vector<16x128xf32> to vector<1x128xf32>
    %1757 = vector.broadcast %1756 : vector<1x128xf32> to vector<16x128xf32>
    %1758 = arith.mulf %1690, %1757 : vector<16x128xf32>
    %1759 = arith.addf %1755, %1758 : vector<16x128xf32>
    %1760 = vector.extract_strided_slice %1720 {offsets = [10, 0], sizes = [1, 128], strides = [1, 1]} : vector<16x128xf32> to vector<1x128xf32>
    %1761 = vector.broadcast %1760 : vector<1x128xf32> to vector<16x128xf32>
    %1762 = arith.mulf %1692, %1761 : vector<16x128xf32>
    %1763 = arith.addf %1759, %1762 : vector<16x128xf32>
    %1764 = vector.extract_strided_slice %1720 {offsets = [11, 0], sizes = [1, 128], strides = [1, 1]} : vector<16x128xf32> to vector<1x128xf32>
    %1765 = vector.broadcast %1764 : vector<1x128xf32> to vector<16x128xf32>
    %1766 = arith.mulf %1694, %1765 : vector<16x128xf32>
    %1767 = arith.addf %1763, %1766 : vector<16x128xf32>
    %1768 = vector.extract_strided_slice %1720 {offsets = [12, 0], sizes = [1, 128], strides = [1, 1]} : vector<16x128xf32> to vector<1x128xf32>
    %1769 = vector.broadcast %1768 : vector<1x128xf32> to vector<16x128xf32>
    %1770 = arith.mulf %1696, %1769 : vector<16x128xf32>
    %1771 = arith.addf %1767, %1770 : vector<16x128xf32>
    %1772 = vector.extract_strided_slice %1720 {offsets = [13, 0], sizes = [1, 128], strides = [1, 1]} : vector<16x128xf32> to vector<1x128xf32>
    %1773 = vector.broadcast %1772 : vector<1x128xf32> to vector<16x128xf32>
    %1774 = arith.mulf %1698, %1773 : vector<16x128xf32>
    %1775 = arith.addf %1771, %1774 : vector<16x128xf32>
    %1776 = vector.extract_strided_slice %1720 {offsets = [14, 0], sizes = [1, 128], strides = [1, 1]} : vector<16x128xf32> to vector<1x128xf32>
    %1777 = vector.broadcast %1776 : vector<1x128xf32> to vector<16x128xf32>
    %1778 = arith.mulf %1700, %1777 : vector<16x128xf32>
    %1779 = arith.addf %1775, %1778 : vector<16x128xf32>
    %1780 = vector.extract_strided_slice %1720 {offsets = [15, 0], sizes = [1, 128], strides = [1, 1]} : vector<16x128xf32> to vector<1x128xf32>
    %1781 = vector.broadcast %1780 : vector<1x128xf32> to vector<16x128xf32>
    %1782 = arith.mulf %1702, %1781 : vector<16x128xf32>
    %1783 = arith.addf %1779, %1782 : vector<16x128xf32>
    %1784 = arith.mulf %1783, %1718 : vector<16x128xf32>
    %c128_84 = arith.constant 128 : index
    %c0_85 = arith.constant 0 : index
    %1785 = vector.load %arg5[%c128_84, %c0_85] : memref<256x128xf32, #tpu.memory_space<vmem>>, vector<16x128xf32>
    tpu.vector_store %arg5[%c128_84, %c0_85], %1784 {strides = array<i32>} : memref<256x128xf32, #tpu.memory_space<vmem>>, vector<16x128xf32>,
    %c144_86 = arith.constant 144 : index
    %c0_87 = arith.constant 0 : index
    %1786 = vector.load %arg3[%c144_86, %c0_87] : memref<256x128xbf16, #tpu.memory_space<vmem>>, vector<16x128xbf16>
    %1787 = arith.extf %1786 : vector<16x128xbf16> to vector<16x128xf32>
    %1788 = vector.extract_strided_slice %1787 {offsets = [0, 0], sizes = [1, 128], strides = [1, 1]} : vector<16x128xf32> to vector<1x128xf32>
    %1789 = vector.broadcast %1788 : vector<1x128xf32> to vector<16x128xf32>
    %1790 = arith.mulf %1672, %1789 : vector<16x128xf32>
    %1791 = vector.extract_strided_slice %1787 {offsets = [1, 0], sizes = [1, 128], strides = [1, 1]} : vector<16x128xf32> to vector<1x128xf32>
    %1792 = vector.broadcast %1791 : vector<1x128xf32> to vector<16x128xf32>
    %1793 = arith.mulf %1674, %1792 : vector<16x128xf32>
    %1794 = arith.addf %1790, %1793 : vector<16x128xf32>
    %1795 = vector.extract_strided_slice %1787 {offsets = [2, 0], sizes = [1, 128], strides = [1, 1]} : vector<16x128xf32> to vector<1x128xf32>
    %1796 = vector.broadcast %1795 : vector<1x128xf32> to vector<16x128xf32>
    %1797 = arith.mulf %1676, %1796 : vector<16x128xf32>
    %1798 = arith.addf %1794, %1797 : vector<16x128xf32>
    %1799 = vector.extract_strided_slice %1787 {offsets = [3, 0], sizes = [1, 128], strides = [1, 1]} : vector<16x128xf32> to vector<1x128xf32>
    %1800 = vector.broadcast %1799 : vector<1x128xf32> to vector<16x128xf32>
    %1801 = arith.mulf %1678, %1800 : vector<16x128xf32>
    %1802 = arith.addf %1798, %1801 : vector<16x128xf32>
    %1803 = vector.extract_strided_slice %1787 {offsets = [4, 0], sizes = [1, 128], strides = [1, 1]} : vector<16x128xf32> to vector<1x128xf32>
    %1804 = vector.broadcast %1803 : vector<1x128xf32> to vector<16x128xf32>
    %1805 = arith.mulf %1680, %1804 : vector<16x128xf32>
    %1806 = arith.addf %1802, %1805 : vector<16x128xf32>
    %1807 = vector.extract_strided_slice %1787 {offsets = [5, 0], sizes = [1, 128], strides = [1, 1]} : vector<16x128xf32> to vector<1x128xf32>
    %1808 = vector.broadcast %1807 : vector<1x128xf32> to vector<16x128xf32>
    %1809 = arith.mulf %1682, %1808 : vector<16x128xf32>
    %1810 = arith.addf %1806, %1809 : vector<16x128xf32>
    %1811 = vector.extract_strided_slice %1787 {offsets = [6, 0], sizes = [1, 128], strides = [1, 1]} : vector<16x128xf32> to vector<1x128xf32>
    %1812 = vector.broadcast %1811 : vector<1x128xf32> to vector<16x128xf32>
    %1813 = arith.mulf %1684, %1812 : vector<16x128xf32>
    %1814 = arith.addf %1810, %1813 : vector<16x128xf32>
    %1815 = vector.extract_strided_slice %1787 {offsets = [7, 0], sizes = [1, 128], strides = [1, 1]} : vector<16x128xf32> to vector<1x128xf32>
    %1816 = vector.broadcast %1815 : vector<1x128xf32> to vector<16x128xf32>
    %1817 = arith.mulf %1686, %1816 : vector<16x128xf32>
    %1818 = arith.addf %1814, %1817 : vector<16x128xf32>
    %1819 = vector.extract_strided_slice %1787 {offsets = [8, 0], sizes = [1, 128], strides = [1, 1]} : vector<16x128xf32> to vector<1x128xf32>
    %1820 = vector.broadcast %1819 : vector<1x128xf32> to vector<16x128xf32>
    %1821 = arith.mulf %1688, %1820 : vector<16x128xf32>
    %1822 = arith.addf %1818, %1821 : vector<16x128xf32>
    %1823 = vector.extract_strided_slice %1787 {offsets = [9, 0], sizes = [1, 128], strides = [1, 1]} : vector<16x128xf32> to vector<1x128xf32>
    %1824 = vector.broadcast %1823 : vector<1x128xf32> to vector<16x128xf32>
    %1825 = arith.mulf %1690, %1824 : vector<16x128xf32>
    %1826 = arith.addf %1822, %1825 : vector<16x128xf32>
    %1827 = vector.extract_strided_slice %1787 {offsets = [10, 0], sizes = [1, 128], strides = [1, 1]} : vector<16x128xf32> to vector<1x128xf32>
    %1828 = vector.broadcast %1827 : vector<1x128xf32> to vector<16x128xf32>
    %1829 = arith.mulf %1692, %1828 : vector<16x128xf32>
    %1830 = arith.addf %1826, %1829 : vector<16x128xf32>
    %1831 = vector.extract_strided_slice %1787 {offsets = [11, 0], sizes = [1, 128], strides = [1, 1]} : vector<16x128xf32> to vector<1x128xf32>
    %1832 = vector.broadcast %1831 : vector<1x128xf32> to vector<16x128xf32>
    %1833 = arith.mulf %1694, %1832 : vector<16x128xf32>
    %1834 = arith.addf %1830, %1833 : vector<16x128xf32>
    %1835 = vector.extract_strided_slice %1787 {offsets = [12, 0], sizes = [1, 128], strides = [1, 1]} : vector<16x128xf32> to vector<1x128xf32>
    %1836 = vector.broadcast %1835 : vector<1x128xf32> to vector<16x128xf32>
    %1837 = arith.mulf %1696, %1836 : vector<16x128xf32>
    %1838 = arith.addf %1834, %1837 : vector<16x128xf32>
    %1839 = vector.extract_strided_slice %1787 {offsets = [13, 0], sizes = [1, 128], strides = [1, 1]} : vector<16x128xf32> to vector<1x128xf32>
    %1840 = vector.broadcast %1839 : vector<1x128xf32> to vector<16x128xf32>
    %1841 = arith.mulf %1698, %1840 : vector<16x128xf32>
    %1842 = arith.addf %1838, %1841 : vector<16x128xf32>
    %1843 = vector.extract_strided_slice %1787 {offsets = [14, 0], sizes = [1, 128], strides = [1, 1]} : vector<16x128xf32> to vector<1x128xf32>
    %1844 = vector.broadcast %1843 : vector<1x128xf32> to vector<16x128xf32>
    %1845 = arith.mulf %1700, %1844 : vector<16x128xf32>
    %1846 = arith.addf %1842, %1845 : vector<16x128xf32>
    %1847 = vector.extract_strided_slice %1787 {offsets = [15, 0], sizes = [1, 128], strides = [1, 1]} : vector<16x128xf32> to vector<1x128xf32>
    %1848 = vector.broadcast %1847 : vector<1x128xf32> to vector<16x128xf32>
    %1849 = arith.mulf %1702, %1848 : vector<16x128xf32>
    %1850 = arith.addf %1846, %1849 : vector<16x128xf32>
    %1851 = arith.mulf %1850, %1718 : vector<16x128xf32>
    %c144_88 = arith.constant 144 : index
    %c0_89 = arith.constant 0 : index
    %1852 = vector.load %arg5[%c144_88, %c0_89] : memref<256x128xf32, #tpu.memory_space<vmem>>, vector<16x128xf32>
    tpu.vector_store %arg5[%c144_88, %c0_89], %1851 {strides = array<i32>} : memref<256x128xf32, #tpu.memory_space<vmem>>, vector<16x128xf32>,
    %c160_90 = arith.constant 160 : index
    %c0_91 = arith.constant 0 : index
    %1853 = vector.load %arg3[%c160_90, %c0_91] : memref<256x128xbf16, #tpu.memory_space<vmem>>, vector<16x128xbf16>
    %1854 = arith.extf %1853 : vector<16x128xbf16> to vector<16x128xf32>
    %1855 = vector.extract_strided_slice %1854 {offsets = [0, 0], sizes = [1, 128], strides = [1, 1]} : vector<16x128xf32> to vector<1x128xf32>
    %1856 = vector.broadcast %1855 : vector<1x128xf32> to vector<16x128xf32>
    %1857 = arith.mulf %1672, %1856 : vector<16x128xf32>
    %1858 = vector.extract_strided_slice %1854 {offsets = [1, 0], sizes = [1, 128], strides = [1, 1]} : vector<16x128xf32> to vector<1x128xf32>
    %1859 = vector.broadcast %1858 : vector<1x128xf32> to vector<16x128xf32>
    %1860 = arith.mulf %1674, %1859 : vector<16x128xf32>
    %1861 = arith.addf %1857, %1860 : vector<16x128xf32>
    %1862 = vector.extract_strided_slice %1854 {offsets = [2, 0], sizes = [1, 128], strides = [1, 1]} : vector<16x128xf32> to vector<1x128xf32>
    %1863 = vector.broadcast %1862 : vector<1x128xf32> to vector<16x128xf32>
    %1864 = arith.mulf %1676, %1863 : vector<16x128xf32>
    %1865 = arith.addf %1861, %1864 : vector<16x128xf32>
    %1866 = vector.extract_strided_slice %1854 {offsets = [3, 0], sizes = [1, 128], strides = [1, 1]} : vector<16x128xf32> to vector<1x128xf32>
    %1867 = vector.broadcast %1866 : vector<1x128xf32> to vector<16x128xf32>
    %1868 = arith.mulf %1678, %1867 : vector<16x128xf32>
    %1869 = arith.addf %1865, %1868 : vector<16x128xf32>
    %1870 = vector.extract_strided_slice %1854 {offsets = [4, 0], sizes = [1, 128], strides = [1, 1]} : vector<16x128xf32> to vector<1x128xf32>
    %1871 = vector.broadcast %1870 : vector<1x128xf32> to vector<16x128xf32>
    %1872 = arith.mulf %1680, %1871 : vector<16x128xf32>
    %1873 = arith.addf %1869, %1872 : vector<16x128xf32>
    %1874 = vector.extract_strided_slice %1854 {offsets = [5, 0], sizes = [1, 128], strides = [1, 1]} : vector<16x128xf32> to vector<1x128xf32>
    %1875 = vector.broadcast %1874 : vector<1x128xf32> to vector<16x128xf32>
    %1876 = arith.mulf %1682, %1875 : vector<16x128xf32>
    %1877 = arith.addf %1873, %1876 : vector<16x128xf32>
    %1878 = vector.extract_strided_slice %1854 {offsets = [6, 0], sizes = [1, 128], strides = [1, 1]} : vector<16x128xf32> to vector<1x128xf32>
    %1879 = vector.broadcast %1878 : vector<1x128xf32> to vector<16x128xf32>
    %1880 = arith.mulf %1684, %1879 : vector<16x128xf32>
    %1881 = arith.addf %1877, %1880 : vector<16x128xf32>
    %1882 = vector.extract_strided_slice %1854 {offsets = [7, 0], sizes = [1, 128], strides = [1, 1]} : vector<16x128xf32> to vector<1x128xf32>
    %1883 = vector.broadcast %1882 : vector<1x128xf32> to vector<16x128xf32>
    %1884 = arith.mulf %1686, %1883 : vector<16x128xf32>
    %1885 = arith.addf %1881, %1884 : vector<16x128xf32>
    %1886 = vector.extract_strided_slice %1854 {offsets = [8, 0], sizes = [1, 128], strides = [1, 1]} : vector<16x128xf32> to vector<1x128xf32>
    %1887 = vector.broadcast %1886 : vector<1x128xf32> to vector<16x128xf32>
    %1888 = arith.mulf %1688, %1887 : vector<16x128xf32>
    %1889 = arith.addf %1885, %1888 : vector<16x128xf32>
    %1890 = vector.extract_strided_slice %1854 {offsets = [9, 0], sizes = [1, 128], strides = [1, 1]} : vector<16x128xf32> to vector<1x128xf32>
    %1891 = vector.broadcast %1890 : vector<1x128xf32> to vector<16x128xf32>
    %1892 = arith.mulf %1690, %1891 : vector<16x128xf32>
    %1893 = arith.addf %1889, %1892 : vector<16x128xf32>
    %1894 = vector.extract_strided_slice %1854 {offsets = [10, 0], sizes = [1, 128], strides = [1, 1]} : vector<16x128xf32> to vector<1x128xf32>
    %1895 = vector.broadcast %1894 : vector<1x128xf32> to vector<16x128xf32>
    %1896 = arith.mulf %1692, %1895 : vector<16x128xf32>
    %1897 = arith.addf %1893, %1896 : vector<16x128xf32>
    %1898 = vector.extract_strided_slice %1854 {offsets = [11, 0], sizes = [1, 128], strides = [1, 1]} : vector<16x128xf32> to vector<1x128xf32>
    %1899 = vector.broadcast %1898 : vector<1x128xf32> to vector<16x128xf32>
    %1900 = arith.mulf %1694, %1899 : vector<16x128xf32>
    %1901 = arith.addf %1897, %1900 : vector<16x128xf32>
    %1902 = vector.extract_strided_slice %1854 {offsets = [12, 0], sizes = [1, 128], strides = [1, 1]} : vector<16x128xf32> to vector<1x128xf32>
    %1903 = vector.broadcast %1902 : vector<1x128xf32> to vector<16x128xf32>
    %1904 = arith.mulf %1696, %1903 : vector<16x128xf32>
    %1905 = arith.addf %1901, %1904 : vector<16x128xf32>
    %1906 = vector.extract_strided_slice %1854 {offsets = [13, 0], sizes = [1, 128], strides = [1, 1]} : vector<16x128xf32> to vector<1x128xf32>
    %1907 = vector.broadcast %1906 : vector<1x128xf32> to vector<16x128xf32>
    %1908 = arith.mulf %1698, %1907 : vector<16x128xf32>
    %1909 = arith.addf %1905, %1908 : vector<16x128xf32>
    %1910 = vector.extract_strided_slice %1854 {offsets = [14, 0], sizes = [1, 128], strides = [1, 1]} : vector<16x128xf32> to vector<1x128xf32>
    %1911 = vector.broadcast %1910 : vector<1x128xf32> to vector<16x128xf32>
    %1912 = arith.mulf %1700, %1911 : vector<16x128xf32>
    %1913 = arith.addf %1909, %1912 : vector<16x128xf32>
    %1914 = vector.extract_strided_slice %1854 {offsets = [15, 0], sizes = [1, 128], strides = [1, 1]} : vector<16x128xf32> to vector<1x128xf32>
    %1915 = vector.broadcast %1914 : vector<1x128xf32> to vector<16x128xf32>
    %1916 = arith.mulf %1702, %1915 : vector<16x128xf32>
    %1917 = arith.addf %1913, %1916 : vector<16x128xf32>
    %1918 = arith.mulf %1917, %1718 : vector<16x128xf32>
    %c160_92 = arith.constant 160 : index
    %c0_93 = arith.constant 0 : index
    %1919 = vector.load %arg5[%c160_92, %c0_93] : memref<256x128xf32, #tpu.memory_space<vmem>>, vector<16x128xf32>
    tpu.vector_store %arg5[%c160_92, %c0_93], %1918 {strides = array<i32>} : memref<256x128xf32, #tpu.memory_space<vmem>>, vector<16x128xf32>,
    %c176_94 = arith.constant 176 : index
    %c0_95 = arith.constant 0 : index
    %1920 = vector.load %arg3[%c176_94, %c0_95] : memref<256x128xbf16, #tpu.memory_space<vmem>>, vector<16x128xbf16>
    %1921 = arith.extf %1920 : vector<16x128xbf16> to vector<16x128xf32>
    %1922 = vector.extract_strided_slice %1921 {offsets = [0, 0], sizes = [1, 128], strides = [1, 1]} : vector<16x128xf32> to vector<1x128xf32>
    %1923 = vector.broadcast %1922 : vector<1x128xf32> to vector<16x128xf32>
    %1924 = arith.mulf %1672, %1923 : vector<16x128xf32>
    %1925 = vector.extract_strided_slice %1921 {offsets = [1, 0], sizes = [1, 128], strides = [1, 1]} : vector<16x128xf32> to vector<1x128xf32>
    %1926 = vector.broadcast %1925 : vector<1x128xf32> to vector<16x128xf32>
    %1927 = arith.mulf %1674, %1926 : vector<16x128xf32>
    %1928 = arith.addf %1924, %1927 : vector<16x128xf32>
    %1929 = vector.extract_strided_slice %1921 {offsets = [2, 0], sizes = [1, 128], strides = [1, 1]} : vector<16x128xf32> to vector<1x128xf32>
    %1930 = vector.broadcast %1929 : vector<1x128xf32> to vector<16x128xf32>
    %1931 = arith.mulf %1676, %1930 : vector<16x128xf32>
    %1932 = arith.addf %1928, %1931 : vector<16x128xf32>
    %1933 = vector.extract_strided_slice %1921 {offsets = [3, 0], sizes = [1, 128], strides = [1, 1]} : vector<16x128xf32> to vector<1x128xf32>
    %1934 = vector.broadcast %1933 : vector<1x128xf32> to vector<16x128xf32>
    %1935 = arith.mulf %1678, %1934 : vector<16x128xf32>
    %1936 = arith.addf %1932, %1935 : vector<16x128xf32>
    %1937 = vector.extract_strided_slice %1921 {offsets = [4, 0], sizes = [1, 128], strides = [1, 1]} : vector<16x128xf32> to vector<1x128xf32>
    %1938 = vector.broadcast %1937 : vector<1x128xf32> to vector<16x128xf32>
    %1939 = arith.mulf %1680, %1938 : vector<16x128xf32>
    %1940 = arith.addf %1936, %1939 : vector<16x128xf32>
    %1941 = vector.extract_strided_slice %1921 {offsets = [5, 0], sizes = [1, 128], strides = [1, 1]} : vector<16x128xf32> to vector<1x128xf32>
    %1942 = vector.broadcast %1941 : vector<1x128xf32> to vector<16x128xf32>
    %1943 = arith.mulf %1682, %1942 : vector<16x128xf32>
    %1944 = arith.addf %1940, %1943 : vector<16x128xf32>
    %1945 = vector.extract_strided_slice %1921 {offsets = [6, 0], sizes = [1, 128], strides = [1, 1]} : vector<16x128xf32> to vector<1x128xf32>
    %1946 = vector.broadcast %1945 : vector<1x128xf32> to vector<16x128xf32>
    %1947 = arith.mulf %1684, %1946 : vector<16x128xf32>
    %1948 = arith.addf %1944, %1947 : vector<16x128xf32>
    %1949 = vector.extract_strided_slice %1921 {offsets = [7, 0], sizes = [1, 128], strides = [1, 1]} : vector<16x128xf32> to vector<1x128xf32>
    %1950 = vector.broadcast %1949 : vector<1x128xf32> to vector<16x128xf32>
    %1951 = arith.mulf %1686, %1950 : vector<16x128xf32>
    %1952 = arith.addf %1948, %1951 : vector<16x128xf32>
    %1953 = vector.extract_strided_slice %1921 {offsets = [8, 0], sizes = [1, 128], strides = [1, 1]} : vector<16x128xf32> to vector<1x128xf32>
    %1954 = vector.broadcast %1953 : vector<1x128xf32> to vector<16x128xf32>
    %1955 = arith.mulf %1688, %1954 : vector<16x128xf32>
    %1956 = arith.addf %1952, %1955 : vector<16x128xf32>
    %1957 = vector.extract_strided_slice %1921 {offsets = [9, 0], sizes = [1, 128], strides = [1, 1]} : vector<16x128xf32> to vector<1x128xf32>
    %1958 = vector.broadcast %1957 : vector<1x128xf32> to vector<16x128xf32>
    %1959 = arith.mulf %1690, %1958 : vector<16x128xf32>
    %1960 = arith.addf %1956, %1959 : vector<16x128xf32>
    %1961 = vector.extract_strided_slice %1921 {offsets = [10, 0], sizes = [1, 128], strides = [1, 1]} : vector<16x128xf32> to vector<1x128xf32>
    %1962 = vector.broadcast %1961 : vector<1x128xf32> to vector<16x128xf32>
    %1963 = arith.mulf %1692, %1962 : vector<16x128xf32>
    %1964 = arith.addf %1960, %1963 : vector<16x128xf32>
    %1965 = vector.extract_strided_slice %1921 {offsets = [11, 0], sizes = [1, 128], strides = [1, 1]} : vector<16x128xf32> to vector<1x128xf32>
    %1966 = vector.broadcast %1965 : vector<1x128xf32> to vector<16x128xf32>
    %1967 = arith.mulf %1694, %1966 : vector<16x128xf32>
    %1968 = arith.addf %1964, %1967 : vector<16x128xf32>
    %1969 = vector.extract_strided_slice %1921 {offsets = [12, 0], sizes = [1, 128], strides = [1, 1]} : vector<16x128xf32> to vector<1x128xf32>
    %1970 = vector.broadcast %1969 : vector<1x128xf32> to vector<16x128xf32>
    %1971 = arith.mulf %1696, %1970 : vector<16x128xf32>
    %1972 = arith.addf %1968, %1971 : vector<16x128xf32>
    %1973 = vector.extract_strided_slice %1921 {offsets = [13, 0], sizes = [1, 128], strides = [1, 1]} : vector<16x128xf32> to vector<1x128xf32>
    %1974 = vector.broadcast %1973 : vector<1x128xf32> to vector<16x128xf32>
    %1975 = arith.mulf %1698, %1974 : vector<16x128xf32>
    %1976 = arith.addf %1972, %1975 : vector<16x128xf32>
    %1977 = vector.extract_strided_slice %1921 {offsets = [14, 0], sizes = [1, 128], strides = [1, 1]} : vector<16x128xf32> to vector<1x128xf32>
    %1978 = vector.broadcast %1977 : vector<1x128xf32> to vector<16x128xf32>
    %1979 = arith.mulf %1700, %1978 : vector<16x128xf32>
    %1980 = arith.addf %1976, %1979 : vector<16x128xf32>
    %1981 = vector.extract_strided_slice %1921 {offsets = [15, 0], sizes = [1, 128], strides = [1, 1]} : vector<16x128xf32> to vector<1x128xf32>
    %1982 = vector.broadcast %1981 : vector<1x128xf32> to vector<16x128xf32>
    %1983 = arith.mulf %1702, %1982 : vector<16x128xf32>
    %1984 = arith.addf %1980, %1983 : vector<16x128xf32>
    %1985 = arith.mulf %1984, %1718 : vector<16x128xf32>
    %c176_96 = arith.constant 176 : index
    %c0_97 = arith.constant 0 : index
    %1986 = vector.load %arg5[%c176_96, %c0_97] : memref<256x128xf32, #tpu.memory_space<vmem>>, vector<16x128xf32>
    tpu.vector_store %arg5[%c176_96, %c0_97], %1985 {strides = array<i32>} : memref<256x128xf32, #tpu.memory_space<vmem>>, vector<16x128xf32>,
    %c192_98 = arith.constant 192 : index
    %c0_99 = arith.constant 0 : index
    %1987 = vector.load %arg3[%c192_98, %c0_99] : memref<256x128xbf16, #tpu.memory_space<vmem>>, vector<16x128xbf16>
    %1988 = arith.extf %1987 : vector<16x128xbf16> to vector<16x128xf32>
    %1989 = vector.extract_strided_slice %1988 {offsets = [0, 0], sizes = [1, 128], strides = [1, 1]} : vector<16x128xf32> to vector<1x128xf32>
    %1990 = vector.broadcast %1989 : vector<1x128xf32> to vector<16x128xf32>
    %1991 = arith.mulf %1672, %1990 : vector<16x128xf32>
    %1992 = vector.extract_strided_slice %1988 {offsets = [1, 0], sizes = [1, 128], strides = [1, 1]} : vector<16x128xf32> to vector<1x128xf32>
    %1993 = vector.broadcast %1992 : vector<1x128xf32> to vector<16x128xf32>
    %1994 = arith.mulf %1674, %1993 : vector<16x128xf32>
    %1995 = arith.addf %1991, %1994 : vector<16x128xf32>
    %1996 = vector.extract_strided_slice %1988 {offsets = [2, 0], sizes = [1, 128], strides = [1, 1]} : vector<16x128xf32> to vector<1x128xf32>
    %1997 = vector.broadcast %1996 : vector<1x128xf32> to vector<16x128xf32>
    %1998 = arith.mulf %1676, %1997 : vector<16x128xf32>
    %1999 = arith.addf %1995, %1998 : vector<16x128xf32>
    %2000 = vector.extract_strided_slice %1988 {offsets = [3, 0], sizes = [1, 128], strides = [1, 1]} : vector<16x128xf32> to vector<1x128xf32>
    %2001 = vector.broadcast %2000 : vector<1x128xf32> to vector<16x128xf32>
    %2002 = arith.mulf %1678, %2001 : vector<16x128xf32>
    %2003 = arith.addf %1999, %2002 : vector<16x128xf32>
    %2004 = vector.extract_strided_slice %1988 {offsets = [4, 0], sizes = [1, 128], strides = [1, 1]} : vector<16x128xf32> to vector<1x128xf32>
    %2005 = vector.broadcast %2004 : vector<1x128xf32> to vector<16x128xf32>
    %2006 = arith.mulf %1680, %2005 : vector<16x128xf32>
    %2007 = arith.addf %2003, %2006 : vector<16x128xf32>
    %2008 = vector.extract_strided_slice %1988 {offsets = [5, 0], sizes = [1, 128], strides = [1, 1]} : vector<16x128xf32> to vector<1x128xf32>
    %2009 = vector.broadcast %2008 : vector<1x128xf32> to vector<16x128xf32>
    %2010 = arith.mulf %1682, %2009 : vector<16x128xf32>
    %2011 = arith.addf %2007, %2010 : vector<16x128xf32>
    %2012 = vector.extract_strided_slice %1988 {offsets = [6, 0], sizes = [1, 128], strides = [1, 1]} : vector<16x128xf32> to vector<1x128xf32>
    %2013 = vector.broadcast %2012 : vector<1x128xf32> to vector<16x128xf32>
    %2014 = arith.mulf %1684, %2013 : vector<16x128xf32>
    %2015 = arith.addf %2011, %2014 : vector<16x128xf32>
    %2016 = vector.extract_strided_slice %1988 {offsets = [7, 0], sizes = [1, 128], strides = [1, 1]} : vector<16x128xf32> to vector<1x128xf32>
    %2017 = vector.broadcast %2016 : vector<1x128xf32> to vector<16x128xf32>
    %2018 = arith.mulf %1686, %2017 : vector<16x128xf32>
    %2019 = arith.addf %2015, %2018 : vector<16x128xf32>
    %2020 = vector.extract_strided_slice %1988 {offsets = [8, 0], sizes = [1, 128], strides = [1, 1]} : vector<16x128xf32> to vector<1x128xf32>
    %2021 = vector.broadcast %2020 : vector<1x128xf32> to vector<16x128xf32>
    %2022 = arith.mulf %1688, %2021 : vector<16x128xf32>
    %2023 = arith.addf %2019, %2022 : vector<16x128xf32>
    %2024 = vector.extract_strided_slice %1988 {offsets = [9, 0], sizes = [1, 128], strides = [1, 1]} : vector<16x128xf32> to vector<1x128xf32>
    %2025 = vector.broadcast %2024 : vector<1x128xf32> to vector<16x128xf32>
    %2026 = arith.mulf %1690, %2025 : vector<16x128xf32>
    %2027 = arith.addf %2023, %2026 : vector<16x128xf32>
    %2028 = vector.extract_strided_slice %1988 {offsets = [10, 0], sizes = [1, 128], strides = [1, 1]} : vector<16x128xf32> to vector<1x128xf32>
    %2029 = vector.broadcast %2028 : vector<1x128xf32> to vector<16x128xf32>
    %2030 = arith.mulf %1692, %2029 : vector<16x128xf32>
    %2031 = arith.addf %2027, %2030 : vector<16x128xf32>
    %2032 = vector.extract_strided_slice %1988 {offsets = [11, 0], sizes = [1, 128], strides = [1, 1]} : vector<16x128xf32> to vector<1x128xf32>
    %2033 = vector.broadcast %2032 : vector<1x128xf32> to vector<16x128xf32>
    %2034 = arith.mulf %1694, %2033 : vector<16x128xf32>
    %2035 = arith.addf %2031, %2034 : vector<16x128xf32>
    %2036 = vector.extract_strided_slice %1988 {offsets = [12, 0], sizes = [1, 128], strides = [1, 1]} : vector<16x128xf32> to vector<1x128xf32>
    %2037 = vector.broadcast %2036 : vector<1x128xf32> to vector<16x128xf32>
    %2038 = arith.mulf %1696, %2037 : vector<16x128xf32>
    %2039 = arith.addf %2035, %2038 : vector<16x128xf32>
    %2040 = vector.extract_strided_slice %1988 {offsets = [13, 0], sizes = [1, 128], strides = [1, 1]} : vector<16x128xf32> to vector<1x128xf32>
    %2041 = vector.broadcast %2040 : vector<1x128xf32> to vector<16x128xf32>
    %2042 = arith.mulf %1698, %2041 : vector<16x128xf32>
    %2043 = arith.addf %2039, %2042 : vector<16x128xf32>
    %2044 = vector.extract_strided_slice %1988 {offsets = [14, 0], sizes = [1, 128], strides = [1, 1]} : vector<16x128xf32> to vector<1x128xf32>
    %2045 = vector.broadcast %2044 : vector<1x128xf32> to vector<16x128xf32>
    %2046 = arith.mulf %1700, %2045 : vector<16x128xf32>
    %2047 = arith.addf %2043, %2046 : vector<16x128xf32>
    %2048 = vector.extract_strided_slice %1988 {offsets = [15, 0], sizes = [1, 128], strides = [1, 1]} : vector<16x128xf32> to vector<1x128xf32>
    %2049 = vector.broadcast %2048 : vector<1x128xf32> to vector<16x128xf32>
    %2050 = arith.mulf %1702, %2049 : vector<16x128xf32>
    %2051 = arith.addf %2047, %2050 : vector<16x128xf32>
    %2052 = arith.mulf %2051, %1718 : vector<16x128xf32>
    %c192_100 = arith.constant 192 : index
    %c0_101 = arith.constant 0 : index
    %2053 = vector.load %arg5[%c192_100, %c0_101] : memref<256x128xf32, #tpu.memory_space<vmem>>, vector<16x128xf32>
    tpu.vector_store %arg5[%c192_100, %c0_101], %2052 {strides = array<i32>} : memref<256x128xf32, #tpu.memory_space<vmem>>, vector<16x128xf32>,
    %c208_102 = arith.constant 208 : index
    %c0_103 = arith.constant 0 : index
    %2054 = vector.load %arg3[%c208_102, %c0_103] : memref<256x128xbf16, #tpu.memory_space<vmem>>, vector<16x128xbf16>
    %2055 = arith.extf %2054 : vector<16x128xbf16> to vector<16x128xf32>
    %2056 = vector.extract_strided_slice %2055 {offsets = [0, 0], sizes = [1, 128], strides = [1, 1]} : vector<16x128xf32> to vector<1x128xf32>
    %2057 = vector.broadcast %2056 : vector<1x128xf32> to vector<16x128xf32>
    %2058 = arith.mulf %1672, %2057 : vector<16x128xf32>
    %2059 = vector.extract_strided_slice %2055 {offsets = [1, 0], sizes = [1, 128], strides = [1, 1]} : vector<16x128xf32> to vector<1x128xf32>
    %2060 = vector.broadcast %2059 : vector<1x128xf32> to vector<16x128xf32>
    %2061 = arith.mulf %1674, %2060 : vector<16x128xf32>
    %2062 = arith.addf %2058, %2061 : vector<16x128xf32>
    %2063 = vector.extract_strided_slice %2055 {offsets = [2, 0], sizes = [1, 128], strides = [1, 1]} : vector<16x128xf32> to vector<1x128xf32>
    %2064 = vector.broadcast %2063 : vector<1x128xf32> to vector<16x128xf32>
    %2065 = arith.mulf %1676, %2064 : vector<16x128xf32>
    %2066 = arith.addf %2062, %2065 : vector<16x128xf32>
    %2067 = vector.extract_strided_slice %2055 {offsets = [3, 0], sizes = [1, 128], strides = [1, 1]} : vector<16x128xf32> to vector<1x128xf32>
    %2068 = vector.broadcast %2067 : vector<1x128xf32> to vector<16x128xf32>
    %2069 = arith.mulf %1678, %2068 : vector<16x128xf32>
    %2070 = arith.addf %2066, %2069 : vector<16x128xf32>
    %2071 = vector.extract_strided_slice %2055 {offsets = [4, 0], sizes = [1, 128], strides = [1, 1]} : vector<16x128xf32> to vector<1x128xf32>
    %2072 = vector.broadcast %2071 : vector<1x128xf32> to vector<16x128xf32>
    %2073 = arith.mulf %1680, %2072 : vector<16x128xf32>
    %2074 = arith.addf %2070, %2073 : vector<16x128xf32>
    %2075 = vector.extract_strided_slice %2055 {offsets = [5, 0], sizes = [1, 128], strides = [1, 1]} : vector<16x128xf32> to vector<1x128xf32>
    %2076 = vector.broadcast %2075 : vector<1x128xf32> to vector<16x128xf32>
    %2077 = arith.mulf %1682, %2076 : vector<16x128xf32>
    %2078 = arith.addf %2074, %2077 : vector<16x128xf32>
    %2079 = vector.extract_strided_slice %2055 {offsets = [6, 0], sizes = [1, 128], strides = [1, 1]} : vector<16x128xf32> to vector<1x128xf32>
    %2080 = vector.broadcast %2079 : vector<1x128xf32> to vector<16x128xf32>
    %2081 = arith.mulf %1684, %2080 : vector<16x128xf32>
    %2082 = arith.addf %2078, %2081 : vector<16x128xf32>
    %2083 = vector.extract_strided_slice %2055 {offsets = [7, 0], sizes = [1, 128], strides = [1, 1]} : vector<16x128xf32> to vector<1x128xf32>
    %2084 = vector.broadcast %2083 : vector<1x128xf32> to vector<16x128xf32>
    %2085 = arith.mulf %1686, %2084 : vector<16x128xf32>
    %2086 = arith.addf %2082, %2085 : vector<16x128xf32>
    %2087 = vector.extract_strided_slice %2055 {offsets = [8, 0], sizes = [1, 128], strides = [1, 1]} : vector<16x128xf32> to vector<1x128xf32>
    %2088 = vector.broadcast %2087 : vector<1x128xf32> to vector<16x128xf32>
    %2089 = arith.mulf %1688, %2088 : vector<16x128xf32>
    %2090 = arith.addf %2086, %2089 : vector<16x128xf32>
    %2091 = vector.extract_strided_slice %2055 {offsets = [9, 0], sizes = [1, 128], strides = [1, 1]} : vector<16x128xf32> to vector<1x128xf32>
    %2092 = vector.broadcast %2091 : vector<1x128xf32> to vector<16x128xf32>
    %2093 = arith.mulf %1690, %2092 : vector<16x128xf32>
    %2094 = arith.addf %2090, %2093 : vector<16x128xf32>
    %2095 = vector.extract_strided_slice %2055 {offsets = [10, 0], sizes = [1, 128], strides = [1, 1]} : vector<16x128xf32> to vector<1x128xf32>
    %2096 = vector.broadcast %2095 : vector<1x128xf32> to vector<16x128xf32>
    %2097 = arith.mulf %1692, %2096 : vector<16x128xf32>
    %2098 = arith.addf %2094, %2097 : vector<16x128xf32>
    %2099 = vector.extract_strided_slice %2055 {offsets = [11, 0], sizes = [1, 128], strides = [1, 1]} : vector<16x128xf32> to vector<1x128xf32>
    %2100 = vector.broadcast %2099 : vector<1x128xf32> to vector<16x128xf32>
    %2101 = arith.mulf %1694, %2100 : vector<16x128xf32>
    %2102 = arith.addf %2098, %2101 : vector<16x128xf32>
    %2103 = vector.extract_strided_slice %2055 {offsets = [12, 0], sizes = [1, 128], strides = [1, 1]} : vector<16x128xf32> to vector<1x128xf32>
    %2104 = vector.broadcast %2103 : vector<1x128xf32> to vector<16x128xf32>
    %2105 = arith.mulf %1696, %2104 : vector<16x128xf32>
    %2106 = arith.addf %2102, %2105 : vector<16x128xf32>
    %2107 = vector.extract_strided_slice %2055 {offsets = [13, 0], sizes = [1, 128], strides = [1, 1]} : vector<16x128xf32> to vector<1x128xf32>
    %2108 = vector.broadcast %2107 : vector<1x128xf32> to vector<16x128xf32>
    %2109 = arith.mulf %1698, %2108 : vector<16x128xf32>
    %2110 = arith.addf %2106, %2109 : vector<16x128xf32>
    %2111 = vector.extract_strided_slice %2055 {offsets = [14, 0], sizes = [1, 128], strides = [1, 1]} : vector<16x128xf32> to vector<1x128xf32>
    %2112 = vector.broadcast %2111 : vector<1x128xf32> to vector<16x128xf32>
    %2113 = arith.mulf %1700, %2112 : vector<16x128xf32>
    %2114 = arith.addf %2110, %2113 : vector<16x128xf32>
    %2115 = vector.extract_strided_slice %2055 {offsets = [15, 0], sizes = [1, 128], strides = [1, 1]} : vector<16x128xf32> to vector<1x128xf32>
    %2116 = vector.broadcast %2115 : vector<1x128xf32> to vector<16x128xf32>
    %2117 = arith.mulf %1702, %2116 : vector<16x128xf32>
    %2118 = arith.addf %2114, %2117 : vector<16x128xf32>
    %2119 = arith.mulf %2118, %1718 : vector<16x128xf32>
    %c208_104 = arith.constant 208 : index
    %c0_105 = arith.constant 0 : index
    %2120 = vector.load %arg5[%c208_104, %c0_105] : memref<256x128xf32, #tpu.memory_space<vmem>>, vector<16x128xf32>
    tpu.vector_store %arg5[%c208_104, %c0_105], %2119 {strides = array<i32>} : memref<256x128xf32, #tpu.memory_space<vmem>>, vector<16x128xf32>,
    %c224_106 = arith.constant 224 : index
    %c0_107 = arith.constant 0 : index
    %2121 = vector.load %arg3[%c224_106, %c0_107] : memref<256x128xbf16, #tpu.memory_space<vmem>>, vector<16x128xbf16>
    %2122 = arith.extf %2121 : vector<16x128xbf16> to vector<16x128xf32>
    %2123 = vector.extract_strided_slice %2122 {offsets = [0, 0], sizes = [1, 128], strides = [1, 1]} : vector<16x128xf32> to vector<1x128xf32>
    %2124 = vector.broadcast %2123 : vector<1x128xf32> to vector<16x128xf32>
    %2125 = arith.mulf %1672, %2124 : vector<16x128xf32>
    %2126 = vector.extract_strided_slice %2122 {offsets = [1, 0], sizes = [1, 128], strides = [1, 1]} : vector<16x128xf32> to vector<1x128xf32>
    %2127 = vector.broadcast %2126 : vector<1x128xf32> to vector<16x128xf32>
    %2128 = arith.mulf %1674, %2127 : vector<16x128xf32>
    %2129 = arith.addf %2125, %2128 : vector<16x128xf32>
    %2130 = vector.extract_strided_slice %2122 {offsets = [2, 0], sizes = [1, 128], strides = [1, 1]} : vector<16x128xf32> to vector<1x128xf32>
    %2131 = vector.broadcast %2130 : vector<1x128xf32> to vector<16x128xf32>
    %2132 = arith.mulf %1676, %2131 : vector<16x128xf32>
    %2133 = arith.addf %2129, %2132 : vector<16x128xf32>
    %2134 = vector.extract_strided_slice %2122 {offsets = [3, 0], sizes = [1, 128], strides = [1, 1]} : vector<16x128xf32> to vector<1x128xf32>
    %2135 = vector.broadcast %2134 : vector<1x128xf32> to vector<16x128xf32>
    %2136 = arith.mulf %1678, %2135 : vector<16x128xf32>
    %2137 = arith.addf %2133, %2136 : vector<16x128xf32>
    %2138 = vector.extract_strided_slice %2122 {offsets = [4, 0], sizes = [1, 128], strides = [1, 1]} : vector<16x128xf32> to vector<1x128xf32>
    %2139 = vector.broadcast %2138 : vector<1x128xf32> to vector<16x128xf32>
    %2140 = arith.mulf %1680, %2139 : vector<16x128xf32>
    %2141 = arith.addf %2137, %2140 : vector<16x128xf32>
    %2142 = vector.extract_strided_slice %2122 {offsets = [5, 0], sizes = [1, 128], strides = [1, 1]} : vector<16x128xf32> to vector<1x128xf32>
    %2143 = vector.broadcast %2142 : vector<1x128xf32> to vector<16x128xf32>
    %2144 = arith.mulf %1682, %2143 : vector<16x128xf32>
    %2145 = arith.addf %2141, %2144 : vector<16x128xf32>
    %2146 = vector.extract_strided_slice %2122 {offsets = [6, 0], sizes = [1, 128], strides = [1, 1]} : vector<16x128xf32> to vector<1x128xf32>
    %2147 = vector.broadcast %2146 : vector<1x128xf32> to vector<16x128xf32>
    %2148 = arith.mulf %1684, %2147 : vector<16x128xf32>
    %2149 = arith.addf %2145, %2148 : vector<16x128xf32>
    %2150 = vector.extract_strided_slice %2122 {offsets = [7, 0], sizes = [1, 128], strides = [1, 1]} : vector<16x128xf32> to vector<1x128xf32>
    %2151 = vector.broadcast %2150 : vector<1x128xf32> to vector<16x128xf32>
    %2152 = arith.mulf %1686, %2151 : vector<16x128xf32>
    %2153 = arith.addf %2149, %2152 : vector<16x128xf32>
    %2154 = vector.extract_strided_slice %2122 {offsets = [8, 0], sizes = [1, 128], strides = [1, 1]} : vector<16x128xf32> to vector<1x128xf32>
    %2155 = vector.broadcast %2154 : vector<1x128xf32> to vector<16x128xf32>
    %2156 = arith.mulf %1688, %2155 : vector<16x128xf32>
    %2157 = arith.addf %2153, %2156 : vector<16x128xf32>
    %2158 = vector.extract_strided_slice %2122 {offsets = [9, 0], sizes = [1, 128], strides = [1, 1]} : vector<16x128xf32> to vector<1x128xf32>
    %2159 = vector.broadcast %2158 : vector<1x128xf32> to vector<16x128xf32>
    %2160 = arith.mulf %1690, %2159 : vector<16x128xf32>
    %2161 = arith.addf %2157, %2160 : vector<16x128xf32>
    %2162 = vector.extract_strided_slice %2122 {offsets = [10, 0], sizes = [1, 128], strides = [1, 1]} : vector<16x128xf32> to vector<1x128xf32>
    %2163 = vector.broadcast %2162 : vector<1x128xf32> to vector<16x128xf32>
    %2164 = arith.mulf %1692, %2163 : vector<16x128xf32>
    %2165 = arith.addf %2161, %2164 : vector<16x128xf32>
    %2166 = vector.extract_strided_slice %2122 {offsets = [11, 0], sizes = [1, 128], strides = [1, 1]} : vector<16x128xf32> to vector<1x128xf32>
    %2167 = vector.broadcast %2166 : vector<1x128xf32> to vector<16x128xf32>
    %2168 = arith.mulf %1694, %2167 : vector<16x128xf32>
    %2169 = arith.addf %2165, %2168 : vector<16x128xf32>
    %2170 = vector.extract_strided_slice %2122 {offsets = [12, 0], sizes = [1, 128], strides = [1, 1]} : vector<16x128xf32> to vector<1x128xf32>
    %2171 = vector.broadcast %2170 : vector<1x128xf32> to vector<16x128xf32>
    %2172 = arith.mulf %1696, %2171 : vector<16x128xf32>
    %2173 = arith.addf %2169, %2172 : vector<16x128xf32>
    %2174 = vector.extract_strided_slice %2122 {offsets = [13, 0], sizes = [1, 128], strides = [1, 1]} : vector<16x128xf32> to vector<1x128xf32>
    %2175 = vector.broadcast %2174 : vector<1x128xf32> to vector<16x128xf32>
    %2176 = arith.mulf %1698, %2175 : vector<16x128xf32>
    %2177 = arith.addf %2173, %2176 : vector<16x128xf32>
    %2178 = vector.extract_strided_slice %2122 {offsets = [14, 0], sizes = [1, 128], strides = [1, 1]} : vector<16x128xf32> to vector<1x128xf32>
    %2179 = vector.broadcast %2178 : vector<1x128xf32> to vector<16x128xf32>
    %2180 = arith.mulf %1700, %2179 : vector<16x128xf32>
    %2181 = arith.addf %2177, %2180 : vector<16x128xf32>
    %2182 = vector.extract_strided_slice %2122 {offsets = [15, 0], sizes = [1, 128], strides = [1, 1]} : vector<16x128xf32> to vector<1x128xf32>
    %2183 = vector.broadcast %2182 : vector<1x128xf32> to vector<16x128xf32>
    %2184 = arith.mulf %1702, %2183 : vector<16x128xf32>
    %2185 = arith.addf %2181, %2184 : vector<16x128xf32>
    %2186 = arith.mulf %2185, %1718 : vector<16x128xf32>
    %c224_108 = arith.constant 224 : index
    %c0_109 = arith.constant 0 : index
    %2187 = vector.load %arg5[%c224_108, %c0_109] : memref<256x128xf32, #tpu.memory_space<vmem>>, vector<16x128xf32>
    tpu.vector_store %arg5[%c224_108, %c0_109], %2186 {strides = array<i32>} : memref<256x128xf32, #tpu.memory_space<vmem>>, vector<16x128xf32>,
    %c240_110 = arith.constant 240 : index
    %c0_111 = arith.constant 0 : index
    %2188 = vector.load %arg3[%c240_110, %c0_111] : memref<256x128xbf16, #tpu.memory_space<vmem>>, vector<16x128xbf16>
    %2189 = arith.extf %2188 : vector<16x128xbf16> to vector<16x128xf32>
    %2190 = vector.extract_strided_slice %2189 {offsets = [0, 0], sizes = [1, 128], strides = [1, 1]} : vector<16x128xf32> to vector<1x128xf32>
    %2191 = vector.broadcast %2190 : vector<1x128xf32> to vector<16x128xf32>
    %2192 = arith.mulf %1672, %2191 : vector<16x128xf32>
    %2193 = vector.extract_strided_slice %2189 {offsets = [1, 0], sizes = [1, 128], strides = [1, 1]} : vector<16x128xf32> to vector<1x128xf32>
    %2194 = vector.broadcast %2193 : vector<1x128xf32> to vector<16x128xf32>
    %2195 = arith.mulf %1674, %2194 : vector<16x128xf32>
    %2196 = arith.addf %2192, %2195 : vector<16x128xf32>
    %2197 = vector.extract_strided_slice %2189 {offsets = [2, 0], sizes = [1, 128], strides = [1, 1]} : vector<16x128xf32> to vector<1x128xf32>
    %2198 = vector.broadcast %2197 : vector<1x128xf32> to vector<16x128xf32>
    %2199 = arith.mulf %1676, %2198 : vector<16x128xf32>
    %2200 = arith.addf %2196, %2199 : vector<16x128xf32>
    %2201 = vector.extract_strided_slice %2189 {offsets = [3, 0], sizes = [1, 128], strides = [1, 1]} : vector<16x128xf32> to vector<1x128xf32>
    %2202 = vector.broadcast %2201 : vector<1x128xf32> to vector<16x128xf32>
    %2203 = arith.mulf %1678, %2202 : vector<16x128xf32>
    %2204 = arith.addf %2200, %2203 : vector<16x128xf32>
    %2205 = vector.extract_strided_slice %2189 {offsets = [4, 0], sizes = [1, 128], strides = [1, 1]} : vector<16x128xf32> to vector<1x128xf32>
    %2206 = vector.broadcast %2205 : vector<1x128xf32> to vector<16x128xf32>
    %2207 = arith.mulf %1680, %2206 : vector<16x128xf32>
    %2208 = arith.addf %2204, %2207 : vector<16x128xf32>
    %2209 = vector.extract_strided_slice %2189 {offsets = [5, 0], sizes = [1, 128], strides = [1, 1]} : vector<16x128xf32> to vector<1x128xf32>
    %2210 = vector.broadcast %2209 : vector<1x128xf32> to vector<16x128xf32>
    %2211 = arith.mulf %1682, %2210 : vector<16x128xf32>
    %2212 = arith.addf %2208, %2211 : vector<16x128xf32>
    %2213 = vector.extract_strided_slice %2189 {offsets = [6, 0], sizes = [1, 128], strides = [1, 1]} : vector<16x128xf32> to vector<1x128xf32>
    %2214 = vector.broadcast %2213 : vector<1x128xf32> to vector<16x128xf32>
    %2215 = arith.mulf %1684, %2214 : vector<16x128xf32>
    %2216 = arith.addf %2212, %2215 : vector<16x128xf32>
    %2217 = vector.extract_strided_slice %2189 {offsets = [7, 0], sizes = [1, 128], strides = [1, 1]} : vector<16x128xf32> to vector<1x128xf32>
    %2218 = vector.broadcast %2217 : vector<1x128xf32> to vector<16x128xf32>
    %2219 = arith.mulf %1686, %2218 : vector<16x128xf32>
    %2220 = arith.addf %2216, %2219 : vector<16x128xf32>
    %2221 = vector.extract_strided_slice %2189 {offsets = [8, 0], sizes = [1, 128], strides = [1, 1]} : vector<16x128xf32> to vector<1x128xf32>
    %2222 = vector.broadcast %2221 : vector<1x128xf32> to vector<16x128xf32>
    %2223 = arith.mulf %1688, %2222 : vector<16x128xf32>
    %2224 = arith.addf %2220, %2223 : vector<16x128xf32>
    %2225 = vector.extract_strided_slice %2189 {offsets = [9, 0], sizes = [1, 128], strides = [1, 1]} : vector<16x128xf32> to vector<1x128xf32>
    %2226 = vector.broadcast %2225 : vector<1x128xf32> to vector<16x128xf32>
    %2227 = arith.mulf %1690, %2226 : vector<16x128xf32>
    %2228 = arith.addf %2224, %2227 : vector<16x128xf32>
    %2229 = vector.extract_strided_slice %2189 {offsets = [10, 0], sizes = [1, 128], strides = [1, 1]} : vector<16x128xf32> to vector<1x128xf32>
    %2230 = vector.broadcast %2229 : vector<1x128xf32> to vector<16x128xf32>
    %2231 = arith.mulf %1692, %2230 : vector<16x128xf32>
    %2232 = arith.addf %2228, %2231 : vector<16x128xf32>
    %2233 = vector.extract_strided_slice %2189 {offsets = [11, 0], sizes = [1, 128], strides = [1, 1]} : vector<16x128xf32> to vector<1x128xf32>
    %2234 = vector.broadcast %2233 : vector<1x128xf32> to vector<16x128xf32>
    %2235 = arith.mulf %1694, %2234 : vector<16x128xf32>
    %2236 = arith.addf %2232, %2235 : vector<16x128xf32>
    %2237 = vector.extract_strided_slice %2189 {offsets = [12, 0], sizes = [1, 128], strides = [1, 1]} : vector<16x128xf32> to vector<1x128xf32>
    %2238 = vector.broadcast %2237 : vector<1x128xf32> to vector<16x128xf32>
    %2239 = arith.mulf %1696, %2238 : vector<16x128xf32>
    %2240 = arith.addf %2236, %2239 : vector<16x128xf32>
    %2241 = vector.extract_strided_slice %2189 {offsets = [13, 0], sizes = [1, 128], strides = [1, 1]} : vector<16x128xf32> to vector<1x128xf32>
    %2242 = vector.broadcast %2241 : vector<1x128xf32> to vector<16x128xf32>
    %2243 = arith.mulf %1698, %2242 : vector<16x128xf32>
    %2244 = arith.addf %2240, %2243 : vector<16x128xf32>
    %2245 = vector.extract_strided_slice %2189 {offsets = [14, 0], sizes = [1, 128], strides = [1, 1]} : vector<16x128xf32> to vector<1x128xf32>
    %2246 = vector.broadcast %2245 : vector<1x128xf32> to vector<16x128xf32>
    %2247 = arith.mulf %1700, %2246 : vector<16x128xf32>
    %2248 = arith.addf %2244, %2247 : vector<16x128xf32>
    %2249 = vector.extract_strided_slice %2189 {offsets = [15, 0], sizes = [1, 128], strides = [1, 1]} : vector<16x128xf32> to vector<1x128xf32>
    %2250 = vector.broadcast %2249 : vector<1x128xf32> to vector<16x128xf32>
    %2251 = arith.mulf %1702, %2250 : vector<16x128xf32>
    %2252 = arith.addf %2248, %2251 : vector<16x128xf32>
    %2253 = arith.mulf %2252, %1718 : vector<16x128xf32>
    %c240_112 = arith.constant 240 : index
    %c0_113 = arith.constant 0 : index
    %2254 = vector.load %arg5[%c240_112, %c0_113] : memref<256x128xf32, #tpu.memory_space<vmem>>, vector<16x128xf32>
    tpu.vector_store %arg5[%c240_112, %c0_113], %2253 {strides = array<i32>} : memref<256x128xf32, #tpu.memory_space<vmem>>, vector<16x128xf32>,
    return
  }
  func.func @transform_0(%arg0: i32) -> (i32, i32) {
    %c0_i32 = arith.constant 0 : i32
    %c0_i32_0 = arith.constant 0 : i32
    return %c0_i32, %arg0 : i32, i32
  }
  func.func @transform_1(%arg0: i32) -> (i32, i32) {
    %c0_i32 = arith.constant 0 : i32
    %c0_i32_0 = arith.constant 0 : i32
    return %c0_i32, %arg0 : i32, i32
  }
  func.func @transform_2(%arg0: i32) -> (i32, i32) {
    %c0_i32 = arith.constant 0 : i32
    %c0_i32_0 = arith.constant 0 : i32
    return %c0_i32, %arg0 : i32, i32
  }
  func.func @transform_3(%arg0: i32) -> (i32, i32) {
    %c0_i32 = arith.constant 0 : i32
    %c0_i32_0 = arith.constant 0 : i32
    %c0_i32_1 = arith.constant 0 : i32
    return %c0_i32, %c0_i32_0 : i32, i32
  }
  func.func @transform_4(%arg0: i32) -> (i32, i32) {
    %c0_i32 = arith.constant 0 : i32
    %c0_i32_0 = arith.constant 0 : i32
    return %c0_i32, %arg0 : i32, i32
  }
}

</mosaic_0001>

<bundles_post_ra>
// kernel: sow_attention.1
= control target key start
LH: loop header
LB: loop body
LE: loop exit
PB: predicated region body
PF: predicated region fallthrough
CT: control target
= control target key end

     0   :  { %s6029_s15 = smov 0   ;;  %s6031_s16 = smov 0   ;;  %s10504_s0 = inlined_call_operand.vmem [shape: bf16[256,256], index: 0, kind: input, shape index: {}]   ;;  %s10505_s1 = inlined_call_operand.vmem [shape: bf16[256,256], index: 1, kind: input, shape index: {}]   ;;  %s10506_s2 = inlined_call_operand.vmem [shape: bf16[256,256], index: 2, kind: input, shape index: {}]   ;;  %s10507_s3 = inlined_call_operand.vmem [shape: f32[16,128], index: 3, kind: input, shape index: {}]   ;;  %s10508_s4 = inlined_call_operand.vmem [shape: f32[256,256], index: 4, kind: output, shape index: {}]  }
   0x1   :  { %s6033_s17 = smov 0  }
   0x2 LB: > { %s5562_s18 = sadd.s32 4294967295, %s6002_s17   ;;  %s6046_s19 = sadd.s32 1, %s6002_s17   ;;  %s6002_s17 = sphi %s6033_s17, %s10956_s17   ;;  %s5998_s16 = sphi %s6031_s16, %s10955_s16   ;;  %s5994_s15 = sphi %s6029_s15, %s10954_s15  }
   0x3   : > { %s18_s20 = ssub.s32 %s6002_s17, %s6046_s19  ;;  %s21_s21 = sadd.s32 1, %s5998_s16 }
   0x4   : > { %p19_p0 = scmp.eq.s32.totalorder %s18_s20, 0  ;;  %p28_p1 = scmp.ne.s32.totalorder %s5998_s16, %s5994_s15 }
   0x5   : > { %p29_p2 = scmp.eq.s32.totalorder %s6002_s17, 0  ;;  %p131_p3 = scmp.eq.s32.totalorder %s5562_s18, 1 }
   0x6   : > { %s6057_s22 = scalar_select %p19_p0, %s5998_s16, %s21_s21  }
   0x7   : > { %p6059_p4 = por %p29_p2, %p28_p1  ;;  %p6063_p5 = por %p131_p3, %p28_p1 }
   0x8   : > { %p5565_p6 = scmp.ge.s32.totalorder %s6002_s17, 2 }
   0xa   : > { %156 = sbr.rel (%p5565_p6) target bundleno = 92 (0x5c), region = 20 }
  0x11   : > { %159 = sbr.rel (!%p6059_p4) target bundleno = 42 (0x2a), region = 24  ;;  %s161_s25 = sand.u32 (%p6059_p4), 1, %s5998_s16  }
  0x12   : > { %s5567_s26 = sshll.u32 (%p6059_p4), %s6002_s17, 2  ;;  %s5566_s27 = sshll.u32 (%p6059_p4), %s161_s25, 7 }
  0x13   : > { %s6075_s30 = scalar_lea.vmem (%p6059_p4), %s10504_s0, %s5567_s26  ;;  %s6079_s5 = scalar_lea.vmem (%p6059_p4), [#allocation2], %s5566_s27 }
  0x14   : > { %v181_v0 = vld [vmem:[%s6075_s30] sm:$0xf] (%p6059_p4)  ;;  %v183_v1 = vld [vmem:[%s6075_s30 + $0x8] sm:$0xf] (%p6059_p4)  ;;  %v185_v2 = vld [vmem:[%s6075_s30 + $0x10] sm:$0xf] (%p6059_p4) }
  0x15   : > { %182 = vst [vmem:[%s6079_s5] sm:$0xf] (%p6059_p4), %v181_v0  ;;  %184 = vst [vmem:[%s6079_s5 + $0x4] sm:$0xf] (%p6059_p4), %v183_v1  ;;  %v187_v3 = vld [vmem:[%s6075_s30 + $0x18] sm:$0xf] (%p6059_p4) }
  0x16   : > { %v189_v4 = vld [vmem:[%s6075_s30 + $0x20] sm:$0xf] (%p6059_p4)  ;;  %186 = vst [vmem:[%s6079_s5 + $0x8] sm:$0xf] (%p6059_p4), %v185_v2  ;;  %188 = vst [vmem:[%s6079_s5 + $0xc] sm:$0xf] (%p6059_p4), %v187_v3 }
  0x17   : > { %190 = vst [vmem:[%s6079_s5 + $0x10] sm:$0xf] (%p6059_p4), %v189_v4  ;;  %v191_v5 = vld [vmem:[%s6075_s30 + $0x28] sm:$0xf] (%p6059_p4)  ;;  %v193_v6 = vld [vmem:[%s6075_s30 + $0x30] sm:$0xf] (%p6059_p4) }
  0x18   : > { %v195_v7 = vld [vmem:[%s6075_s30 + $0x38] sm:$0xf]  ;;  %192 = vst [vmem:[%s6079_s5 + $0x14] sm:$0xf] %v191_v5  ;;  %194 = vst [vmem:[%s6079_s5 + $0x18] sm:$0xf] %v193_v6 }
  0x19   : > { %196 = vst [vmem:[%s6079_s5 + $0x1c] sm:$0xf] %v195_v7  ;;  %v197_v8 = vld [vmem:[%s6075_s30 + $0x40] sm:$0xf]  ;;  %v199_v9 = vld [vmem:[%s6075_s30 + $0x48] sm:$0xf] }
  0x1a   : > { %v201_v10 = vld [vmem:[%s6075_s30 + $0x50] sm:$0xf]  ;;  %198 = vst [vmem:[%s6079_s5 + $0x20] sm:$0xf] %v197_v8  ;;  %200 = vst [vmem:[%s6079_s5 + $0x24] sm:$0xf] %v199_v9 }
  0x1b   : > { %202 = vst [vmem:[%s6079_s5 + $0x28] sm:$0xf] %v201_v10  ;;  %v203_v11 = vld [vmem:[%s6075_s30 + $0x58] sm:$0xf]  ;;  %v205_v12 = vld [vmem:[%s6075_s30 + $0x60] sm:$0xf] }
  0x1c   : > { %v207_v13 = vld [vmem:[%s6075_s30 + $0x68] sm:$0xf]  ;;  %204 = vst [vmem:[%s6079_s5 + $0x2c] sm:$0xf] %v203_v11  ;;  %206 = vst [vmem:[%s6079_s5 + $0x30] sm:$0xf] %v205_v12 }
  0x1d   : > { %208 = vst [vmem:[%s6079_s5 + $0x34] sm:$0xf] %v207_v13  ;;  %v209_v14 = vld [vmem:[%s6075_s30 + $0x70] sm:$0xf]  ;;  %v211_v15 = vld [vmem:[%s6075_s30 + $0x78] sm:$0xf] }
  0x1e   : > { %v213_v16 = vld [vmem:[%s6075_s30 + $0x80] sm:$0xf]  ;;  %210 = vst [vmem:[%s6079_s5 + $0x38] sm:$0xf] %v209_v14  ;;  %212 = vst [vmem:[%s6079_s5 + $0x3c] sm:$0xf] %v211_v15 }
  0x1f   : > { %214 = vst [vmem:[%s6079_s5 + $0x40] sm:$0xf] %v213_v16  ;;  %v215_v17 = vld [vmem:[%s6075_s30 + $0x88] sm:$0xf]  ;;  %v217_v18 = vld [vmem:[%s6075_s30 + $0x90] sm:$0xf] }
  0x20   : > { %v219_v19 = vld [vmem:[%s6075_s30 + $0x98] sm:$0xf]  ;;  %216 = vst [vmem:[%s6079_s5 + $0x44] sm:$0xf] %v215_v17  ;;  %218 = vst [vmem:[%s6079_s5 + $0x48] sm:$0xf] %v217_v18 }
  0x21   : > { %220 = vst [vmem:[%s6079_s5 + $0x4c] sm:$0xf] %v219_v19  ;;  %v221_v20 = vld [vmem:[%s6075_s30 + $0xa0] sm:$0xf]  ;;  %v223_v21 = vld [vmem:[%s6075_s30 + $0xa8] sm:$0xf] }
  0x22   : > { %v225_v22 = vld [vmem:[%s6075_s30 + $0xb0] sm:$0xf]  ;;  %222 = vst [vmem:[%s6079_s5 + $0x50] sm:$0xf] %v221_v20  ;;  %224 = vst [vmem:[%s6079_s5 + $0x54] sm:$0xf] %v223_v21 }
  0x23   : > { %226 = vst [vmem:[%s6079_s5 + $0x58] sm:$0xf] %v225_v22  ;;  %v227_v23 = vld [vmem:[%s6075_s30 + $0xb8] sm:$0xf]  ;;  %v229_v24 = vld [vmem:[%s6075_s30 + $0xc0] sm:$0xf] }
  0x24   : > { %v231_v25 = vld [vmem:[%s6075_s30 + $0xc8] sm:$0xf]  ;;  %228 = vst [vmem:[%s6079_s5 + $0x5c] sm:$0xf] %v227_v23  ;;  %230 = vst [vmem:[%s6079_s5 + $0x60] sm:$0xf] %v229_v24 }
  0x25   : > { %232 = vst [vmem:[%s6079_s5 + $0x64] sm:$0xf] %v231_v25  ;;  %v233_v26 = vld [vmem:[%s6075_s30 + $0xd0] sm:$0xf]  ;;  %v235_v27 = vld [vmem:[%s6075_s30 + $0xd8] sm:$0xf] }
  0x26   : > { %v237_v28 = vld [vmem:[%s6075_s30 + $0xe0] sm:$0xf]  ;;  %234 = vst [vmem:[%s6079_s5 + $0x68] sm:$0xf] %v233_v26  ;;  %236 = vst [vmem:[%s6079_s5 + $0x6c] sm:$0xf] %v235_v27 }
  0x27   : > { %238 = vst [vmem:[%s6079_s5 + $0x70] sm:$0xf] %v237_v28  ;;  %v239_v29 = vld [vmem:[%s6075_s30 + $0xe8] sm:$0xf]  ;;  %v241_v30 = vld [vmem:[%s6075_s30 + $0xf0] sm:$0xf] }
  0x28   : > { %v243_v31 = vld [vmem:[%s6075_s30 + $0xf8] sm:$0xf]  ;;  %240 = vst [vmem:[%s6079_s5 + $0x74] sm:$0xf] %v239_v29  ;;  %242 = vst [vmem:[%s6079_s5 + $0x78] sm:$0xf] %v241_v30 }
  0x29   : > { %244 = vst [vmem:[%s6079_s5 + $0x7c] sm:$0xf] %v243_v31 }
  0x2a PF: > { %331 = sbr.rel (!%p6059_p4) target bundleno = 67 (0x43), region = 65  ;;  %s333_s6 = sand.u32 (%p6059_p4), 1, %s5998_s16  }
  0x2b   : > { %s5569_s7 = sshll.u32 (%p6059_p4), %s6002_s17, 2  ;;  %s5568_s8 = sshll.u32 (%p6059_p4), %s333_s6, 7 }
  0x2c   : > { %s6150_s11 = scalar_lea.vmem (%p6059_p4), %s10505_s1, %s5569_s7  ;;  %s6154_s12 = scalar_lea.vmem (%p6059_p4), [#allocation3], %s5568_s8 }
  0x2d   : > { %v353_v32 = vld [vmem:[%s6150_s11] sm:$0xf] (%p6059_p4)  ;;  %v355_v33 = vld [vmem:[%s6150_s11 + $0x8] sm:$0xf] (%p6059_p4)  ;;  %v357_v34 = vld [vmem:[%s6150_s11 + $0x10] sm:$0xf] (%p6059_p4) }
  0x2e   : > { %354 = vst [vmem:[%s6154_s12] sm:$0xf] (%p6059_p4), %v353_v32  ;;  %356 = vst [vmem:[%s6154_s12 + $0x4] sm:$0xf] (%p6059_p4), %v355_v33  ;;  %v359_v35 = vld [vmem:[%s6150_s11 + $0x18] sm:$0xf] (%p6059_p4) }
  0x2f   : > { %v361_v36 = vld [vmem:[%s6150_s11 + $0x20] sm:$0xf] (%p6059_p4)  ;;  %358 = vst [vmem:[%s6154_s12 + $0x8] sm:$0xf] (%p6059_p4), %v357_v34  ;;  %360 = vst [vmem:[%s6154_s12 + $0xc] sm:$0xf] (%p6059_p4), %v359_v35 }
  0x30   : > { %362 = vst [vmem:[%s6154_s12 + $0x10] sm:$0xf] (%p6059_p4), %v361_v36  ;;  %v363_v37 = vld [vmem:[%s6150_s11 + $0x28] sm:$0xf] (%p6059_p4)  ;;  %v365_v38 = vld [vmem:[%s6150_s11 + $0x30] sm:$0xf] (%p6059_p4) }
  0x31   : > { %v367_v39 = vld [vmem:[%s6150_s11 + $0x38] sm:$0xf]  ;;  %364 = vst [vmem:[%s6154_s12 + $0x14] sm:$0xf] %v363_v37  ;;  %366 = vst [vmem:[%s6154_s12 + $0x18] sm:$0xf] %v365_v38 }
  0x32   : > { %368 = vst [vmem:[%s6154_s12 + $0x1c] sm:$0xf] %v367_v39  ;;  %v369_v40 = vld [vmem:[%s6150_s11 + $0x40] sm:$0xf]  ;;  %v371_v41 = vld [vmem:[%s6150_s11 + $0x48] sm:$0xf] }
  0x33   : > { %v373_v42 = vld [vmem:[%s6150_s11 + $0x50] sm:$0xf]  ;;  %370 = vst [vmem:[%s6154_s12 + $0x20] sm:$0xf] %v369_v40  ;;  %372 = vst [vmem:[%s6154_s12 + $0x24] sm:$0xf] %v371_v41 }
  0x34   : > { %374 = vst [vmem:[%s6154_s12 + $0x28] sm:$0xf] %v373_v42  ;;  %v375_v43 = vld [vmem:[%s6150_s11 + $0x58] sm:$0xf]  ;;  %v377_v44 = vld [vmem:[%s6150_s11 + $0x60] sm:$0xf] }
  0x35   : > { %v379_v45 = vld [vmem:[%s6150_s11 + $0x68] sm:$0xf]  ;;  %376 = vst [vmem:[%s6154_s12 + $0x2c] sm:$0xf] %v375_v43  ;;  %378 = vst [vmem:[%s6154_s12 + $0x30] sm:$0xf] %v377_v44 }
  0x36   : > { %380 = vst [vmem:[%s6154_s12 + $0x34] sm:$0xf] %v379_v45  ;;  %v381_v46 = vld [vmem:[%s6150_s11 + $0x70] sm:$0xf]  ;;  %v383_v47 = vld [vmem:[%s6150_s11 + $0x78] sm:$0xf] }
  0x37   : > { %v385_v48 = vld [vmem:[%s6150_s11 + $0x80] sm:$0xf]  ;;  %382 = vst [vmem:[%s6154_s12 + $0x38] sm:$0xf] %v381_v46  ;;  %384 = vst [vmem:[%s6154_s12 + $0x3c] sm:$0xf] %v383_v47 }
  0x38   : > { %386 = vst [vmem:[%s6154_s12 + $0x40] sm:$0xf] %v385_v48  ;;  %v387_v49 = vld [vmem:[%s6150_s11 + $0x88] sm:$0xf]  ;;  %v389_v50 = vld [vmem:[%s6150_s11 + $0x90] sm:$0xf] }
  0x39   : > { %v391_v51 = vld [vmem:[%s6150_s11 + $0x98] sm:$0xf]  ;;  %388 = vst [vmem:[%s6154_s12 + $0x44] sm:$0xf] %v387_v49  ;;  %390 = vst [vmem:[%s6154_s12 + $0x48] sm:$0xf] %v389_v50 }
  0x3a   : > { %392 = vst [vmem:[%s6154_s12 + $0x4c] sm:$0xf] %v391_v51  ;;  %v393_v52 = vld [vmem:[%s6150_s11 + $0xa0] sm:$0xf]  ;;  %v395_v53 = vld [vmem:[%s6150_s11 + $0xa8] sm:$0xf] }
  0x3b   : > { %v397_v54 = vld [vmem:[%s6150_s11 + $0xb0] sm:$0xf]  ;;  %394 = vst [vmem:[%s6154_s12 + $0x50] sm:$0xf] %v393_v52  ;;  %396 = vst [vmem:[%s6154_s12 + $0x54] sm:$0xf] %v395_v53 }
  0x3c   : > { %398 = vst [vmem:[%s6154_s12 + $0x58] sm:$0xf] %v397_v54  ;;  %v399_v55 = vld [vmem:[%s6150_s11 + $0xb8] sm:$0xf]  ;;  %v401_v56 = vld [vmem:[%s6150_s11 + $0xc0] sm:$0xf] }
  0x3d   : > { %v403_v57 = vld [vmem:[%s6150_s11 + $0xc8] sm:$0xf]  ;;  %400 = vst [vmem:[%s6154_s12 + $0x5c] sm:$0xf] %v399_v55  ;;  %402 = vst [vmem:[%s6154_s12 + $0x60] sm:$0xf] %v401_v56 }
  0x3e   : > { %404 = vst [vmem:[%s6154_s12 + $0x64] sm:$0xf] %v403_v57  ;;  %v405_v58 = vld [vmem:[%s6150_s11 + $0xd0] sm:$0xf]  ;;  %v407_v59 = vld [vmem:[%s6150_s11 + $0xd8] sm:$0xf] }
  0x3f   : > { %v409_v60 = vld [vmem:[%s6150_s11 + $0xe0] sm:$0xf]  ;;  %406 = vst [vmem:[%s6154_s12 + $0x68] sm:$0xf] %v405_v58  ;;  %408 = vst [vmem:[%s6154_s12 + $0x6c] sm:$0xf] %v407_v59 }
  0x40   : > { %410 = vst [vmem:[%s6154_s12 + $0x70] sm:$0xf] %v409_v60  ;;  %v411_v61 = vld [vmem:[%s6150_s11 + $0xe8] sm:$0xf]  ;;  %v413_v62 = vld [vmem:[%s6150_s11 + $0xf0] sm:$0xf] }
  0x41   : > { %v415_v63 = vld [vmem:[%s6150_s11 + $0xf8] sm:$0xf]  ;;  %412 = vst [vmem:[%s6154_s12 + $0x74] sm:$0xf] %v411_v61  ;;  %414 = vst [vmem:[%s6154_s12 + $0x78] sm:$0xf] %v413_v62 }
  0x42   : > { %416 = vst [vmem:[%s6154_s12 + $0x7c] sm:$0xf] %v415_v63 }
  0x43 PF: > { %503 = sbr.rel (!%p6059_p4) target bundleno = 92 (0x5c), region = 106  ;;  %s505_s13 = sand.u32 (%p6059_p4), 1, %s5998_s16  }
  0x44   : > { %s5571_s14 = sshll.u32 (%p6059_p4), %s6002_s17, 2  ;;  %s5570_s20 = sshll.u32 (%p6059_p4), %s505_s13, 7 }
  0x45   : > { %s6225_s26 = scalar_lea.vmem (%p6059_p4), %s10506_s2, %s5571_s14  ;;  %s6229_s23 = scalar_lea.vmem (%p6059_p4), [#allocation4], %s5570_s20 }
  0x46   : > { %v525_v0 = vld [vmem:[%s6225_s26] sm:$0xf] (%p6059_p4)  ;;  %v527_v1 = vld [vmem:[%s6225_s26 + $0x8] sm:$0xf] (%p6059_p4)  ;;  %v529_v2 = vld [vmem:[%s6225_s26 + $0x10] sm:$0xf] (%p6059_p4) }
  0x47   : > { %526 = vst [vmem:[%s6229_s23] sm:$0xf] (%p6059_p4), %v525_v0  ;;  %528 = vst [vmem:[%s6229_s23 + $0x4] sm:$0xf] (%p6059_p4), %v527_v1  ;;  %v531_v3 = vld [vmem:[%s6225_s26 + $0x18] sm:$0xf] (%p6059_p4) }
  0x48   : > { %v533_v4 = vld [vmem:[%s6225_s26 + $0x20] sm:$0xf] (%p6059_p4)  ;;  %530 = vst [vmem:[%s6229_s23 + $0x8] sm:$0xf] (%p6059_p4), %v529_v2  ;;  %532 = vst [vmem:[%s6229_s23 + $0xc] sm:$0xf] (%p6059_p4), %v531_v3 }
  0x49   : > { %534 = vst [vmem:[%s6229_s23 + $0x10] sm:$0xf] (%p6059_p4), %v533_v4  ;;  %v535_v5 = vld [vmem:[%s6225_s26 + $0x28] sm:$0xf] (%p6059_p4)  ;;  %v537_v6 = vld [vmem:[%s6225_s26 + $0x30] sm:$0xf] (%p6059_p4) }
  0x4a   : > { %v539_v7 = vld [vmem:[%s6225_s26 + $0x38] sm:$0xf]  ;;  %536 = vst [vmem:[%s6229_s23 + $0x14] sm:$0xf] %v535_v5  ;;  %538 = vst [vmem:[%s6229_s23 + $0x18] sm:$0xf] %v537_v6 }
  0x4b   : > { %540 = vst [vmem:[%s6229_s23 + $0x1c] sm:$0xf] %v539_v7  ;;  %v541_v8 = vld [vmem:[%s6225_s26 + $0x40] sm:$0xf]  ;;  %v543_v9 = vld [vmem:[%s6225_s26 + $0x48] sm:$0xf] }
  0x4c   : > { %v545_v10 = vld [vmem:[%s6225_s26 + $0x50] sm:$0xf]  ;;  %542 = vst [vmem:[%s6229_s23 + $0x20] sm:$0xf] %v541_v8  ;;  %544 = vst [vmem:[%s6229_s23 + $0x24] sm:$0xf] %v543_v9 }
  0x4d   : > { %546 = vst [vmem:[%s6229_s23 + $0x28] sm:$0xf] %v545_v10  ;;  %v547_v11 = vld [vmem:[%s6225_s26 + $0x58] sm:$0xf]  ;;  %v549_v12 = vld [vmem:[%s6225_s26 + $0x60] sm:$0xf] }
  0x4e   : > { %v551_v13 = vld [vmem:[%s6225_s26 + $0x68] sm:$0xf]  ;;  %548 = vst [vmem:[%s6229_s23 + $0x2c] sm:$0xf] %v547_v11  ;;  %550 = vst [vmem:[%s6229_s23 + $0x30] sm:$0xf] %v549_v12 }
  0x4f   : > { %552 = vst [vmem:[%s6229_s23 + $0x34] sm:$0xf] %v551_v13  ;;  %v553_v14 = vld [vmem:[%s6225_s26 + $0x70] sm:$0xf]  ;;  %v555_v15 = vld [vmem:[%s6225_s26 + $0x78] sm:$0xf] }
  0x50   : > { %v557_v16 = vld [vmem:[%s6225_s26 + $0x80] sm:$0xf]  ;;  %554 = vst [vmem:[%s6229_s23 + $0x38] sm:$0xf] %v553_v14  ;;  %556 = vst [vmem:[%s6229_s23 + $0x3c] sm:$0xf] %v555_v15 }
  0x51   : > { %558 = vst [vmem:[%s6229_s23 + $0x40] sm:$0xf] %v557_v16  ;;  %v559_v17 = vld [vmem:[%s6225_s26 + $0x88] sm:$0xf]  ;;  %v561_v18 = vld [vmem:[%s6225_s26 + $0x90] sm:$0xf] }
  0x52   : > { %v563_v19 = vld [vmem:[%s6225_s26 + $0x98] sm:$0xf]  ;;  %560 = vst [vmem:[%s6229_s23 + $0x44] sm:$0xf] %v559_v17  ;;  %562 = vst [vmem:[%s6229_s23 + $0x48] sm:$0xf] %v561_v18 }
  0x53   : > { %564 = vst [vmem:[%s6229_s23 + $0x4c] sm:$0xf] %v563_v19  ;;  %v565_v20 = vld [vmem:[%s6225_s26 + $0xa0] sm:$0xf]  ;;  %v567_v21 = vld [vmem:[%s6225_s26 + $0xa8] sm:$0xf] }
  0x54   : > { %v569_v22 = vld [vmem:[%s6225_s26 + $0xb0] sm:$0xf]  ;;  %566 = vst [vmem:[%s6229_s23 + $0x50] sm:$0xf] %v565_v20  ;;  %568 = vst [vmem:[%s6229_s23 + $0x54] sm:$0xf] %v567_v21 }
  0x55   : > { %570 = vst [vmem:[%s6229_s23 + $0x58] sm:$0xf] %v569_v22  ;;  %v571_v23 = vld [vmem:[%s6225_s26 + $0xb8] sm:$0xf]  ;;  %v573_v24 = vld [vmem:[%s6225_s26 + $0xc0] sm:$0xf] }
  0x56   : > { %v575_v25 = vld [vmem:[%s6225_s26 + $0xc8] sm:$0xf]  ;;  %572 = vst [vmem:[%s6229_s23 + $0x5c] sm:$0xf] %v571_v23  ;;  %574 = vst [vmem:[%s6229_s23 + $0x60] sm:$0xf] %v573_v24 }
  0x57   : > { %576 = vst [vmem:[%s6229_s23 + $0x64] sm:$0xf] %v575_v25  ;;  %v577_v26 = vld [vmem:[%s6225_s26 + $0xd0] sm:$0xf]  ;;  %v579_v27 = vld [vmem:[%s6225_s26 + $0xd8] sm:$0xf] }
  0x58   : > { %v581_v28 = vld [vmem:[%s6225_s26 + $0xe0] sm:$0xf]  ;;  %578 = vst [vmem:[%s6229_s23 + $0x68] sm:$0xf] %v577_v26  ;;  %580 = vst [vmem:[%s6229_s23 + $0x6c] sm:$0xf] %v579_v27 }
  0x59   : > { %582 = vst [vmem:[%s6229_s23 + $0x70] sm:$0xf] %v581_v28  ;;  %v583_v29 = vld [vmem:[%s6225_s26 + $0xe8] sm:$0xf]  ;;  %v585_v30 = vld [vmem:[%s6225_s26 + $0xf0] sm:$0xf] }
  0x5a   : > { %v587_v31 = vld [vmem:[%s6225_s26 + $0xf8] sm:$0xf]  ;;  %584 = vst [vmem:[%s6229_s23 + $0x74] sm:$0xf] %v583_v29  ;;  %586 = vst [vmem:[%s6229_s23 + $0x78] sm:$0xf] %v585_v30 }
  0x5b   : > { %588 = vst [vmem:[%s6229_s23 + $0x7c] sm:$0xf] %v587_v31 }
  0x5c PF: > { %p5572_p7 = scmp.ge.s32.totalorder %s6002_s17, 1  ;;  %p674_p8 = scmp.lt.s32.totalorder %s6002_s17, 3 }
  0x5e   : > { %p675_p9 = pnand %p5572_p7, %p674_p8 }
  0x60   : > { %678 = sbr.rel (%p675_p9) target bundleno = 862 (0x35e), region = 147 }
  0x67   : > { %s681_s27 = sand.u32 1, %s5994_s15   ;;  %v737_v32 = vlaneseq  ;;  %s5578_s20 = sshll.u32 (%p6063_p5), %s5562_s18, 3 }
  0x68   : > { %s6298_s28 = sshll.u32 %s681_s27, 7  ;;  %s5576_s8 = sshll.u32 %s681_s27, 8 }
  0x69   : > { %v738_v33 = vshrl.u32 %v737_v32, 7  ;;  %s6301_s29 = scalar_lea.vmem [#allocation2], %s6298_s28  ;;  %s6305_s30 = scalar_lea.vmem [#allocation3], %s6298_s28 }
  0x6a   : > { %v5582_v34 = vld [vmem:[%s6301_s29] sm:$0xff]   ;;  %v5773_v24 = vld [vmem:[%s6301_s29 + $0x8] sm:$0xff]   ;;  %v5775_v30 = vld [vmem:[%s6301_s29 + $0x10] sm:$0xff]   ;;  %s7355_s5 = scalar_lea.vmem [#allocation4], %s6298_s28  ;;  %s7963_s15 = scalar_lea.vmem [#allocation5], %s5576_s8 }
  0x6b   : > { %v5586_v35 = vld [vmem:[%s6305_s30] sm:$0xff]   ;;  %v5583_v36 = vunpack.c.l.bf16 %v5582_v34  ;;  %v5584_v37 = vunpack.c.h.bf16 %v5582_v34  ;;  %v6308_v40 = vsub.s32 0, %v738_v33  ;;  %v6310_v41 = vsub.s32 1, %v738_v33  ;;  %v5774_v25 = vld [vmem:[%s6305_s30 + $0x8] sm:$0xff]   ;;  %v5776_v31 = vld [vmem:[%s6305_s30 + $0x10] sm:$0xff]   ;;  %s10431_s24 = scalar_lea.vmem (%p6063_p5), %s10508_s4, %s5578_s20 }
  0x6c   : > { %v5587_v38 = vunpack.c.l.bf16 %v5586_v35  ;;  %v5588_v39 = vunpack.c.h.bf16 %v5586_v35  ;;  %v6312_v42 = vsub.s32 2, %v738_v33  ;;  %v6314_v43 = vsub.s32 3, %v738_v33 }
  0x6d   : > { %v6316_v44 = vsub.s32 4, %v738_v33  ;;  %v6318_v45 = vsub.s32 5, %v738_v33  ;;  %v6320_v46 = vsub.s32 6, %v738_v33  ;;  %v6322_v47 = vsub.s32 7, %v738_v33 }
  0x6e   : > { %v740_v48 = vrot.slane %v5587_v38, %v6308_v40  ;;  %v746_v49 = vrot.slane %v5587_v38, %v6310_v41  ;;  %v752_v50 = vrot.slane %v5587_v38, %v6312_v42  ;;  %v758_v51 = vrot.slane %v5587_v38, %v6314_v43 }
  0x6f   : > { %v764_v52 = vrot.slane %v5587_v38, %v6316_v44  ;;  %v770_v53 = vrot.slane %v5587_v38, %v6318_v45  ;;  %v776_v54 = vrot.slane %v5587_v38, %v6320_v46  ;;  %v782_v55 = vrot.slane %v5587_v38, %v6322_v47 }
  0x70   : > { %v6332_v56 = vmul.f32 %v5583_v36, %v740_v48  ;;  %v6334_v57 = vmul.f32 %v5584_v37, %v740_v48  ;;  %v6336_v58 = vmul.f32 %v5583_v36, %v746_v49  ;;  %v6338_v59 = vmul.f32 %v5584_v37, %v746_v49 }
  0x71   : > { %v6340_v60 = vmul.f32 %v5583_v36, %v752_v50  ;;  %v6342_v61 = vmul.f32 %v5584_v37, %v752_v50  ;;  %v6344_v62 = vmul.f32 %v5583_v36, %v758_v51  ;;  %v6346_v63 = vmul.f32 %v5584_v37, %v758_v51 }
  0x72   : > { %v6348_v0 = vmul.f32 %v5583_v36, %v764_v52  ;;  %v6350_v1 = vmul.f32 %v5584_v37, %v764_v52  ;;  %v6352_v2 = vmul.f32 %v5583_v36, %v770_v53  ;;  %v6354_v3 = vmul.f32 %v5584_v37, %v770_v53 }
  0x73   : > { %v6356_v4 = vmul.f32 %v5583_v36, %v776_v54  ;;  %v6358_v5 = vmul.f32 %v5584_v37, %v776_v54  ;;  %v6360_v6 = vmul.f32 %v5583_v36, %v782_v55  ;;  %v6362_v7 = vmul.f32 %v5584_v37, %v782_v55 }
  0x74   : > { %v788_v8 = vrot.slane %v5588_v39, %v6308_v40  ;;  %v794_v9 = vrot.slane %v5588_v39, %v6310_v41  ;;  %v800_v10 = vrot.slane %v5588_v39, %v6312_v42  ;;  %v806_v11 = vrot.slane %v5588_v39, %v6314_v43 }
  0x75   : > { %v812_v12 = vrot.slane %v5588_v39, %v6316_v44  ;;  %v818_v13 = vrot.slane %v5588_v39, %v6318_v45  ;;  %v824_v14 = vrot.slane %v5588_v39, %v6320_v46  ;;  %v830_v15 = vrot.slane %v5588_v39, %v6322_v47 }
  0x76   : > { %v6372_v16 = vmul.f32 %v5583_v36, %v788_v8  ;;  %v6374_v17 = vmul.f32 %v5584_v37, %v788_v8  ;;  %v6376_v18 = vmul.f32 %v5583_v36, %v794_v9  ;;  %v6378_v19 = vmul.f32 %v5584_v37, %v794_v9 }
  0x77   : > { %v6380_v20 = vmul.f32 %v5583_v36, %v800_v10  ;;  %v6382_v21 = vmul.f32 %v5584_v37, %v800_v10  ;;  %v6384_v22 = vmul.f32 %v5583_v36, %v806_v11  ;;  %v6386_v23 = vmul.f32 %v5584_v37, %v806_v11 }
  0x78   : > { %v6390_v26 = vmul.f32 %v5583_v36, %v812_v12  ;;  %v6392_v27 = vmul.f32 %v5584_v37, %v812_v12  ;;  %v6394_v28 = vmul.f32 %v5583_v36, %v818_v13  ;;  %v6396_v29 = vmul.f32 %v5584_v37, %v818_v13 }
  0x79   : > { %v6400_v32 = vmul.f32 %v5583_v36, %v824_v14  ;;  %v6402_v33 = vmul.f32 %v5584_v37, %v824_v14  ;;  %v6404_v34 = vmul.f32 %v5583_v36, %v830_v15  ;;  %v6406_v35 = vmul.f32 %v5584_v37, %v830_v15 }
  0x7a   : > { %v6408_v38 = vunpack.c.l.bf16 %v5773_v24  ;;  %v6410_v39 = vunpack.c.h.bf16 %v5773_v24  ;;  %v5595_v48 = vunpack.c.l.bf16 %v5774_v25  ;;  %v5596_v49 = vunpack.c.h.bf16 %v5774_v25 }
  0x7b   : > { %v6412_v50 = vunpack.c.l.bf16 %v5775_v30  ;;  %v6414_v51 = vunpack.c.h.bf16 %v5775_v30  ;;  %v6416_v52 = vunpack.c.l.bf16 %v5776_v31  ;;  %v6418_v53 = vunpack.c.h.bf16 %v5776_v31 }
  0x7c   : > { %v844_v54 = vrot.slane %v5595_v48, %v6308_v40  ;;  %v852_v36 = vrot.slane %v5595_v48, %v6310_v41  ;;  %v860_v37 = vrot.slane %v5595_v48, %v6312_v42  ;;  %v868_v55 = vrot.slane %v5595_v48, %v6314_v43 }
  0x7d   : > { %10662 = vst [vmem:[#allocation6_spill] sm:$0xff] %v6414_v51  ;;  %10663 = vst [vmem:[#allocation7_spill] sm:$0xff] %v6418_v53  ;;  %v876_v8 = vrot.slane %v5595_v48, %v6316_v44  ;;  %v884_v9 = vrot.slane %v5595_v48, %v6318_v45  ;;  %v892_v10 = vrot.slane %v5595_v48, %v6320_v46 }
  0x7e   : > { %v900_v11 = vrot.slane %v5595_v48, %v6322_v47  ;;  %v845_v12 = vmul.f32 %v6408_v38, %v844_v54  ;;  %v846_v13 = vmul.f32 %v6410_v39, %v844_v54  ;;  %v853_v14 = vmul.f32 %v6408_v38, %v852_v36 }
  0x7f   : > { %v854_v15 = vmul.f32 %v6410_v39, %v852_v36  ;;  %v861_v24 = vmul.f32 %v6408_v38, %v860_v37  ;;  %v862_v25 = vmul.f32 %v6410_v39, %v860_v37  ;;  %v869_v30 = vmul.f32 %v6408_v38, %v868_v55 }
  0x80   : > { %v870_v31 = vmul.f32 %v6410_v39, %v868_v55  ;;  %v6437_v53 = vadd.f32 %v845_v12, %v6332_v56  ;;  %v6440_v48 = vadd.f32 %v846_v13, %v6334_v57  ;;  %v6443_v54 = vadd.f32 %v853_v14, %v6336_v58 }
  0x81   : > { %v6446_v51 = vadd.f32 %v854_v15, %v6338_v59  ;;  %v6449_v36 = vadd.f32 %v861_v24, %v6340_v60  ;;  %v6452_v37 = vadd.f32 %v862_v25, %v6342_v61  ;;  %v6455_v55 = vadd.f32 %v869_v30, %v6344_v62 }
  0x82   : > { %v6458_v56 = vadd.f32 %v870_v31, %v6346_v63  ;;  %v877_v57 = vmul.f32 %v6408_v38, %v876_v8  ;;  %v878_v58 = vmul.f32 %v6410_v39, %v876_v8  ;;  %v885_v12 = vmul.f32 %v6408_v38, %v884_v9 }
  0x83   : > { %v886_v59 = vmul.f32 %v6410_v39, %v884_v9  ;;  %v893_v60 = vmul.f32 %v6408_v38, %v892_v10  ;;  %v894_v13 = vmul.f32 %v6410_v39, %v892_v10  ;;  %v901_v61 = vmul.f32 %v6408_v38, %v900_v11 }
  0x84   : > { %v902_v62 = vmul.f32 %v6410_v39, %v900_v11  ;;  %v6469_v14 = vadd.f32 %v877_v57, %v6348_v0  ;;  %v6472_v63 = vadd.f32 %v878_v58, %v6350_v1  ;;  %v6475_v8 = vadd.f32 %v885_v12, %v6352_v2 }
  0x85   : > { %v6478_v15 = vadd.f32 %v886_v59, %v6354_v3  ;;  %v6481_v9 = vadd.f32 %v893_v60, %v6356_v4  ;;  %v6484_v10 = vadd.f32 %v894_v13, %v6358_v5  ;;  %v6487_v11 = vadd.f32 %v901_v61, %v6360_v6 }
  0x86   : > { %v6490_v0 = vadd.f32 %v902_v62, %v6362_v7  ;;  %v908_v1 = vrot.slane %v5596_v49, %v6308_v40  ;;  %v916_v2 = vrot.slane %v5596_v49, %v6310_v41  ;;  %v924_v24 = vrot.slane %v5596_v49, %v6312_v42 }
  0x87   : > { %v932_v3 = vrot.slane %v5596_v49, %v6314_v43  ;;  %v940_v4 = vrot.slane %v5596_v49, %v6316_v44  ;;  %v948_v25 = vrot.slane %v5596_v49, %v6318_v45  ;;  %v956_v5 = vrot.slane %v5596_v49, %v6320_v46 }
  0x88   : > { %v964_v6 = vrot.slane %v5596_v49, %v6322_v47  ;;  %v909_v30 = vmul.f32 %v6408_v38, %v908_v1  ;;  %v910_v7 = vmul.f32 %v6410_v39, %v908_v1  ;;  %v917_v31 = vmul.f32 %v6408_v38, %v916_v2 }
  0x89   : > { %v918_v57 = vmul.f32 %v6410_v39, %v916_v2  ;;  %v925_v58 = vmul.f32 %v6408_v38, %v924_v24  ;;  %v926_v12 = vmul.f32 %v6410_v39, %v924_v24  ;;  %v933_v59 = vmul.f32 %v6408_v38, %v932_v3 }
  0x8a   : > { %v934_v60 = vmul.f32 %v6410_v39, %v932_v3  ;;  %v6509_v13 = vadd.f32 %v909_v30, %v6372_v16  ;;  %v6512_v49 = vadd.f32 %v910_v7, %v6374_v17  ;;  %v6515_v61 = vadd.f32 %v917_v31, %v6376_v18 }
  0x8b   : > { %v6518_v62 = vadd.f32 %v918_v57, %v6378_v19  ;;  %v6521_v1 = vadd.f32 %v925_v58, %v6380_v20  ;;  %v6524_v2 = vadd.f32 %v926_v12, %v6382_v21  ;;  %v6527_v24 = vadd.f32 %v933_v59, %v6384_v22  ;;  %v10664_v57 = vld [vmem:[#allocation6_spill] sm:$0xff] }
  0x8c   : > { %v6530_v16 = vadd.f32 %v934_v60, %v6386_v23  ;;  %v941_v17 = vmul.f32 %v6408_v38, %v940_v4  ;;  %v942_v18 = vmul.f32 %v6410_v39, %v940_v4  ;;  %v949_v3 = vmul.f32 %v6408_v38, %v948_v25 }
  0x8d   : > { %v950_v19 = vmul.f32 %v6410_v39, %v948_v25  ;;  %v957_v20 = vmul.f32 %v6408_v38, %v956_v5  ;;  %v958_v30 = vmul.f32 %v6410_v39, %v956_v5  ;;  %v965_v21 = vmul.f32 %v6408_v38, %v964_v6 }
  0x8e   : > { %v966_v22 = vmul.f32 %v6410_v39, %v964_v6  ;;  %v6541_v7 = vadd.f32 %v941_v17, %v6390_v26  ;;  %v6544_v23 = vadd.f32 %v942_v18, %v6392_v27  ;;  %v6547_v4 = vadd.f32 %v949_v3, %v6394_v28 }
  0x8f   : > { %v6550_v31 = vadd.f32 %v950_v19, %v6396_v29  ;;  %v6553_v25 = vadd.f32 %v957_v20, %v6400_v32  ;;  %v6556_v5 = vadd.f32 %v958_v30, %v6402_v33  ;;  %v6559_v38 = vadd.f32 %v965_v21, %v6404_v34 }
  0x90   : > { %v6562_v26 = vadd.f32 %v966_v22, %v6406_v35  ;;  %v980_v27 = vrot.slane %v6416_v52, %v6308_v40  ;;  %v988_v28 = vrot.slane %v6416_v52, %v6310_v41  ;;  %v996_v29 = vrot.slane %v6416_v52, %v6312_v42 }
  0x91   : > { %v1004_v32 = vrot.slane %v6416_v52, %v6314_v43  ;;  %v1012_v33 = vrot.slane %v6416_v52, %v6316_v44  ;;  %v1020_v34 = vrot.slane %v6416_v52, %v6318_v45  ;;  %v1028_v35 = vrot.slane %v6416_v52, %v6320_v46 }
  0x92   : > { %v1036_v39 = vrot.slane %v6416_v52, %v6322_v47  ;;  %v981_v6 = vmul.f32 %v6412_v50, %v980_v27  ;;  %v982_v58 = vmul.f32 %v10664_v57, %v980_v27  ;;  %v989_v12 = vmul.f32 %v6412_v50, %v988_v28 }
  0x93   : > { %v990_v59 = vmul.f32 %v10664_v57, %v988_v28  ;;  %v997_v60 = vmul.f32 %v6412_v50, %v996_v29  ;;  %v998_v17 = vmul.f32 %v10664_v57, %v996_v29  ;;  %v1005_v18 = vmul.f32 %v6412_v50, %v1004_v32 }
  0x94   : > { %v1006_v3 = vmul.f32 %v10664_v57, %v1004_v32  ;;  %v6589_v19 = vadd.f32 %v981_v6, %v6437_v53  ;;  %v6592_v52 = vadd.f32 %v982_v58, %v6440_v48  ;;  %v6595_v20 = vadd.f32 %v989_v12, %v6443_v54 }
  0x95   : > { %v6598_v30 = vadd.f32 %v990_v59, %v6446_v51  ;;  %v6601_v21 = vadd.f32 %v997_v60, %v6449_v36  ;;  %v6604_v22 = vadd.f32 %v998_v17, %v6452_v37  ;;  %v6607_v27 = vadd.f32 %v1005_v18, %v6455_v55 }
  0x96   : > { %v6610_v53 = vadd.f32 %v1006_v3, %v6458_v56  ;;  %v1013_v48 = vmul.f32 %v6412_v50, %v1012_v33  ;;  %v1014_v54 = vmul.f32 %v10664_v57, %v1012_v33  ;;  %v1021_v28 = vmul.f32 %v6412_v50, %v1020_v34 }
  0x97   : > { %v1022_v51 = vmul.f32 %v10664_v57, %v1020_v34  ;;  %v1029_v36 = vmul.f32 %v6412_v50, %v1028_v35  ;;  %v1030_v29 = vmul.f32 %v10664_v57, %v1028_v35  ;;  %v1037_v37 = vmul.f32 %v6412_v50, %v1036_v39 }
  0x98   : > { %v1038_v55 = vmul.f32 %v10664_v57, %v1036_v39  ;;  %v6621_v32 = vadd.f32 %v1013_v48, %v6469_v14  ;;  %v6624_v56 = vadd.f32 %v1014_v54, %v6472_v63  ;;  %v6627_v33 = vadd.f32 %v1021_v28, %v6475_v8  ;;  %v10665_v63 = vld [vmem:[#allocation7_spill] sm:$0xff] }
  0x99   : > { %v6630_v6 = vadd.f32 %v1022_v51, %v6478_v15  ;;  %v6633_v34 = vadd.f32 %v1029_v36, %v6481_v9  ;;  %v6636_v35 = vadd.f32 %v1030_v29, %v6484_v10  ;;  %v6639_v39 = vadd.f32 %v1037_v37, %v6487_v11 }
  0x9a   : > { %v6642_v14 = vadd.f32 %v1038_v55, %v6490_v0  ;;  %v1044_v58 = vrot.slane %v10665_v63, %v6308_v40  ;;  %v1052_v8 = vrot.slane %v10665_v63, %v6310_v41  ;;  %v1060_v15 = vrot.slane %v10665_v63, %v6312_v42 }
  0x9b   : > { %v1068_v9 = vrot.slane %v10665_v63, %v6314_v43  ;;  %v1076_v10 = vrot.slane %v10665_v63, %v6316_v44  ;;  %v1084_v11 = vrot.slane %v10665_v63, %v6318_v45  ;;  %v1092_v0 = vrot.slane %v10665_v63, %v6320_v46 }
  0x9c   : > { %v1100_v12 = vrot.slane %v10665_v63, %v6322_v47  ;;  %v1045_v59 = vmul.f32 %v6412_v50, %v1044_v58  ;;  %v1046_v60 = vmul.f32 %v10664_v57, %v1044_v58  ;;  %v1053_v17 = vmul.f32 %v6412_v50, %v1052_v8 }
  0x9d   : > { %v1054_v18 = vmul.f32 %v10664_v57, %v1052_v8  ;;  %v1061_v3 = vmul.f32 %v6412_v50, %v1060_v15  ;;  %v1062_v48 = vmul.f32 %v10664_v57, %v1060_v15  ;;  %v1069_v54 = vmul.f32 %v6412_v50, %v1068_v9 }
  0x9e   : > { %v1070_v28 = vmul.f32 %v10664_v57, %v1068_v9  ;;  %v6669_v51 = vadd.f32 %v1045_v59, %v6509_v13  ;;  %v6672_v36 = vadd.f32 %v1046_v60, %v6512_v49  ;;  %v6675_v29 = vadd.f32 %v1053_v17, %v6515_v61  ;;  %v5777_v9 = vld [vmem:[%s6301_s29 + $0x18] sm:$0xff]   ;;  %v5779_v17 = vld [vmem:[%s6301_s29 + $0x20] sm:$0xff]  }
  0x9f   : > { %v6678_v37 = vadd.f32 %v1054_v18, %v6518_v62  ;;  %v6681_v55 = vadd.f32 %v1061_v3, %v6521_v1  ;;  %v6684_v63 = vadd.f32 %v1062_v48, %v6524_v2  ;;  %v6687_v13 = vadd.f32 %v1069_v54, %v6527_v24 }
  0xa0   : > { %v6690_v49 = vadd.f32 %v1070_v28, %v6530_v16  ;;  %v1077_v61 = vmul.f32 %v6412_v50, %v1076_v10  ;;  %v1078_v58 = vmul.f32 %v10664_v57, %v1076_v10  ;;  %v1085_v62 = vmul.f32 %v6412_v50, %v1084_v11  ;;  %v5778_v16 = vld [vmem:[%s6305_s30 + $0x18] sm:$0xff]  }
  0xa1   : > { %v1086_v1 = vmul.f32 %v10664_v57, %v1084_v11  ;;  %v1093_v8 = vmul.f32 %v6412_v50, %v1092_v0  ;;  %v1094_v2 = vmul.f32 %v10664_v57, %v1092_v0  ;;  %v1101_v24 = vmul.f32 %v6412_v50, %v1100_v12  ;;  %v5780_v0 = vld [vmem:[%s6305_s30 + $0x20] sm:$0xff]  }
  0xa2   : > { %v1102_v15 = vmul.f32 %v10664_v57, %v1100_v12  ;;  %v6703_v59 = vadd.f32 %v1077_v61, %v6541_v7  ;;  %v6706_v60 = vadd.f32 %v1078_v58, %v6544_v23  ;;  %v6709_v10 = vadd.f32 %v1085_v62, %v6547_v4 }
  0xa3   : > { %v6712_v11 = vadd.f32 %v1086_v1, %v6550_v31  ;;  %v6717_v50 = vadd.f32 %v1093_v8, %v6553_v25  ;;  %v6720_v57 = vadd.f32 %v1094_v2, %v6556_v5  ;;  %v6723_v7 = vadd.f32 %v1101_v24, %v6559_v38 }
  0xa4   : > { %v6726_v23 = vadd.f32 %v1102_v15, %v6562_v26  ;;  %v6728_v12 = vunpack.c.l.bf16 %v5777_v9  ;;  %v6730_v4 = vunpack.c.h.bf16 %v5777_v9  ;;  %v5611_v31 = vunpack.c.l.bf16 %v5778_v16 }
  0xa5   : > { %v5612_v18 = vunpack.c.h.bf16 %v5778_v16  ;;  %v6732_v3 = vunpack.c.l.bf16 %v5779_v17  ;;  %v6734_v48 = vunpack.c.h.bf16 %v5779_v17  ;;  %v6736_v25 = vunpack.c.l.bf16 %v5780_v0 }
  0xa6   : > { %v6738_v5 = vunpack.c.h.bf16 %v5780_v0  ;;  %v1116_v38 = vrot.slane %v5611_v31, %v6308_v40  ;;  %v1124_v54 = vrot.slane %v5611_v31, %v6310_v41  ;;  %v1132_v26 = vrot.slane %v5611_v31, %v6312_v42 }
  0xa7   : > { %10666 = vst [vmem:[#allocation6_spill] sm:$0xff] %v6734_v48  ;;  %v1140_v28 = vrot.slane %v5611_v31, %v6314_v43  ;;  %v1148_v61 = vrot.slane %v5611_v31, %v6316_v44  ;;  %v1156_v58 = vrot.slane %v5611_v31, %v6318_v45  ;;  %v1164_v62 = vrot.slane %v5611_v31, %v6320_v46 }
  0xa8   : > { %10667 = vst [vmem:[#allocation7_spill] sm:$0xff] %v6738_v5  ;;  %v1172_v1 = vrot.slane %v5611_v31, %v6322_v47  ;;  %v1117_v8 = vmul.f32 %v6728_v12, %v1116_v38  ;;  %v1118_v2 = vmul.f32 %v6730_v4, %v1116_v38  ;;  %v1125_v24 = vmul.f32 %v6728_v12, %v1124_v54 }
  0xa9   : > { %v1126_v15 = vmul.f32 %v6730_v4, %v1124_v54  ;;  %v1133_v9 = vmul.f32 %v6728_v12, %v1132_v26  ;;  %v1134_v16 = vmul.f32 %v6730_v4, %v1132_v26  ;;  %v1141_v17 = vmul.f32 %v6728_v12, %v1140_v28 }
  0xaa   : > { %v1142_v0 = vmul.f32 %v6730_v4, %v1140_v28  ;;  %v6757_v5 = vadd.f32 %v1117_v8, %v6589_v19  ;;  %v6760_v31 = vadd.f32 %v1118_v2, %v6592_v52  ;;  %v6763_v38 = vadd.f32 %v1125_v24, %v6595_v20 }
  0xab   : > { %v6766_v48 = vadd.f32 %v1126_v15, %v6598_v30  ;;  %v6769_v54 = vadd.f32 %v1133_v9, %v6601_v21  ;;  %v6772_v26 = vadd.f32 %v1134_v16, %v6604_v22  ;;  %v6775_v28 = vadd.f32 %v1141_v17, %v6607_v27 }
  0xac   : > { %v6778_v19 = vadd.f32 %v1142_v0, %v6610_v53  ;;  %v1149_v52 = vmul.f32 %v6728_v12, %v1148_v61  ;;  %v1150_v20 = vmul.f32 %v6730_v4, %v1148_v61  ;;  %v1157_v8 = vmul.f32 %v6728_v12, %v1156_v58 }
  0xad   : > { %v1158_v30 = vmul.f32 %v6730_v4, %v1156_v58  ;;  %v1165_v21 = vmul.f32 %v6728_v12, %v1164_v62  ;;  %v1166_v2 = vmul.f32 %v6730_v4, %v1164_v62  ;;  %v1173_v22 = vmul.f32 %v6728_v12, %v1172_v1 }
  0xae   : > { %v1174_v27 = vmul.f32 %v6730_v4, %v1172_v1  ;;  %v6789_v24 = vadd.f32 %v1149_v52, %v6621_v32  ;;  %v6792_v53 = vadd.f32 %v1150_v20, %v6624_v56  ;;  %v6795_v61 = vadd.f32 %v1157_v8, %v6627_v33 }
  0xaf   : > { %v6798_v15 = vadd.f32 %v1158_v30, %v6630_v6  ;;  %v6801_v58 = vadd.f32 %v1165_v21, %v6633_v34  ;;  %v6804_v62 = vadd.f32 %v1166_v2, %v6636_v35  ;;  %v6807_v1 = vadd.f32 %v1173_v22, %v6639_v39 }
  0xb0   : > { %v6810_v32 = vadd.f32 %v1174_v27, %v6642_v14  ;;  %v1180_v56 = vrot.slane %v5612_v18, %v6308_v40  ;;  %v1188_v33 = vrot.slane %v5612_v18, %v6310_v41  ;;  %v1196_v9 = vrot.slane %v5612_v18, %v6312_v42 }
  0xb1   : > { %v1204_v6 = vrot.slane %v5612_v18, %v6314_v43  ;;  %v1212_v34 = vrot.slane %v5612_v18, %v6316_v44  ;;  %v1220_v16 = vrot.slane %v5612_v18, %v6318_v45  ;;  %v1228_v35 = vrot.slane %v5612_v18, %v6320_v46 }
  0xb2   : > { %v1236_v39 = vrot.slane %v5612_v18, %v6322_v47  ;;  %v1181_v17 = vmul.f32 %v6728_v12, %v1180_v56  ;;  %v1182_v14 = vmul.f32 %v6730_v4, %v1180_v56  ;;  %v1189_v0 = vmul.f32 %v6728_v12, %v1188_v33 }
  0xb3   : > { %v1190_v52 = vmul.f32 %v6730_v4, %v1188_v33  ;;  %v1197_v20 = vmul.f32 %v6728_v12, %v1196_v9  ;;  %v1198_v8 = vmul.f32 %v6730_v4, %v1196_v9  ;;  %v1205_v30 = vmul.f32 %v6728_v12, %v1204_v6 }
  0xb4   : > { %v1206_v21 = vmul.f32 %v6730_v4, %v1204_v6  ;;  %v6829_v2 = vadd.f32 %v1181_v17, %v6669_v51  ;;  %v6832_v18 = vadd.f32 %v1182_v14, %v6672_v36  ;;  %v6835_v22 = vadd.f32 %v1189_v0, %v6675_v29 }
  0xb5   : > { %v6838_v27 = vadd.f32 %v1190_v52, %v6678_v37  ;;  %v6841_v56 = vadd.f32 %v1197_v20, %v6681_v55  ;;  %v6844_v33 = vadd.f32 %v1198_v8, %v6684_v63  ;;  %v6847_v9 = vadd.f32 %v1205_v30, %v6687_v13  ;;  %v10668_v52 = vld [vmem:[#allocation6_spill] sm:$0xff] }
  0xb6   : > { %v6850_v51 = vadd.f32 %v1206_v21, %v6690_v49  ;;  %v1213_v36 = vmul.f32 %v6728_v12, %v1212_v34  ;;  %v1214_v29 = vmul.f32 %v6730_v4, %v1212_v34  ;;  %v1221_v6 = vmul.f32 %v6728_v12, %v1220_v16 }
  0xb7   : > { %v1222_v37 = vmul.f32 %v6730_v4, %v1220_v16  ;;  %v1229_v55 = vmul.f32 %v6728_v12, %v1228_v35  ;;  %v1230_v17 = vmul.f32 %v6730_v4, %v1228_v35  ;;  %v1237_v63 = vmul.f32 %v6728_v12, %v1236_v39 }
  0xb8   : > { %v1238_v13 = vmul.f32 %v6730_v4, %v1236_v39  ;;  %v6861_v14 = vadd.f32 %v1213_v36, %v6703_v59  ;;  %v6864_v49 = vadd.f32 %v1214_v29, %v6706_v60  ;;  %v6867_v34 = vadd.f32 %v1221_v6, %v6709_v10 }
  0xb9   : > { %v6870_v0 = vadd.f32 %v1222_v37, %v6712_v11  ;;  %v6873_v16 = vadd.f32 %v1229_v55, %v6717_v50  ;;  %v6876_v35 = vadd.f32 %v1230_v17, %v6720_v57  ;;  %v6879_v12 = vadd.f32 %v1237_v63, %v6723_v7 }
  0xba   : > { %v6882_v59 = vadd.f32 %v1238_v13, %v6726_v23  ;;  %v1252_v60 = vrot.slane %v6736_v25, %v6308_v40  ;;  %v1260_v10 = vrot.slane %v6736_v25, %v6310_v41  ;;  %v1268_v11 = vrot.slane %v6736_v25, %v6312_v42 }
  0xbb   : > { %v1276_v50 = vrot.slane %v6736_v25, %v6314_v43  ;;  %v1284_v57 = vrot.slane %v6736_v25, %v6316_v44  ;;  %v1292_v7 = vrot.slane %v6736_v25, %v6318_v45  ;;  %v1300_v23 = vrot.slane %v6736_v25, %v6320_v46 }
  0xbc   : > { %v1308_v4 = vrot.slane %v6736_v25, %v6322_v47  ;;  %v1253_v39 = vmul.f32 %v6732_v3, %v1252_v60  ;;  %v1254_v20 = vmul.f32 %v10668_v52, %v1252_v60  ;;  %v1261_v8 = vmul.f32 %v6732_v3, %v1260_v10 }
  0xbd   : > { %v1262_v30 = vmul.f32 %v10668_v52, %v1260_v10  ;;  %v1269_v21 = vmul.f32 %v6732_v3, %v1268_v11  ;;  %v1270_v36 = vmul.f32 %v10668_v52, %v1268_v11  ;;  %v1277_v29 = vmul.f32 %v6732_v3, %v1276_v50 }
  0xbe   : > { %v1278_v6 = vmul.f32 %v10668_v52, %v1276_v50  ;;  %v6909_v37 = vadd.f32 %v1253_v39, %v6757_v5  ;;  %v6912_v25 = vadd.f32 %v1254_v20, %v6760_v31  ;;  %v6915_v55 = vadd.f32 %v1261_v8, %v6763_v38 }
  0xbf   : > { %v6918_v17 = vadd.f32 %v1262_v30, %v6766_v48  ;;  %v6921_v63 = vadd.f32 %v1269_v21, %v6769_v54  ;;  %v6924_v13 = vadd.f32 %v1270_v36, %v6772_v26  ;;  %v6927_v60 = vadd.f32 %v1277_v29, %v6775_v28 }
  0xc0   : > { %v6930_v5 = vadd.f32 %v1278_v6, %v6778_v19  ;;  %v1285_v31 = vmul.f32 %v6732_v3, %v1284_v57  ;;  %v1286_v38 = vmul.f32 %v10668_v52, %v1284_v57  ;;  %v1293_v10 = vmul.f32 %v6732_v3, %v1292_v7 }
  0xc1   : > { %v1294_v48 = vmul.f32 %v10668_v52, %v1292_v7  ;;  %v1301_v54 = vmul.f32 %v6732_v3, %v1300_v23  ;;  %v1302_v11 = vmul.f32 %v10668_v52, %v1300_v23  ;;  %v1309_v26 = vmul.f32 %v6732_v3, %v1308_v4 }
  0xc2   : > { %v1310_v28 = vmul.f32 %v10668_v52, %v1308_v4  ;;  %v6941_v50 = vadd.f32 %v1285_v31, %v6789_v24  ;;  %v6944_v19 = vadd.f32 %v1286_v38, %v6792_v53  ;;  %v6947_v57 = vadd.f32 %v1293_v10, %v6795_v61  ;;  %v10669_v53 = vld [vmem:[#allocation7_spill] sm:$0xff] }
  0xc3   : > { %v6950_v39 = vadd.f32 %v1294_v48, %v6798_v15  ;;  %v6953_v7 = vadd.f32 %v1301_v54, %v6801_v58  ;;  %v6956_v23 = vadd.f32 %v1302_v11, %v6804_v62  ;;  %v6959_v4 = vadd.f32 %v1309_v26, %v6807_v1 }
  0xc4   : > { %v6962_v24 = vadd.f32 %v1310_v28, %v6810_v32  ;;  %v1316_v20 = vrot.slane %v10669_v53, %v6308_v40  ;;  %v1324_v61 = vrot.slane %v10669_v53, %v6310_v41  ;;  %v1332_v15 = vrot.slane %v10669_v53, %v6312_v42 }
  0xc5   : > { %v1340_v58 = vrot.slane %v10669_v53, %v6314_v43  ;;  %v1348_v62 = vrot.slane %v10669_v53, %v6316_v44  ;;  %v1356_v1 = vrot.slane %v10669_v53, %v6318_v45  ;;  %v1364_v32 = vrot.slane %v10669_v53, %v6320_v46 }
  0xc6   : > { %v1372_v8 = vrot.slane %v10669_v53, %v6322_v47  ;;  %v1317_v30 = vmul.f32 %v6732_v3, %v1316_v20  ;;  %v1318_v21 = vmul.f32 %v10668_v52, %v1316_v20  ;;  %v1325_v36 = vmul.f32 %v6732_v3, %v1324_v61 }
  0xc7   : > { %v1326_v29 = vmul.f32 %v10668_v52, %v1324_v61  ;;  %v1333_v6 = vmul.f32 %v6732_v3, %v1332_v15  ;;  %v1334_v31 = vmul.f32 %v10668_v52, %v1332_v15  ;;  %v1341_v38 = vmul.f32 %v6732_v3, %v1340_v58 }
  0xc8   : > { %v1342_v10 = vmul.f32 %v10668_v52, %v1340_v58  ;;  %v6989_v48 = vadd.f32 %v1317_v30, %v6829_v2  ;;  %v6992_v54 = vadd.f32 %v1318_v21, %v6832_v18  ;;  %v6995_v11 = vadd.f32 %v1325_v36, %v6835_v22  ;;  %v5781_v58 = vld [vmem:[%s6301_s29 + $0x28] sm:$0xff]   ;;  %v5783_v36 = vld [vmem:[%s6301_s29 + $0x30] sm:$0xff]  }
  0xc9   : > { %v6998_v26 = vadd.f32 %v1326_v29, %v6838_v27  ;;  %v7001_v28 = vadd.f32 %v1333_v6, %v6841_v56  ;;  %v7004_v53 = vadd.f32 %v1334_v31, %v6844_v33  ;;  %v7007_v2 = vadd.f32 %v1341_v38, %v6847_v9 }
  0xca   : > { %v7010_v18 = vadd.f32 %v1342_v10, %v6850_v51  ;;  %v1349_v22 = vmul.f32 %v6732_v3, %v1348_v62  ;;  %v1350_v20 = vmul.f32 %v10668_v52, %v1348_v62  ;;  %v1357_v27 = vmul.f32 %v6732_v3, %v1356_v1  ;;  %v5782_v51 = vld [vmem:[%s6305_s30 + $0x28] sm:$0xff]  }
  0xcb   : > { %v1358_v56 = vmul.f32 %v10668_v52, %v1356_v1  ;;  %v1365_v61 = vmul.f32 %v6732_v3, %v1364_v32  ;;  %v1366_v33 = vmul.f32 %v10668_v52, %v1364_v32  ;;  %v1373_v9 = vmul.f32 %v6732_v3, %v1372_v8  ;;  %v5784_v32 = vld [vmem:[%s6305_s30 + $0x30] sm:$0xff]  }
  0xcc   : > { %v1374_v15 = vmul.f32 %v10668_v52, %v1372_v8  ;;  %v7023_v30 = vadd.f32 %v1349_v22, %v6861_v14  ;;  %v7026_v21 = vadd.f32 %v1350_v20, %v6864_v49  ;;  %v7029_v62 = vadd.f32 %v1357_v27, %v6867_v34 }
  0xcd   : > { %v7032_v1 = vadd.f32 %v1358_v56, %v6870_v0  ;;  %v7037_v3 = vadd.f32 %v1365_v61, %v6873_v16  ;;  %v7040_v52 = vadd.f32 %v1366_v33, %v6876_v35  ;;  %v7043_v14 = vadd.f32 %v1373_v9, %v6879_v12 }
  0xce   : > { %v7046_v49 = vadd.f32 %v1374_v15, %v6882_v59  ;;  %v7048_v8 = vunpack.c.l.bf16 %v5781_v58  ;;  %v7050_v34 = vunpack.c.h.bf16 %v5781_v58  ;;  %v5627_v0 = vunpack.c.l.bf16 %v5782_v51 }
  0xcf   : > { %v5628_v29 = vunpack.c.h.bf16 %v5782_v51  ;;  %v7052_v6 = vunpack.c.l.bf16 %v5783_v36  ;;  %v7054_v31 = vunpack.c.h.bf16 %v5783_v36  ;;  %v7056_v16 = vunpack.c.l.bf16 %v5784_v32 }
  0xd0   : > { %v7058_v35 = vunpack.c.h.bf16 %v5784_v32  ;;  %v1388_v12 = vrot.slane %v5627_v0, %v6308_v40  ;;  %v1396_v38 = vrot.slane %v5627_v0, %v6310_v41  ;;  %v1404_v59 = vrot.slane %v5627_v0, %v6312_v42 }
  0xd1   : > { %10670 = vst [vmem:[#allocation6_spill] sm:$0xff] %v7054_v31  ;;  %v1412_v10 = vrot.slane %v5627_v0, %v6314_v43  ;;  %v1420_v22 = vrot.slane %v5627_v0, %v6316_v44  ;;  %v1428_v20 = vrot.slane %v5627_v0, %v6318_v45  ;;  %v1436_v27 = vrot.slane %v5627_v0, %v6320_v46 }
  0xd2   : > { %10671 = vst [vmem:[#allocation7_spill] sm:$0xff] %v7058_v35  ;;  %v1444_v56 = vrot.slane %v5627_v0, %v6322_v47  ;;  %v1389_v61 = vmul.f32 %v7048_v8, %v1388_v12  ;;  %v1390_v33 = vmul.f32 %v7050_v34, %v1388_v12  ;;  %v1397_v9 = vmul.f32 %v7048_v8, %v1396_v38 }
  0xd3   : > { %v1398_v15 = vmul.f32 %v7050_v34, %v1396_v38  ;;  %v1405_v58 = vmul.f32 %v7048_v8, %v1404_v59  ;;  %v1406_v51 = vmul.f32 %v7050_v34, %v1404_v59  ;;  %v1413_v36 = vmul.f32 %v7048_v8, %v1412_v10 }
  0xd4   : > { %v1414_v32 = vmul.f32 %v7050_v34, %v1412_v10  ;;  %v7077_v35 = vadd.f32 %v1389_v61, %v6909_v37  ;;  %v7080_v0 = vadd.f32 %v1390_v33, %v6912_v25  ;;  %v7083_v12 = vadd.f32 %v1397_v9, %v6915_v55 }
  0xd5   : > { %v7086_v31 = vadd.f32 %v1398_v15, %v6918_v17  ;;  %v7089_v38 = vadd.f32 %v1405_v58, %v6921_v63  ;;  %v7092_v59 = vadd.f32 %v1406_v51, %v6924_v13  ;;  %v7095_v10 = vadd.f32 %v1413_v36, %v6927_v60 }
  0xd6   : > { %v7098_v37 = vadd.f32 %v1414_v32, %v6930_v5  ;;  %v1421_v25 = vmul.f32 %v7048_v8, %v1420_v22  ;;  %v1422_v55 = vmul.f32 %v7050_v34, %v1420_v22  ;;  %v1429_v61 = vmul.f32 %v7048_v8, %v1428_v20 }
  0xd7   : > { %v1430_v17 = vmul.f32 %v7050_v34, %v1428_v20  ;;  %v1437_v63 = vmul.f32 %v7048_v8, %v1436_v27  ;;  %v1438_v33 = vmul.f32 %v7050_v34, %v1436_v27  ;;  %v1445_v13 = vmul.f32 %v7048_v8, %v1444_v56 }
  0xd8   : > { %v1446_v60 = vmul.f32 %v7050_v34, %v1444_v56  ;;  %v7109_v9 = vadd.f32 %v1421_v25, %v6941_v50  ;;  %v7112_v5 = vadd.f32 %v1422_v55, %v6944_v19  ;;  %v7115_v22 = vadd.f32 %v1429_v61, %v6947_v57 }
  0xd9   : > { %v7118_v15 = vadd.f32 %v1430_v17, %v6950_v39  ;;  %v7121_v20 = vadd.f32 %v1437_v63, %v6953_v7  ;;  %v7124_v27 = vadd.f32 %v1438_v33, %v6956_v23  ;;  %v7127_v56 = vadd.f32 %v1445_v13, %v6959_v4 }
  0xda   : > { %v7130_v50 = vadd.f32 %v1446_v60, %v6962_v24  ;;  %v1452_v19 = vrot.slane %v5628_v29, %v6308_v40  ;;  %v1460_v57 = vrot.slane %v5628_v29, %v6310_v41  ;;  %v1468_v58 = vrot.slane %v5628_v29, %v6312_v42 }
  0xdb   : > { %v1476_v39 = vrot.slane %v5628_v29, %v6314_v43  ;;  %v1484_v7 = vrot.slane %v5628_v29, %v6316_v44  ;;  %v1492_v51 = vrot.slane %v5628_v29, %v6318_v45  ;;  %v1500_v23 = vrot.slane %v5628_v29, %v6320_v46 }
  0xdc   : > { %v1508_v4 = vrot.slane %v5628_v29, %v6322_v47  ;;  %v1453_v36 = vmul.f32 %v7048_v8, %v1452_v19  ;;  %v1454_v24 = vmul.f32 %v7050_v34, %v1452_v19  ;;  %v1461_v32 = vmul.f32 %v7048_v8, %v1460_v57 }
  0xdd   : > { %v1462_v25 = vmul.f32 %v7050_v34, %v1460_v57  ;;  %v1469_v55 = vmul.f32 %v7048_v8, %v1468_v58  ;;  %v1470_v61 = vmul.f32 %v7050_v34, %v1468_v58  ;;  %v1477_v17 = vmul.f32 %v7048_v8, %v1476_v39 }
  0xde   : > { %v1478_v63 = vmul.f32 %v7050_v34, %v1476_v39  ;;  %v7149_v33 = vadd.f32 %v1453_v36, %v6989_v48  ;;  %v7152_v29 = vadd.f32 %v1454_v24, %v6992_v54  ;;  %v7155_v13 = vadd.f32 %v1461_v32, %v6995_v11 }
  0xdf   : > { %v7158_v60 = vadd.f32 %v1462_v25, %v6998_v26  ;;  %v7161_v19 = vadd.f32 %v1469_v55, %v7001_v28  ;;  %v7164_v57 = vadd.f32 %v1470_v61, %v7004_v53  ;;  %v7167_v58 = vadd.f32 %v1477_v17, %v7007_v2  ;;  %v10672_v25 = vld [vmem:[#allocation6_spill] sm:$0xff] }
  0xe0   : > { %v7170_v48 = vadd.f32 %v1478_v63, %v7010_v18  ;;  %v1485_v54 = vmul.f32 %v7048_v8, %v1484_v7  ;;  %v1486_v11 = vmul.f32 %v7050_v34, %v1484_v7  ;;  %v1493_v39 = vmul.f32 %v7048_v8, %v1492_v51 }
  0xe1   : > { %v1494_v26 = vmul.f32 %v7050_v34, %v1492_v51  ;;  %v1501_v28 = vmul.f32 %v7048_v8, %v1500_v23  ;;  %v1502_v36 = vmul.f32 %v7050_v34, %v1500_v23  ;;  %v1509_v53 = vmul.f32 %v7048_v8, %v1508_v4 }
  0xe2   : > { %v1510_v2 = vmul.f32 %v7050_v34, %v1508_v4  ;;  %v7181_v24 = vadd.f32 %v1485_v54, %v7023_v30  ;;  %v7184_v18 = vadd.f32 %v1486_v11, %v7026_v21  ;;  %v7187_v7 = vadd.f32 %v1493_v39, %v7029_v62 }
  0xe3   : > { %v7190_v32 = vadd.f32 %v1494_v26, %v7032_v1  ;;  %v7193_v51 = vadd.f32 %v1501_v28, %v7037_v3  ;;  %v7196_v23 = vadd.f32 %v1502_v36, %v7040_v52  ;;  %v7199_v8 = vadd.f32 %v1509_v53, %v7043_v14 }
  0xe4   : > { %v7202_v30 = vadd.f32 %v1510_v2, %v7046_v49  ;;  %v1524_v21 = vrot.slane %v7056_v16, %v6308_v40  ;;  %v1532_v62 = vrot.slane %v7056_v16, %v6310_v41  ;;  %v1540_v1 = vrot.slane %v7056_v16, %v6312_v42 }
  0xe5   : > { %v1548_v3 = vrot.slane %v7056_v16, %v6314_v43  ;;  %v1556_v52 = vrot.slane %v7056_v16, %v6316_v44  ;;  %v1564_v14 = vrot.slane %v7056_v16, %v6318_v45  ;;  %v1572_v49 = vrot.slane %v7056_v16, %v6320_v46 }
  0xe6   : > { %v1580_v34 = vrot.slane %v7056_v16, %v6322_v47  ;;  %v1525_v4 = vmul.f32 %v7052_v6, %v1524_v21  ;;  %v1526_v55 = vmul.f32 %v10672_v25, %v1524_v21  ;;  %v1533_v61 = vmul.f32 %v7052_v6, %v1532_v62 }
  0xe7   : > { %v1534_v17 = vmul.f32 %v10672_v25, %v1532_v62  ;;  %v1541_v63 = vmul.f32 %v7052_v6, %v1540_v1  ;;  %v1542_v54 = vmul.f32 %v10672_v25, %v1540_v1  ;;  %v1549_v11 = vmul.f32 %v7052_v6, %v1548_v3 }
  0xe8   : > { %v1550_v39 = vmul.f32 %v10672_v25, %v1548_v3  ;;  %v7229_v26 = vadd.f32 %v1525_v4, %v7077_v35  ;;  %v7232_v16 = vadd.f32 %v1526_v55, %v7080_v0  ;;  %v7235_v28 = vadd.f32 %v1533_v61, %v7083_v12 }
  0xe9   : > { %v7238_v36 = vadd.f32 %v1534_v17, %v7086_v31  ;;  %v7241_v53 = vadd.f32 %v1541_v63, %v7089_v38  ;;  %v7244_v2 = vadd.f32 %v1542_v54, %v7092_v59  ;;  %v7247_v21 = vadd.f32 %v1549_v11, %v7095_v10 }
  0xea   : > { %v7250_v35 = vadd.f32 %v1550_v39, %v7098_v37  ;;  %v1557_v0 = vmul.f32 %v7052_v6, %v1556_v52  ;;  %v1558_v12 = vmul.f32 %v10672_v25, %v1556_v52  ;;  %v1565_v62 = vmul.f32 %v7052_v6, %v1564_v14 }
  0xeb   : > { %v1566_v31 = vmul.f32 %v10672_v25, %v1564_v14  ;;  %v1573_v38 = vmul.f32 %v7052_v6, %v1572_v49  ;;  %v1574_v1 = vmul.f32 %v10672_v25, %v1572_v49  ;;  %v1581_v59 = vmul.f32 %v7052_v6, %v1580_v34 }
  0xec   : > { %v1582_v10 = vmul.f32 %v10672_v25, %v1580_v34  ;;  %v7261_v3 = vadd.f32 %v1557_v0, %v7109_v9  ;;  %v7264_v37 = vadd.f32 %v1558_v12, %v7112_v5  ;;  %v7267_v52 = vadd.f32 %v1565_v62, %v7115_v22  ;;  %v10673_v5 = vld [vmem:[#allocation7_spill] sm:$0xff] }
  0xed   : > { %v7270_v4 = vadd.f32 %v1566_v31, %v7118_v15  ;;  %v7273_v14 = vadd.f32 %v1573_v38, %v7121_v20  ;;  %v7276_v49 = vadd.f32 %v1574_v1, %v7124_v27  ;;  %v7279_v34 = vadd.f32 %v1581_v59, %v7127_v56 }
  0xee   : > { %v7282_v9 = vadd.f32 %v1582_v10, %v7130_v50  ;;  %v1588_v55 = vrot.slane %v10673_v5, %v6308_v40  ;;  %v1596_v22 = vrot.slane %v10673_v5, %v6310_v41  ;;  %v1604_v15 = vrot.slane %v10673_v5, %v6312_v42 }
  0xef   : > { %v1612_v20 = vrot.slane %v10673_v5, %v6314_v43  ;;  %v1620_v27 = vrot.slane %v10673_v5, %v6316_v44  ;;  %v1628_v56 = vrot.slane %v10673_v5, %v6318_v45  ;;  %v1636_v50 = vrot.slane %v10673_v5, %v6320_v46 }
  0xf0   : > { %v1644_v61 = vrot.slane %v10673_v5, %v6322_v47  ;;  %v1589_v17 = vmul.f32 %v7052_v6, %v1588_v55  ;;  %v1590_v63 = vmul.f32 %v10672_v25, %v1588_v55  ;;  %v1597_v54 = vmul.f32 %v7052_v6, %v1596_v22 }
  0xf1   : > { %v1598_v11 = vmul.f32 %v10672_v25, %v1596_v22  ;;  %v1605_v39 = vmul.f32 %v7052_v6, %v1604_v15  ;;  %v1606_v0 = vmul.f32 %v10672_v25, %v1604_v15  ;;  %v1613_v12 = vmul.f32 %v7052_v6, %v1612_v20 }
  0xf2   : > { %v1614_v62 = vmul.f32 %v10672_v25, %v1612_v20  ;;  %v7309_v31 = vadd.f32 %v1589_v17, %v7149_v33  ;;  %v7312_v38 = vadd.f32 %v1590_v63, %v7152_v29  ;;  %v7315_v1 = vadd.f32 %v1597_v54, %v7155_v13  ;;  %v5785_v20 = vld [vmem:[%s6301_s29 + $0x38] sm:$0xff]  }
  0xf3   : > { %v7318_v59 = vadd.f32 %v1598_v11, %v7158_v60  ;;  %v7321_v10 = vadd.f32 %v1605_v39, %v7161_v19  ;;  %v7324_v5 = vadd.f32 %v1606_v0, %v7164_v57  ;;  %v7327_v33 = vadd.f32 %v1613_v12, %v7167_v58  ;;  %v5786_v17 = vld [vmem:[%s6305_s30 + $0x38] sm:$0xff]  }
  0xf4   : > { %v7330_v29 = vadd.f32 %v1614_v62, %v7170_v48  ;;  %v1621_v55 = vmul.f32 %v7052_v6, %v1620_v27  ;;  %v1622_v13 = vmul.f32 %v10672_v25, %v1620_v27  ;;  %v1629_v60 = vmul.f32 %v7052_v6, %v1628_v56 }
  0xf5   : > { %v1630_v22 = vmul.f32 %v10672_v25, %v1628_v56  ;;  %v1637_v19 = vmul.f32 %v7052_v6, %v1636_v50  ;;  %v1638_v57 = vmul.f32 %v10672_v25, %v1636_v50  ;;  %v1645_v15 = vmul.f32 %v7052_v6, %v1644_v61  ;;  %v5646_v6 = vld [vmem:[%s7355_s5] sm:$0xff]  }
  0xf6   : > { %v1646_v58 = vmul.f32 %v10672_v25, %v1644_v61  ;;  %v7343_v48 = vadd.f32 %v1621_v55, %v7181_v24  ;;  %v7346_v63 = vadd.f32 %v1622_v13, %v7184_v18  ;;  %v7349_v27 = vadd.f32 %v1629_v60, %v7187_v7  ;;  %v5787_v25 = vld [vmem:[%s7355_s5 + $0x8] sm:$0xff]  }
  0xf7   : > { %v7352_v56 = vadd.f32 %v1630_v22, %v7190_v32  ;;  %v7360_v50 = vadd.f32 %v1637_v19, %v7193_v51  ;;  %v7363_v24 = vadd.f32 %v1638_v57, %v7196_v23  ;;  %v7366_v18 = vadd.f32 %v1645_v15, %v7199_v8 }
  0xf8   : > { %v7369_v7 = vadd.f32 %v1646_v58, %v7202_v30  ;;  %v7371_v32 = vunpack.c.l.bf16 %v5785_v20  ;;  %v7373_v61 = vunpack.c.h.bf16 %v5785_v20  ;;  %v5643_v54 = vunpack.c.l.bf16 %v5786_v17 }
  0xf9   : > { %v5644_v11 = vunpack.c.h.bf16 %v5786_v17  ;;  %v7375_v39 = vunpack.c.l.bf16 %v5646_v6  ;;  %v7377_v0 = vunpack.c.h.bf16 %v5646_v6  ;;  %v7379_v51 = vunpack.c.l.bf16 %v5787_v25 }
  0xfa   : > { %v7381_v23 = vunpack.c.h.bf16 %v5787_v25  ;;  %v1660_v8 = vrot.slane %v5643_v54, %v6308_v40  ;;  %v1668_v12 = vrot.slane %v5643_v54, %v6310_v41  ;;  %v1676_v30 = vrot.slane %v5643_v54, %v6312_v42 }
  0xfb   : > { %10674 = vst [vmem:[#allocation6_spill] sm:$0xff] %v7379_v51  ;;  %v1684_v62 = vrot.slane %v5643_v54, %v6314_v43  ;;  %v1692_v55 = vrot.slane %v5643_v54, %v6316_v44  ;;  %v1700_v13 = vrot.slane %v5643_v54, %v6318_v45  ;;  %v1708_v60 = vrot.slane %v5643_v54, %v6320_v46 }
  0xfc   : > { %10675 = vst [vmem:[#allocation7_spill] sm:$0xff] %v7381_v23  ;;  %v1716_v22 = vrot.slane %v5643_v54, %v6322_v47  ;;  %v1661_v19 = vmul.f32 %v7371_v32, %v1660_v8  ;;  %v1662_v57 = vmul.f32 %v7373_v61, %v1660_v8  ;;  %v1669_v15 = vmul.f32 %v7371_v32, %v1668_v12 }
  0xfd   : > { %v1670_v58 = vmul.f32 %v7373_v61, %v1668_v12  ;;  %v1677_v20 = vmul.f32 %v7371_v32, %v1676_v30  ;;  %v1678_v17 = vmul.f32 %v7373_v61, %v1676_v30  ;;  %v1685_v6 = vmul.f32 %v7371_v32, %v1684_v62 }
  0xfe   : > { %v1686_v25 = vmul.f32 %v7373_v61, %v1684_v62  ;;  %v7400_v23 = vadd.f32 %v1661_v19, %v7229_v26  ;;  %v7403_v54 = vadd.f32 %v1662_v57, %v7232_v16  ;;  %v7406_v8 = vadd.f32 %v1669_v15, %v7235_v28 }
  0xff   : > { %v7409_v51 = vadd.f32 %v1670_v58, %v7238_v36  ;;  %v7412_v12 = vadd.f32 %v1677_v20, %v7241_v53  ;;  %v7415_v30 = vadd.f32 %v1678_v17, %v7244_v2  ;;  %v7418_v62 = vadd.f32 %v1685_v6, %v7247_v21 }
 0x100   : > { %v7421_v26 = vadd.f32 %v1686_v25, %v7250_v35  ;;  %v1693_v16 = vmul.f32 %v7371_v32, %v1692_v55  ;;  %v1694_v28 = vmul.f32 %v7373_v61, %v1692_v55  ;;  %v1701_v19 = vmul.f32 %v7371_v32, %v1700_v13 }
 0x101   : > { %v1702_v36 = vmul.f32 %v7373_v61, %v1700_v13  ;;  %v1709_v53 = vmul.f32 %v7371_v32, %v1708_v60  ;;  %v1710_v57 = vmul.f32 %v7373_v61, %v1708_v60  ;;  %v1717_v2 = vmul.f32 %v7371_v32, %v1716_v22 }
 0x102   : > { %v1718_v21 = vmul.f32 %v7373_v61, %v1716_v22  ;;  %v7432_v15 = vadd.f32 %v1693_v16, %v7261_v3  ;;  %v7435_v35 = vadd.f32 %v1694_v28, %v7264_v37  ;;  %v7438_v55 = vadd.f32 %v1701_v19, %v7267_v52 }
 0x103   : > { %v7441_v58 = vadd.f32 %v1702_v36, %v7270_v4  ;;  %v7444_v13 = vadd.f32 %v1709_v53, %v7273_v14  ;;  %v7447_v60 = vadd.f32 %v1710_v57, %v7276_v49  ;;  %v7450_v22 = vadd.f32 %v1717_v2, %v7279_v34 }
 0x104   : > { %v7453_v3 = vadd.f32 %v1718_v21, %v7282_v9  ;;  %v1724_v37 = vrot.slane %v5644_v11, %v6308_v40  ;;  %v1732_v52 = vrot.slane %v5644_v11, %v6310_v41  ;;  %v1740_v20 = vrot.slane %v5644_v11, %v6312_v42 }
 0x105   : > { %v1748_v4 = vrot.slane %v5644_v11, %v6314_v43  ;;  %v1756_v14 = vrot.slane %v5644_v11, %v6316_v44  ;;  %v1764_v17 = vrot.slane %v5644_v11, %v6318_v45  ;;  %v1772_v49 = vrot.slane %v5644_v11, %v6320_v46 }
 0x106   : > { %v1780_v34 = vrot.slane %v5644_v11, %v6322_v47  ;;  %v1725_v6 = vmul.f32 %v7371_v32, %v1724_v37  ;;  %v1726_v9 = vmul.f32 %v7373_v61, %v1724_v37  ;;  %v1733_v25 = vmul.f32 %v7371_v32, %v1732_v52 }
 0x107   : > { %v1734_v16 = vmul.f32 %v7373_v61, %v1732_v52  ;;  %v1741_v28 = vmul.f32 %v7371_v32, %v1740_v20  ;;  %v1742_v19 = vmul.f32 %v7373_v61, %v1740_v20  ;;  %v1749_v36 = vmul.f32 %v7371_v32, %v1748_v4 }
 0x108   : > { %v1750_v53 = vmul.f32 %v7373_v61, %v1748_v4  ;;  %v7472_v57 = vadd.f32 %v1725_v6, %v7309_v31  ;;  %v7475_v11 = vadd.f32 %v1726_v9, %v7312_v38  ;;  %v7478_v2 = vadd.f32 %v1733_v25, %v7315_v1 }
 0x109   : > { %v7481_v21 = vadd.f32 %v1734_v16, %v7318_v59  ;;  %v7484_v37 = vadd.f32 %v1741_v28, %v7321_v10  ;;  %v7487_v52 = vadd.f32 %v1742_v19, %v7324_v5  ;;  %v7490_v20 = vadd.f32 %v1749_v36, %v7327_v33 }
 0x10a   : > { %v7493_v31 = vadd.f32 %v1750_v53, %v7330_v29  ;;  %v1757_v38 = vmul.f32 %v7371_v32, %v1756_v14  ;;  %v1758_v1 = vmul.f32 %v7373_v61, %v1756_v14  ;;  %v1765_v4 = vmul.f32 %v7371_v32, %v1764_v17 }
 0x10b   : > { %10676 = vst [vmem:[#allocation8_spill] sm:$0xff] %v7484_v37  ;;  %10677 = vst [vmem:[#allocation9_spill] sm:$0xff] %v7487_v52  ;;  %v1766_v59 = vmul.f32 %v7373_v61, %v1764_v17  ;;  %v1773_v10 = vmul.f32 %v7371_v32, %v1772_v49  ;;  %v1774_v6 = vmul.f32 %v7373_v61, %v1772_v49 }
 0x10c   : > { %10678 = vst [vmem:[#allocation10_spill] sm:$0xff] %v7490_v20  ;;  %10679 = vst [vmem:[#allocation11_spill] sm:$0xff] %v7493_v31  ;;  %v1781_v5 = vmul.f32 %v7371_v32, %v1780_v34  ;;  %v1782_v33 = vmul.f32 %v7373_v61, %v1780_v34  ;;  %v7504_v9 = vadd.f32 %v1757_v38, %v7343_v48 }
 0x10d   : > { %v7507_v29 = vadd.f32 %v1758_v1, %v7346_v63  ;;  %v7510_v14 = vadd.f32 %v1765_v4, %v7349_v27  ;;  %v7513_v25 = vadd.f32 %v1766_v59, %v7352_v56  ;;  %v7516_v17 = vadd.f32 %v1773_v10, %v7360_v50 }
 0x10e   : > { %v7519_v49 = vadd.f32 %v1774_v6, %v7363_v24  ;;  %v7522_v32 = vadd.f32 %v1781_v5, %v7366_v18  ;;  %v7525_v48 = vadd.f32 %v1782_v33, %v7369_v7  ;;  %v1785_v63 = vmax.f32 %v7400_v23, %v7406_v8 }
 0x10f   : > { %10680 = vst [vmem:[#allocation12_spill] sm:$0xff] %v7510_v14  ;;  %10681 = vst [vmem:[#allocation13_spill] sm:$0xff] %v7516_v17  ;;  %v1786_v27 = vmax.f32 %v7403_v54, %v7409_v51  ;;  %v1787_v56 = vmax.f32 %v7412_v12, %v7418_v62  ;;  %v1788_v50 = vmax.f32 %v7415_v30, %v7421_v26 }
 0x110   : > { %10682 = vst [vmem:[#allocation14_spill] sm:$0xff] %v7522_v32  ;;  %10683 = vst [vmem:[#allocation15_spill] sm:$0xff] %v7525_v48  ;;  %v1789_v24 = vmax.f32 %v7432_v15, %v7438_v55  ;;  %v1790_v18 = vmax.f32 %v7435_v35, %v7441_v58  ;;  %v1791_v7 = vmax.f32 %v7444_v13, %v7450_v22 }
 0x111   : > { %v1792_v61 = vmax.f32 %v7447_v60, %v7453_v3  ;;  %v1793_v34 = vmax.f32 %v7472_v57, %v7478_v2  ;;  %v1794_v16 = vmax.f32 %v7475_v11, %v7481_v21  ;;  %v1795_v28 = vmax.f32 %v7484_v37, %v7490_v20 }
 0x112   : > { %v1796_v19 = vmax.f32 %v7487_v52, %v7493_v31  ;;  %v1797_v36 = vmax.f32 %v7504_v9, %v7510_v14  ;;  %v1798_v53 = vmax.f32 %v7507_v29, %v7513_v25  ;;  %v1799_v38 = vmax.f32 %v7516_v17, %v7522_v32 }
 0x113   : > { %v1800_v1 = vmax.f32 %v7519_v49, %v7525_v48  ;;  %v1801_v4 = vmax.f32 %v1785_v63, %v1787_v56  ;;  %v1802_v59 = vmax.f32 %v1786_v27, %v1788_v50  ;;  %v1803_v10 = vmax.f32 %v1789_v24, %v1791_v7 }
 0x114   : > { %v1804_v6 = vmax.f32 %v1790_v18, %v1792_v61  ;;  %v1805_v5 = vmax.f32 %v1793_v34, %v1795_v28  ;;  %v1806_v33 = vmax.f32 %v1794_v16, %v1796_v19  ;;  %v1807_v20 = vmax.f32 %v1797_v36, %v1799_v38 }
 0x115   : > { %v1808_v31 = vmax.f32 %v1798_v53, %v1800_v1  ;;  %v1809_v52 = vmax.f32 %v1801_v4, %v1803_v10  ;;  %v7561_v14 = vrot.slane %v7375_v39, %v6308_v40  ;;  %v7565_v32 = vrot.slane %v7375_v39, %v6310_v41 }
 0x116   : > { %v1810_v37 = vmax.f32 %v1802_v59, %v1804_v6  ;;  %v1811_v17 = vmax.f32 %v1805_v5, %v1807_v20  ;;  %v7569_v63 = vrot.slane %v7375_v39, %v6312_v42  ;;  %v7573_v27 = vrot.slane %v7375_v39, %v6314_v43 }
 0x117   : > { %v1812_v48 = vmax.f32 %v1806_v33, %v1808_v31  ;;  %v7577_v56 = vrot.slane %v7375_v39, %v6316_v44  ;;  %v7581_v50 = vrot.slane %v7375_v39, %v6318_v45  ;;  %v7585_v20 = vrot.slane %v7375_v39, %v6320_v46 }
 0x118   : > { %v7589_v31 = vrot.slane %v7375_v39, %v6322_v47  ;;  %v7591_v24 = vmax.f32 %v1809_v52, %v1811_v17  ;;  %v7597_v7 = vrot.slane %v7377_v0, %v6308_v40  ;;  %v7601_v61 = vrot.slane %v7377_v0, %v6310_v41 }
 0x119   : > { %v7593_v18 = vmax.f32 %v1810_v37, %v1812_v48  ;;  %v7605_v34 = vrot.slane %v7377_v0, %v6312_v42  ;;  %v7609_v39 = vrot.slane %v7377_v0, %v6314_v43  ;;  %v7613_v37 = vrot.slane %v7377_v0, %v6316_v44 }
 0x11a   : > { %v7617_v52 = vrot.slane %v7377_v0, %v6318_v45  ;;  %v1815_v17 = vsub.f32 %v7400_v23, %v7591_v24  ;;  %v1821_v16 = vsub.f32 %v7406_v8, %v7591_v24  ;;  %v1827_v19 = vsub.f32 %v7412_v12, %v7591_v24 }
 0x11b   : > { %v1816_v48 = vsub.f32 %v7403_v54, %v7593_v18  ;;  %v1822_v28 = vsub.f32 %v7409_v51, %v7593_v18  ;;  %v1828_v36 = vsub.f32 %v7415_v30, %v7593_v18  ;;  %v1833_v53 = vsub.f32 %v7418_v62, %v7591_v24 }
 0x11c   : > { %v1834_v23 = vsub.f32 %v7421_v26, %v7593_v18  ;;  %v1817_v38 = vmul.f32 1.442695, %v1815_v17  ;;  %v1823_v1 = vmul.f32 1.442695, %v1821_v16  ;;  %v1839_v8 = vsub.f32 %v7432_v15, %v7591_v24 }
 0x11d   : > { %v1819_v54 = vmul.f32 1.442695, %v1816_v48  ;;  %v1825_v4 = vmul.f32 1.442695, %v1822_v28  ;;  %v1829_v51 = vmul.f32 1.442695, %v1827_v19  ;;  %v1840_v12 = vsub.f32 %v7435_v35, %v7593_v18 }
 0x11e   : > { %v1831_v59 = vmul.f32 1.442695, %v1828_v36  ;;  %5842 = vpow2.f32 %v1817_v38  ;;  %v1835_v30 = vmul.f32 1.442695, %v1833_v53  ;;  %v1837_v10 = vmul.f32 1.442695, %v1834_v23 }
 0x11f   : > { %v1841_v6 = vmul.f32 1.442695, %v1839_v8  ;;  %5844 = vpow2.f32 %v1819_v54  ;;  %v1843_v62 = vmul.f32 1.442695, %v1840_v12  ;;  %v1845_v26 = vsub.f32 %v7438_v55, %v7591_v24  ;;  %v10685_v54 = vld [vmem:[#allocation9_spill] sm:$0xff] }
 0x120   : > { %v1846_v5 = vsub.f32 %v7441_v58, %v7593_v18  ;;  %5846 = vpow2.f32 %v1823_v1  ;;  %v1851_v15 = vsub.f32 %v7444_v13, %v7591_v24  ;;  %v1852_v33 = vsub.f32 %v7447_v60, %v7593_v18 }
 0x121   : > { %v1857_v35 = vsub.f32 %v7450_v22, %v7591_v24  ;;  %5848 = vpow2.f32 %v1825_v4  ;;  %v1847_v17 = vmul.f32 1.442695, %v1845_v26  ;;  %v1858_v16 = vsub.f32 %v7453_v3, %v7593_v18  ;;  %v10684_v3 = vld [vmem:[#allocation8_spill] sm:$0xff] }
 0x122   : > { %v1849_v48 = vmul.f32 1.442695, %v1846_v5  ;;  %5850 = vpow2.f32 %v1829_v51  ;;  %v1853_v55 = vmul.f32 1.442695, %v1851_v15  ;;  %v1855_v28 = vmul.f32 1.442695, %v1852_v33 }
 0x123   : > { %v1859_v58 = vmul.f32 1.442695, %v1857_v35  ;;  %5852 = vpow2.f32 %v1831_v59  ;;  %v1861_v19 = vmul.f32 1.442695, %v1858_v16  ;;  %v1863_v13 = vsub.f32 %v7472_v57, %v7591_v24 }
 0x124   : > { %v1864_v60 = vsub.f32 %v7475_v11, %v7593_v18  ;;  %5854 = vpow2.f32 %v1835_v30  ;;  %v1869_v22 = vsub.f32 %v7478_v2, %v7591_v24  ;;  %v1870_v36 = vsub.f32 %v7481_v21, %v7593_v18  ;;  %v10686_v2 = vld [vmem:[#allocation10_spill] sm:$0xff]  ;;  %v10687_v21 = vld [vmem:[#allocation11_spill] sm:$0xff] }
 0x125   : > { %v1875_v53 = vsub.f32 %v10684_v3, %v7591_v24  ;;  %5856 = vpow2.f32 %v1837_v10  ;;  %v1865_v23 = vmul.f32 1.442695, %v1863_v13  ;;  %v1876_v1 = vsub.f32 %v10685_v54, %v7593_v18  ;;  %v10696_v3 = vld [vmem:[#allocation15_spill] sm:$0xff] }
 0x126   : > { %v1867_v38 = vmul.f32 1.442695, %v1864_v60  ;;  %5858 = vpow2.f32 %v1841_v6  ;;  %v1871_v57 = vmul.f32 1.442695, %v1869_v22  ;;  %v1873_v8 = vmul.f32 1.442695, %v1870_v36 }
 0x127   : > { %v1877_v11 = vmul.f32 1.442695, %v1875_v53  ;;  %5860 = vpow2.f32 %v1843_v62  ;;  %v1879_v4 = vmul.f32 1.442695, %v1876_v1  ;;  %v1881_v51 = vsub.f32 %v10686_v2, %v7591_v24  ;;  %v10689_v6 = vld [vmem:[#allocation12_spill] sm:$0xff]  ;;  %v10693_v60 = vld [vmem:[#allocation13_spill] sm:$0xff] }
 0x128   : > { %v1882_v59 = vsub.f32 %v10687_v21, %v7593_v18  ;;  %v7667_v12 = vpop.eup %5842  ;;  %5862 = vpow2.f32 %v1847_v17  ;;  %v1887_v30 = vsub.f32 %v7504_v9, %v7591_v24  ;;  %v1888_v10 = vsub.f32 %v7507_v29, %v7593_v18 }
 0x129   : > { %10688 = vst [vmem:[#allocation8_spill] sm:$0xff] %v7667_v12  ;;  %v1893_v26 = vsub.f32 %v10689_v6, %v7591_v24  ;;  %v7675_v62 = vpop.eup %5844  ;;  %5864 = vpow2.f32 %v1849_v48  ;;  %v1883_v5 = vmul.f32 1.442695, %v1881_v51  ;;  %v1894_v33 = vsub.f32 %v7513_v25, %v7593_v18  ;;  %v10695_v25 = vld [vmem:[#allocation14_spill] sm:$0xff] }
 0x12a   : > { %10690 = vst [vmem:[#allocation9_spill] sm:$0xff] %v7675_v62  ;;  %v1885_v15 = vmul.f32 1.442695, %v1882_v59  ;;  %v7679_v35 = vpop.eup %5846  ;;  %5866 = vpow2.f32 %v1853_v55  ;;  %v1889_v17 = vmul.f32 1.442695, %v1887_v30  ;;  %v1899_v48 = vsub.f32 %v10693_v60, %v7591_v24 }
 0x12b   : > { %10691 = vst [vmem:[#allocation10_spill] sm:$0xff] %v7679_v35  ;;  %v1891_v16 = vmul.f32 1.442695, %v1888_v10  ;;  %v7681_v9 = vmul.f32 1.442695, %v1893_v26  ;;  %v7683_v13 = vpop.eup %5848  ;;  %5868 = vpow2.f32 %v1855_v28  ;;  %v1900_v22 = vsub.f32 %v7519_v49, %v7593_v18 }
 0x12c   : > { %10692 = vst [vmem:[#allocation11_spill] sm:$0xff] %v7683_v13  ;;  %v7685_v29 = vmul.f32 1.442695, %v1894_v33  ;;  %v7691_v36 = vpop.eup %5850  ;;  %5870 = vpow2.f32 %v1859_v58  ;;  %v1905_v55 = vsub.f32 %v10695_v25, %v7591_v24  ;;  %v1906_v53 = vsub.f32 %v10696_v3, %v7593_v18 }
 0x12d   : > { %10694 = vst [vmem:[#allocation12_spill] sm:$0xff] %v7691_v36  ;;  %v1911_v28 = vadd.f32 %v7679_v35, %v7667_v12  ;;  %v7699_v54 = vpop.eup %5852  ;;  %5872 = vpow2.f32 %v1861_v19  ;;  %v7701_v1 = vmul.f32 1.442695, %v1899_v48  ;;  %v7703_v2 = vmul.f32 1.442695, %v1900_v22 }
 0x12e   : > { %v1912_v49 = vadd.f32 %v7683_v13, %v7675_v62  ;;  %v7707_v58 = vpop.eup %5854  ;;  %5874 = vpow2.f32 %v1865_v23  ;;  %v7709_v24 = vmul.f32 1.442695, %v1905_v55  ;;  %v7711_v51 = vmul.f32 1.442695, %v1906_v53 }
 0x12f   : > { %v1953_v18 = vmul.f32 %v7667_v12, %v7561_v14  ;;  %v7715_v21 = vpop.eup %5856  ;;  %5876 = vpow2.f32 %v1867_v38  ;;  %v1913_v19 = vadd.f32 %v7707_v58, %v7691_v36  ;;  %v1954_v59 = vmul.f32 %v7675_v62, %v7561_v14 }
 0x130   : > { %v1959_v30 = vmul.f32 %v7679_v35, %v7565_v32  ;;  %v7723_v23 = vpop.eup %5858  ;;  %5878 = vpow2.f32 %v1871_v57  ;;  %v1914_v10 = vadd.f32 %v7715_v21, %v7699_v54  ;;  %v1960_v6 = vmul.f32 %v7683_v13, %v7565_v32 }
 0x131   : > { %10697 = vst [vmem:[#allocation13_spill] sm:$0xff] %v7723_v23  ;;  %v1967_v38 = vmul.f32 %v7691_v36, %v7569_v63  ;;  %v7731_v26 = vpop.eup %5860  ;;  %5880 = vpow2.f32 %v1873_v8  ;;  %v1927_v33 = vadd.f32 %v1913_v19, %v1911_v28  ;;  %v1968_v60 = vmul.f32 %v7699_v54, %v7569_v63 }
 0x132   : > { %v1961_v14 = vadd.f32 %v1959_v30, %v1953_v18  ;;  %v7735_v48 = vpop.eup %5862  ;;  %5882 = vpow2.f32 %v1877_v11  ;;  %v1928_v57 = vadd.f32 %v1914_v10, %v1912_v49  ;;  %v1962_v22 = vadd.f32 %v1960_v6, %v1954_v59 }
 0x133   : > { %v1975_v25 = vmul.f32 %v7707_v58, %v7573_v27  ;;  %v7739_v32 = vpop.eup %5864  ;;  %5884 = vpow2.f32 %v1879_v4  ;;  %v1915_v55 = vadd.f32 %v7735_v48, %v7723_v23  ;;  %v1976_v3 = vmul.f32 %v7715_v21, %v7573_v27 }
 0x134   : > { %v1969_v8 = vadd.f32 %v1967_v38, %v1961_v14  ;;  %v7745_v53 = vpop.eup %5866  ;;  %5886 = vpow2.f32 %v1883_v5  ;;  %v1916_v63 = vadd.f32 %v7739_v32, %v7731_v26  ;;  %v1970_v11 = vadd.f32 %v1968_v60, %v1962_v22 }
 0x135   : > { %v1983_v28 = vmul.f32 %v7723_v23, %v7577_v56  ;;  %v7751_v49 = vpop.eup %5868  ;;  %5888 = vpow2.f32 %v1885_v15  ;;  %v1984_v18 = vmul.f32 %v7731_v26, %v7577_v56  ;;  %v1991_v27 = vmul.f32 %v7735_v48, %v7581_v50 }
 0x136   : > { %v1977_v4 = vadd.f32 %v1975_v25, %v1969_v8  ;;  %v7757_v19 = vpop.eup %5870  ;;  %5890 = vpow2.f32 %v1889_v17  ;;  %v1978_v5 = vadd.f32 %v1976_v3, %v1970_v11  ;;  %v1992_v59 = vmul.f32 %v7739_v32, %v7581_v50 }
 0x137   : > { %v1999_v30 = vmul.f32 %v7745_v53, %v7585_v20  ;;  %v7763_v10 = vpop.eup %5872  ;;  %5892 = vpow2.f32 %v1891_v16  ;;  %v1917_v15 = vadd.f32 %v7757_v19, %v7745_v53  ;;  %v2000_v6 = vmul.f32 %v7751_v49, %v7585_v20 }
 0x138   : > { %v1985_v56 = vadd.f32 %v1983_v28, %v1977_v4  ;;  %v7769_v38 = vpop.eup %5874  ;;  %5894 = vpow2.f32 %v7681_v9  ;;  %v1918_v50 = vadd.f32 %v7763_v10, %v7751_v49  ;;  %v1986_v17 = vadd.f32 %v1984_v18, %v1978_v5 }
 0x139   : > { %v2007_v14 = vmul.f32 %v7757_v19, %v7589_v31  ;;  %v7776_v60 = vpop.eup %5876  ;;  %5896 = vpow2.f32 %v7685_v29  ;;  %v1929_v16 = vadd.f32 %v1917_v15, %v1915_v55  ;;  %v2008_v20 = vmul.f32 %v7763_v10, %v7589_v31 }
 0x13a   : > { %v1993_v22 = vadd.f32 %v1991_v27, %v1985_v56  ;;  %v7781_v25 = vpop.eup %5878  ;;  %5898 = vpow2.f32 %v7701_v1  ;;  %v1930_v9 = vadd.f32 %v1918_v50, %v1916_v63  ;;  %v1994_v8 = vadd.f32 %v1992_v59, %v1986_v17 }
 0x13b   : > { %v2015_v3 = vmul.f32 %v7769_v38, %v7597_v7  ;;  %v7786_v11 = vpop.eup %5880  ;;  %5900 = vpow2.f32 %v7703_v2  ;;  %v1919_v29 = vadd.f32 %v7781_v25, %v7769_v38  ;;  %v7791_v55 = vadd.f32 %v1929_v16, %v1927_v33 }
 0x13c   : > { %v2001_v28 = vadd.f32 %v1999_v30, %v1993_v22  ;;  %v7793_v31 = vpop.eup %5882  ;;  %5902 = vpow2.f32 %v7709_v24  ;;  %v1920_v1 = vadd.f32 %v7786_v11, %v7776_v60  ;;  %v7798_v63 = vadd.f32 %v1930_v9, %v1928_v57 }
 0x13d   : > { %10698 = vst [vmem:[#allocation14_spill] sm:$0xff] %v7793_v31  ;;  %v2002_v4 = vadd.f32 %v2000_v6, %v1994_v8  ;;  %v7800_v18 = vpop.eup %5884  ;;  %5904 = vpow2.f32 %v7711_v51  ;;  %v2016_v33 = vmul.f32 %v7776_v60, %v7597_v7  ;;  %v2023_v27 = vmul.f32 %v7781_v25, %v7601_v61  ;;  %v10704_v8 = vld [vmem:[#allocation6_spill] sm:$0xff] }
 0x13e   : > { %10699 = vst [vmem:[#allocation15_spill] sm:$0xff] %v7800_v18  ;;  %v2009_v2 = vadd.f32 %v2007_v14, %v2001_v28  ;;  %v7807_v5 = vpop.eup %5886  ;;  %v2024_v59 = vmul.f32 %v7786_v11, %v7601_v61  ;;  %v2031_v57 = vmul.f32 %v7793_v31, %v7605_v34  ;;  %v2032_v30 = vmul.f32 %v7800_v18, %v7605_v34 }
 0x13f   : > { %10700 = vst [vmem:[#allocation16_spill] sm:$0xff] %v7807_v5  ;;  %v2010_v24 = vadd.f32 %v2008_v20, %v2002_v4  ;;  %v7815_v51 = vpop.eup %5888  ;;  %v1921_v7 = vadd.f32 %v7807_v5, %v7793_v31  ;;  %v2039_v56 = vmul.f32 %v7807_v5, %v7609_v39  ;;  %v2062_v6 = vrot.slane %v7377_v0, %v6320_v46 }
 0x140   : > { %10701 = vst [vmem:[#allocation17_spill] sm:$0xff] %v7815_v51  ;;  %v2017_v15 = vadd.f32 %v2015_v3, %v2009_v2  ;;  %v7823_v50 = vpop.eup %5890  ;;  %v1922_v61 = vadd.f32 %v7815_v51, %v7800_v18  ;;  %v2040_v34 = vmul.f32 %v7815_v51, %v7609_v39  ;;  %v2070_v14 = vrot.slane %v7377_v0, %v6322_v47 }
 0x141   : > { %10702 = vst [vmem:[#allocation18_spill] sm:$0xff] %v7823_v50  ;;  %v2018_v17 = vadd.f32 %v2016_v33, %v2010_v24  ;;  %v7831_v16 = vpop.eup %5892  ;;  %v1931_v22 = vadd.f32 %v1921_v7, %v1919_v29  ;;  %v2047_v9 = vmul.f32 %v7823_v50, %v7613_v37  ;;  %v2086_v3 = vrot.slane %v10704_v8, %v6308_v40 }
 0x142   : > { %10703 = vst [vmem:[#allocation19_spill] sm:$0xff] %v7831_v16  ;;  %v2025_v20 = vadd.f32 %v2023_v27, %v2017_v15  ;;  %v7837_v28 = vpop.eup %5894  ;;  %v1932_v4 = vadd.f32 %v1922_v61, %v1920_v1  ;;  %v2048_v39 = vmul.f32 %v7831_v16, %v7613_v37  ;;  %v2092_v0 = vrot.slane %v10704_v8, %v6310_v41 }
 0x143   : > { %10705 = vst [vmem:[#allocation6_spill] sm:$0xff] %v7837_v28  ;;  %v2026_v2 = vadd.f32 %v2024_v59, %v2018_v17  ;;  %v7843_v33 = vpop.eup %5896  ;;  %v1923_v29 = vadd.f32 %v7837_v28, %v7823_v50  ;;  %v2055_v24 = vmul.f32 %v7837_v28, %v7617_v52  ;;  %v2087_v7 = vmul.f32 %v7667_v12, %v2086_v3 }
 0x144   : > { %10706 = vst [vmem:[#allocation20_spill] sm:$0xff] %v7843_v33  ;;  %v2033_v27 = vadd.f32 %v2031_v57, %v2025_v20  ;;  %v7850_v15 = vpop.eup %5898  ;;  %v1924_v1 = vadd.f32 %v7843_v33, %v7831_v16  ;;  %v2056_v59 = vmul.f32 %v7843_v33, %v7617_v52  ;;  %v2088_v61 = vmul.f32 %v7675_v62, %v2086_v3 }
 0x145   : > { %10707 = vst [vmem:[#allocation21_spill] sm:$0xff] %v7850_v15  ;;  %v2034_v37 = vadd.f32 %v2032_v30, %v2026_v2  ;;  %v7857_v17 = vpop.eup %5900  ;;  %v2063_v57 = vmul.f32 %v7850_v15, %v2062_v6  ;;  %v2093_v20 = vmul.f32 %v7679_v35, %v2092_v0  ;;  %v2094_v12 = vmul.f32 %v7683_v13, %v2092_v0 }
 0x146   : > { %10708 = vst [vmem:[#allocation22_spill] sm:$0xff] %v7857_v17  ;;  %v2041_v50 = vadd.f32 %v2039_v56, %v2033_v27  ;;  %v7862_v28 = vpop.eup %5902  ;;  %v2064_v16 = vmul.f32 %v7857_v17, %v2062_v6  ;;  %v2100_v30 = vrot.slane %v10704_v8, %v6312_v42  ;;  %v2108_v52 = vrot.slane %v10704_v8, %v6314_v43 }
 0x147   : > { %10709 = vst [vmem:[#allocation23_spill] sm:$0xff] %v7862_v28  ;;  %v2042_v51 = vadd.f32 %v2040_v34, %v2034_v37  ;;  %v7869_v3 = vpop.eup %5904  ;;  %v1925_v56 = vadd.f32 %v7862_v28, %v7850_v15  ;;  %v2071_v27 = vmul.f32 %v7862_v28, %v2070_v14  ;;  %v2095_v0 = vadd.f32 %v2093_v20, %v2087_v7 }
 0x148   : > { %10710 = vst [vmem:[#allocation24_spill] sm:$0xff] %v7869_v3  ;;  %v2049_v2 = vadd.f32 %v2047_v9, %v2041_v50  ;;  %v1926_v34 = vadd.f32 %v7869_v3, %v7857_v17  ;;  %v2072_v6 = vmul.f32 %v7869_v3, %v2070_v14  ;;  %v2096_v13 = vadd.f32 %v2094_v12, %v2088_v61 }
 0x149   : > { %v2050_v37 = vadd.f32 %v2048_v39, %v2042_v51  ;;  %v1933_v35 = vadd.f32 %v1925_v56, %v1923_v29  ;;  %v2101_v33 = vmul.f32 %v7691_v36, %v2100_v30  ;;  %v2102_v5 = vmul.f32 %v7699_v54, %v2100_v30 }
 0x14a   : > { %v2057_v62 = vadd.f32 %v2055_v24, %v2049_v2  ;;  %v1934_v18 = vadd.f32 %v1926_v34, %v1924_v1  ;;  %v2109_v50 = vmul.f32 %v7707_v58, %v2108_v52  ;;  %v2110_v9 = vmul.f32 %v7715_v21, %v2108_v52 }
 0x14b   : > { %v2058_v31 = vadd.f32 %v2056_v59, %v2050_v37  ;;  %v1937_v7 = vadd.f32 %v1933_v35, %v1931_v22  ;;  %v2103_v28 = vadd.f32 %v2101_v33, %v2095_v0  ;;  %v2104_v17 = vadd.f32 %v2102_v5, %v2096_v13 }
 0x14c   : > { %v2065_v20 = vadd.f32 %v2063_v57, %v2057_v62  ;;  %v1938_v51 = vadd.f32 %v1934_v18, %v1932_v4  ;;  %v2116_v12 = vrot.slane %v10704_v8, %v6316_v44  ;;  %v2124_v14 = vrot.slane %v10704_v8, %v6318_v45  ;;  %v10711_v4 = vld [vmem:[#allocation7_spill] sm:$0xff] }
 0x14d   : > { %v2066_v39 = vadd.f32 %v2064_v16, %v2058_v31  ;;  %v1939_v29 = vadd.f32 %v1937_v7, %v7791_v55  ;;  %v2111_v1 = vadd.f32 %v2109_v50, %v2103_v28  ;;  %v2112_v59 = vadd.f32 %v2110_v9, %v2104_v17 }
 0x14e   : > { %v7886_v24 = vadd.f32 %v2071_v27, %v2065_v20  ;;  %v1940_v61 = vadd.f32 %v1938_v51, %v7798_v63  ;;  %v2117_v62 = vmul.f32 %v7723_v23, %v2116_v12  ;;  %v2118_v13 = vmul.f32 %v7731_v26, %v2116_v12 }
 0x14f   : > { %v7889_v35 = vadd.f32 %v2072_v6, %v2066_v39  ;;  %5906 = vrcp.f32 %v1939_v29  ;;  %v2125_v31 = vmul.f32 %v7735_v48, %v2124_v14  ;;  %v2126_v18 = vmul.f32 %v7739_v32, %v2124_v14  ;;  %v10712_v14 = vld [vmem:[#allocation14_spill] sm:$0xff] }
 0x150   : > { %v2132_v55 = vrot.slane %v10704_v8, %v6320_v46  ;;  %5908 = vrcp.f32 %v1940_v61  ;;  %v2119_v5 = vadd.f32 %v2117_v62, %v2111_v1  ;;  %v2120_v16 = vadd.f32 %v2118_v13, %v2112_v59  ;;  %v10713_v1 = vld [vmem:[#allocation15_spill] sm:$0xff]  ;;  %v727_v61 = vld [vmem:[%s10507_s3] sm:$0xff]  ;;  %v10714_v62 = vld [vmem:[#allocation16_spill] sm:$0xff] }
 0x151   : > { %v2140_v63 = vrot.slane %v10704_v8, %v6322_v47  ;;  %v2148_v33 = vrot.slane %v10711_v4, %v6308_v40  ;;  %v2156_v17 = vrot.slane %v10711_v4, %v6310_v41  ;;  %v2164_v6 = vrot.slane %v10711_v4, %v6312_v42 }
 0x152   : > { %v2133_v22 = vmul.f32 %v7745_v53, %v2132_v55  ;;  %v2134_v28 = vmul.f32 %v7751_v49, %v2132_v55  ;;  %v2127_v57 = vadd.f32 %v2125_v31, %v2119_v5  ;;  %v2128_v30 = vadd.f32 %v2126_v18, %v2120_v16  ;;  %v10715_v31 = vld [vmem:[#allocation17_spill] sm:$0xff]  ;;  %v10716_v55 = vld [vmem:[#allocation18_spill] sm:$0xff]  ;;  %v10717_v16 = vld [vmem:[#allocation19_spill] sm:$0xff] }
 0x153   : > { %v2141_v52 = vmul.f32 %v7757_v19, %v2140_v63  ;;  %v2142_v56 = vmul.f32 %v7763_v10, %v2140_v63  ;;  %v2149_v2 = vmul.f32 %v7769_v38, %v2148_v33  ;;  %v2150_v8 = vmul.f32 %v7776_v60, %v2148_v33 }
 0x154   : > { %v2157_v27 = vmul.f32 %v7781_v25, %v2156_v17  ;;  %v2158_v0 = vmul.f32 %v7786_v11, %v2156_v17  ;;  %v2135_v34 = vadd.f32 %v2133_v22, %v2127_v57  ;;  %v2136_v37 = vadd.f32 %v2134_v28, %v2128_v30  ;;  %v5788_v22 = vld [vmem:[%s7355_s5 + $0x10] sm:$0xff]   ;;  %v728_v28 = vld [vmem:[%s10507_s3 + $0x8] sm:$0xff]  ;;  %v10718_v17 = vld [vmem:[#allocation6_spill] sm:$0xff] }
 0x155   : > { %v2172_v50 = vrot.slane %v10711_v4, %v6314_v43  ;;  %v2180_v9 = vrot.slane %v10711_v4, %v6316_v44  ;;  %v2188_v7 = vrot.slane %v10711_v4, %v6318_v45  ;;  %v2196_v20 = vrot.slane %v10711_v4, %v6320_v46  ;;  %v10719_v30 = vld [vmem:[#allocation20_spill] sm:$0xff] }
 0x156   : > { %v2204_v51 = vrot.slane %v10711_v4, %v6322_v47  ;;  %v2143_v39 = vadd.f32 %v2141_v52, %v2135_v34  ;;  %v2144_v12 = vadd.f32 %v2142_v56, %v2136_v37  ;;  %v2165_v29 = vmul.f32 %v10712_v14, %v2164_v6  ;;  %v5789_v56 = vld [vmem:[%s7355_s5 + $0x18] sm:$0xff]  }
 0x157   : > { %v2166_v59 = vmul.f32 %v10713_v1, %v2164_v6  ;;  %v2173_v13 = vmul.f32 %v10714_v62, %v2172_v50  ;;  %v2174_v18 = vmul.f32 %v10715_v31, %v2172_v50  ;;  %v2181_v5 = vmul.f32 %v10716_v55, %v2180_v9  ;;  %v10720_v6 = vld [vmem:[#allocation22_spill] sm:$0xff] }
 0x158   : > { %v2182_v63 = vmul.f32 %v10717_v16, %v2180_v9  ;;  %v2151_v4 = vadd.f32 %v2149_v2, %v2143_v39  ;;  %v2152_v33 = vadd.f32 %v2150_v8, %v2144_v12  ;;  %v2189_v57 = vmul.f32 %v10718_v17, %v2188_v7  ;;  %v10721_v9 = vld [vmem:[#allocation23_spill] sm:$0xff] }
 0x159   : > { %v2190_v52 = vmul.f32 %v10719_v30, %v2188_v7  ;;  %v5907_v34 = vpop.eup %5906  ;;  %v2197_v37 = vmul.f32 %v7850_v15, %v2196_v20  ;;  %v2198_v50 = vmul.f32 %v10720_v6, %v2196_v20  ;;  %v2205_v16 = vmul.f32 %v10721_v9, %v2204_v51 }
 0x15a   : > { %v2206_v55 = vmul.f32 %v7869_v3, %v2204_v51  ;;  %v5909_v31 = vpop.eup %5908  ;;  %v7945_v62 = vmul.f32 %v5907_v34, %v727_v61  ;;  %v2159_v1 = vadd.f32 %v2157_v27, %v2151_v4  ;;  %v2160_v2 = vadd.f32 %v2158_v0, %v2152_v33  ;;  %v10726_v4 = vld [vmem:[#allocation10_spill] sm:$0xff]  ;;  %v10727_v33 = vld [vmem:[#allocation11_spill] sm:$0xff] }
 0x15b   : > { %v5655_v8 = vunpack.c.l.bf16 %v5788_v22  ;;  %v7947_v39 = vmul.f32 %v5909_v31, %v728_v28  ;;  %v7949_v12 = vunpack.c.h.bf16 %v5788_v22  ;;  %v7951_v7 = vunpack.c.l.bf16 %v5789_v56 }
 0x15c   : > { %v7953_v30 = vunpack.c.h.bf16 %v5789_v56  ;;  %v2075_v20 = vmul.f32 %v7886_v24, %v7945_v62  ;;  %v2167_v9 = vadd.f32 %v2165_v29, %v2159_v1  ;;  %v2168_v6 = vadd.f32 %v2166_v59, %v2160_v2  ;;  %v10724_v29 = vld [vmem:[#allocation8_spill] sm:$0xff]  ;;  %v10725_v59 = vld [vmem:[#allocation9_spill] sm:$0xff] }
 0x15d   : > { %10722 = vst [vmem:[#allocation7_spill] sm:$0xff] %v7947_v39  ;;  %v2220_v51 = vrot.slane %v5655_v8, %v6308_v40  ;;  %v2076_v27 = vmul.f32 %v7889_v35, %v7947_v39  ;;  %v2226_v0 = vrot.slane %v5655_v8, %v6310_v41  ;;  %v2234_v61 = vrot.slane %v5655_v8, %v6312_v42 }
 0x15e   : > { %10723 = vst [vmem:[#allocation25_spill] sm:$0xff] %v7953_v30  ;;  %v2242_v31 = vrot.slane %v5655_v8, %v6314_v43  ;;  %2077 = vst [vmem:[%s7963_s15] sm:$0xff] %v2075_v20  ;;  %v2175_v22 = vadd.f32 %v2173_v13, %v2167_v9  ;;  %v2176_v24 = vadd.f32 %v2174_v18, %v2168_v6 }
 0x15f   : > { %v2221_v1 = vmul.f32 %v10724_v29, %v2220_v51  ;;  %v2222_v28 = vmul.f32 %v10725_v59, %v2220_v51  ;;  %2078 = vst [vmem:[%s7963_s15 + $0x8] sm:$0xff] %v2076_v27  ;;  %v2227_v35 = vmul.f32 %v10726_v4, %v2226_v0  ;;  %v2228_v56 = vmul.f32 %v10727_v33, %v2226_v0 }
 0x160   : > { %v2235_v34 = vmul.f32 %v7691_v36, %v2234_v61  ;;  %v2236_v2 = vmul.f32 %v7699_v54, %v2234_v61  ;;  %v2183_v30 = vadd.f32 %v2181_v5, %v2175_v22  ;;  %v2184_v3 = vadd.f32 %v2182_v63, %v2176_v24 }
 0x161   : > { %v2243_v15 = vmul.f32 %v7707_v58, %v2242_v31  ;;  %v2244_v13 = vmul.f32 %v7715_v21, %v2242_v31  ;;  %v2229_v18 = vadd.f32 %v2227_v35, %v2221_v1  ;;  %v2230_v6 = vadd.f32 %v2228_v56, %v2222_v28 }
 0x162   : > { %v2250_v9 = vrot.slane %v5655_v8, %v6316_v44  ;;  %v2258_v20 = vrot.slane %v5655_v8, %v6318_v45  ;;  %v2191_v51 = vadd.f32 %v2189_v57, %v2183_v30  ;;  %v2192_v27 = vadd.f32 %v2190_v52, %v2184_v3 }
 0x163   : > { %v2266_v0 = vrot.slane %v5655_v8, %v6320_v46  ;;  %v2274_v36 = vrot.slane %v5655_v8, %v6322_v47  ;;  %v2237_v33 = vadd.f32 %v2235_v34, %v2229_v18  ;;  %v2238_v61 = vadd.f32 %v2236_v2, %v2230_v6 }
 0x164   : > { %v2251_v5 = vmul.f32 %v7723_v23, %v2250_v9  ;;  %v2252_v63 = vmul.f32 %v7731_v26, %v2250_v9  ;;  %v2199_v22 = vadd.f32 %v2197_v37, %v2191_v51  ;;  %v2200_v31 = vadd.f32 %v2198_v50, %v2192_v27  ;;  %v10728_v27 = vld [vmem:[#allocation15_spill] sm:$0xff] }
 0x165   : > { %v2259_v24 = vmul.f32 %v7735_v48, %v2258_v20  ;;  %v2260_v1 = vmul.f32 %v7739_v32, %v2258_v20  ;;  %v2245_v28 = vadd.f32 %v2243_v15, %v2237_v33  ;;  %v2246_v35 = vadd.f32 %v2244_v13, %v2238_v61 }
 0x166   : > { %v2267_v3 = vmul.f32 %v7745_v53, %v2266_v0  ;;  %v2268_v57 = vmul.f32 %v7751_v49, %v2266_v0  ;;  %v2207_v30 = vadd.f32 %v2205_v16, %v2199_v22  ;;  %v2208_v52 = vadd.f32 %v2206_v55, %v2200_v31  ;;  %v10730_v31 = vld [vmem:[#allocation17_spill] sm:$0xff] }
 0x167   : > { %v2275_v8 = vmul.f32 %v7757_v19, %v2274_v36  ;;  %v2276_v56 = vmul.f32 %v7763_v10, %v2274_v36  ;;  %v2253_v37 = vadd.f32 %v2251_v5, %v2245_v28  ;;  %v2254_v50 = vadd.f32 %v2252_v63, %v2246_v35  ;;  %v10729_v63 = vld [vmem:[#allocation16_spill] sm:$0xff] }
 0x168   : > { %v2282_v34 = vrot.slane %v7949_v12, %v6308_v40  ;;  %v2290_v15 = vrot.slane %v7949_v12, %v6310_v41  ;;  %v2209_v33 = vmul.f32 %v2207_v30, %v7945_v62  ;;  %v2210_v2 = vmul.f32 %v2208_v52, %v7947_v39 }
 0x169   : > { %v2298_v55 = vrot.slane %v7949_v12, %v6312_v42  ;;  %v2306_v16 = vrot.slane %v7949_v12, %v6314_v43  ;;  %v2261_v13 = vadd.f32 %v2259_v24, %v2253_v37  ;;  %v2262_v36 = vadd.f32 %v2260_v1, %v2254_v50  ;;  %v10731_v50 = vld [vmem:[#allocation18_spill] sm:$0xff] }
 0x16a   : > { %v2283_v18 = vmul.f32 %v7769_v38, %v2282_v34  ;;  %v2284_v6 = vmul.f32 %v7776_v60, %v2282_v34  ;;  %2211 = vst [vmem:[%s7963_s15 + $0x10] sm:$0xff] %v2209_v33  ;;  %2212 = vst [vmem:[%s7963_s15 + $0x18] sm:$0xff] %v2210_v2  ;;  %v2291_v9 = vmul.f32 %v7781_v25, %v2290_v15 }
 0x16b   : > { %v2292_v20 = vmul.f32 %v7786_v11, %v2290_v15  ;;  %v2299_v51 = vmul.f32 %v10712_v14, %v2298_v55  ;;  %v2300_v0 = vmul.f32 %v10728_v27, %v2298_v55  ;;  %v2269_v61 = vadd.f32 %v2267_v3, %v2261_v13  ;;  %v10732_v15 = vld [vmem:[#allocation19_spill] sm:$0xff]  ;;  %v10733_v55 = vld [vmem:[#allocation20_spill] sm:$0xff] }
 0x16c   : > { %v2270_v5 = vadd.f32 %v2268_v57, %v2262_v36  ;;  %v2307_v22 = vmul.f32 %v10729_v63, %v2306_v16  ;;  %v2308_v24 = vmul.f32 %v10730_v31, %v2306_v16  ;;  %v2314_v1 = vrot.slane %v7949_v12, %v6316_v44  ;;  %v10734_v31 = vld [vmem:[#allocation21_spill] sm:$0xff]  ;;  %v10737_v63 = vld [vmem:[#allocation24_spill] sm:$0xff] }
 0x16d   : > { %v2322_v28 = vrot.slane %v7949_v12, %v6318_v45  ;;  %v2330_v35 = vrot.slane %v7949_v12, %v6320_v46  ;;  %v2338_v30 = vrot.slane %v7949_v12, %v6322_v47  ;;  %v2277_v52 = vadd.f32 %v2275_v8, %v2269_v61  ;;  %v10735_v8 = vld [vmem:[#allocation22_spill] sm:$0xff]  ;;  %v10736_v61 = vld [vmem:[#allocation23_spill] sm:$0xff] }
 0x16e   : > { %v2278_v37 = vadd.f32 %v2276_v56, %v2270_v5  ;;  %v2354_v3 = vrot.slane %v7951_v7, %v6308_v40  ;;  %v2360_v57 = vrot.slane %v7951_v7, %v6310_v41  ;;  %v2315_v34 = vmul.f32 %v10731_v50, %v2314_v1 }
 0x16f   : > { %v2316_v33 = vmul.f32 %v10732_v15, %v2314_v1  ;;  %v2323_v2 = vmul.f32 %v10718_v17, %v2322_v28  ;;  %v2324_v16 = vmul.f32 %v10733_v55, %v2322_v28  ;;  %v2285_v13 = vadd.f32 %v2283_v18, %v2277_v52  ;;  %v10738_v15 = vld [vmem:[#allocation11_spill] sm:$0xff] }
 0x170   : > { %v2286_v36 = vadd.f32 %v2284_v6, %v2278_v37  ;;  %v2331_v12 = vmul.f32 %v10734_v31, %v2330_v35  ;;  %v2332_v56 = vmul.f32 %v10735_v8, %v2330_v35  ;;  %v2339_v5 = vmul.f32 %v10736_v61, %v2338_v30 }
 0x171   : > { %v2340_v27 = vmul.f32 %v10737_v63, %v2338_v30  ;;  %v2355_v14 = vmul.f32 %v10724_v29, %v2354_v3  ;;  %v2356_v50 = vmul.f32 %v10725_v59, %v2354_v3  ;;  %v2293_v39 = vadd.f32 %v2291_v9, %v2285_v13  ;;  %v10739_v3 = vld [vmem:[#allocation12_spill] sm:$0xff] }
 0x172   : > { %v2294_v1 = vadd.f32 %v2292_v20, %v2286_v36  ;;  %v2361_v17 = vmul.f32 %v10726_v4, %v2360_v57  ;;  %v2362_v28 = vmul.f32 %v10738_v15, %v2360_v57  ;;  %v2368_v18 = vrot.slane %v7951_v7, %v6312_v42 }
 0x173   : > { %v2376_v6 = vrot.slane %v7951_v7, %v6314_v43  ;;  %v2384_v35 = vrot.slane %v7951_v7, %v6316_v44  ;;  %v2392_v30 = vrot.slane %v7951_v7, %v6318_v45  ;;  %v2301_v52 = vadd.f32 %v2299_v51, %v2293_v39 }
 0x174   : > { %v2302_v37 = vadd.f32 %v2300_v0, %v2294_v1  ;;  %v2363_v9 = vadd.f32 %v2361_v17, %v2355_v14  ;;  %v2364_v20 = vadd.f32 %v2362_v28, %v2356_v50  ;;  %v2369_v13 = vmul.f32 %v10739_v3, %v2368_v18  ;;  %v10740_v1 = vld [vmem:[#allocation25_spill] sm:$0xff] }
 0x175   : > { %v2370_v57 = vmul.f32 %v7699_v54, %v2368_v18  ;;  %v2377_v36 = vmul.f32 %v7707_v58, %v2376_v6  ;;  %v2378_v15 = vmul.f32 %v7715_v21, %v2376_v6  ;;  %v2309_v4 = vadd.f32 %v2307_v22, %v2301_v52 }
 0x176   : > { %v2310_v59 = vadd.f32 %v2308_v24, %v2302_v37  ;;  %v2385_v29 = vmul.f32 %v7723_v23, %v2384_v35  ;;  %v2386_v63 = vmul.f32 %v7731_v26, %v2384_v35  ;;  %v2371_v61 = vadd.f32 %v2369_v13, %v2363_v9 }
 0x177   : > { %v2372_v8 = vadd.f32 %v2370_v57, %v2364_v20  ;;  %v2393_v39 = vmul.f32 %v7735_v48, %v2392_v30  ;;  %v2394_v14 = vmul.f32 %v7739_v32, %v2392_v30  ;;  %v2317_v17 = vadd.f32 %v2315_v34, %v2309_v4 }
 0x178   : > { %v2318_v51 = vadd.f32 %v2316_v33, %v2310_v59  ;;  %v2400_v0 = vrot.slane %v7951_v7, %v6320_v46  ;;  %v2408_v50 = vrot.slane %v7951_v7, %v6322_v47  ;;  %v2379_v22 = vadd.f32 %v2377_v36, %v2371_v61 }
 0x179   : > { %v2380_v24 = vadd.f32 %v2378_v15, %v2372_v8  ;;  %v2416_v28 = vrot.slane %v10740_v1, %v6308_v40  ;;  %v2424_v18 = vrot.slane %v10740_v1, %v6310_v41  ;;  %v2325_v6 = vadd.f32 %v2323_v2, %v2317_v17 }
 0x17a   : > { %v2326_v35 = vadd.f32 %v2324_v16, %v2318_v51  ;;  %v2401_v30 = vmul.f32 %v7745_v53, %v2400_v0  ;;  %v2402_v59 = vmul.f32 %v7751_v49, %v2400_v0  ;;  %v2387_v4 = vadd.f32 %v2385_v29, %v2379_v22  ;;  %v10743_v51 = vld [vmem:[#allocation15_spill] sm:$0xff] }
 0x17b   : > { %v2388_v34 = vadd.f32 %v2386_v63, %v2380_v24  ;;  %v2409_v33 = vmul.f32 %v7757_v19, %v2408_v50  ;;  %v2410_v7 = vmul.f32 %v7763_v10, %v2408_v50  ;;  %v2333_v61 = vadd.f32 %v2331_v12, %v2325_v6  ;;  %v10744_v24 = vld [vmem:[#allocation16_spill] sm:$0xff] }
 0x17c   : > { %v2334_v15 = vadd.f32 %v2332_v56, %v2326_v35  ;;  %v2417_v8 = vmul.f32 %v7769_v38, %v2416_v28  ;;  %v2418_v52 = vmul.f32 %v7776_v60, %v2416_v28  ;;  %v2395_v37 = vadd.f32 %v2393_v39, %v2387_v4  ;;  %v5790_v35 = vld [vmem:[%s7355_s5 + $0x20] sm:$0xff]  }
 0x17d   : > { %v2396_v9 = vadd.f32 %v2394_v14, %v2388_v34  ;;  %v2425_v2 = vmul.f32 %v7781_v25, %v2424_v18  ;;  %v2426_v16 = vmul.f32 %v7786_v11, %v2424_v18  ;;  %v2341_v20 = vadd.f32 %v2339_v5, %v2333_v61  ;;  %v10742_v14 = vld [vmem:[#allocation14_spill] sm:$0xff]  ;;  %v10745_v18 = vld [vmem:[#allocation17_spill] sm:$0xff]  ;;  %v10747_v34 = vld [vmem:[#allocation19_spill] sm:$0xff] }
 0x17e   : > { %v2342_v29 = vadd.f32 %v2340_v27, %v2334_v15  ;;  %v2432_v63 = vrot.slane %v10740_v1, %v6312_v42  ;;  %v2440_v12 = vrot.slane %v10740_v1, %v6314_v43  ;;  %v2403_v56 = vadd.f32 %v2401_v30, %v2395_v37  ;;  %v10741_v27 = vld [vmem:[#allocation7_spill] sm:$0xff]  ;;  %v10748_v15 = vld [vmem:[#allocation6_spill] sm:$0xff] }
 0x17f   : > { %v2404_v13 = vadd.f32 %v2402_v59, %v2396_v9  ;;  %v2448_v57 = vrot.slane %v10740_v1, %v6316_v44  ;;  %v2456_v36 = vrot.slane %v10740_v1, %v6318_v45  ;;  %v2343_v5 = vmul.f32 %v2341_v20, %v7945_v62  ;;  %v5791_v30 = vld [vmem:[%s7355_s5 + $0x28] sm:$0xff]   ;;  %v10746_v59 = vld [vmem:[#allocation18_spill] sm:$0xff] }
 0x180   : > { %v2344_v39 = vmul.f32 %v2342_v29, %v10741_v27  ;;  %v2433_v17 = vmul.f32 %v10742_v14, %v2432_v63  ;;  %v2434_v0 = vmul.f32 %v10743_v51, %v2432_v63  ;;  %v2411_v50 = vadd.f32 %v2409_v33, %v2403_v56 }
 0x181   : > { %v2412_v22 = vadd.f32 %v2410_v7, %v2404_v13  ;;  %v2441_v28 = vmul.f32 %v10744_v24, %v2440_v12  ;;  %v2442_v6 = vmul.f32 %v10745_v18, %v2440_v12  ;;  %2345 = vst [vmem:[%s7963_s15 + $0x20] sm:$0xff] %v2343_v5  ;;  %v2449_v4 = vmul.f32 %v10746_v59, %v2448_v57 }
 0x182   : > { %2346 = vst [vmem:[%s7963_s15 + $0x28] sm:$0xff] %v2344_v39  ;;  %v2450_v61 = vmul.f32 %v10747_v34, %v2448_v57  ;;  %v2457_v37 = vmul.f32 %v10748_v15, %v2456_v36  ;;  %v2458_v9 = vmul.f32 %v10733_v55, %v2456_v36  ;;  %v2419_v20 = vadd.f32 %v2417_v8, %v2411_v50  ;;  %v10751_v36 = vld [vmem:[#allocation22_spill] sm:$0xff] }
 0x183   : > { %v2420_v29 = vadd.f32 %v2418_v52, %v2412_v22  ;;  %v2464_v33 = vrot.slane %v10740_v1, %v6320_v46  ;;  %v2472_v7 = vrot.slane %v10740_v1, %v6322_v47  ;;  %v5663_v63 = vunpack.c.l.bf16 %v5790_v35  ;;  %v10752_v52 = vld [vmem:[#allocation23_spill] sm:$0xff]  ;;  %v10753_v22 = vld [vmem:[#allocation24_spill] sm:$0xff] }
 0x184   : > { %v8089_v12 = vunpack.c.h.bf16 %v5790_v35  ;;  %v8091_v56 = vunpack.c.l.bf16 %v5791_v30  ;;  %v8093_v13 = vunpack.c.h.bf16 %v5791_v30  ;;  %v2427_v57 = vadd.f32 %v2425_v2, %v2419_v20  ;;  %v10754_v2 = vld [vmem:[#allocation8_spill] sm:$0xff]  ;;  %v10755_v20 = vld [vmem:[#allocation9_spill] sm:$0xff] }
 0x185   : > { %v2428_v5 = vadd.f32 %v2426_v16, %v2420_v29  ;;  %v2465_v39 = vmul.f32 %v10734_v31, %v2464_v33  ;;  %v2466_v8 = vmul.f32 %v10751_v36, %v2464_v33  ;;  %v2473_v50 = vmul.f32 %v10752_v52, %v2472_v7  ;;  %v10757_v36 = vld [vmem:[#allocation11_spill] sm:$0xff] }
 0x186   : > { %10749 = vst [vmem:[#allocation12_spill] sm:$0xff] %v8091_v56  ;;  %10750 = vst [vmem:[#allocation25_spill] sm:$0xff] %v8093_v13  ;;  %v2474_v55 = vmul.f32 %v10753_v22, %v2472_v7  ;;  %v2488_v15 = vrot.slane %v5663_v63, %v6308_v40  ;;  %v2494_v1 = vrot.slane %v5663_v63, %v6310_v41  ;;  %v10756_v13 = vld [vmem:[#allocation10_spill] sm:$0xff] }
 0x187   : > { %v2435_v35 = vadd.f32 %v2433_v17, %v2427_v57  ;;  %v2436_v34 = vadd.f32 %v2434_v0, %v2428_v5  ;;  %v2502_v59 = vrot.slane %v5663_v63, %v6312_v42  ;;  %v2510_v30 = vrot.slane %v5663_v63, %v6314_v43 }
 0x188   : > { %v2489_v16 = vmul.f32 %v10754_v2, %v2488_v15  ;;  %v2490_v29 = vmul.f32 %v10755_v20, %v2488_v15  ;;  %v2495_v33 = vmul.f32 %v10756_v13, %v2494_v1  ;;  %v2496_v52 = vmul.f32 %v10757_v36, %v2494_v1 }
 0x189   : > { %v2443_v31 = vadd.f32 %v2441_v28, %v2435_v35  ;;  %v2444_v7 = vadd.f32 %v2442_v6, %v2436_v34  ;;  %v2503_v22 = vmul.f32 %v10739_v3, %v2502_v59  ;;  %v2504_v56 = vmul.f32 %v7699_v54, %v2502_v59 }
 0x18a   : > { %v2497_v17 = vadd.f32 %v2495_v33, %v2489_v16  ;;  %v2498_v0 = vadd.f32 %v2496_v52, %v2490_v29  ;;  %v2511_v57 = vmul.f32 %v7707_v58, %v2510_v30  ;;  %v2512_v5 = vmul.f32 %v7715_v21, %v2510_v30 }
 0x18b   : > { %v2451_v18 = vadd.f32 %v2449_v4, %v2443_v31  ;;  %v2452_v2 = vadd.f32 %v2450_v61, %v2444_v7  ;;  %v2518_v15 = vrot.slane %v5663_v63, %v6316_v44  ;;  %v2526_v13 = vrot.slane %v5663_v63, %v6318_v45 }
 0x18c   : > { %v2505_v20 = vadd.f32 %v2503_v22, %v2497_v17  ;;  %v2506_v1 = vadd.f32 %v2504_v56, %v2498_v0  ;;  %v2534_v28 = vrot.slane %v5663_v63, %v6320_v46  ;;  %v2542_v6 = vrot.slane %v5663_v63, %v6322_v47 }
 0x18d   : > { %v2459_v34 = vadd.f32 %v2457_v37, %v2451_v18  ;;  %v2460_v59 = vadd.f32 %v2458_v9, %v2452_v2  ;;  %v2519_v52 = vmul.f32 %v7723_v23, %v2518_v15  ;;  %v2520_v35 = vmul.f32 %v7731_v26, %v2518_v15 }
 0x18e   : > { %v2513_v16 = vadd.f32 %v2511_v57, %v2505_v20  ;;  %v2514_v30 = vadd.f32 %v2512_v5, %v2506_v1  ;;  %v2527_v31 = vmul.f32 %v7735_v48, %v2526_v13  ;;  %v2528_v4 = vmul.f32 %v7739_v32, %v2526_v13 }
 0x18f   : > { %v2467_v61 = vadd.f32 %v2465_v39, %v2459_v34  ;;  %v2468_v29 = vadd.f32 %v2466_v8, %v2460_v59  ;;  %v2535_v56 = vmul.f32 %v7745_v53, %v2534_v28  ;;  %v2536_v22 = vmul.f32 %v7751_v49, %v2534_v28 }
 0x190   : > { %v2521_v33 = vadd.f32 %v2519_v52, %v2513_v16  ;;  %v2522_v63 = vadd.f32 %v2520_v35, %v2514_v30  ;;  %v2543_v18 = vmul.f32 %v7757_v19, %v2542_v6  ;;  %v2544_v37 = vmul.f32 %v7763_v10, %v2542_v6  ;;  %v10758_v52 = vld [vmem:[#allocation17_spill] sm:$0xff] }
 0x191   : > { %v2475_v9 = vadd.f32 %v2473_v50, %v2467_v61  ;;  %v2476_v2 = vadd.f32 %v2474_v55, %v2468_v29  ;;  %v2550_v20 = vrot.slane %v8089_v12, %v6308_v40  ;;  %v2558_v13 = vrot.slane %v8089_v12, %v6310_v41 }
 0x192   : > { %v2529_v39 = vadd.f32 %v2527_v31, %v2521_v33  ;;  %v2530_v8 = vadd.f32 %v2528_v4, %v2522_v63  ;;  %v2566_v7 = vrot.slane %v8089_v12, %v6312_v42  ;;  %v2574_v17 = vrot.slane %v8089_v12, %v6314_v43 }
 0x193   : > { %v2477_v0 = vmul.f32 %v2475_v9, %v7945_v62  ;;  %v2478_v50 = vmul.f32 %v2476_v2, %v10741_v27  ;;  %v2551_v55 = vmul.f32 %v7769_v38, %v2550_v20  ;;  %v2552_v57 = vmul.f32 %v7776_v60, %v2550_v20  ;;  %v10761_v2 = vld [vmem:[#allocation19_spill] sm:$0xff] }
 0x194   : > { %v2537_v5 = vadd.f32 %v2535_v56, %v2529_v39  ;;  %v2538_v15 = vadd.f32 %v2536_v22, %v2530_v8  ;;  %v2559_v1 = vmul.f32 %v7781_v25, %v2558_v13  ;;  %v2560_v28 = vmul.f32 %v7786_v11, %v2558_v13  ;;  %v10759_v56 = vld [vmem:[#allocation12_spill] sm:$0xff]  ;;  %v10762_v13 = vld [vmem:[#allocation6_spill] sm:$0xff] }
 0x195   : > { %2479 = vst [vmem:[%s7963_s15 + $0x30] sm:$0xff] %v2477_v0  ;;  %2480 = vst [vmem:[%s7963_s15 + $0x38] sm:$0xff] %v2478_v50  ;;  %v2567_v6 = vmul.f32 %v10742_v14, %v2566_v7  ;;  %v2568_v34 = vmul.f32 %v10743_v51, %v2566_v7  ;;  %v2575_v59 = vmul.f32 %v10744_v24, %v2574_v17  ;;  %v10763_v8 = vld [vmem:[#allocation20_spill] sm:$0xff]  ;;  %v10765_v50 = vld [vmem:[#allocation22_spill] sm:$0xff] }
 0x196   : > { %v2576_v35 = vmul.f32 %v10758_v52, %v2574_v17  ;;  %v2545_v16 = vadd.f32 %v2543_v18, %v2537_v5  ;;  %v2546_v30 = vadd.f32 %v2544_v37, %v2538_v15  ;;  %v2582_v31 = vrot.slane %v8089_v12, %v6316_v44  ;;  %v10760_v37 = vld [vmem:[#allocation18_spill] sm:$0xff]  ;;  %v10764_v17 = vld [vmem:[#allocation21_spill] sm:$0xff]  ;;  %v10766_v52 = vld [vmem:[#allocation23_spill] sm:$0xff] }
 0x197   : > { %v2590_v4 = vrot.slane %v8089_v12, %v6318_v45  ;;  %v2598_v61 = vrot.slane %v8089_v12, %v6320_v46  ;;  %v2606_v29 = vrot.slane %v8089_v12, %v6322_v47  ;;  %v2622_v22 = vrot.slane %v10759_v56, %v6308_v40  ;;  %v10767_v51 = vld [vmem:[#allocation24_spill] sm:$0xff] }
 0x198   : > { %v2628_v33 = vrot.slane %v10759_v56, %v6310_v41  ;;  %v2553_v63 = vadd.f32 %v2551_v55, %v2545_v16  ;;  %v2554_v18 = vadd.f32 %v2552_v57, %v2546_v30  ;;  %v2583_v9 = vmul.f32 %v10760_v37, %v2582_v31  ;;  %v10768_v55 = vld [vmem:[#allocation8_spill] sm:$0xff]  ;;  %v10769_v16 = vld [vmem:[#allocation9_spill] sm:$0xff]  ;;  %v10770_v37 = vld [vmem:[#allocation10_spill] sm:$0xff] }
 0x199   : > { %v2584_v20 = vmul.f32 %v10761_v2, %v2582_v31  ;;  %v2591_v39 = vmul.f32 %v10762_v13, %v2590_v4  ;;  %v2592_v7 = vmul.f32 %v10763_v8, %v2590_v4  ;;  %v2599_v0 = vmul.f32 %v10764_v17, %v2598_v61 }
 0x19a   : > { %v2600_v12 = vmul.f32 %v10765_v50, %v2598_v61  ;;  %v2561_v5 = vadd.f32 %v2559_v1, %v2553_v63  ;;  %v2562_v15 = vadd.f32 %v2560_v28, %v2554_v18  ;;  %v2607_v24 = vmul.f32 %v10766_v52, %v2606_v29 }
 0x19b   : > { %v2608_v14 = vmul.f32 %v10767_v51, %v2606_v29  ;;  %v2623_v57 = vmul.f32 %v10768_v55, %v2622_v22  ;;  %v2624_v30 = vmul.f32 %v10769_v16, %v2622_v22  ;;  %v2629_v31 = vmul.f32 %v10770_v37, %v2628_v33 }
 0x19c   : > { %v2630_v13 = vmul.f32 %v10757_v36, %v2628_v33  ;;  %v2569_v2 = vadd.f32 %v2567_v6, %v2561_v5  ;;  %v2570_v4 = vadd.f32 %v2568_v34, %v2562_v15  ;;  %v2636_v17 = vrot.slane %v10759_v56, %v6312_v42 }
 0x19d   : > { %v2644_v1 = vrot.slane %v10759_v56, %v6314_v43  ;;  %v2631_v28 = vadd.f32 %v2629_v31, %v2623_v57  ;;  %v2652_v29 = vrot.slane %v10759_v56, %v6316_v44  ;;  %v2660_v22 = vrot.slane %v10759_v56, %v6318_v45 }
 0x19e   : > { %v2632_v61 = vadd.f32 %v2630_v13, %v2624_v30  ;;  %v2577_v63 = vadd.f32 %v2575_v59, %v2569_v2  ;;  %v2578_v18 = vadd.f32 %v2576_v35, %v2570_v4  ;;  %v2637_v33 = vmul.f32 %v10739_v3, %v2636_v17 }
 0x19f   : > { %v2638_v6 = vmul.f32 %v7699_v54, %v2636_v17  ;;  %v2645_v34 = vmul.f32 %v7707_v58, %v2644_v1  ;;  %v2646_v5 = vmul.f32 %v7715_v21, %v2644_v1  ;;  %v2653_v15 = vmul.f32 %v7723_v23, %v2652_v29 }
 0x1a0   : > { %v2654_v13 = vmul.f32 %v7731_v26, %v2652_v29  ;;  %v2585_v57 = vadd.f32 %v2583_v9, %v2577_v63  ;;  %v2586_v30 = vadd.f32 %v2584_v20, %v2578_v18  ;;  %v2639_v31 = vadd.f32 %v2637_v33, %v2631_v28  ;;  %v10771_v33 = vld [vmem:[#allocation25_spill] sm:$0xff] }
 0x1a1   : > { %v2640_v36 = vadd.f32 %v2638_v6, %v2632_v61  ;;  %v2661_v37 = vmul.f32 %v7735_v48, %v2660_v22  ;;  %v2662_v59 = vmul.f32 %v7739_v32, %v2660_v22  ;;  %v2668_v35 = vrot.slane %v10759_v56, %v6320_v46 }
 0x1a2   : > { %v2676_v2 = vrot.slane %v10759_v56, %v6322_v47  ;;  %v2593_v17 = vadd.f32 %v2591_v39, %v2585_v57  ;;  %v2594_v4 = vadd.f32 %v2592_v7, %v2586_v30  ;;  %v2647_v1 = vadd.f32 %v2645_v34, %v2639_v31 }
 0x1a3   : > { %v2648_v23 = vadd.f32 %v2646_v5, %v2640_v36  ;;  %v2669_v29 = vmul.f32 %v7745_v53, %v2668_v35  ;;  %v2670_v9 = vmul.f32 %v7751_v49, %v2668_v35  ;;  %v2684_v6 = vrot.slane %v10771_v33, %v6308_v40 }
 0x1a4   : > { %v2677_v20 = vmul.f32 %v7757_v19, %v2676_v2  ;;  %v2678_v28 = vmul.f32 %v7763_v10, %v2676_v2  ;;  %v2601_v61 = vadd.f32 %v2599_v0, %v2593_v17  ;;  %v2602_v22 = vadd.f32 %v2600_v12, %v2594_v4 }
 0x1a5   : > { %v2655_v63 = vadd.f32 %v2653_v15, %v2647_v1  ;;  %v2656_v18 = vadd.f32 %v2654_v13, %v2648_v23  ;;  %v2692_v56 = vrot.slane %v10771_v33, %v6310_v41  ;;  %v2700_v36 = vrot.slane %v10771_v33, %v6312_v42  ;;  %v10775_v1 = vld [vmem:[#allocation17_spill] sm:$0xff] }
 0x1a6   : > { %v2708_v39 = vrot.slane %v10771_v33, %v6314_v43  ;;  %v2609_v7 = vadd.f32 %v2607_v24, %v2601_v61  ;;  %v2610_v34 = vadd.f32 %v2608_v14, %v2602_v22  ;;  %v2685_v23 = vmul.f32 %v7769_v38, %v2684_v6  ;;  %v5792_v24 = vld [vmem:[%s7355_s5 + $0x30] sm:$0xff]   ;;  %v10772_v14 = vld [vmem:[#allocation14_spill] sm:$0xff] }
 0x1a7   : > { %v2663_v0 = vadd.f32 %v2661_v37, %v2655_v63  ;;  %v2664_v12 = vadd.f32 %v2662_v59, %v2656_v18  ;;  %v2686_v5 = vmul.f32 %v7776_v60, %v2684_v6  ;;  %v2693_v15 = vmul.f32 %v7781_v25, %v2692_v56  ;;  %v10773_v37 = vld [vmem:[#allocation15_spill] sm:$0xff]  ;;  %v10774_v59 = vld [vmem:[#allocation16_spill] sm:$0xff] }
 0x1a8   : > { %v2694_v13 = vmul.f32 %v7786_v11, %v2692_v56  ;;  %v2611_v57 = vmul.f32 %v2609_v7, %v7945_v62  ;;  %v2612_v30 = vmul.f32 %v2610_v34, %v10741_v27  ;;  %v2701_v2 = vmul.f32 %v10772_v14, %v2700_v36  ;;  %v10776_v34 = vld [vmem:[#allocation18_spill] sm:$0xff] }
 0x1a9   : > { %v2671_v31 = vadd.f32 %v2669_v29, %v2663_v0  ;;  %v2672_v35 = vadd.f32 %v2670_v9, %v2664_v12  ;;  %v2702_v17 = vmul.f32 %v10773_v37, %v2700_v36  ;;  %v2709_v4 = vmul.f32 %v10774_v59, %v2708_v39  ;;  %v10778_v12 = vld [vmem:[#allocation6_spill] sm:$0xff] }
 0x1aa   : > { %v2710_v61 = vmul.f32 %v10775_v1, %v2708_v39  ;;  %2613 = vst [vmem:[%s7963_s15 + $0x40] sm:$0xff] %v2611_v57  ;;  %2614 = vst [vmem:[%s7963_s15 + $0x48] sm:$0xff] %v2612_v30  ;;  %v2716_v18 = vrot.slane %v10771_v33, %v6316_v44  ;;  %v2724_v29 = vrot.slane %v10771_v33, %v6318_v45  ;;  %v5671_v56 = vunpack.c.l.bf16 %v5792_v24 }
 0x1ab   : > { %v2679_v22 = vadd.f32 %v2677_v20, %v2671_v31  ;;  %v2680_v63 = vadd.f32 %v2678_v28, %v2672_v35  ;;  %v2732_v9 = vrot.slane %v10771_v33, %v6320_v46  ;;  %v2740_v6 = vrot.slane %v10771_v33, %v6322_v47  ;;  %v10777_v28 = vld [vmem:[#allocation19_spill] sm:$0xff]  ;;  %v10779_v31 = vld [vmem:[#allocation21_spill] sm:$0xff] }
 0x1ac   : > { %v8220_v36 = vunpack.c.h.bf16 %v5792_v24  ;;  %v2717_v20 = vmul.f32 %v10776_v34, %v2716_v18  ;;  %v2718_v0 = vmul.f32 %v10777_v28, %v2716_v18  ;;  %v2725_v57 = vmul.f32 %v10778_v12, %v2724_v29  ;;  %v10782_v34 = vld [vmem:[#allocation13_spill] sm:$0xff] }
 0x1ad   : > { %v2687_v39 = vadd.f32 %v2685_v23, %v2679_v22  ;;  %v2688_v7 = vadd.f32 %v2686_v5, %v2680_v63  ;;  %v2726_v30 = vmul.f32 %v10763_v8, %v2724_v29  ;;  %v2733_v35 = vmul.f32 %v10779_v31, %v2732_v9 }
 0x1ae   : > { %v2734_v1 = vmul.f32 %v10765_v50, %v2732_v9  ;;  %v2741_v33 = vmul.f32 %v10766_v52, %v2740_v6  ;;  %v2742_v24 = vmul.f32 %v10767_v51, %v2740_v6  ;;  %v2756_v23 = vrot.slane %v5671_v56, %v6308_v40 }
 0x1af   : > { %v2695_v59 = vadd.f32 %v2693_v15, %v2687_v39  ;;  %v2696_v37 = vadd.f32 %v2694_v13, %v2688_v7  ;;  %v2762_v5 = vrot.slane %v5671_v56, %v6310_v41  ;;  %v2770_v22 = vrot.slane %v5671_v56, %v6312_v42  ;;  %v10780_v39 = vld [vmem:[#allocation10_spill] sm:$0xff]  ;;  %v10781_v7 = vld [vmem:[#allocation11_spill] sm:$0xff] }
 0x1b0   : > { %v2778_v63 = vrot.slane %v5671_v56, %v6314_v43  ;;  %v2786_v31 = vrot.slane %v5671_v56, %v6316_v44  ;;  %v2794_v9 = vrot.slane %v5671_v56, %v6318_v45  ;;  %v2757_v15 = vmul.f32 %v10768_v55, %v2756_v23 }
 0x1b1   : > { %v2703_v18 = vadd.f32 %v2701_v2, %v2695_v59  ;;  %v2704_v29 = vadd.f32 %v2702_v17, %v2696_v37  ;;  %v2758_v13 = vmul.f32 %v10769_v16, %v2756_v23  ;;  %v2763_v6 = vmul.f32 %v10780_v39, %v2762_v5 }
 0x1b2   : > { %v2764_v51 = vmul.f32 %v10781_v7, %v2762_v5  ;;  %v2771_v8 = vmul.f32 %v10739_v3, %v2770_v22  ;;  %v2772_v12 = vmul.f32 %v7699_v54, %v2770_v22  ;;  %v2779_v17 = vmul.f32 %v7707_v58, %v2778_v63 }
 0x1b3   : > { %v2711_v52 = vadd.f32 %v2709_v4, %v2703_v18  ;;  %v2712_v50 = vadd.f32 %v2710_v61, %v2704_v29  ;;  %v2765_v2 = vadd.f32 %v2763_v6, %v2757_v15  ;;  %v2780_v59 = vmul.f32 %v7715_v21, %v2778_v63 }
 0x1b4   : > { %v2766_v37 = vadd.f32 %v2764_v51, %v2758_v13  ;;  %v2787_v23 = vmul.f32 %v10782_v34, %v2786_v31  ;;  %v2788_v39 = vmul.f32 %v7731_v26, %v2786_v31  ;;  %v2795_v4 = vmul.f32 %v7735_v48, %v2794_v9 }
 0x1b5   : > { %v2719_v28 = vadd.f32 %v2717_v20, %v2711_v52  ;;  %v2720_v55 = vadd.f32 %v2718_v0, %v2712_v50  ;;  %v2773_v16 = vadd.f32 %v2771_v8, %v2765_v2  ;;  %v2796_v61 = vmul.f32 %v7739_v32, %v2794_v9 }
 0x1b6   : > { %v2774_v5 = vadd.f32 %v2772_v12, %v2766_v37  ;;  %v2802_v51 = vrot.slane %v5671_v56, %v6320_v46  ;;  %v2810_v29 = vrot.slane %v5671_v56, %v6322_v47  ;;  %v2818_v52 = vrot.slane %v8220_v36, %v6308_v40 }
 0x1b7   : > { %v2727_v18 = vadd.f32 %v2725_v57, %v2719_v28  ;;  %v2728_v22 = vadd.f32 %v2726_v30, %v2720_v55  ;;  %v2781_v15 = vadd.f32 %v2779_v17, %v2773_v16  ;;  %v2826_v50 = vrot.slane %v8220_v36, %v6310_v41 }
 0x1b8   : > { %v2782_v63 = vadd.f32 %v2780_v59, %v2774_v5  ;;  %v2803_v0 = vmul.f32 %v7745_v53, %v2802_v51  ;;  %v2804_v12 = vmul.f32 %v7751_v49, %v2802_v51  ;;  %v2811_v57 = vmul.f32 %v7757_v19, %v2810_v29  ;;  %v10785_v51 = vld [vmem:[#allocation17_spill] sm:$0xff] }
 0x1b9   : > { %v2735_v8 = vadd.f32 %v2733_v35, %v2727_v18  ;;  %v2736_v20 = vadd.f32 %v2734_v1, %v2728_v22  ;;  %v2789_v28 = vadd.f32 %v2787_v23, %v2781_v15  ;;  %v2812_v56 = vmul.f32 %v7763_v10, %v2810_v29  ;;  %v10784_v18 = vld [vmem:[#allocation16_spill] sm:$0xff]  ;;  %v5793_v15 = vld [vmem:[%s7355_s5 + $0x38] sm:$0xff]  }
 0x1ba   : > { %v2790_v55 = vadd.f32 %v2788_v39, %v2782_v63  ;;  %v2819_v31 = vmul.f32 %v7769_v38, %v2818_v52  ;;  %v2820_v9 = vmul.f32 %v7776_v60, %v2818_v52  ;;  %v2827_v13 = vmul.f32 %v7781_v25, %v2826_v50 }
 0x1bb   : > { %v2743_v16 = vadd.f32 %v2741_v33, %v2735_v8  ;;  %v2744_v30 = vadd.f32 %v2742_v24, %v2736_v20  ;;  %v2797_v35 = vadd.f32 %v2795_v4, %v2789_v28  ;;  %v2828_v6 = vmul.f32 %v7786_v11, %v2826_v50  ;;  %v10783_v4 = vld [vmem:[#allocation15_spill] sm:$0xff]  ;;  %v10786_v50 = vld [vmem:[#allocation18_spill] sm:$0xff] }
 0x1bc   : > { %v2798_v1 = vadd.f32 %v2796_v61, %v2790_v55  ;;  %v2834_v33 = vrot.slane %v8220_v36, %v6312_v42  ;;  %v2842_v24 = vrot.slane %v8220_v36, %v6314_v43  ;;  %v2850_v59 = vrot.slane %v8220_v36, %v6316_v44  ;;  %v10787_v20 = vld [vmem:[#allocation19_spill] sm:$0xff]  ;;  %v10789_v55 = vld [vmem:[#allocation20_spill] sm:$0xff] }
 0x1bd   : > { %v2745_v39 = vmul.f32 %v2743_v16, %v7945_v62  ;;  %v2746_v2 = vmul.f32 %v2744_v30, %v10741_v27  ;;  %v2805_v37 = vadd.f32 %v2803_v0, %v2797_v35  ;;  %v2858_v23 = vrot.slane %v8220_v36, %v6318_v45 }
 0x1be   : > { %v2806_v17 = vadd.f32 %v2804_v12, %v2798_v1  ;;  %v2835_v5 = vmul.f32 %v10772_v14, %v2834_v33  ;;  %v2836_v61 = vmul.f32 %v10783_v4, %v2834_v33  ;;  %v2843_v22 = vmul.f32 %v10784_v18, %v2842_v24  ;;  %v10788_v12 = vld [vmem:[#allocation6_spill] sm:$0xff] }
 0x1bf   : > { %2747 = vst [vmem:[%s7963_s15 + $0x50] sm:$0xff] %v2745_v39  ;;  %2748 = vst [vmem:[%s7963_s15 + $0x58] sm:$0xff] %v2746_v2  ;;  %v2844_v29 = vmul.f32 %v10785_v51, %v2842_v24  ;;  %v2813_v63 = vadd.f32 %v2811_v57, %v2805_v37  ;;  %v2851_v8 = vmul.f32 %v10786_v50, %v2850_v59  ;;  %v5675_v2 = vunpack.c.l.bf16 %v5793_v15  ;;  %v10790_v57 = vld [vmem:[#allocation21_spill] sm:$0xff]  ;;  %v10791_v24 = vld [vmem:[#allocation22_spill] sm:$0xff] }
 0x1c0   : > { %v2814_v52 = vadd.f32 %v2812_v56, %v2806_v17  ;;  %v2852_v0 = vmul.f32 %v10787_v20, %v2850_v59  ;;  %v2859_v28 = vmul.f32 %v10788_v12, %v2858_v23  ;;  %v2860_v16 = vmul.f32 %v10789_v55, %v2858_v23  ;;  %v10792_v17 = vld [vmem:[#allocation23_spill] sm:$0xff]  ;;  %v10793_v12 = vld [vmem:[#allocation24_spill] sm:$0xff] }
 0x1c1   : > { %v2866_v30 = vrot.slane %v8220_v36, %v6320_v46  ;;  %v2874_v35 = vrot.slane %v8220_v36, %v6322_v47  ;;  %v2821_v1 = vadd.f32 %v2819_v31, %v2813_v63  ;;  %v8287_v33 = vunpack.c.h.bf16 %v5793_v15 }
 0x1c2   : > { %v2822_v39 = vadd.f32 %v2820_v9, %v2814_v52  ;;  %v2890_v50 = vrot.slane %v5675_v2, %v6308_v40  ;;  %v2896_v51 = vrot.slane %v5675_v2, %v6310_v41  ;;  %v2904_v36 = vrot.slane %v5675_v2, %v6312_v42 }
 0x1c3   : > { %v2867_v56 = vmul.f32 %v10790_v57, %v2866_v30  ;;  %v2868_v37 = vmul.f32 %v10791_v24, %v2866_v30  ;;  %v2875_v59 = vmul.f32 %v10792_v17, %v2874_v35  ;;  %v2876_v20 = vmul.f32 %v10793_v12, %v2874_v35  ;;  %v10794_v30 = vld [vmem:[#allocation8_spill] sm:$0xff]  ;;  %v10795_v24 = vld [vmem:[#allocation9_spill] sm:$0xff] }
 0x1c4   : > { %v2829_v23 = vadd.f32 %v2827_v13, %v2821_v1  ;;  %v2830_v55 = vadd.f32 %v2828_v6, %v2822_v39  ;;  %v2912_v31 = vrot.slane %v5675_v2, %v6314_v43  ;;  %v2920_v9 = vrot.slane %v5675_v2, %v6316_v44  ;;  %v10796_v13 = vld [vmem:[#allocation10_spill] sm:$0xff] }
 0x1c5   : > { %v2928_v15 = vrot.slane %v5675_v2, %v6318_v45  ;;  %v2891_v17 = vmul.f32 %v10794_v30, %v2890_v50  ;;  %v2892_v35 = vmul.f32 %v10795_v24, %v2890_v50  ;;  %v2897_v6 = vmul.f32 %v10796_v13, %v2896_v51  ;;  %v10799_v30 = vld [vmem:[#allocation16_spill] sm:$0xff]  ;;  %v10800_v13 = vld [vmem:[#allocation17_spill] sm:$0xff] }
 0x1c6   : > { %v2837_v63 = vadd.f32 %v2835_v5, %v2829_v23  ;;  %v2838_v52 = vadd.f32 %v2836_v61, %v2830_v55  ;;  %v2898_v1 = vmul.f32 %v10781_v7, %v2896_v51  ;;  %v2905_v39 = vmul.f32 %v10739_v3, %v2904_v36 }
 0x1c7   : > { %v2906_v12 = vmul.f32 %v7699_v54, %v2904_v36  ;;  %v2913_v4 = vmul.f32 %v7707_v58, %v2912_v31  ;;  %v2914_v14 = vmul.f32 %v7715_v21, %v2912_v31  ;;  %v2899_v5 = vadd.f32 %v2897_v6, %v2891_v17 }
 0x1c8   : > { %v2845_v57 = vadd.f32 %v2843_v22, %v2837_v63  ;;  %v2846_v18 = vadd.f32 %v2844_v29, %v2838_v52  ;;  %v2900_v61 = vadd.f32 %v2898_v1, %v2892_v35  ;;  %v2921_v55 = vmul.f32 %v10782_v34, %v2920_v9  ;;  %v5794_v52 = vld [vmem:[%s6301_s29 + $0x40] sm:$0xff]  }
 0x1c9   : > { %v2922_v50 = vmul.f32 %v7731_v26, %v2920_v9  ;;  %v2929_v7 = vmul.f32 %v7735_v48, %v2928_v15  ;;  %v2930_v3 = vmul.f32 %v7739_v32, %v2928_v15  ;;  %v2907_v51 = vadd.f32 %v2905_v39, %v2899_v5  ;;  %v10798_v15 = vld [vmem:[#allocation15_spill] sm:$0xff]  ;;  %v10801_v1 = vld [vmem:[#allocation18_spill] sm:$0xff] }
 0x1ca   : > { %v2853_v24 = vadd.f32 %v2851_v8, %v2845_v57  ;;  %v2854_v23 = vadd.f32 %v2852_v0, %v2846_v18  ;;  %v2908_v54 = vadd.f32 %v2906_v12, %v2900_v61  ;;  %v2936_v22 = vrot.slane %v5675_v2, %v6320_v46  ;;  %v10802_v5 = vld [vmem:[#allocation19_spill] sm:$0xff] }
 0x1cb   : > { %v2944_v58 = vrot.slane %v5675_v2, %v6322_v47  ;;  %v2952_v17 = vrot.slane %v8287_v33, %v6308_v40  ;;  %v2960_v26 = vrot.slane %v8287_v33, %v6310_v41  ;;  %v2915_v34 = vadd.f32 %v2913_v4, %v2907_v51 }
 0x1cc   : > { %v2861_v29 = vadd.f32 %v2859_v28, %v2853_v24  ;;  %v2862_v21 = vadd.f32 %v2860_v16, %v2854_v23  ;;  %v2916_v18 = vadd.f32 %v2914_v14, %v2908_v54  ;;  %v2937_v48 = vmul.f32 %v7745_v53, %v2936_v22  ;;  %v10803_v23 = vld [vmem:[#allocation6_spill] sm:$0xff] }
 0x1cd   : > { %v2938_v32 = vmul.f32 %v7751_v49, %v2936_v22  ;;  %v2945_v12 = vmul.f32 %v7757_v19, %v2944_v58  ;;  %v2946_v2 = vmul.f32 %v7763_v10, %v2944_v58  ;;  %v2923_v28 = vadd.f32 %v2921_v55, %v2915_v34  ;;  %v5795_v55 = vld [vmem:[%s6305_s30 + $0x40] sm:$0xff]  }
 0x1ce   : > { %v2869_v8 = vadd.f32 %v2867_v56, %v2861_v29  ;;  %v2870_v0 = vadd.f32 %v2868_v37, %v2862_v21  ;;  %v2924_v16 = vadd.f32 %v2922_v50, %v2916_v18  ;;  %v2953_v57 = vmul.f32 %v7769_v38, %v2952_v17  ;;  %v10805_v18 = vld [vmem:[#allocation21_spill] sm:$0xff] }
 0x1cf   : > { %v2954_v36 = vmul.f32 %v7776_v60, %v2952_v17  ;;  %v2961_v53 = vmul.f32 %v7781_v25, %v2960_v26  ;;  %v2962_v49 = vmul.f32 %v7786_v11, %v2960_v26  ;;  %v2931_v14 = vadd.f32 %v2929_v7, %v2923_v28 }
 0x1d0   : > { %v2877_v31 = vadd.f32 %v2875_v59, %v2869_v8  ;;  %v2878_v4 = vadd.f32 %v2876_v20, %v2870_v0  ;;  %v2932_v56 = vadd.f32 %v2930_v3, %v2924_v16  ;;  %v2968_v19 = vrot.slane %v8287_v33, %v6312_v42  ;;  %v10797_v59 = vld [vmem:[#allocation14_spill] sm:$0xff]  ;;  %v10804_v3 = vld [vmem:[#allocation20_spill] sm:$0xff]  ;;  %v10807_v0 = vld [vmem:[#allocation23_spill] sm:$0xff] }
 0x1d1   : > { %v2976_v10 = vrot.slane %v8287_v33, %v6314_v43  ;;  %v2984_v20 = vrot.slane %v8287_v33, %v6316_v44  ;;  %v2992_v25 = vrot.slane %v8287_v33, %v6318_v45  ;;  %v2939_v11 = vadd.f32 %v2937_v48, %v2931_v14 }
 0x1d2   : > { %v2879_v38 = vmul.f32 %v2877_v31, %v7945_v62  ;;  %v2880_v60 = vmul.f32 %v2878_v4, %v10741_v27  ;;  %v2940_v37 = vadd.f32 %v2938_v32, %v2932_v56  ;;  %v2969_v9 = vmul.f32 %v10797_v59, %v2968_v19  ;;  %v10806_v32 = vld [vmem:[#allocation22_spill] sm:$0xff] }
 0x1d3   : > { %v2970_v63 = vmul.f32 %v10798_v15, %v2968_v19  ;;  %v2977_v35 = vmul.f32 %v10799_v30, %v2976_v10  ;;  %v2978_v6 = vmul.f32 %v10800_v13, %v2976_v10  ;;  %v2985_v39 = vmul.f32 %v10801_v1, %v2984_v20 }
 0x1d4   : > { %2881 = vst [vmem:[%s7963_s15 + $0x60] sm:$0xff] %v2879_v38  ;;  %2882 = vst [vmem:[%s7963_s15 + $0x68] sm:$0xff] %v2880_v60  ;;  %v2986_v61 = vmul.f32 %v10802_v5, %v2984_v20  ;;  %v2947_v50 = vadd.f32 %v2945_v12, %v2939_v11  ;;  %v2948_v24 = vadd.f32 %v2946_v2, %v2940_v37  ;;  %v8351_v58 = vunpack.c.l.bf16 %v5794_v52  ;;  %v10808_v2 = vld [vmem:[#allocation24_spill] sm:$0xff] }
 0x1d5   : > { %v2993_v7 = vmul.f32 %v10803_v23, %v2992_v25  ;;  %v2994_v51 = vmul.f32 %v10804_v3, %v2992_v25  ;;  %v3000_v54 = vrot.slane %v8287_v33, %v6320_v46  ;;  %v3008_v22 = vrot.slane %v8287_v33, %v6322_v47 }
 0x1d6   : > { %v8353_v29 = vunpack.c.h.bf16 %v5794_v52  ;;  %v2955_v21 = vadd.f32 %v2953_v57, %v2947_v50  ;;  %v2956_v17 = vadd.f32 %v2954_v36, %v2948_v24  ;;  %v5683_v26 = vunpack.c.l.bf16 %v5795_v55 }
 0x1d7   : > { %v5684_v34 = vunpack.c.h.bf16 %v5795_v55  ;;  %v3001_v48 = vmul.f32 %v10805_v18, %v3000_v54  ;;  %v3002_v8 = vmul.f32 %v10806_v32, %v3000_v54  ;;  %v3009_v12 = vmul.f32 %v10807_v0, %v3008_v22  ;;  %v5796_v32 = vld [vmem:[%s6301_s29 + $0x48] sm:$0xff]  }
 0x1d8   : > { %v3010_v28 = vmul.f32 %v10808_v2, %v3008_v22  ;;  %v2963_v16 = vadd.f32 %v2961_v53, %v2955_v21  ;;  %v2964_v31 = vadd.f32 %v2962_v49, %v2956_v17  ;;  %v3028_v33 = vrot.slane %v5683_v26, %v6308_v40 }
 0x1d9   : > { %v3034_v4 = vrot.slane %v5683_v26, %v6310_v41  ;;  %v3040_v14 = vrot.slane %v5683_v26, %v6312_v42  ;;  %v3046_v57 = vrot.slane %v5683_v26, %v6314_v43  ;;  %v3052_v36 = vrot.slane %v5683_v26, %v6316_v44 }
 0x1da   : > { %v3058_v56 = vrot.slane %v5683_v26, %v6318_v45  ;;  %v2971_v19 = vadd.f32 %v2969_v9, %v2963_v16  ;;  %v2972_v10 = vadd.f32 %v2970_v63, %v2964_v31  ;;  %v8366_v38 = vmul.f32 %v8351_v58, %v3028_v33 }
 0x1db   : > { %v8369_v53 = vmul.f32 %v8353_v29, %v3028_v33  ;;  %v8372_v49 = vmul.f32 %v8351_v58, %v3034_v4  ;;  %v8375_v60 = vmul.f32 %v8353_v29, %v3034_v4  ;;  %v8378_v20 = vmul.f32 %v8351_v58, %v3040_v14 }
 0x1dc   : > { %v8381_v25 = vmul.f32 %v8353_v29, %v3040_v14  ;;  %v2979_v11 = vadd.f32 %v2977_v35, %v2971_v19  ;;  %v2980_v37 = vadd.f32 %v2978_v6, %v2972_v10  ;;  %v8384_v59 = vmul.f32 %v8351_v58, %v3046_v57  ;;  %v5797_v19 = vld [vmem:[%s6305_s30 + $0x48] sm:$0xff]  }
 0x1dd   : > { %v8387_v9 = vmul.f32 %v8353_v29, %v3046_v57  ;;  %v8390_v15 = vmul.f32 %v8351_v58, %v3052_v36  ;;  %v8393_v63 = vmul.f32 %v8353_v29, %v3052_v36  ;;  %v8396_v52 = vmul.f32 %v8351_v58, %v3058_v56 }
 0x1de   : > { %v8399_v30 = vmul.f32 %v8353_v29, %v3058_v56  ;;  %v2987_v35 = vadd.f32 %v2985_v39, %v2979_v11  ;;  %v2988_v13 = vadd.f32 %v2986_v61, %v2980_v37  ;;  %v3064_v6 = vrot.slane %v5683_v26, %v6320_v46  ;;  %v5798_v37 = vld [vmem:[%s6301_s29 + $0x50] sm:$0xff]  }
 0x1df   : > { %v3070_v1 = vrot.slane %v5683_v26, %v6322_v47  ;;  %v3076_v5 = vrot.slane %v5684_v34, %v6308_v40  ;;  %v3082_v55 = vrot.slane %v5684_v34, %v6310_v41  ;;  %v3088_v50 = vrot.slane %v5684_v34, %v6312_v42 }
 0x1e0   : > { %v3094_v24 = vrot.slane %v5684_v34, %v6314_v43  ;;  %v2995_v23 = vadd.f32 %v2993_v7, %v2987_v35  ;;  %v2996_v3 = vadd.f32 %v2994_v51, %v2988_v13  ;;  %v8408_v54 = vmul.f32 %v8351_v58, %v3064_v6  ;;  %v5799_v35 = vld [vmem:[%s6305_s30 + $0x50] sm:$0xff]  }
 0x1e1   : > { %v8411_v39 = vmul.f32 %v8353_v29, %v3064_v6  ;;  %v8414_v61 = vmul.f32 %v8351_v58, %v3070_v1  ;;  %v8417_v22 = vmul.f32 %v8353_v29, %v3070_v1  ;;  %v8420_v21 = vmul.f32 %v8351_v58, %v3076_v5 }
 0x1e2   : > { %v8423_v17 = vmul.f32 %v8353_v29, %v3076_v5  ;;  %v3003_v7 = vadd.f32 %v3001_v48, %v2995_v23  ;;  %v3004_v51 = vadd.f32 %v3002_v8, %v2996_v3  ;;  %v8426_v26 = vmul.f32 %v8351_v58, %v3082_v55 }
 0x1e3   : > { %v8429_v18 = vmul.f32 %v8353_v29, %v3082_v55  ;;  %v8433_v0 = vmul.f32 %v8351_v58, %v3088_v50  ;;  %v8436_v2 = vmul.f32 %v8353_v29, %v3088_v50  ;;  %v8439_v16 = vmul.f32 %v8351_v58, %v3094_v24 }
 0x1e4   : > { %v8442_v48 = vmul.f32 %v8353_v29, %v3094_v24  ;;  %v3011_v8 = vadd.f32 %v3009_v12, %v3003_v7  ;;  %v3012_v31 = vadd.f32 %v3010_v28, %v3004_v51  ;;  %v3100_v33 = vrot.slane %v5684_v34, %v6316_v44 }
 0x1e5   : > { %v3106_v4 = vrot.slane %v5684_v34, %v6318_v45  ;;  %v3112_v14 = vrot.slane %v5684_v34, %v6320_v46  ;;  %v3118_v57 = vrot.slane %v5684_v34, %v6322_v47  ;;  %v8448_v36 = vunpack.c.l.bf16 %v5796_v32 }
 0x1e6   : > { %v8450_v56 = vunpack.c.h.bf16 %v5796_v32  ;;  %v3013_v10 = vmul.f32 %v3011_v8, %v7945_v62  ;;  %v3014_v12 = vmul.f32 %v3012_v31, %v10741_v27  ;;  %v8456_v28 = vmul.f32 %v8351_v58, %v3100_v33 }
 0x1e7   : > { %v8459_v11 = vmul.f32 %v8353_v29, %v3100_v33  ;;  %v8464_v13 = vmul.f32 %v8351_v58, %v3106_v4  ;;  %v8467_v34 = vmul.f32 %v8353_v29, %v3106_v4  ;;  %v8470_v6 = vmul.f32 %v8351_v58, %v3112_v14 }
 0x1e8   : > { %v8473_v62 = vmul.f32 %v8353_v29, %v3112_v14  ;;  %3015 = vst [vmem:[%s7963_s15 + $0x70] sm:$0xff] %v3013_v10  ;;  %3016 = vst [vmem:[%s7963_s15 + $0x78] sm:$0xff] %v3014_v12  ;;  %v8478_v27 = vmul.f32 %v8351_v58, %v3118_v57  ;;  %v8481_v1 = vmul.f32 %v8353_v29, %v3118_v57  ;;  %v5691_v5 = vunpack.c.l.bf16 %v5797_v19 }
 0x1e9   : > { %v5692_v55 = vunpack.c.h.bf16 %v5797_v19  ;;  %v8483_v50 = vunpack.c.l.bf16 %v5798_v37  ;;  %v8485_v24 = vunpack.c.h.bf16 %v5798_v37  ;;  %v8487_v23 = vunpack.c.l.bf16 %v5799_v35 }
 0x1ea   : > { %v8489_v3 = vunpack.c.h.bf16 %v5799_v35  ;;  %v3132_v7 = vrot.slane %v5691_v5, %v6308_v40  ;;  %v3140_v51 = vrot.slane %v5691_v5, %v6310_v41  ;;  %v3148_v58 = vrot.slane %v5691_v5, %v6312_v42 }
 0x1eb   : > { %10809 = vst [vmem:[#allocation7_spill] sm:$0xff] %v8485_v24  ;;  %v3156_v32 = vrot.slane %v5691_v5, %v6314_v43  ;;  %v3164_v29 = vrot.slane %v5691_v5, %v6316_v44  ;;  %v3172_v8 = vrot.slane %v5691_v5, %v6318_v45  ;;  %v3180_v31 = vrot.slane %v5691_v5, %v6320_v46 }
 0x1ec   : > { %10810 = vst [vmem:[#allocation12_spill] sm:$0xff] %v8489_v3  ;;  %v3188_v33 = vrot.slane %v5691_v5, %v6322_v47  ;;  %v3133_v4 = vmul.f32 %v8448_v36, %v3132_v7  ;;  %v3134_v14 = vmul.f32 %v8450_v56, %v3132_v7  ;;  %v3141_v57 = vmul.f32 %v8448_v36, %v3140_v51 }
 0x1ed   : > { %v3142_v19 = vmul.f32 %v8450_v56, %v3140_v51  ;;  %v3149_v10 = vmul.f32 %v8448_v36, %v3148_v58  ;;  %v3150_v12 = vmul.f32 %v8450_v56, %v3148_v58  ;;  %v3157_v37 = vmul.f32 %v8448_v36, %v3156_v32 }
 0x1ee   : > { %v3158_v35 = vmul.f32 %v8450_v56, %v3156_v32  ;;  %v8508_v3 = vadd.f32 %v3133_v4, %v8366_v38  ;;  %v8511_v5 = vadd.f32 %v3134_v14, %v8369_v53  ;;  %v8514_v7 = vadd.f32 %v3141_v57, %v8372_v49 }
 0x1ef   : > { %v8517_v24 = vadd.f32 %v3142_v19, %v8375_v60  ;;  %v8520_v51 = vadd.f32 %v3149_v10, %v8378_v20  ;;  %v8523_v58 = vadd.f32 %v3150_v12, %v8381_v25  ;;  %v8526_v32 = vadd.f32 %v3157_v37, %v8384_v59 }
 0x1f0   : > { %v8529_v38 = vadd.f32 %v3158_v35, %v8387_v9  ;;  %v3165_v53 = vmul.f32 %v8448_v36, %v3164_v29  ;;  %v3166_v49 = vmul.f32 %v8450_v56, %v3164_v29  ;;  %v3173_v4 = vmul.f32 %v8448_v36, %v3172_v8 }
 0x1f1   : > { %v3174_v60 = vmul.f32 %v8450_v56, %v3172_v8  ;;  %v3181_v20 = vmul.f32 %v8448_v36, %v3180_v31  ;;  %v3182_v14 = vmul.f32 %v8450_v56, %v3180_v31  ;;  %v3189_v25 = vmul.f32 %v8448_v36, %v3188_v33 }
 0x1f2   : > { %v3190_v59 = vmul.f32 %v8450_v56, %v3188_v33  ;;  %v8540_v57 = vadd.f32 %v3165_v53, %v8390_v15  ;;  %v8543_v9 = vadd.f32 %v3166_v49, %v8393_v63  ;;  %v8546_v29 = vadd.f32 %v3173_v4, %v8396_v52 }
 0x1f3   : > { %v8549_v19 = vadd.f32 %v3174_v60, %v8399_v30  ;;  %v8552_v8 = vadd.f32 %v3181_v20, %v8408_v54  ;;  %v8555_v31 = vadd.f32 %v3182_v14, %v8411_v39  ;;  %v8558_v33 = vadd.f32 %v3189_v25, %v8414_v61 }
 0x1f4   : > { %v8561_v15 = vadd.f32 %v3190_v59, %v8417_v22  ;;  %v3196_v63 = vrot.slane %v5692_v55, %v6308_v40  ;;  %v3204_v52 = vrot.slane %v5692_v55, %v6310_v41  ;;  %v3212_v10 = vrot.slane %v5692_v55, %v6312_v42 }
 0x1f5   : > { %v3220_v30 = vrot.slane %v5692_v55, %v6314_v43  ;;  %v3228_v54 = vrot.slane %v5692_v55, %v6316_v44  ;;  %v3236_v12 = vrot.slane %v5692_v55, %v6318_v45  ;;  %v3244_v39 = vrot.slane %v5692_v55, %v6320_v46 }
 0x1f6   : > { %v3252_v61 = vrot.slane %v5692_v55, %v6322_v47  ;;  %v3197_v37 = vmul.f32 %v8448_v36, %v3196_v63  ;;  %v3198_v22 = vmul.f32 %v8450_v56, %v3196_v63  ;;  %v3205_v35 = vmul.f32 %v8448_v36, %v3204_v52 }
 0x1f7   : > { %v3206_v53 = vmul.f32 %v8450_v56, %v3204_v52  ;;  %v3213_v49 = vmul.f32 %v8448_v36, %v3212_v10  ;;  %v3214_v4 = vmul.f32 %v8450_v56, %v3212_v10  ;;  %v3221_v60 = vmul.f32 %v8448_v36, %v3220_v30 }
 0x1f8   : > { %v3222_v20 = vmul.f32 %v8450_v56, %v3220_v30  ;;  %v8580_v14 = vadd.f32 %v3197_v37, %v8420_v21  ;;  %v8583_v55 = vadd.f32 %v3198_v22, %v8423_v17  ;;  %v8586_v25 = vadd.f32 %v3205_v35, %v8426_v26 }
 0x1f9   : > { %v8589_v59 = vadd.f32 %v3206_v53, %v8429_v18  ;;  %v8592_v63 = vadd.f32 %v3213_v49, %v8433_v0  ;;  %v8595_v52 = vadd.f32 %v3214_v4, %v8436_v2  ;;  %v8598_v10 = vadd.f32 %v3221_v60, %v8439_v16  ;;  %v10811_v53 = vld [vmem:[#allocation7_spill] sm:$0xff] }
 0x1fa   : > { %v8601_v21 = vadd.f32 %v3222_v20, %v8442_v48  ;;  %v3229_v17 = vmul.f32 %v8448_v36, %v3228_v54  ;;  %v3230_v26 = vmul.f32 %v8450_v56, %v3228_v54  ;;  %v3237_v30 = vmul.f32 %v8448_v36, %v3236_v12 }
 0x1fb   : > { %v3238_v18 = vmul.f32 %v8450_v56, %v3236_v12  ;;  %v3245_v0 = vmul.f32 %v8448_v36, %v3244_v39  ;;  %v3246_v37 = vmul.f32 %v8450_v56, %v3244_v39  ;;  %v3253_v2 = vmul.f32 %v8448_v36, %v3252_v61 }
 0x1fc   : > { %v3254_v16 = vmul.f32 %v8450_v56, %v3252_v61  ;;  %v8612_v22 = vadd.f32 %v3229_v17, %v8456_v28  ;;  %v8615_v48 = vadd.f32 %v3230_v26, %v8459_v11  ;;  %v8618_v54 = vadd.f32 %v3237_v30, %v8464_v13 }
 0x1fd   : > { %v8621_v35 = vadd.f32 %v3238_v18, %v8467_v34  ;;  %v8624_v12 = vadd.f32 %v3245_v0, %v8470_v6  ;;  %v8627_v39 = vadd.f32 %v3246_v37, %v8473_v62  ;;  %v8630_v36 = vadd.f32 %v3253_v2, %v8478_v27 }
 0x1fe   : > { %v8633_v56 = vadd.f32 %v3254_v16, %v8481_v1  ;;  %v3268_v28 = vrot.slane %v8487_v23, %v6308_v40  ;;  %v3276_v11 = vrot.slane %v8487_v23, %v6310_v41  ;;  %v3284_v13 = vrot.slane %v8487_v23, %v6312_v42 }
 0x1ff   : > { %v3292_v34 = vrot.slane %v8487_v23, %v6314_v43  ;;  %v3300_v6 = vrot.slane %v8487_v23, %v6316_v44  ;;  %v3308_v62 = vrot.slane %v8487_v23, %v6318_v45  ;;  %v3316_v27 = vrot.slane %v8487_v23, %v6320_v46 }
 0x200   : > { %v3324_v1 = vrot.slane %v8487_v23, %v6322_v47  ;;  %v3269_v61 = vmul.f32 %v8483_v50, %v3268_v28  ;;  %v3270_v49 = vmul.f32 %v10811_v53, %v3268_v28  ;;  %v3277_v4 = vmul.f32 %v8483_v50, %v3276_v11 }
 0x201   : > { %v3278_v60 = vmul.f32 %v10811_v53, %v3276_v11  ;;  %v3285_v20 = vmul.f32 %v8483_v50, %v3284_v13  ;;  %v3286_v17 = vmul.f32 %v10811_v53, %v3284_v13  ;;  %v3293_v26 = vmul.f32 %v8483_v50, %v3292_v34 }
 0x202   : > { %v3294_v30 = vmul.f32 %v10811_v53, %v3292_v34  ;;  %v8660_v18 = vadd.f32 %v3269_v61, %v8508_v3  ;;  %v8663_v23 = vadd.f32 %v3270_v49, %v8511_v5  ;;  %v8666_v0 = vadd.f32 %v3277_v4, %v8514_v7 }
 0x203   : > { %v8669_v37 = vadd.f32 %v3278_v60, %v8517_v24  ;;  %v8672_v2 = vadd.f32 %v3285_v20, %v8520_v51  ;;  %v8675_v16 = vadd.f32 %v3286_v17, %v8523_v58  ;;  %v8678_v28 = vadd.f32 %v3293_v26, %v8526_v32 }
 0x204   : > { %v8681_v3 = vadd.f32 %v3294_v30, %v8529_v38  ;;  %v3301_v5 = vmul.f32 %v8483_v50, %v3300_v6  ;;  %v3302_v7 = vmul.f32 %v10811_v53, %v3300_v6  ;;  %v3309_v11 = vmul.f32 %v8483_v50, %v3308_v62 }
 0x205   : > { %v3310_v24 = vmul.f32 %v10811_v53, %v3308_v62  ;;  %v3317_v51 = vmul.f32 %v8483_v50, %v3316_v27  ;;  %v3318_v13 = vmul.f32 %v10811_v53, %v3316_v27  ;;  %v3325_v58 = vmul.f32 %v8483_v50, %v3324_v1 }
 0x206   : > { %v3326_v32 = vmul.f32 %v10811_v53, %v3324_v1  ;;  %v8692_v34 = vadd.f32 %v3301_v5, %v8540_v57  ;;  %v8695_v38 = vadd.f32 %v3302_v7, %v8543_v9  ;;  %v8698_v6 = vadd.f32 %v3309_v11, %v8546_v29  ;;  %v10812_v9 = vld [vmem:[#allocation12_spill] sm:$0xff] }
 0x207   : > { %v8701_v61 = vadd.f32 %v3310_v24, %v8549_v19  ;;  %v8704_v62 = vadd.f32 %v3317_v51, %v8552_v8  ;;  %v8707_v27 = vadd.f32 %v3318_v13, %v8555_v31  ;;  %v8710_v1 = vadd.f32 %v3325_v58, %v8558_v33 }
 0x208   : > { %v8713_v57 = vadd.f32 %v3326_v32, %v8561_v15  ;;  %v3332_v49 = vrot.slane %v10812_v9, %v6308_v40  ;;  %v3340_v29 = vrot.slane %v10812_v9, %v6310_v41  ;;  %v3348_v19 = vrot.slane %v10812_v9, %v6312_v42 }
 0x209   : > { %v3356_v8 = vrot.slane %v10812_v9, %v6314_v43  ;;  %v3364_v31 = vrot.slane %v10812_v9, %v6316_v44  ;;  %v3372_v33 = vrot.slane %v10812_v9, %v6318_v45  ;;  %v3380_v15 = vrot.slane %v10812_v9, %v6320_v46 }
 0x20a   : > { %v3388_v4 = vrot.slane %v10812_v9, %v6322_v47  ;;  %v3333_v60 = vmul.f32 %v8483_v50, %v3332_v49  ;;  %v3334_v20 = vmul.f32 %v10811_v53, %v3332_v49  ;;  %v3341_v17 = vmul.f32 %v8483_v50, %v3340_v29 }
 0x20b   : > { %v3342_v26 = vmul.f32 %v10811_v53, %v3340_v29  ;;  %v3349_v30 = vmul.f32 %v8483_v50, %v3348_v19  ;;  %v3350_v5 = vmul.f32 %v10811_v53, %v3348_v19  ;;  %v3357_v7 = vmul.f32 %v8483_v50, %v3356_v8 }
 0x20c   : > { %v3358_v11 = vmul.f32 %v10811_v53, %v3356_v8  ;;  %v8740_v24 = vadd.f32 %v3333_v60, %v8580_v14  ;;  %v8743_v51 = vadd.f32 %v3334_v20, %v8583_v55  ;;  %v8746_v13 = vadd.f32 %v3341_v17, %v8586_v25  ;;  %v5800_v8 = vld [vmem:[%s6301_s29 + $0x58] sm:$0xff]   ;;  %v5802_v17 = vld [vmem:[%s6301_s29 + $0x60] sm:$0xff]  }
 0x20d   : > { %v8749_v58 = vadd.f32 %v3342_v26, %v8589_v59  ;;  %v8752_v32 = vadd.f32 %v3349_v30, %v8592_v63  ;;  %v8755_v9 = vadd.f32 %v3350_v5, %v8595_v52  ;;  %v8758_v14 = vadd.f32 %v3357_v7, %v8598_v10 }
 0x20e   : > { %v8761_v55 = vadd.f32 %v3358_v11, %v8601_v21  ;;  %v3365_v25 = vmul.f32 %v8483_v50, %v3364_v31  ;;  %v3366_v49 = vmul.f32 %v10811_v53, %v3364_v31  ;;  %v3373_v59 = vmul.f32 %v8483_v50, %v3372_v33  ;;  %v5801_v21 = vld [vmem:[%s6305_s30 + $0x58] sm:$0xff]  }
 0x20f   : > { %v3374_v63 = vmul.f32 %v10811_v53, %v3372_v33  ;;  %v3381_v29 = vmul.f32 %v8483_v50, %v3380_v15  ;;  %v3382_v52 = vmul.f32 %v10811_v53, %v3380_v15  ;;  %v3389_v10 = vmul.f32 %v8483_v50, %v3388_v4  ;;  %v5803_v15 = vld [vmem:[%s6305_s30 + $0x60] sm:$0xff]  }
 0x210   : > { %v3390_v19 = vmul.f32 %v10811_v53, %v3388_v4  ;;  %v8774_v60 = vadd.f32 %v3365_v25, %v8612_v22  ;;  %v8777_v20 = vadd.f32 %v3366_v49, %v8615_v48  ;;  %v8780_v31 = vadd.f32 %v3373_v59, %v8618_v54 }
 0x211   : > { %v8783_v33 = vadd.f32 %v3374_v63, %v8621_v35  ;;  %v8788_v50 = vadd.f32 %v3381_v29, %v8624_v12  ;;  %v8791_v53 = vadd.f32 %v3382_v52, %v8627_v39  ;;  %v8794_v22 = vadd.f32 %v3389_v10, %v8630_v36 }
 0x212   : > { %v8797_v48 = vadd.f32 %v3390_v19, %v8633_v56  ;;  %v8799_v4 = vunpack.c.l.bf16 %v5800_v8  ;;  %v8801_v54 = vunpack.c.h.bf16 %v5800_v8  ;;  %v5707_v35 = vunpack.c.l.bf16 %v5801_v21 }
 0x213   : > { %v5708_v26 = vunpack.c.h.bf16 %v5801_v21  ;;  %v8803_v30 = vunpack.c.l.bf16 %v5802_v17  ;;  %v8805_v5 = vunpack.c.h.bf16 %v5802_v17  ;;  %v8807_v12 = vunpack.c.l.bf16 %v5803_v15 }
 0x214   : > { %v8809_v39 = vunpack.c.h.bf16 %v5803_v15  ;;  %v3404_v36 = vrot.slane %v5707_v35, %v6308_v40  ;;  %v3412_v7 = vrot.slane %v5707_v35, %v6310_v41  ;;  %v3420_v56 = vrot.slane %v5707_v35, %v6312_v42 }
 0x215   : > { %10813 = vst [vmem:[#allocation25_spill] sm:$0xff] %v8805_v5  ;;  %v3428_v11 = vrot.slane %v5707_v35, %v6314_v43  ;;  %v3436_v25 = vrot.slane %v5707_v35, %v6316_v44  ;;  %v3444_v49 = vrot.slane %v5707_v35, %v6318_v45  ;;  %v3452_v59 = vrot.slane %v5707_v35, %v6320_v46 }
 0x216   : > { %10814 = vst [vmem:[#allocation11_spill] sm:$0xff] %v8809_v39  ;;  %v3460_v63 = vrot.slane %v5707_v35, %v6322_v47  ;;  %v3405_v29 = vmul.f32 %v8799_v4, %v3404_v36  ;;  %v3406_v52 = vmul.f32 %v8801_v54, %v3404_v36  ;;  %v3413_v10 = vmul.f32 %v8799_v4, %v3412_v7 }
 0x217   : > { %v3414_v19 = vmul.f32 %v8801_v54, %v3412_v7  ;;  %v3421_v8 = vmul.f32 %v8799_v4, %v3420_v56  ;;  %v3422_v21 = vmul.f32 %v8801_v54, %v3420_v56  ;;  %v3429_v17 = vmul.f32 %v8799_v4, %v3428_v11 }
 0x218   : > { %v3430_v15 = vmul.f32 %v8801_v54, %v3428_v11  ;;  %v8828_v39 = vadd.f32 %v3405_v29, %v8660_v18  ;;  %v8831_v35 = vadd.f32 %v3406_v52, %v8663_v23  ;;  %v8834_v36 = vadd.f32 %v3413_v10, %v8666_v0 }
 0x219   : > { %v8837_v5 = vadd.f32 %v3414_v19, %v8669_v37  ;;  %v8840_v7 = vadd.f32 %v3421_v8, %v8672_v2  ;;  %v8843_v56 = vadd.f32 %v3422_v21, %v8675_v16  ;;  %v8846_v11 = vadd.f32 %v3429_v17, %v8678_v28 }
 0x21a   : > { %v8849_v18 = vadd.f32 %v3430_v15, %v8681_v3  ;;  %v3437_v23 = vmul.f32 %v8799_v4, %v3436_v25  ;;  %v3438_v0 = vmul.f32 %v8801_v54, %v3436_v25  ;;  %v3445_v29 = vmul.f32 %v8799_v4, %v3444_v49 }
 0x21b   : > { %v3446_v37 = vmul.f32 %v8801_v54, %v3444_v49  ;;  %v3453_v2 = vmul.f32 %v8799_v4, %v3452_v59  ;;  %v3454_v52 = vmul.f32 %v8801_v54, %v3452_v59  ;;  %v3461_v16 = vmul.f32 %v8799_v4, %v3460_v63 }
 0x21c   : > { %v3462_v28 = vmul.f32 %v8801_v54, %v3460_v63  ;;  %v8860_v10 = vadd.f32 %v3437_v23, %v8692_v34  ;;  %v8863_v3 = vadd.f32 %v3438_v0, %v8695_v38  ;;  %v8866_v25 = vadd.f32 %v3445_v29, %v8698_v6 }
 0x21d   : > { %v8869_v19 = vadd.f32 %v3446_v37, %v8701_v61  ;;  %v8872_v49 = vadd.f32 %v3453_v2, %v8704_v62  ;;  %v8875_v59 = vadd.f32 %v3454_v52, %v8707_v27  ;;  %v8878_v63 = vadd.f32 %v3461_v16, %v8710_v1 }
 0x21e   : > { %v8881_v34 = vadd.f32 %v3462_v28, %v8713_v57  ;;  %v3468_v38 = vrot.slane %v5708_v26, %v6308_v40  ;;  %v3476_v6 = vrot.slane %v5708_v26, %v6310_v41  ;;  %v3484_v8 = vrot.slane %v5708_v26, %v6312_v42 }
 0x21f   : > { %v3492_v61 = vrot.slane %v5708_v26, %v6314_v43  ;;  %v3500_v62 = vrot.slane %v5708_v26, %v6316_v44  ;;  %v3508_v21 = vrot.slane %v5708_v26, %v6318_v45  ;;  %v3516_v27 = vrot.slane %v5708_v26, %v6320_v46 }
 0x220   : > { %v3524_v1 = vrot.slane %v5708_v26, %v6322_v47  ;;  %v3469_v17 = vmul.f32 %v8799_v4, %v3468_v38  ;;  %v3470_v57 = vmul.f32 %v8801_v54, %v3468_v38  ;;  %v3477_v15 = vmul.f32 %v8799_v4, %v3476_v6 }
 0x221   : > { %v3478_v23 = vmul.f32 %v8801_v54, %v3476_v6  ;;  %v3485_v0 = vmul.f32 %v8799_v4, %v3484_v8  ;;  %v3486_v29 = vmul.f32 %v8801_v54, %v3484_v8  ;;  %v3493_v37 = vmul.f32 %v8799_v4, %v3492_v61 }
 0x222   : > { %v3494_v2 = vmul.f32 %v8801_v54, %v3492_v61  ;;  %v8900_v52 = vadd.f32 %v3469_v17, %v8740_v24  ;;  %v8903_v26 = vadd.f32 %v3470_v57, %v8743_v51  ;;  %v8906_v16 = vadd.f32 %v3477_v15, %v8746_v13 }
 0x223   : > { %v8909_v28 = vadd.f32 %v3478_v23, %v8749_v58  ;;  %v8912_v38 = vadd.f32 %v3485_v0, %v8752_v32  ;;  %v8915_v6 = vadd.f32 %v3486_v29, %v8755_v9  ;;  %v8918_v8 = vadd.f32 %v3493_v37, %v8758_v14  ;;  %v10815_v23 = vld [vmem:[#allocation25_spill] sm:$0xff] }
 0x224   : > { %v8921_v24 = vadd.f32 %v3494_v2, %v8761_v55  ;;  %v3501_v51 = vmul.f32 %v8799_v4, %v3500_v62  ;;  %v3502_v13 = vmul.f32 %v8801_v54, %v3500_v62  ;;  %v3509_v61 = vmul.f32 %v8799_v4, %v3508_v21 }
 0x225   : > { %v3510_v58 = vmul.f32 %v8801_v54, %v3508_v21  ;;  %v3517_v32 = vmul.f32 %v8799_v4, %v3516_v27  ;;  %v3518_v17 = vmul.f32 %v8801_v54, %v3516_v27  ;;  %v3525_v9 = vmul.f32 %v8799_v4, %v3524_v1 }
 0x226   : > { %v3526_v14 = vmul.f32 %v8801_v54, %v3524_v1  ;;  %v8932_v57 = vadd.f32 %v3501_v51, %v8774_v60  ;;  %v8935_v55 = vadd.f32 %v3502_v13, %v8777_v20  ;;  %v8938_v62 = vadd.f32 %v3509_v61, %v8780_v31 }
 0x227   : > { %v8941_v15 = vadd.f32 %v3510_v58, %v8783_v33  ;;  %v8944_v21 = vadd.f32 %v3517_v32, %v8788_v50  ;;  %v8947_v27 = vadd.f32 %v3518_v17, %v8791_v53  ;;  %v8950_v4 = vadd.f32 %v3525_v9, %v8794_v22 }
 0x228   : > { %v8953_v60 = vadd.f32 %v3526_v14, %v8797_v48  ;;  %v3540_v20 = vrot.slane %v8807_v12, %v6308_v40  ;;  %v3548_v31 = vrot.slane %v8807_v12, %v6310_v41  ;;  %v3556_v33 = vrot.slane %v8807_v12, %v6312_v42 }
 0x229   : > { %v3564_v50 = vrot.slane %v8807_v12, %v6314_v43  ;;  %v3572_v53 = vrot.slane %v8807_v12, %v6316_v44  ;;  %v3580_v22 = vrot.slane %v8807_v12, %v6318_v45  ;;  %v3588_v48 = vrot.slane %v8807_v12, %v6320_v46 }
 0x22a   : > { %v3596_v54 = vrot.slane %v8807_v12, %v6322_v47  ;;  %v3541_v1 = vmul.f32 %v8803_v30, %v3540_v20  ;;  %v3542_v0 = vmul.f32 %v10815_v23, %v3540_v20  ;;  %v3549_v29 = vmul.f32 %v8803_v30, %v3548_v31 }
 0x22b   : > { %v3550_v37 = vmul.f32 %v10815_v23, %v3548_v31  ;;  %v3557_v2 = vmul.f32 %v8803_v30, %v3556_v33  ;;  %v3558_v51 = vmul.f32 %v10815_v23, %v3556_v33  ;;  %v3565_v13 = vmul.f32 %v8803_v30, %v3564_v50 }
 0x22c   : > { %v3566_v61 = vmul.f32 %v10815_v23, %v3564_v50  ;;  %v8980_v58 = vadd.f32 %v3541_v1, %v8828_v39  ;;  %v8983_v12 = vadd.f32 %v3542_v0, %v8831_v35  ;;  %v8986_v32 = vadd.f32 %v3549_v29, %v8834_v36 }
 0x22d   : > { %v8989_v17 = vadd.f32 %v3550_v37, %v8837_v5  ;;  %v8992_v9 = vadd.f32 %v3557_v2, %v8840_v7  ;;  %v8995_v14 = vadd.f32 %v3558_v51, %v8843_v56  ;;  %v8998_v20 = vadd.f32 %v3565_v13, %v8846_v11 }
 0x22e   : > { %v9001_v39 = vadd.f32 %v3566_v61, %v8849_v18  ;;  %v3573_v35 = vmul.f32 %v8803_v30, %v3572_v53  ;;  %v3574_v36 = vmul.f32 %v10815_v23, %v3572_v53  ;;  %v3581_v31 = vmul.f32 %v8803_v30, %v3580_v22 }
 0x22f   : > { %v3582_v5 = vmul.f32 %v10815_v23, %v3580_v22  ;;  %v3589_v7 = vmul.f32 %v8803_v30, %v3588_v48  ;;  %v3590_v33 = vmul.f32 %v10815_v23, %v3588_v48  ;;  %v3597_v56 = vmul.f32 %v8803_v30, %v3596_v54 }
 0x230   : > { %v3598_v11 = vmul.f32 %v10815_v23, %v3596_v54  ;;  %v9012_v50 = vadd.f32 %v3573_v35, %v8860_v10  ;;  %v9015_v18 = vadd.f32 %v3574_v36, %v8863_v3  ;;  %v9018_v53 = vadd.f32 %v3581_v31, %v8866_v25  ;;  %v10816_v3 = vld [vmem:[#allocation11_spill] sm:$0xff] }
 0x231   : > { %v9021_v1 = vadd.f32 %v3582_v5, %v8869_v19  ;;  %v9024_v22 = vadd.f32 %v3589_v7, %v8872_v49  ;;  %v9027_v48 = vadd.f32 %v3590_v33, %v8875_v59  ;;  %v9030_v54 = vadd.f32 %v3597_v56, %v8878_v63 }
 0x232   : > { %v9033_v10 = vadd.f32 %v3598_v11, %v8881_v34  ;;  %v3604_v0 = vrot.slane %v10816_v3, %v6308_v40  ;;  %v3612_v25 = vrot.slane %v10816_v3, %v6310_v41  ;;  %v3620_v19 = vrot.slane %v10816_v3, %v6312_v42 }
 0x233   : > { %v3628_v49 = vrot.slane %v10816_v3, %v6314_v43  ;;  %v3636_v59 = vrot.slane %v10816_v3, %v6316_v44  ;;  %v3644_v63 = vrot.slane %v10816_v3, %v6318_v45  ;;  %v3652_v34 = vrot.slane %v10816_v3, %v6320_v46 }
 0x234   : > { %v3660_v29 = vrot.slane %v10816_v3, %v6322_v47  ;;  %v3605_v37 = vmul.f32 %v8803_v30, %v3604_v0  ;;  %v3606_v2 = vmul.f32 %v10815_v23, %v3604_v0  ;;  %v3613_v51 = vmul.f32 %v8803_v30, %v3612_v25 }
 0x235   : > { %v3614_v13 = vmul.f32 %v10815_v23, %v3612_v25  ;;  %v3621_v61 = vmul.f32 %v8803_v30, %v3620_v19  ;;  %v3622_v35 = vmul.f32 %v10815_v23, %v3620_v19  ;;  %v3629_v36 = vmul.f32 %v8803_v30, %v3628_v49 }
 0x236   : > { %v3630_v31 = vmul.f32 %v10815_v23, %v3628_v49  ;;  %v9060_v5 = vadd.f32 %v3605_v37, %v8900_v52  ;;  %v9063_v7 = vadd.f32 %v3606_v2, %v8903_v26  ;;  %v9066_v33 = vadd.f32 %v3613_v51, %v8906_v16  ;;  %v5804_v49 = vld [vmem:[%s6301_s29 + $0x68] sm:$0xff]   ;;  %v5806_v51 = vld [vmem:[%s6301_s29 + $0x70] sm:$0xff]  }
 0x237   : > { %v9069_v56 = vadd.f32 %v3614_v13, %v8909_v28  ;;  %v9072_v11 = vadd.f32 %v3621_v61, %v8912_v38  ;;  %v9075_v3 = vadd.f32 %v3622_v35, %v8915_v6  ;;  %v9078_v52 = vadd.f32 %v3629_v36, %v8918_v8 }
 0x238   : > { %v9081_v26 = vadd.f32 %v3630_v31, %v8921_v24  ;;  %v3637_v16 = vmul.f32 %v8803_v30, %v3636_v59  ;;  %v3638_v0 = vmul.f32 %v10815_v23, %v3636_v59  ;;  %v3645_v28 = vmul.f32 %v8803_v30, %v3644_v63  ;;  %v5805_v24 = vld [vmem:[%s6305_s30 + $0x68] sm:$0xff]  }
 0x239   : > { %v3646_v38 = vmul.f32 %v10815_v23, %v3644_v63  ;;  %v3653_v25 = vmul.f32 %v8803_v30, %v3652_v34  ;;  %v3654_v6 = vmul.f32 %v10815_v23, %v3652_v34  ;;  %v3661_v8 = vmul.f32 %v8803_v30, %v3660_v29  ;;  %v5807_v34 = vld [vmem:[%s6305_s30 + $0x70] sm:$0xff]  }
 0x23a   : > { %v3662_v19 = vmul.f32 %v10815_v23, %v3660_v29  ;;  %v9094_v37 = vadd.f32 %v3637_v16, %v8932_v57  ;;  %v9097_v2 = vadd.f32 %v3638_v0, %v8935_v55  ;;  %v9100_v59 = vadd.f32 %v3645_v28, %v8938_v62 }
 0x23b   : > { %v9103_v63 = vadd.f32 %v3646_v38, %v8941_v15  ;;  %v9108_v30 = vadd.f32 %v3653_v25, %v8944_v21  ;;  %v9111_v23 = vadd.f32 %v3654_v6, %v8947_v27  ;;  %v9114_v57 = vadd.f32 %v3661_v8, %v8950_v4 }
 0x23c   : > { %v9117_v55 = vadd.f32 %v3662_v19, %v8953_v60  ;;  %v9119_v29 = vunpack.c.l.bf16 %v5804_v49  ;;  %v9121_v62 = vunpack.c.h.bf16 %v5804_v49  ;;  %v5723_v15 = vunpack.c.l.bf16 %v5805_v24 }
 0x23d   : > { %v5724_v13 = vunpack.c.h.bf16 %v5805_v24  ;;  %v9123_v61 = vunpack.c.l.bf16 %v5806_v51  ;;  %v9125_v35 = vunpack.c.h.bf16 %v5806_v51  ;;  %v9127_v21 = vunpack.c.l.bf16 %v5807_v34 }
 0x23e   : > { %v9129_v27 = vunpack.c.h.bf16 %v5807_v34  ;;  %v3676_v4 = vrot.slane %v5723_v15, %v6308_v40  ;;  %v3684_v36 = vrot.slane %v5723_v15, %v6310_v41  ;;  %v3692_v60 = vrot.slane %v5723_v15, %v6312_v42 }
 0x23f   : > { %10817 = vst [vmem:[#allocation13_spill] sm:$0xff] %v9125_v35  ;;  %v3700_v31 = vrot.slane %v5723_v15, %v6314_v43  ;;  %v3708_v16 = vrot.slane %v5723_v15, %v6316_v44  ;;  %v3716_v0 = vrot.slane %v5723_v15, %v6318_v45  ;;  %v3724_v28 = vrot.slane %v5723_v15, %v6320_v46 }
 0x240   : > { %10818 = vst [vmem:[#allocation8_spill] sm:$0xff] %v9129_v27  ;;  %v3732_v38 = vrot.slane %v5723_v15, %v6322_v47  ;;  %v3677_v25 = vmul.f32 %v9119_v29, %v3676_v4  ;;  %v3678_v6 = vmul.f32 %v9121_v62, %v3676_v4  ;;  %v3685_v8 = vmul.f32 %v9119_v29, %v3684_v36 }
 0x241   : > { %v3686_v19 = vmul.f32 %v9121_v62, %v3684_v36  ;;  %v3693_v49 = vmul.f32 %v9119_v29, %v3692_v60  ;;  %v3694_v24 = vmul.f32 %v9121_v62, %v3692_v60  ;;  %v3701_v51 = vmul.f32 %v9119_v29, %v3700_v31 }
 0x242   : > { %v3702_v34 = vmul.f32 %v9121_v62, %v3700_v31  ;;  %v9148_v27 = vadd.f32 %v3677_v25, %v8980_v58  ;;  %v9151_v15 = vadd.f32 %v3678_v6, %v8983_v12  ;;  %v9154_v4 = vadd.f32 %v3685_v8, %v8986_v32 }
 0x243   : > { %v9157_v35 = vadd.f32 %v3686_v19, %v8989_v17  ;;  %v9160_v36 = vadd.f32 %v3693_v49, %v8992_v9  ;;  %v9163_v60 = vadd.f32 %v3694_v24, %v8995_v14  ;;  %v9166_v31 = vadd.f32 %v3701_v51, %v8998_v20 }
 0x244   : > { %v9169_v58 = vadd.f32 %v3702_v34, %v9001_v39  ;;  %v3709_v12 = vmul.f32 %v9119_v29, %v3708_v16  ;;  %v3710_v32 = vmul.f32 %v9121_v62, %v3708_v16  ;;  %v3717_v25 = vmul.f32 %v9119_v29, %v3716_v0 }
 0x245   : > { %v3718_v17 = vmul.f32 %v9121_v62, %v3716_v0  ;;  %v3725_v9 = vmul.f32 %v9119_v29, %v3724_v28  ;;  %v3726_v6 = vmul.f32 %v9121_v62, %v3724_v28  ;;  %v3733_v14 = vmul.f32 %v9119_v29, %v3732_v38 }
 0x246   : > { %v3734_v20 = vmul.f32 %v9121_v62, %v3732_v38  ;;  %v9180_v8 = vadd.f32 %v3709_v12, %v9012_v50  ;;  %v9183_v39 = vadd.f32 %v3710_v32, %v9015_v18  ;;  %v9186_v16 = vadd.f32 %v3717_v25, %v9018_v53 }
 0x247   : > { %v9189_v19 = vadd.f32 %v3718_v17, %v9021_v1  ;;  %v9192_v0 = vadd.f32 %v3725_v9, %v9024_v22  ;;  %v9195_v28 = vadd.f32 %v3726_v6, %v9027_v48  ;;  %v9198_v38 = vadd.f32 %v3733_v14, %v9030_v54 }
 0x248   : > { %v9201_v50 = vadd.f32 %v3734_v20, %v9033_v10  ;;  %v3740_v18 = vrot.slane %v5724_v13, %v6308_v40  ;;  %v3748_v53 = vrot.slane %v5724_v13, %v6310_v41  ;;  %v3756_v49 = vrot.slane %v5724_v13, %v6312_v42 }
 0x249   : > { %v3764_v1 = vrot.slane %v5724_v13, %v6314_v43  ;;  %v3772_v22 = vrot.slane %v5724_v13, %v6316_v44  ;;  %v3780_v24 = vrot.slane %v5724_v13, %v6318_v45  ;;  %v3788_v48 = vrot.slane %v5724_v13, %v6320_v46 }
 0x24a   : > { %v3796_v54 = vrot.slane %v5724_v13, %v6322_v47  ;;  %v3741_v51 = vmul.f32 %v9119_v29, %v3740_v18  ;;  %v3742_v10 = vmul.f32 %v9121_v62, %v3740_v18  ;;  %v3749_v34 = vmul.f32 %v9119_v29, %v3748_v53 }
 0x24b   : > { %v3750_v12 = vmul.f32 %v9121_v62, %v3748_v53  ;;  %v3757_v32 = vmul.f32 %v9119_v29, %v3756_v49  ;;  %v3758_v25 = vmul.f32 %v9121_v62, %v3756_v49  ;;  %v3765_v17 = vmul.f32 %v9119_v29, %v3764_v1 }
 0x24c   : > { %v3766_v9 = vmul.f32 %v9121_v62, %v3764_v1  ;;  %v9220_v6 = vadd.f32 %v3741_v51, %v9060_v5  ;;  %v9223_v13 = vadd.f32 %v3742_v10, %v9063_v7  ;;  %v9226_v14 = vadd.f32 %v3749_v34, %v9066_v33 }
 0x24d   : > { %v9229_v20 = vadd.f32 %v3750_v12, %v9069_v56  ;;  %v9232_v18 = vadd.f32 %v3757_v32, %v9072_v11  ;;  %v9235_v53 = vadd.f32 %v3758_v25, %v9075_v3  ;;  %v9238_v49 = vadd.f32 %v3765_v17, %v9078_v52  ;;  %v10819_v12 = vld [vmem:[#allocation13_spill] sm:$0xff] }
 0x24e   : > { %v9241_v5 = vadd.f32 %v3766_v9, %v9081_v26  ;;  %v3773_v7 = vmul.f32 %v9119_v29, %v3772_v22  ;;  %v3774_v33 = vmul.f32 %v9121_v62, %v3772_v22  ;;  %v3781_v1 = vmul.f32 %v9119_v29, %v3780_v24 }
 0x24f   : > { %v3782_v56 = vmul.f32 %v9121_v62, %v3780_v24  ;;  %v3789_v11 = vmul.f32 %v9119_v29, %v3788_v48  ;;  %v3790_v51 = vmul.f32 %v9121_v62, %v3788_v48  ;;  %v3797_v3 = vmul.f32 %v9119_v29, %v3796_v54 }
 0x250   : > { %v3798_v52 = vmul.f32 %v9121_v62, %v3796_v54  ;;  %v9252_v10 = vadd.f32 %v3773_v7, %v9094_v37  ;;  %v9255_v26 = vadd.f32 %v3774_v33, %v9097_v2  ;;  %v9258_v22 = vadd.f32 %v3781_v1, %v9100_v59 }
 0x251   : > { %v9261_v34 = vadd.f32 %v3782_v56, %v9103_v63  ;;  %v9264_v24 = vadd.f32 %v3789_v11, %v9108_v30  ;;  %v9267_v48 = vadd.f32 %v3790_v51, %v9111_v23  ;;  %v9270_v29 = vadd.f32 %v3797_v3, %v9114_v57 }
 0x252   : > { %v9273_v37 = vadd.f32 %v3798_v52, %v9117_v55  ;;  %v3812_v2 = vrot.slane %v9127_v21, %v6308_v40  ;;  %v3820_v59 = vrot.slane %v9127_v21, %v6310_v41  ;;  %v3828_v63 = vrot.slane %v9127_v21, %v6312_v42 }
 0x253   : > { %v3836_v30 = vrot.slane %v9127_v21, %v6314_v43  ;;  %v3844_v23 = vrot.slane %v9127_v21, %v6316_v44  ;;  %v3852_v57 = vrot.slane %v9127_v21, %v6318_v45  ;;  %v3860_v55 = vrot.slane %v9127_v21, %v6320_v46 }
 0x254   : > { %v3868_v62 = vrot.slane %v9127_v21, %v6322_v47  ;;  %v3813_v54 = vmul.f32 %v9123_v61, %v3812_v2  ;;  %v3814_v32 = vmul.f32 %v10819_v12, %v3812_v2  ;;  %v3821_v25 = vmul.f32 %v9123_v61, %v3820_v59 }
 0x255   : > { %v3822_v17 = vmul.f32 %v10819_v12, %v3820_v59  ;;  %v3829_v9 = vmul.f32 %v9123_v61, %v3828_v63  ;;  %v3830_v7 = vmul.f32 %v10819_v12, %v3828_v63  ;;  %v3837_v33 = vmul.f32 %v9123_v61, %v3836_v30 }
 0x256   : > { %v3838_v1 = vmul.f32 %v10819_v12, %v3836_v30  ;;  %v9300_v56 = vadd.f32 %v3813_v54, %v9148_v27  ;;  %v9303_v21 = vadd.f32 %v3814_v32, %v9151_v15  ;;  %v9306_v11 = vadd.f32 %v3821_v25, %v9154_v4 }
 0x257   : > { %v9309_v51 = vadd.f32 %v3822_v17, %v9157_v35  ;;  %v9312_v3 = vadd.f32 %v3829_v9, %v9160_v36  ;;  %v9315_v52 = vadd.f32 %v3830_v7, %v9163_v60  ;;  %v9318_v2 = vadd.f32 %v3837_v33, %v9166_v31 }
 0x258   : > { %v9321_v27 = vadd.f32 %v3838_v1, %v9169_v58  ;;  %v3845_v15 = vmul.f32 %v9123_v61, %v3844_v23  ;;  %v3846_v4 = vmul.f32 %v10819_v12, %v3844_v23  ;;  %v3853_v59 = vmul.f32 %v9123_v61, %v3852_v57 }
 0x259   : > { %v3854_v35 = vmul.f32 %v10819_v12, %v3852_v57  ;;  %v3861_v36 = vmul.f32 %v9123_v61, %v3860_v55  ;;  %v3862_v63 = vmul.f32 %v10819_v12, %v3860_v55  ;;  %v3869_v60 = vmul.f32 %v9123_v61, %v3868_v62 }
 0x25a   : > { %v3870_v31 = vmul.f32 %v10819_v12, %v3868_v62  ;;  %v9332_v30 = vadd.f32 %v3845_v15, %v9180_v8  ;;  %v9335_v58 = vadd.f32 %v3846_v4, %v9183_v39  ;;  %v9338_v23 = vadd.f32 %v3853_v59, %v9186_v16  ;;  %v10820_v39 = vld [vmem:[#allocation8_spill] sm:$0xff] }
 0x25b   : > { %v9341_v54 = vadd.f32 %v3854_v35, %v9189_v19  ;;  %v9344_v57 = vadd.f32 %v3861_v36, %v9192_v0  ;;  %v9347_v55 = vadd.f32 %v3862_v63, %v9195_v28  ;;  %v9350_v62 = vadd.f32 %v3869_v60, %v9198_v38 }
 0x25c   : > { %v9353_v8 = vadd.f32 %v3870_v31, %v9201_v50  ;;  %v3876_v32 = vrot.slane %v10820_v39, %v6308_v40  ;;  %v3884_v16 = vrot.slane %v10820_v39, %v6310_v41  ;;  %v3892_v19 = vrot.slane %v10820_v39, %v6312_v42 }
 0x25d   : > { %v3900_v0 = vrot.slane %v10820_v39, %v6314_v43  ;;  %v3908_v28 = vrot.slane %v10820_v39, %v6316_v44  ;;  %v3916_v38 = vrot.slane %v10820_v39, %v6318_v45  ;;  %v3924_v50 = vrot.slane %v10820_v39, %v6320_v46 }
 0x25e   : > { %v3932_v25 = vrot.slane %v10820_v39, %v6322_v47  ;;  %v3877_v17 = vmul.f32 %v9123_v61, %v3876_v32  ;;  %v3878_v9 = vmul.f32 %v10819_v12, %v3876_v32  ;;  %v3885_v7 = vmul.f32 %v9123_v61, %v3884_v16 }
 0x25f   : > { %v3886_v33 = vmul.f32 %v10819_v12, %v3884_v16  ;;  %v3893_v1 = vmul.f32 %v9123_v61, %v3892_v19  ;;  %v3894_v15 = vmul.f32 %v10819_v12, %v3892_v19  ;;  %v3901_v4 = vmul.f32 %v9123_v61, %v3900_v0 }
 0x260   : > { %v3902_v59 = vmul.f32 %v10819_v12, %v3900_v0  ;;  %v9380_v35 = vadd.f32 %v3877_v17, %v9220_v6  ;;  %v9383_v36 = vadd.f32 %v3878_v9, %v9223_v13  ;;  %v9386_v63 = vadd.f32 %v3885_v7, %v9226_v14  ;;  %v5808_v0 = vld [vmem:[%s6301_s29 + $0x78] sm:$0xff]   ;;  %v5810_v7 = vld [vmem:[%s7355_s5 + $0x40] sm:$0xff]  }
 0x261   : > { %v9389_v60 = vadd.f32 %v3886_v33, %v9229_v20  ;;  %v9392_v31 = vadd.f32 %v3893_v1, %v9232_v18  ;;  %v9395_v39 = vadd.f32 %v3894_v15, %v9235_v53  ;;  %v9398_v6 = vadd.f32 %v3901_v4, %v9238_v49 }
 0x262   : > { %v9401_v13 = vadd.f32 %v3902_v59, %v9241_v5  ;;  %v3909_v14 = vmul.f32 %v9123_v61, %v3908_v28  ;;  %v3910_v32 = vmul.f32 %v10819_v12, %v3908_v28  ;;  %v3917_v20 = vmul.f32 %v9123_v61, %v3916_v38  ;;  %v5809_v5 = vld [vmem:[%s6305_s30 + $0x78] sm:$0xff]  }
 0x263   : > { %v3918_v18 = vmul.f32 %v10819_v12, %v3916_v38  ;;  %v3925_v16 = vmul.f32 %v9123_v61, %v3924_v50  ;;  %v3926_v53 = vmul.f32 %v10819_v12, %v3924_v50  ;;  %v3933_v49 = vmul.f32 %v9123_v61, %v3932_v25  ;;  %v5811_v50 = vld [vmem:[%s7355_s5 + $0x48] sm:$0xff]  }
 0x264   : > { %v3934_v19 = vmul.f32 %v10819_v12, %v3932_v25  ;;  %v9414_v17 = vadd.f32 %v3909_v14, %v9252_v10  ;;  %v9417_v9 = vadd.f32 %v3910_v32, %v9255_v26  ;;  %v9420_v28 = vadd.f32 %v3917_v20, %v9258_v22 }
 0x265   : > { %v9423_v38 = vadd.f32 %v3918_v18, %v9261_v34  ;;  %v9428_v61 = vadd.f32 %v3925_v16, %v9264_v24  ;;  %v9431_v12 = vadd.f32 %v3926_v53, %v9267_v48  ;;  %v9434_v10 = vadd.f32 %v3933_v49, %v9270_v29 }
 0x266   : > { %v9437_v26 = vadd.f32 %v3934_v19, %v9273_v37  ;;  %v9439_v25 = vunpack.c.l.bf16 %v5808_v0  ;;  %v9441_v22 = vunpack.c.h.bf16 %v5808_v0  ;;  %v5739_v34 = vunpack.c.l.bf16 %v5809_v5 }
 0x267   : > { %v5740_v33 = vunpack.c.h.bf16 %v5809_v5  ;;  %v9443_v1 = vunpack.c.l.bf16 %v5810_v7  ;;  %v9445_v15 = vunpack.c.h.bf16 %v5810_v7  ;;  %v9447_v24 = vunpack.c.l.bf16 %v5811_v50 }
 0x268   : > { %v9449_v48 = vunpack.c.h.bf16 %v5811_v50  ;;  %v3948_v29 = vrot.slane %v5739_v34, %v6308_v40  ;;  %v3956_v4 = vrot.slane %v5739_v34, %v6310_v41  ;;  %v3964_v37 = vrot.slane %v5739_v34, %v6312_v42 }
 0x269   : > { %10821 = vst [vmem:[#allocation9_spill] sm:$0xff] %v9447_v24  ;;  %v3972_v59 = vrot.slane %v5739_v34, %v6314_v43  ;;  %v3980_v14 = vrot.slane %v5739_v34, %v6316_v44  ;;  %v3988_v32 = vrot.slane %v5739_v34, %v6318_v45  ;;  %v3996_v20 = vrot.slane %v5739_v34, %v6320_v46 }
 0x26a   : > { %10822 = vst [vmem:[#allocation10_spill] sm:$0xff] %v9449_v48  ;;  %v4004_v18 = vrot.slane %v5739_v34, %v6322_v47  ;;  %v3949_v16 = vmul.f32 %v9439_v25, %v3948_v29  ;;  %v3950_v53 = vmul.f32 %v9441_v22, %v3948_v29  ;;  %v3957_v49 = vmul.f32 %v9439_v25, %v3956_v4 }
 0x26b   : > { %v3958_v19 = vmul.f32 %v9441_v22, %v3956_v4  ;;  %v3965_v0 = vmul.f32 %v9439_v25, %v3964_v37  ;;  %v3966_v5 = vmul.f32 %v9441_v22, %v3964_v37  ;;  %v3973_v7 = vmul.f32 %v9439_v25, %v3972_v59 }
 0x26c   : > { %v3974_v50 = vmul.f32 %v9441_v22, %v3972_v59  ;;  %v9468_v48 = vadd.f32 %v3949_v16, %v9300_v56  ;;  %v9471_v34 = vadd.f32 %v3950_v53, %v9303_v21  ;;  %v9474_v29 = vadd.f32 %v3957_v49, %v9306_v11 }
 0x26d   : > { %v9477_v24 = vadd.f32 %v3958_v19, %v9309_v51  ;;  %v9480_v4 = vadd.f32 %v3965_v0, %v9312_v3  ;;  %v9483_v37 = vadd.f32 %v3966_v5, %v9315_v52  ;;  %v9486_v59 = vadd.f32 %v3973_v7, %v9318_v2 }
 0x26e   : > { %v9489_v56 = vadd.f32 %v3974_v50, %v9321_v27  ;;  %v3981_v21 = vmul.f32 %v9439_v25, %v3980_v14  ;;  %v3982_v11 = vmul.f32 %v9441_v22, %v3980_v14  ;;  %v3989_v16 = vmul.f32 %v9439_v25, %v3988_v32 }
 0x26f   : > { %v3990_v51 = vmul.f32 %v9441_v22, %v3988_v32  ;;  %v3997_v3 = vmul.f32 %v9439_v25, %v3996_v20  ;;  %v3998_v53 = vmul.f32 %v9441_v22, %v3996_v20  ;;  %v4005_v52 = vmul.f32 %v9439_v25, %v4004_v18 }
 0x270   : > { %v4006_v2 = vmul.f32 %v9441_v22, %v4004_v18  ;;  %v9500_v49 = vadd.f32 %v3981_v21, %v9332_v30  ;;  %v9503_v27 = vadd.f32 %v3982_v11, %v9335_v58  ;;  %v9506_v14 = vadd.f32 %v3989_v16, %v9338_v23 }
 0x271   : > { %v9509_v19 = vadd.f32 %v3990_v51, %v9341_v54  ;;  %v9512_v32 = vadd.f32 %v3997_v3, %v9344_v57  ;;  %v9515_v20 = vadd.f32 %v3998_v53, %v9347_v55  ;;  %v9518_v18 = vadd.f32 %v4005_v52, %v9350_v62 }
 0x272   : > { %v9521_v30 = vadd.f32 %v4006_v2, %v9353_v8  ;;  %v4012_v58 = vrot.slane %v5740_v33, %v6308_v40  ;;  %v4020_v23 = vrot.slane %v5740_v33, %v6310_v41  ;;  %v4028_v0 = vrot.slane %v5740_v33, %v6312_v42 }
 0x273   : > { %v4036_v54 = vrot.slane %v5740_v33, %v6314_v43  ;;  %v4044_v57 = vrot.slane %v5740_v33, %v6316_v44  ;;  %v4052_v5 = vrot.slane %v5740_v33, %v6318_v45  ;;  %v4060_v55 = vrot.slane %v5740_v33, %v6320_v46 }
 0x274   : > { %v4068_v62 = vrot.slane %v5740_v33, %v6322_v47  ;;  %v4013_v7 = vmul.f32 %v9439_v25, %v4012_v58  ;;  %v4014_v8 = vmul.f32 %v9441_v22, %v4012_v58  ;;  %v4021_v50 = vmul.f32 %v9439_v25, %v4020_v23 }
 0x275   : > { %v4022_v21 = vmul.f32 %v9441_v22, %v4020_v23  ;;  %v4029_v11 = vmul.f32 %v9439_v25, %v4028_v0  ;;  %v4030_v16 = vmul.f32 %v9441_v22, %v4028_v0  ;;  %v4037_v51 = vmul.f32 %v9439_v25, %v4036_v54 }
 0x276   : > { %v4038_v3 = vmul.f32 %v9441_v22, %v4036_v54  ;;  %v9540_v53 = vadd.f32 %v4013_v7, %v9380_v35  ;;  %v9543_v33 = vadd.f32 %v4014_v8, %v9383_v36  ;;  %v9546_v52 = vadd.f32 %v4021_v50, %v9386_v63 }
 0x277   : > { %v9549_v2 = vadd.f32 %v4022_v21, %v9389_v60  ;;  %v9552_v58 = vadd.f32 %v4029_v11, %v9392_v31  ;;  %v9555_v23 = vadd.f32 %v4030_v16, %v9395_v39  ;;  %v9558_v0 = vadd.f32 %v4037_v51, %v9398_v6 }
 0x278   : > { %v9561_v35 = vadd.f32 %v4038_v3, %v9401_v13  ;;  %v4045_v36 = vmul.f32 %v9439_v25, %v4044_v57  ;;  %v4046_v63 = vmul.f32 %v9441_v22, %v4044_v57  ;;  %v4053_v54 = vmul.f32 %v9439_v25, %v4052_v5 }
 0x279   : > { %10823 = vst [vmem:[#allocation14_spill] sm:$0xff] %v9552_v58  ;;  %10824 = vst [vmem:[#allocation15_spill] sm:$0xff] %v9555_v23  ;;  %v4054_v60 = vmul.f32 %v9441_v22, %v4052_v5  ;;  %v4061_v31 = vmul.f32 %v9439_v25, %v4060_v55  ;;  %v4062_v7 = vmul.f32 %v9441_v22, %v4060_v55 }
 0x27a   : > { %10825 = vst [vmem:[#allocation16_spill] sm:$0xff] %v9558_v0  ;;  %10826 = vst [vmem:[#allocation17_spill] sm:$0xff] %v9561_v35  ;;  %v4069_v39 = vmul.f32 %v9439_v25, %v4068_v62  ;;  %v4070_v6 = vmul.f32 %v9441_v22, %v4068_v62  ;;  %v9572_v8 = vadd.f32 %v4045_v36, %v9414_v17 }
 0x27b   : > { %v9575_v13 = vadd.f32 %v4046_v63, %v9417_v9  ;;  %v9578_v57 = vadd.f32 %v4053_v54, %v9420_v28  ;;  %v9581_v50 = vadd.f32 %v4054_v60, %v9423_v38  ;;  %v9584_v5 = vadd.f32 %v4061_v31, %v9428_v61 }
 0x27c   : > { %v9587_v55 = vadd.f32 %v4062_v7, %v9431_v12  ;;  %v9590_v25 = vadd.f32 %v4069_v39, %v9434_v10  ;;  %v9593_v17 = vadd.f32 %v4070_v6, %v9437_v26  ;;  %v4073_v9 = vmax.f32 %v9468_v48, %v9474_v29 }
 0x27d   : > { %10827 = vst [vmem:[#allocation18_spill] sm:$0xff] %v9578_v57  ;;  %10828 = vst [vmem:[#allocation19_spill] sm:$0xff] %v9584_v5  ;;  %v4074_v28 = vmax.f32 %v9471_v34, %v9477_v24  ;;  %v4075_v38 = vmax.f32 %v9480_v4, %v9486_v59  ;;  %v4076_v61 = vmax.f32 %v9483_v37, %v9489_v56 }
 0x27e   : > { %10829 = vst [vmem:[#allocation6_spill] sm:$0xff] %v9590_v25  ;;  %10830 = vst [vmem:[#allocation20_spill] sm:$0xff] %v9593_v17  ;;  %v4077_v12 = vmax.f32 %v9500_v49, %v9506_v14  ;;  %v4078_v10 = vmax.f32 %v9503_v27, %v9509_v19  ;;  %v4079_v26 = vmax.f32 %v9512_v32, %v9518_v18 }
 0x27f   : > { %v4080_v22 = vmax.f32 %v9515_v20, %v9521_v30  ;;  %v4081_v62 = vmax.f32 %v9540_v53, %v9546_v52  ;;  %v4082_v21 = vmax.f32 %v9543_v33, %v9549_v2  ;;  %v4083_v11 = vmax.f32 %v9552_v58, %v9558_v0 }
 0x280   : > { %v4084_v16 = vmax.f32 %v9555_v23, %v9561_v35  ;;  %v4085_v51 = vmax.f32 %v9572_v8, %v9578_v57  ;;  %v4086_v3 = vmax.f32 %v9575_v13, %v9581_v50  ;;  %v4087_v36 = vmax.f32 %v9584_v5, %v9590_v25 }
 0x281   : > { %v4088_v63 = vmax.f32 %v9587_v55, %v9593_v17  ;;  %v4089_v54 = vmax.f32 %v4073_v9, %v4075_v38  ;;  %v4090_v60 = vmax.f32 %v4074_v28, %v4076_v61  ;;  %v4091_v31 = vmax.f32 %v4077_v12, %v4079_v26 }
 0x282   : > { %v4092_v7 = vmax.f32 %v4078_v10, %v4080_v22  ;;  %v4093_v39 = vmax.f32 %v4081_v62, %v4083_v11  ;;  %v4094_v6 = vmax.f32 %v4082_v21, %v4084_v16  ;;  %v4095_v0 = vmax.f32 %v4085_v51, %v4087_v36 }
 0x283   : > { %v4096_v35 = vmax.f32 %v4086_v3, %v4088_v63  ;;  %v4097_v23 = vmax.f32 %v4089_v54, %v4091_v31  ;;  %v9629_v57 = vrot.slane %v9443_v1, %v6308_v40  ;;  %v9633_v25 = vrot.slane %v9443_v1, %v6310_v41 }
 0x284   : > { %v4098_v58 = vmax.f32 %v4090_v60, %v4092_v7  ;;  %v4099_v5 = vmax.f32 %v4093_v39, %v4095_v0  ;;  %v9637_v9 = vrot.slane %v9443_v1, %v6312_v42  ;;  %v9641_v28 = vrot.slane %v9443_v1, %v6314_v43 }
 0x285   : > { %v4100_v17 = vmax.f32 %v4094_v6, %v4096_v35  ;;  %v9645_v38 = vrot.slane %v9443_v1, %v6316_v44  ;;  %v9649_v61 = vrot.slane %v9443_v1, %v6318_v45  ;;  %v9653_v0 = vrot.slane %v9443_v1, %v6320_v46 }
 0x286   : > { %v9657_v35 = vrot.slane %v9443_v1, %v6322_v47  ;;  %v9659_v12 = vmax.f32 %v4097_v23, %v4099_v5  ;;  %v9665_v26 = vrot.slane %v9445_v15, %v6308_v40  ;;  %v9669_v22 = vrot.slane %v9445_v15, %v6310_v41 }
 0x287   : > { %v9661_v10 = vmax.f32 %v4098_v58, %v4100_v17  ;;  %v9673_v62 = vrot.slane %v9445_v15, %v6312_v42  ;;  %v9677_v1 = vrot.slane %v9445_v15, %v6314_v43  ;;  %v9681_v58 = vrot.slane %v9445_v15, %v6316_v44 }
 0x288   : > { %v9685_v23 = vrot.slane %v9445_v15, %v6318_v45  ;;  %v4103_v5 = vsub.f32 %v9468_v48, %v9659_v12  ;;  %v4109_v21 = vsub.f32 %v9474_v29, %v9659_v12  ;;  %v4115_v16 = vsub.f32 %v9480_v4, %v9659_v12 }
 0x289   : > { %v4104_v17 = vsub.f32 %v9471_v34, %v9661_v10  ;;  %v4110_v11 = vsub.f32 %v9477_v24, %v9661_v10  ;;  %v4116_v51 = vsub.f32 %v9483_v37, %v9661_v10  ;;  %v4121_v3 = vsub.f32 %v9486_v59, %v9659_v12 }
 0x28a   : > { %v4122_v48 = vsub.f32 %v9489_v56, %v9661_v10  ;;  %v4105_v36 = vmul.f32 1.442695, %v4103_v5  ;;  %v4111_v63 = vmul.f32 1.442695, %v4109_v21  ;;  %v4127_v29 = vsub.f32 %v9500_v49, %v9659_v12 }
 0x28b   : > { %v4107_v34 = vmul.f32 1.442695, %v4104_v17  ;;  %v4113_v54 = vmul.f32 1.442695, %v4110_v11  ;;  %v4117_v24 = vmul.f32 1.442695, %v4115_v16  ;;  %v4128_v4 = vsub.f32 %v9503_v27, %v9661_v10 }
 0x28c   : > { %v4119_v60 = vmul.f32 1.442695, %v4116_v51  ;;  %5910 = vpow2.f32 %v4105_v36  ;;  %v4123_v37 = vmul.f32 1.442695, %v4121_v3  ;;  %v4125_v31 = vmul.f32 1.442695, %v4122_v48 }
 0x28d   : > { %v4129_v7 = vmul.f32 1.442695, %v4127_v29  ;;  %5912 = vpow2.f32 %v4107_v34  ;;  %v4131_v59 = vmul.f32 1.442695, %v4128_v4  ;;  %v4133_v56 = vsub.f32 %v9506_v14, %v9659_v12  ;;  %v10832_v34 = vld [vmem:[#allocation15_spill] sm:$0xff] }
 0x28e   : > { %v4134_v39 = vsub.f32 %v9509_v19, %v9661_v10  ;;  %5914 = vpow2.f32 %v4111_v63  ;;  %v4139_v49 = vsub.f32 %v9512_v32, %v9659_v12  ;;  %v4140_v6 = vsub.f32 %v9515_v20, %v9661_v10 }
 0x28f   : > { %v4145_v27 = vsub.f32 %v9518_v18, %v9659_v12  ;;  %5916 = vpow2.f32 %v4113_v54  ;;  %v4135_v5 = vmul.f32 1.442695, %v4133_v56  ;;  %v4146_v21 = vsub.f32 %v9521_v30, %v9661_v10  ;;  %v10831_v30 = vld [vmem:[#allocation14_spill] sm:$0xff] }
 0x290   : > { %v4137_v17 = vmul.f32 1.442695, %v4134_v39  ;;  %5918 = vpow2.f32 %v4117_v24  ;;  %v4141_v14 = vmul.f32 1.442695, %v4139_v49  ;;  %v4143_v11 = vmul.f32 1.442695, %v4140_v6 }
 0x291   : > { %v4147_v19 = vmul.f32 1.442695, %v4145_v27  ;;  %5920 = vpow2.f32 %v4119_v60  ;;  %v4149_v16 = vmul.f32 1.442695, %v4146_v21  ;;  %v4151_v32 = vsub.f32 %v9540_v53, %v9659_v12 }
 0x292   : > { %v4152_v20 = vsub.f32 %v9543_v33, %v9661_v10  ;;  %5922 = vpow2.f32 %v4123_v37  ;;  %v4157_v18 = vsub.f32 %v9546_v52, %v9659_v12  ;;  %v4158_v51 = vsub.f32 %v9549_v2, %v9661_v10  ;;  %v10833_v52 = vld [vmem:[#allocation16_spill] sm:$0xff]  ;;  %v10834_v2 = vld [vmem:[#allocation17_spill] sm:$0xff] }
 0x293   : > { %v4163_v3 = vsub.f32 %v10831_v30, %v9659_v12  ;;  %5924 = vpow2.f32 %v4125_v31  ;;  %v4153_v48 = vmul.f32 1.442695, %v4151_v32  ;;  %v4164_v63 = vsub.f32 %v10832_v34, %v9661_v10  ;;  %v10843_v30 = vld [vmem:[#allocation20_spill] sm:$0xff] }
 0x294   : > { %v4155_v36 = vmul.f32 1.442695, %v4152_v20  ;;  %5926 = vpow2.f32 %v4129_v7  ;;  %v4159_v53 = vmul.f32 1.442695, %v4157_v18  ;;  %v4161_v29 = vmul.f32 1.442695, %v4158_v51 }
 0x295   : > { %v4165_v33 = vmul.f32 1.442695, %v4163_v3  ;;  %5928 = vpow2.f32 %v4131_v59  ;;  %v4167_v54 = vmul.f32 1.442695, %v4164_v63  ;;  %v4169_v24 = vsub.f32 %v10833_v52, %v9659_v12  ;;  %v10836_v7 = vld [vmem:[#allocation18_spill] sm:$0xff]  ;;  %v10840_v20 = vld [vmem:[#allocation19_spill] sm:$0xff] }
 0x296   : > { %v4170_v60 = vsub.f32 %v10834_v2, %v9661_v10  ;;  %v9735_v4 = vpop.eup %5910  ;;  %5930 = vpow2.f32 %v4135_v5  ;;  %v4175_v37 = vsub.f32 %v9572_v8, %v9659_v12  ;;  %v4176_v31 = vsub.f32 %v9575_v13, %v9661_v10 }
 0x297   : > { %10835 = vst [vmem:[#allocation21_spill] sm:$0xff] %v9735_v4  ;;  %v4181_v56 = vsub.f32 %v10836_v7, %v9659_v12  ;;  %v9743_v59 = vpop.eup %5912  ;;  %5932 = vpow2.f32 %v4137_v17  ;;  %v4171_v39 = vmul.f32 1.442695, %v4169_v24  ;;  %v4182_v6 = vsub.f32 %v9581_v50, %v9661_v10  ;;  %v10842_v50 = vld [vmem:[#allocation6_spill] sm:$0xff] }
 0x298   : > { %10837 = vst [vmem:[#allocation22_spill] sm:$0xff] %v9743_v59  ;;  %v4173_v49 = vmul.f32 1.442695, %v4170_v60  ;;  %v9747_v27 = vpop.eup %5914  ;;  %5934 = vpow2.f32 %v4141_v14  ;;  %v4177_v5 = vmul.f32 1.442695, %v4175_v37  ;;  %v4187_v17 = vsub.f32 %v10840_v20, %v9659_v12 }
 0x299   : > { %10838 = vst [vmem:[#allocation23_spill] sm:$0xff] %v9747_v27  ;;  %v4179_v21 = vmul.f32 1.442695, %v4176_v31  ;;  %v9749_v8 = vmul.f32 1.442695, %v4181_v56  ;;  %v9751_v32 = vpop.eup %5916  ;;  %5936 = vpow2.f32 %v4143_v11  ;;  %v4188_v18 = vsub.f32 %v9587_v55, %v9661_v10 }
 0x29a   : > { %10839 = vst [vmem:[#allocation24_spill] sm:$0xff] %v9751_v32  ;;  %v9753_v13 = vmul.f32 1.442695, %v4182_v6  ;;  %v9759_v51 = vpop.eup %5918  ;;  %5938 = vpow2.f32 %v4147_v19  ;;  %v4193_v14 = vsub.f32 %v10842_v50, %v9659_v12  ;;  %v4194_v3 = vsub.f32 %v10843_v30, %v9661_v10 }
 0x29b   : > { %10841 = vst [vmem:[#allocation7_spill] sm:$0xff] %v9759_v51  ;;  %v4199_v11 = vadd.f32 %v9747_v27, %v9735_v4  ;;  %v9767_v34 = vpop.eup %5920  ;;  %5940 = vpow2.f32 %v4149_v16  ;;  %v9769_v63 = vmul.f32 1.442695, %v4187_v17  ;;  %v9771_v52 = vmul.f32 1.442695, %v4188_v18 }
 0x29c   : > { %v4200_v55 = vadd.f32 %v9751_v32, %v9743_v59  ;;  %v9775_v19 = vpop.eup %5922  ;;  %5942 = vpow2.f32 %v4153_v48  ;;  %v9777_v12 = vmul.f32 1.442695, %v4193_v14  ;;  %v9779_v24 = vmul.f32 1.442695, %v4194_v3 }
 0x29d   : > { %v4241_v10 = vmul.f32 %v9735_v4, %v9629_v57  ;;  %v9783_v2 = vpop.eup %5924  ;;  %5944 = vpow2.f32 %v4155_v36  ;;  %v4201_v16 = vadd.f32 %v9775_v19, %v9759_v51  ;;  %v4242_v60 = vmul.f32 %v9743_v59, %v9629_v57 }
 0x29e   : > { %v4247_v37 = vmul.f32 %v9747_v27, %v9633_v25  ;;  %v9791_v48 = vpop.eup %5926  ;;  %5946 = vpow2.f32 %v4159_v53  ;;  %v4202_v31 = vadd.f32 %v9783_v2, %v9767_v34  ;;  %v4248_v7 = vmul.f32 %v9751_v32, %v9633_v25 }
 0x29f   : > { %10844 = vst [vmem:[#allocation12_spill] sm:$0xff] %v9791_v48  ;;  %v4255_v36 = vmul.f32 %v9759_v51, %v9637_v9  ;;  %v9799_v56 = vpop.eup %5928  ;;  %5948 = vpow2.f32 %v4161_v29  ;;  %v4215_v6 = vadd.f32 %v4201_v16, %v4199_v11  ;;  %v4256_v20 = vmul.f32 %v9767_v34, %v9637_v9 }
 0x2a0   : > { %v4249_v57 = vadd.f32 %v4247_v37, %v4241_v10  ;;  %v9803_v17 = vpop.eup %5930  ;;  %5950 = vpow2.f32 %v4165_v33  ;;  %v4216_v53 = vadd.f32 %v4202_v31, %v4200_v55  ;;  %v4250_v18 = vadd.f32 %v4248_v7, %v4242_v60 }
 0x2a1   : > { %v4263_v50 = vmul.f32 %v9775_v19, %v9641_v28  ;;  %v9807_v25 = vpop.eup %5932  ;;  %5952 = vpow2.f32 %v4167_v54  ;;  %v4203_v14 = vadd.f32 %v9803_v17, %v9791_v48  ;;  %v4264_v30 = vmul.f32 %v9783_v2, %v9641_v28 }
 0x2a2   : > { %v4257_v29 = vadd.f32 %v4255_v36, %v4249_v57  ;;  %v9813_v3 = vpop.eup %5934  ;;  %5954 = vpow2.f32 %v4171_v39  ;;  %v4204_v9 = vadd.f32 %v9807_v25, %v9799_v56  ;;  %v4258_v33 = vadd.f32 %v4256_v20, %v4250_v18 }
 0x2a3   : > { %v4271_v11 = vmul.f32 %v9791_v48, %v9645_v38  ;;  %v9819_v55 = vpop.eup %5936  ;;  %5956 = vpow2.f32 %v4173_v49  ;;  %v4272_v10 = vmul.f32 %v9799_v56, %v9645_v38  ;;  %v4279_v28 = vmul.f32 %v9803_v17, %v9649_v61 }
 0x2a4   : > { %v4265_v54 = vadd.f32 %v4263_v50, %v4257_v29  ;;  %v9825_v16 = vpop.eup %5938  ;;  %5958 = vpow2.f32 %v4177_v5  ;;  %v4266_v39 = vadd.f32 %v4264_v30, %v4258_v33  ;;  %v4280_v60 = vmul.f32 %v9807_v25, %v9649_v61 }
 0x2a5   : > { %v4287_v37 = vmul.f32 %v9813_v3, %v9653_v0  ;;  %v9831_v31 = vpop.eup %5940  ;;  %5960 = vpow2.f32 %v4179_v21  ;;  %v4205_v49 = vadd.f32 %v9825_v16, %v9813_v3  ;;  %v4288_v7 = vmul.f32 %v9819_v55, %v9653_v0 }
 0x2a6   : > { %v4273_v38 = vadd.f32 %v4271_v11, %v4265_v54  ;;  %v9837_v36 = vpop.eup %5942  ;;  %5962 = vpow2.f32 %v9749_v8  ;;  %v4206_v61 = vadd.f32 %v9831_v31, %v9819_v55  ;;  %v4274_v5 = vadd.f32 %v4272_v10, %v4266_v39 }
 0x2a7   : > { %v4295_v57 = vmul.f32 %v9825_v16, %v9657_v35  ;;  %v9844_v20 = vpop.eup %5944  ;;  %5964 = vpow2.f32 %v9753_v13  ;;  %v4217_v21 = vadd.f32 %v4205_v49, %v4203_v14  ;;  %v4296_v0 = vmul.f32 %v9831_v31, %v9657_v35 }
 0x2a8   : > { %v4281_v18 = vadd.f32 %v4279_v28, %v4273_v38  ;;  %v9849_v50 = vpop.eup %5946  ;;  %5966 = vpow2.f32 %v9769_v63  ;;  %v4218_v8 = vadd.f32 %v4206_v61, %v4204_v9  ;;  %v4282_v29 = vadd.f32 %v4280_v60, %v4274_v5 }
 0x2a9   : > { %v4303_v30 = vmul.f32 %v9837_v36, %v9665_v26  ;;  %v9854_v33 = vpop.eup %5948  ;;  %5968 = vpow2.f32 %v9771_v52  ;;  %v4207_v13 = vadd.f32 %v9849_v50, %v9837_v36  ;;  %v9859_v14 = vadd.f32 %v4217_v21, %v4215_v6 }
 0x2aa   : > { %v4289_v11 = vadd.f32 %v4287_v37, %v4281_v18  ;;  %v9861_v35 = vpop.eup %5950  ;;  %5970 = vpow2.f32 %v9777_v12  ;;  %v4208_v63 = vadd.f32 %v9854_v33, %v9844_v20  ;;  %v9866_v9 = vadd.f32 %v4218_v8, %v4216_v53 }
 0x2ab   : > { %10845 = vst [vmem:[#allocation25_spill] sm:$0xff] %v9861_v35  ;;  %v4290_v54 = vadd.f32 %v4288_v7, %v4282_v29  ;;  %v9868_v10 = vpop.eup %5952  ;;  %5972 = vpow2.f32 %v9779_v24  ;;  %v4304_v6 = vmul.f32 %v9844_v20, %v9665_v26  ;;  %v4311_v28 = vmul.f32 %v9849_v50, %v9669_v22  ;;  %v10851_v29 = vld [vmem:[#allocation9_spill] sm:$0xff] }
 0x2ac   : > { %10846 = vst [vmem:[#allocation11_spill] sm:$0xff] %v9868_v10  ;;  %v4297_v52 = vadd.f32 %v4295_v57, %v4289_v11  ;;  %v9875_v39 = vpop.eup %5954  ;;  %v4312_v60 = vmul.f32 %v9854_v33, %v9669_v22  ;;  %v4319_v53 = vmul.f32 %v9861_v35, %v9673_v62  ;;  %v4320_v37 = vmul.f32 %v9868_v10, %v9673_v62 }
 0x2ad   : > { %10847 = vst [vmem:[#allocation13_spill] sm:$0xff] %v9875_v39  ;;  %v4298_v12 = vadd.f32 %v4296_v0, %v4290_v54  ;;  %v9883_v24 = vpop.eup %5956  ;;  %v4209_v26 = vadd.f32 %v9875_v39, %v9861_v35  ;;  %v4327_v38 = vmul.f32 %v9875_v39, %v9677_v1  ;;  %v4350_v7 = vrot.slane %v9445_v15, %v6320_v46 }
 0x2ae   : > { %10848 = vst [vmem:[#allocation8_spill] sm:$0xff] %v9883_v24  ;;  %v4305_v49 = vadd.f32 %v4303_v30, %v4297_v52  ;;  %v9891_v61 = vpop.eup %5958  ;;  %v4210_v22 = vadd.f32 %v9883_v24, %v9868_v10  ;;  %v4328_v62 = vmul.f32 %v9883_v24, %v9677_v1  ;;  %v4358_v57 = vrot.slane %v9445_v15, %v6322_v47 }
 0x2af   : > { %10849 = vst [vmem:[#allocation14_spill] sm:$0xff] %v9891_v61  ;;  %v4306_v5 = vadd.f32 %v4304_v6, %v4298_v12  ;;  %v9899_v21 = vpop.eup %5960  ;;  %v4219_v18 = vadd.f32 %v4209_v26, %v4207_v13  ;;  %v4335_v8 = vmul.f32 %v9891_v61, %v9681_v58  ;;  %v4374_v30 = vrot.slane %v10851_v29, %v6308_v40 }
 0x2b0   : > { %10850 = vst [vmem:[#allocation15_spill] sm:$0xff] %v9899_v21  ;;  %v4313_v0 = vadd.f32 %v4311_v28, %v4305_v49  ;;  %v9905_v11 = vpop.eup %5962  ;;  %v4220_v54 = vadd.f32 %v4210_v22, %v4208_v63  ;;  %v4336_v1 = vmul.f32 %v9899_v21, %v9681_v58  ;;  %v4380_v15 = vrot.slane %v10851_v29, %v6310_v41 }
 0x2b1   : > { %10852 = vst [vmem:[#allocation16_spill] sm:$0xff] %v9905_v11  ;;  %v4314_v52 = vadd.f32 %v4312_v60, %v4306_v5  ;;  %v9911_v6 = vpop.eup %5964  ;;  %v4211_v13 = vadd.f32 %v9905_v11, %v9891_v61  ;;  %v4343_v12 = vmul.f32 %v9905_v11, %v9685_v23  ;;  %v4375_v26 = vmul.f32 %v9735_v4, %v4374_v30 }
 0x2b2   : > { %10853 = vst [vmem:[#allocation17_spill] sm:$0xff] %v9911_v6  ;;  %v4321_v28 = vadd.f32 %v4319_v53, %v4313_v0  ;;  %v9918_v49 = vpop.eup %5966  ;;  %v4212_v63 = vadd.f32 %v9911_v6, %v9899_v21  ;;  %v4344_v60 = vmul.f32 %v9911_v6, %v9685_v23  ;;  %v4376_v22 = vmul.f32 %v9743_v59, %v4374_v30 }
 0x2b3   : > { %10854 = vst [vmem:[#allocation18_spill] sm:$0xff] %v9918_v49  ;;  %v4322_v58 = vadd.f32 %v4320_v37, %v4314_v52  ;;  %v9925_v5 = vpop.eup %5968  ;;  %v4351_v53 = vmul.f32 %v9918_v49, %v4350_v7  ;;  %v4381_v0 = vmul.f32 %v9747_v27, %v4380_v15  ;;  %v4382_v4 = vmul.f32 %v9751_v32, %v4380_v15 }
 0x2b4   : > { %10855 = vst [vmem:[#allocation19_spill] sm:$0xff] %v9925_v5  ;;  %v4329_v61 = vadd.f32 %v4327_v38, %v4321_v28  ;;  %v9930_v11 = vpop.eup %5970  ;;  %v4352_v21 = vmul.f32 %v9925_v5, %v4350_v7  ;;  %v4388_v37 = vrot.slane %v10851_v29, %v6312_v42  ;;  %v4396_v23 = vrot.slane %v10851_v29, %v6314_v43 }
 0x2b5   : > { %10856 = vst [vmem:[#allocation6_spill] sm:$0xff] %v9930_v11  ;;  %v4330_v24 = vadd.f32 %v4328_v62, %v4322_v58  ;;  %v9937_v30 = vpop.eup %5972  ;;  %v4213_v38 = vadd.f32 %v9930_v11, %v9918_v49  ;;  %v4359_v28 = vmul.f32 %v9930_v11, %v4358_v57  ;;  %v4383_v15 = vadd.f32 %v4381_v0, %v4375_v26 }
 0x2b6   : > { %10857 = vst [vmem:[#allocation20_spill] sm:$0xff] %v9937_v30  ;;  %v4337_v52 = vadd.f32 %v4335_v8, %v4329_v61  ;;  %v4214_v62 = vadd.f32 %v9937_v30, %v9925_v5  ;;  %v4360_v7 = vmul.f32 %v9937_v30, %v4358_v57  ;;  %v4384_v32 = vadd.f32 %v4382_v4, %v4376_v22 }
 0x2b7   : > { %v4338_v58 = vadd.f32 %v4336_v1, %v4330_v24  ;;  %v4221_v27 = vadd.f32 %v4213_v38, %v4211_v13  ;;  %v4389_v6 = vmul.f32 %v9759_v51, %v4388_v37  ;;  %v4390_v39 = vmul.f32 %v9767_v34, %v4388_v37 }
 0x2b8   : > { %v4345_v59 = vadd.f32 %v4343_v12, %v4337_v52  ;;  %v4222_v10 = vadd.f32 %v4214_v62, %v4212_v63  ;;  %v4397_v61 = vmul.f32 %v9775_v19, %v4396_v23  ;;  %v4398_v8 = vmul.f32 %v9783_v2, %v4396_v23 }
 0x2b9   : > { %v4346_v35 = vadd.f32 %v4344_v60, %v4338_v58  ;;  %v4225_v26 = vadd.f32 %v4221_v27, %v4219_v18  ;;  %v4391_v11 = vadd.f32 %v4389_v6, %v4383_v15  ;;  %v4392_v5 = vadd.f32 %v4390_v39, %v4384_v32 }
 0x2ba   : > { %v4353_v0 = vadd.f32 %v4351_v53, %v4345_v59  ;;  %v4226_v24 = vadd.f32 %v4222_v10, %v4220_v54  ;;  %v4404_v4 = vrot.slane %v10851_v29, %v6316_v44  ;;  %v4412_v57 = vrot.slane %v10851_v29, %v6318_v45  ;;  %v10858_v54 = vld [vmem:[#allocation10_spill] sm:$0xff] }
 0x2bb   : > { %v4354_v1 = vadd.f32 %v4352_v21, %v4346_v35  ;;  %v4227_v13 = vadd.f32 %v4225_v26, %v9859_v14  ;;  %v4399_v63 = vadd.f32 %v4397_v61, %v4391_v11  ;;  %v4400_v60 = vadd.f32 %v4398_v8, %v4392_v5 }
 0x2bc   : > { %v9954_v12 = vadd.f32 %v4359_v28, %v4353_v0  ;;  %v4228_v22 = vadd.f32 %v4226_v24, %v9866_v9  ;;  %v4405_v59 = vmul.f32 %v9791_v48, %v4404_v4  ;;  %v4406_v32 = vmul.f32 %v9799_v56, %v4404_v4 }
 0x2bd   : > { %v9957_v27 = vadd.f32 %v4360_v7, %v4354_v1  ;;  %5974 = vrcp.f32 %v4227_v13  ;;  %v4413_v35 = vmul.f32 %v9803_v17, %v4412_v57  ;;  %v4414_v10 = vmul.f32 %v9807_v25, %v4412_v57  ;;  %v10859_v57 = vld [vmem:[#allocation25_spill] sm:$0xff] }
 0x2be   : > { %v4420_v14 = vrot.slane %v10851_v29, %v6320_v46  ;;  %5976 = vrcp.f32 %v4228_v22  ;;  %v4407_v39 = vadd.f32 %v4405_v59, %v4399_v63  ;;  %v4408_v21 = vadd.f32 %v4406_v32, %v4400_v60  ;;  %v10860_v63 = vld [vmem:[#allocation11_spill] sm:$0xff]  ;;  %v10861_v22 = vld [vmem:[#allocation13_spill] sm:$0xff]  ;;  %v10862_v32 = vld [vmem:[#allocation8_spill] sm:$0xff] }
 0x2bf   : > { %v4428_v9 = vrot.slane %v10851_v29, %v6322_v47  ;;  %v4436_v6 = vrot.slane %v10858_v54, %v6308_v40  ;;  %v4444_v5 = vrot.slane %v10858_v54, %v6310_v41  ;;  %v4452_v7 = vrot.slane %v10858_v54, %v6312_v42 }
 0x2c0   : > { %v4421_v18 = vmul.f32 %v9813_v3, %v4420_v14  ;;  %v4422_v11 = vmul.f32 %v9819_v55, %v4420_v14  ;;  %v4415_v53 = vadd.f32 %v4413_v35, %v4407_v39  ;;  %v4416_v37 = vadd.f32 %v4414_v10, %v4408_v21  ;;  %v10863_v10 = vld [vmem:[#allocation14_spill] sm:$0xff]  ;;  %v10864_v39 = vld [vmem:[#allocation15_spill] sm:$0xff] }
 0x2c1   : > { %v4429_v23 = vmul.f32 %v9825_v16, %v4428_v9  ;;  %v4430_v38 = vmul.f32 %v9831_v31, %v4428_v9  ;;  %v4437_v52 = vmul.f32 %v9837_v36, %v4436_v6  ;;  %v4438_v29 = vmul.f32 %v9844_v20, %v4436_v6  ;;  %v5812_v9 = vld [vmem:[%s7355_s5 + $0x50] sm:$0xff]  }
 0x2c2   : > { %v4445_v28 = vmul.f32 %v9849_v50, %v4444_v5  ;;  %v4446_v15 = vmul.f32 %v9854_v33, %v4444_v5  ;;  %v4423_v62 = vadd.f32 %v4421_v18, %v4415_v53  ;;  %v4424_v58 = vadd.f32 %v4422_v11, %v4416_v37  ;;  %v10865_v6 = vld [vmem:[#allocation16_spill] sm:$0xff]  ;;  %v5813_v37 = vld [vmem:[%s7355_s5 + $0x58] sm:$0xff]  }
 0x2c3   : > { %v4460_v61 = vrot.slane %v10858_v54, %v6314_v43  ;;  %v4468_v8 = vrot.slane %v10858_v54, %v6316_v44  ;;  %v4476_v26 = vrot.slane %v10858_v54, %v6318_v45  ;;  %v4484_v0 = vrot.slane %v10858_v54, %v6320_v46 }
 0x2c4   : > { %v4492_v24 = vrot.slane %v10858_v54, %v6322_v47  ;;  %v4431_v1 = vadd.f32 %v4429_v23, %v4423_v62  ;;  %v4432_v4 = vadd.f32 %v4430_v38, %v4424_v58  ;;  %v4453_v13 = vmul.f32 %v10859_v57, %v4452_v7  ;;  %v10866_v54 = vld [vmem:[#allocation17_spill] sm:$0xff]  ;;  %v10867_v62 = vld [vmem:[#allocation19_spill] sm:$0xff] }
 0x2c5   : > { %v4454_v60 = vmul.f32 %v10860_v63, %v4452_v7  ;;  %v4461_v59 = vmul.f32 %v10861_v22, %v4460_v61  ;;  %v4462_v35 = vmul.f32 %v10862_v32, %v4460_v61  ;;  %v4469_v14 = vmul.f32 %v10863_v10, %v4468_v8  ;;  %v10868_v7 = vld [vmem:[#allocation6_spill] sm:$0xff] }
 0x2c6   : > { %v4470_v21 = vmul.f32 %v10864_v39, %v4468_v8  ;;  %v4439_v18 = vadd.f32 %v4437_v52, %v4431_v1  ;;  %v4440_v11 = vadd.f32 %v4438_v29, %v4432_v4  ;;  %v4477_v5 = vmul.f32 %v10865_v6, %v4476_v26  ;;  %v5978_v52 = vld [vmem:[%s10507_s3] sm:$0xff]  ;;  %v5979_v4 = vld [vmem:[%s10507_s3 + $0x8] sm:$0xff] }
 0x2c7   : > { %v4478_v53 = vmul.f32 %v10866_v54, %v4476_v26  ;;  %v5975_v23 = vpop.eup %5974  ;;  %v4485_v38 = vmul.f32 %v9918_v49, %v4484_v0  ;;  %v4486_v58 = vmul.f32 %v10867_v62, %v4484_v0  ;;  %v4493_v22 = vmul.f32 %v10868_v7, %v4492_v24  ;;  %v10873_v49 = vld [vmem:[#allocation22_spill] sm:$0xff] }
 0x2c8   : > { %v4494_v61 = vmul.f32 %v9937_v30, %v4492_v24  ;;  %v5977_v10 = vpop.eup %5976  ;;  %v10008_v29 = vmul.f32 %v5978_v52, %v5975_v23  ;;  %v4447_v8 = vadd.f32 %v4445_v28, %v4439_v18  ;;  %v4448_v26 = vadd.f32 %v4446_v15, %v4440_v11 }
 0x2c9   : > { %v5751_v1 = vunpack.c.l.bf16 %v5812_v9  ;;  %v10013_v0 = vmul.f32 %v5979_v4, %v5977_v10  ;;  %v10015_v7 = vunpack.c.h.bf16 %v5812_v9  ;;  %v10017_v24 = vunpack.c.l.bf16 %v5813_v37 }
 0x2ca   : > { %v10019_v30 = vunpack.c.h.bf16 %v5813_v37  ;;  %v4363_v23 = vmul.f32 %v9954_v12, %v10008_v29  ;;  %v4455_v28 = vadd.f32 %v4453_v13, %v4447_v8  ;;  %v4456_v18 = vadd.f32 %v4454_v60, %v4448_v26  ;;  %v10874_v13 = vld [vmem:[#allocation23_spill] sm:$0xff]  ;;  %v10875_v8 = vld [vmem:[#allocation24_spill] sm:$0xff] }
 0x2cb   : > { %10869 = vst [vmem:[#allocation9_spill] sm:$0xff] %v10013_v0  ;;  %10870 = vst [vmem:[#allocation10_spill] sm:$0xff] %v10017_v24  ;;  %v4508_v15 = vrot.slane %v5751_v1, %v6308_v40  ;;  %v4364_v11 = vmul.f32 %v9957_v27, %v10013_v0  ;;  %v4514_v10 = vrot.slane %v5751_v1, %v6310_v41 }
 0x2cc   : > { %10871 = vst [vmem:[#allocation26_spill] sm:$0xff] %v10019_v30  ;;  %v4522_v9 = vrot.slane %v5751_v1, %v6312_v42  ;;  %v4530_v52 = vrot.slane %v5751_v1, %v6314_v43  ;;  %4365 = vst [vmem:[%s7963_s15 + $0x80] sm:$0xff] %v4363_v23  ;;  %v4463_v4 = vadd.f32 %v4461_v59, %v4455_v28  ;;  %v10872_v30 = vld [vmem:[#allocation21_spill] sm:$0xff] }
 0x2cd   : > { %v4464_v37 = vadd.f32 %v4462_v35, %v4456_v18  ;;  %v4509_v62 = vmul.f32 %v10872_v30, %v4508_v15  ;;  %v4510_v12 = vmul.f32 %v10873_v49, %v4508_v15  ;;  %4366 = vst [vmem:[%s7963_s15 + $0x88] sm:$0xff] %v4364_v11  ;;  %v4515_v60 = vmul.f32 %v10874_v13, %v4514_v10 }
 0x2ce   : > { %v4516_v26 = vmul.f32 %v10875_v8, %v4514_v10  ;;  %v4523_v27 = vmul.f32 %v9759_v51, %v4522_v9  ;;  %v4524_v54 = vmul.f32 %v9767_v34, %v4522_v9  ;;  %v4471_v6 = vadd.f32 %v4469_v14, %v4463_v4 }
 0x2cf   : > { %v4472_v39 = vadd.f32 %v4470_v21, %v4464_v37  ;;  %v4531_v24 = vmul.f32 %v9775_v19, %v4530_v52  ;;  %v4532_v59 = vmul.f32 %v9783_v2, %v4530_v52  ;;  %v4517_v35 = vadd.f32 %v4515_v60, %v4509_v62 }
 0x2d0   : > { %v4518_v23 = vadd.f32 %v4516_v26, %v4510_v12  ;;  %v4538_v28 = vrot.slane %v5751_v1, %v6316_v44  ;;  %v4546_v18 = vrot.slane %v5751_v1, %v6318_v45  ;;  %v4479_v15 = vadd.f32 %v4477_v5, %v4471_v6 }
 0x2d1   : > { %v4480_v11 = vadd.f32 %v4478_v53, %v4472_v39  ;;  %v4554_v10 = vrot.slane %v5751_v1, %v6320_v46  ;;  %v4562_v51 = vrot.slane %v5751_v1, %v6322_v47  ;;  %v4525_v8 = vadd.f32 %v4523_v27, %v4517_v35 }
 0x2d2   : > { %v4526_v9 = vadd.f32 %v4524_v54, %v4518_v23  ;;  %v4539_v14 = vmul.f32 %v9791_v48, %v4538_v28  ;;  %v4540_v21 = vmul.f32 %v9799_v56, %v4538_v28  ;;  %v4487_v4 = vadd.f32 %v4485_v38, %v4479_v15 }
 0x2d3   : > { %v4488_v52 = vadd.f32 %v4486_v58, %v4480_v11  ;;  %v4547_v62 = vmul.f32 %v9803_v17, %v4546_v18  ;;  %v4548_v37 = vmul.f32 %v9807_v25, %v4546_v18  ;;  %v4533_v12 = vadd.f32 %v4531_v24, %v4525_v8 }
 0x2d4   : > { %v4534_v60 = vadd.f32 %v4532_v59, %v4526_v9  ;;  %v4555_v39 = vmul.f32 %v9813_v3, %v4554_v10  ;;  %v4556_v6 = vmul.f32 %v9819_v55, %v4554_v10  ;;  %v4495_v5 = vadd.f32 %v4493_v22, %v4487_v4 }
 0x2d5   : > { %v4496_v53 = vadd.f32 %v4494_v61, %v4488_v52  ;;  %v4563_v54 = vmul.f32 %v9825_v16, %v4562_v51  ;;  %v4564_v1 = vmul.f32 %v9831_v31, %v4562_v51  ;;  %v4541_v38 = vadd.f32 %v4539_v14, %v4533_v12  ;;  %v10876_v14 = vld [vmem:[#allocation13_spill] sm:$0xff] }
 0x2d6   : > { %v4542_v58 = vadd.f32 %v4540_v21, %v4534_v60  ;;  %v4570_v26 = vrot.slane %v10015_v7, %v6308_v40  ;;  %v4578_v24 = vrot.slane %v10015_v7, %v6310_v41  ;;  %v4497_v8 = vmul.f32 %v4495_v5, %v10008_v29 }
 0x2d7   : > { %v4498_v27 = vmul.f32 %v4496_v53, %v10013_v0  ;;  %v4586_v22 = vrot.slane %v10015_v7, %v6312_v42  ;;  %v4594_v61 = vrot.slane %v10015_v7, %v6314_v43  ;;  %v4549_v59 = vadd.f32 %v4547_v62, %v4541_v38  ;;  %v10878_v38 = vld [vmem:[#allocation14_spill] sm:$0xff] }
 0x2d8   : > { %v4550_v51 = vadd.f32 %v4548_v37, %v4542_v58  ;;  %v4571_v35 = vmul.f32 %v9837_v36, %v4570_v26  ;;  %v4572_v23 = vmul.f32 %v9844_v20, %v4570_v26  ;;  %4499 = vst [vmem:[%s7963_s15 + $0x90] sm:$0xff] %v4497_v8  ;;  %v4579_v28 = vmul.f32 %v9849_v50, %v4578_v24  ;;  %v10879_v26 = vld [vmem:[#allocation15_spill] sm:$0xff]  ;;  %v10880_v8 = vld [vmem:[#allocation16_spill] sm:$0xff] }
 0x2d9   : > { %4500 = vst [vmem:[%s7963_s15 + $0x98] sm:$0xff] %v4498_v27  ;;  %v4580_v18 = vmul.f32 %v9854_v33, %v4578_v24  ;;  %v4587_v15 = vmul.f32 %v10859_v57, %v4586_v22  ;;  %v4588_v11 = vmul.f32 %v10860_v63, %v4586_v22  ;;  %v4557_v10 = vadd.f32 %v4555_v39, %v4549_v59  ;;  %v10877_v39 = vld [vmem:[#allocation10_spill] sm:$0xff]  ;;  %v10881_v22 = vld [vmem:[#allocation17_spill] sm:$0xff] }
 0x2da   : > { %v4558_v9 = vadd.f32 %v4556_v6, %v4550_v51  ;;  %v4595_v21 = vmul.f32 %v10876_v14, %v4594_v61  ;;  %v4596_v4 = vmul.f32 %v10862_v32, %v4594_v61  ;;  %v4602_v52 = vrot.slane %v10015_v7, %v6316_v44  ;;  %v10882_v32 = vld [vmem:[#allocation18_spill] sm:$0xff]  ;;  %v10885_v14 = vld [vmem:[#allocation20_spill] sm:$0xff] }
 0x2db   : > { %v4610_v62 = vrot.slane %v10015_v7, %v6318_v45  ;;  %v4618_v37 = vrot.slane %v10015_v7, %v6320_v46  ;;  %v4626_v12 = vrot.slane %v10015_v7, %v6322_v47  ;;  %v4565_v60 = vadd.f32 %v4563_v54, %v4557_v10  ;;  %v10883_v54 = vld [vmem:[#allocation19_spill] sm:$0xff]  ;;  %v10884_v10 = vld [vmem:[#allocation6_spill] sm:$0xff] }
 0x2dc   : > { %v4566_v5 = vadd.f32 %v4564_v1, %v4558_v9  ;;  %v4642_v6 = vrot.slane %v10877_v39, %v6308_v40  ;;  %v4648_v53 = vrot.slane %v10877_v39, %v6310_v41  ;;  %v4603_v58 = vmul.f32 %v10878_v38, %v4602_v52 }
 0x2dd   : > { %v4604_v24 = vmul.f32 %v10879_v26, %v4602_v52  ;;  %v4611_v27 = vmul.f32 %v10880_v8, %v4610_v62  ;;  %v4612_v61 = vmul.f32 %v10881_v22, %v4610_v62  ;;  %v4573_v59 = vadd.f32 %v4571_v35, %v4565_v60  ;;  %v10886_v26 = vld [vmem:[#allocation24_spill] sm:$0xff] }
 0x2de   : > { %v4574_v51 = vadd.f32 %v4572_v23, %v4566_v5  ;;  %v4619_v7 = vmul.f32 %v10882_v32, %v4618_v37  ;;  %v4620_v1 = vmul.f32 %v10883_v54, %v4618_v37  ;;  %v4627_v9 = vmul.f32 %v10884_v10, %v4626_v12 }
 0x2df   : > { %v4628_v63 = vmul.f32 %v10885_v14, %v4626_v12  ;;  %v4643_v57 = vmul.f32 %v10872_v30, %v4642_v6  ;;  %v4644_v38 = vmul.f32 %v10873_v49, %v4642_v6  ;;  %v4581_v0 = vadd.f32 %v4579_v28, %v4573_v59  ;;  %v10887_v6 = vld [vmem:[#allocation7_spill] sm:$0xff] }
 0x2e0   : > { %v4582_v52 = vadd.f32 %v4580_v18, %v4574_v51  ;;  %v4649_v8 = vmul.f32 %v10874_v13, %v4648_v53  ;;  %v4650_v62 = vmul.f32 %v10886_v26, %v4648_v53  ;;  %v4656_v35 = vrot.slane %v10877_v39, %v6312_v42 }
 0x2e1   : > { %v4664_v23 = vrot.slane %v10877_v39, %v6314_v43  ;;  %v4672_v37 = vrot.slane %v10877_v39, %v6316_v44  ;;  %v4680_v12 = vrot.slane %v10877_v39, %v6318_v45  ;;  %v4589_v60 = vadd.f32 %v4587_v15, %v4581_v0 }
 0x2e2   : > { %v4590_v5 = vadd.f32 %v4588_v11, %v4582_v52  ;;  %v4651_v28 = vadd.f32 %v4649_v8, %v4643_v57  ;;  %v4652_v18 = vadd.f32 %v4650_v62, %v4644_v38  ;;  %v4657_v59 = vmul.f32 %v10887_v6, %v4656_v35  ;;  %v10888_v52 = vld [vmem:[#allocation26_spill] sm:$0xff] }
 0x2e3   : > { %v4658_v53 = vmul.f32 %v9767_v34, %v4656_v35  ;;  %v4665_v51 = vmul.f32 %v9775_v19, %v4664_v23  ;;  %v4666_v26 = vmul.f32 %v9783_v2, %v4664_v23  ;;  %v4597_v13 = vadd.f32 %v4595_v21, %v4589_v60 }
 0x2e4   : > { %v4598_v49 = vadd.f32 %v4596_v4, %v4590_v5  ;;  %v4673_v30 = vmul.f32 %v9791_v48, %v4672_v37  ;;  %v4674_v14 = vmul.f32 %v9799_v56, %v4672_v37  ;;  %v4659_v10 = vadd.f32 %v4657_v59, %v4651_v28 }
 0x2e5   : > { %v4660_v54 = vadd.f32 %v4658_v53, %v4652_v18  ;;  %v4681_v0 = vmul.f32 %v9803_v17, %v4680_v12  ;;  %v4682_v57 = vmul.f32 %v9807_v25, %v4680_v12  ;;  %v4605_v15 = vadd.f32 %v4603_v58, %v4597_v13 }
 0x2e6   : > { %v4606_v11 = vadd.f32 %v4604_v24, %v4598_v49  ;;  %v4688_v38 = vrot.slane %v10877_v39, %v6320_v46  ;;  %v4696_v8 = vrot.slane %v10877_v39, %v6322_v47  ;;  %v4667_v21 = vadd.f32 %v4665_v51, %v4659_v10 }
 0x2e7   : > { %v4668_v4 = vadd.f32 %v4666_v26, %v4660_v54  ;;  %v4704_v62 = vrot.slane %v10888_v52, %v6308_v40  ;;  %v4712_v35 = vrot.slane %v10888_v52, %v6310_v41  ;;  %v4613_v23 = vadd.f32 %v4611_v27, %v4605_v15 }
 0x2e8   : > { %v4614_v37 = vadd.f32 %v4612_v61, %v4606_v11  ;;  %v4689_v12 = vmul.f32 %v9813_v3, %v4688_v38  ;;  %v4690_v49 = vmul.f32 %v9819_v55, %v4688_v38  ;;  %v4675_v13 = vadd.f32 %v4673_v30, %v4667_v21  ;;  %v10891_v11 = vld [vmem:[#allocation11_spill] sm:$0xff] }
 0x2e9   : > { %v4676_v58 = vadd.f32 %v4674_v14, %v4668_v4  ;;  %v4697_v24 = vmul.f32 %v9825_v16, %v4696_v8  ;;  %v4698_v39 = vmul.f32 %v9831_v31, %v4696_v8  ;;  %v4621_v10 = vadd.f32 %v4619_v7, %v4613_v23  ;;  %v10892_v4 = vld [vmem:[#allocation13_spill] sm:$0xff] }
 0x2ea   : > { %v4622_v26 = vadd.f32 %v4620_v1, %v4614_v37  ;;  %v4705_v54 = vmul.f32 %v9837_v36, %v4704_v62  ;;  %v4706_v60 = vmul.f32 %v9844_v20, %v4704_v62  ;;  %v4683_v5 = vadd.f32 %v4681_v0, %v4675_v13  ;;  %v5814_v37 = vld [vmem:[%s7355_s5 + $0x60] sm:$0xff]  }
 0x2eb   : > { %v4684_v28 = vadd.f32 %v4682_v57, %v4676_v58  ;;  %v4713_v27 = vmul.f32 %v9849_v50, %v4712_v35  ;;  %v4714_v61 = vmul.f32 %v9854_v33, %v4712_v35  ;;  %v4629_v18 = vadd.f32 %v4627_v9, %v4621_v10  ;;  %v10890_v57 = vld [vmem:[#allocation25_spill] sm:$0xff]  ;;  %v10893_v35 = vld [vmem:[#allocation8_spill] sm:$0xff]  ;;  %v10895_v58 = vld [vmem:[#allocation15_spill] sm:$0xff] }
 0x2ec   : > { %v4630_v30 = vadd.f32 %v4628_v63, %v4622_v26  ;;  %v4720_v14 = vrot.slane %v10888_v52, %v6312_v42  ;;  %v4728_v7 = vrot.slane %v10888_v52, %v6314_v43  ;;  %v4691_v1 = vadd.f32 %v4689_v12, %v4683_v5  ;;  %v10889_v63 = vld [vmem:[#allocation9_spill] sm:$0xff]  ;;  %v5815_v12 = vld [vmem:[%s7355_s5 + $0x68] sm:$0xff]   ;;  %v10896_v26 = vld [vmem:[#allocation16_spill] sm:$0xff] }
 0x2ed   : > { %v4692_v59 = vadd.f32 %v4690_v49, %v4684_v28  ;;  %v4736_v53 = vrot.slane %v10888_v52, %v6316_v44  ;;  %v4744_v51 = vrot.slane %v10888_v52, %v6318_v45  ;;  %v4631_v9 = vmul.f32 %v4629_v18, %v10008_v29  ;;  %v10894_v49 = vld [vmem:[#allocation14_spill] sm:$0xff] }
 0x2ee   : > { %v4632_v0 = vmul.f32 %v4630_v30, %v10889_v63  ;;  %v4721_v15 = vmul.f32 %v10890_v57, %v4720_v14  ;;  %v4722_v38 = vmul.f32 %v10891_v11, %v4720_v14  ;;  %v4699_v8 = vadd.f32 %v4697_v24, %v4691_v1 }
 0x2ef   : > { %v4700_v21 = vadd.f32 %v4698_v39, %v4692_v59  ;;  %v4729_v62 = vmul.f32 %v10892_v4, %v4728_v7  ;;  %v4730_v23 = vmul.f32 %v10893_v35, %v4728_v7  ;;  %4633 = vst [vmem:[%s7963_s15 + $0xa0] sm:$0xff] %v4631_v9  ;;  %v4737_v13 = vmul.f32 %v10894_v49, %v4736_v53 }
 0x2f0   : > { %4634 = vst [vmem:[%s7963_s15 + $0xa8] sm:$0xff] %v4632_v0  ;;  %v4738_v10 = vmul.f32 %v10895_v58, %v4736_v53  ;;  %v4745_v5 = vmul.f32 %v10896_v26, %v4744_v51  ;;  %v4746_v28 = vmul.f32 %v10881_v22, %v4744_v51  ;;  %v4707_v18 = vadd.f32 %v4705_v54, %v4699_v8  ;;  %v10899_v51 = vld [vmem:[#allocation19_spill] sm:$0xff] }
 0x2f1   : > { %v4708_v30 = vadd.f32 %v4706_v60, %v4700_v21  ;;  %v4752_v24 = vrot.slane %v10888_v52, %v6320_v46  ;;  %v4760_v39 = vrot.slane %v10888_v52, %v6322_v47  ;;  %v5759_v14 = vunpack.c.l.bf16 %v5814_v37  ;;  %v10900_v60 = vld [vmem:[#allocation6_spill] sm:$0xff]  ;;  %v10901_v21 = vld [vmem:[#allocation20_spill] sm:$0xff] }
 0x2f2   : > { %v10153_v7 = vunpack.c.h.bf16 %v5814_v37  ;;  %v10155_v1 = vunpack.c.l.bf16 %v5815_v12  ;;  %v10157_v59 = vunpack.c.h.bf16 %v5815_v12  ;;  %v4715_v53 = vadd.f32 %v4713_v27, %v4707_v18  ;;  %v10902_v27 = vld [vmem:[#allocation21_spill] sm:$0xff]  ;;  %v10903_v18 = vld [vmem:[#allocation22_spill] sm:$0xff] }
 0x2f3   : > { %v4716_v9 = vadd.f32 %v4714_v61, %v4708_v30  ;;  %v4753_v0 = vmul.f32 %v10882_v32, %v4752_v24  ;;  %v4754_v54 = vmul.f32 %v10899_v51, %v4752_v24  ;;  %v4761_v8 = vmul.f32 %v10900_v60, %v4760_v39  ;;  %v10905_v51 = vld [vmem:[#allocation24_spill] sm:$0xff] }
 0x2f4   : > { %10897 = vst [vmem:[#allocation10_spill] sm:$0xff] %v10155_v1  ;;  %10898 = vst [vmem:[#allocation7_spill] sm:$0xff] %v10157_v59  ;;  %v4762_v22 = vmul.f32 %v10901_v21, %v4760_v39  ;;  %v4776_v26 = vrot.slane %v5759_v14, %v6308_v40  ;;  %v4782_v52 = vrot.slane %v5759_v14, %v6310_v41  ;;  %v10904_v59 = vld [vmem:[#allocation23_spill] sm:$0xff] }
 0x2f5   : > { %v4723_v37 = vadd.f32 %v4721_v15, %v4715_v53  ;;  %v4724_v58 = vadd.f32 %v4722_v38, %v4716_v9  ;;  %v4790_v49 = vrot.slane %v5759_v14, %v6312_v42  ;;  %v4798_v12 = vrot.slane %v5759_v14, %v6314_v43 }
 0x2f6   : > { %v4777_v61 = vmul.f32 %v10902_v27, %v4776_v26  ;;  %v4778_v30 = vmul.f32 %v10903_v18, %v4776_v26  ;;  %v4783_v24 = vmul.f32 %v10904_v59, %v4782_v52  ;;  %v4784_v60 = vmul.f32 %v10905_v51, %v4782_v52 }
 0x2f7   : > { %v4731_v32 = vadd.f32 %v4729_v62, %v4723_v37  ;;  %v4732_v39 = vadd.f32 %v4730_v23, %v4724_v58  ;;  %v4791_v21 = vmul.f32 %v10887_v6, %v4790_v49  ;;  %v4792_v1 = vmul.f32 %v9767_v34, %v4790_v49 }
 0x2f8   : > { %v4785_v15 = vadd.f32 %v4783_v24, %v4777_v61  ;;  %v4786_v38 = vadd.f32 %v4784_v60, %v4778_v30  ;;  %v4799_v53 = vmul.f32 %v9775_v19, %v4798_v12  ;;  %v4800_v9 = vmul.f32 %v9783_v2, %v4798_v12 }
 0x2f9   : > { %v4739_v35 = vadd.f32 %v4737_v13, %v4731_v32  ;;  %v4740_v27 = vadd.f32 %v4738_v10, %v4732_v39  ;;  %v4806_v26 = vrot.slane %v5759_v14, %v6316_v44  ;;  %v4814_v59 = vrot.slane %v5759_v14, %v6318_v45 }
 0x2fa   : > { %v4793_v18 = vadd.f32 %v4791_v21, %v4785_v15  ;;  %v4794_v52 = vadd.f32 %v4792_v1, %v4786_v38  ;;  %v4822_v62 = vrot.slane %v5759_v14, %v6320_v46  ;;  %v4830_v23 = vrot.slane %v5759_v14, %v6322_v47 }
 0x2fb   : > { %v4747_v58 = vadd.f32 %v4745_v5, %v4739_v35  ;;  %v4748_v49 = vadd.f32 %v4746_v28, %v4740_v27  ;;  %v4807_v60 = vmul.f32 %v9791_v48, %v4806_v26  ;;  %v4808_v37 = vmul.f32 %v9799_v56, %v4806_v26 }
 0x2fc   : > { %v4801_v61 = vadd.f32 %v4799_v53, %v4793_v18  ;;  %v4802_v12 = vadd.f32 %v4800_v9, %v4794_v52  ;;  %v4815_v32 = vmul.f32 %v9803_v17, %v4814_v59  ;;  %v4816_v13 = vmul.f32 %v9807_v25, %v4814_v59 }
 0x2fd   : > { %v4755_v10 = vadd.f32 %v4753_v0, %v4747_v58  ;;  %v4756_v30 = vadd.f32 %v4754_v54, %v4748_v49  ;;  %v4823_v1 = vmul.f32 %v9813_v3, %v4822_v62  ;;  %v4824_v21 = vmul.f32 %v9819_v55, %v4822_v62 }
 0x2fe   : > { %v4809_v24 = vadd.f32 %v4807_v60, %v4801_v61  ;;  %v4810_v14 = vadd.f32 %v4808_v37, %v4802_v12  ;;  %v4831_v35 = vmul.f32 %v9825_v16, %v4830_v23  ;;  %v4832_v5 = vmul.f32 %v9831_v31, %v4830_v23  ;;  %v10906_v60 = vld [vmem:[#allocation8_spill] sm:$0xff] }
 0x2ff   : > { %v4763_v28 = vadd.f32 %v4761_v8, %v4755_v10  ;;  %v4764_v27 = vadd.f32 %v4762_v22, %v4756_v30  ;;  %v4838_v18 = vrot.slane %v10153_v7, %v6308_v40  ;;  %v4846_v59 = vrot.slane %v10153_v7, %v6310_v41 }
 0x300   : > { %v4817_v0 = vadd.f32 %v4815_v32, %v4809_v24  ;;  %v4818_v54 = vadd.f32 %v4816_v13, %v4810_v14  ;;  %v4854_v39 = vrot.slane %v10153_v7, %v6312_v42  ;;  %v4862_v15 = vrot.slane %v10153_v7, %v6314_v43 }
 0x301   : > { %v4765_v38 = vmul.f32 %v4763_v28, %v10008_v29  ;;  %v4766_v8 = vmul.f32 %v4764_v27, %v10889_v63  ;;  %v4839_v22 = vmul.f32 %v9837_v36, %v4838_v18  ;;  %v4840_v53 = vmul.f32 %v9844_v20, %v4838_v18  ;;  %v10909_v27 = vld [vmem:[#allocation15_spill] sm:$0xff] }
 0x302   : > { %v4825_v9 = vadd.f32 %v4823_v1, %v4817_v0  ;;  %v4826_v26 = vadd.f32 %v4824_v21, %v4818_v54  ;;  %v4847_v52 = vmul.f32 %v9849_v50, %v4846_v59  ;;  %v4848_v62 = vmul.f32 %v9854_v33, %v4846_v59  ;;  %v10907_v1 = vld [vmem:[#allocation10_spill] sm:$0xff]  ;;  %v10910_v59 = vld [vmem:[#allocation16_spill] sm:$0xff]  ;;  %v10911_v54 = vld [vmem:[#allocation17_spill] sm:$0xff] }
 0x303   : > { %4767 = vst [vmem:[%s7963_s15 + $0xb0] sm:$0xff] %v4765_v38  ;;  %4768 = vst [vmem:[%s7963_s15 + $0xb8] sm:$0xff] %v4766_v8  ;;  %v4855_v23 = vmul.f32 %v10890_v57, %v4854_v39  ;;  %v4856_v58 = vmul.f32 %v10891_v11, %v4854_v39  ;;  %v4863_v49 = vmul.f32 %v10892_v4, %v4862_v15  ;;  %v10913_v8 = vld [vmem:[#allocation19_spill] sm:$0xff]  ;;  %v10915_v11 = vld [vmem:[#allocation20_spill] sm:$0xff] }
 0x304   : > { %v4864_v37 = vmul.f32 %v10906_v60, %v4862_v15  ;;  %v4833_v61 = vadd.f32 %v4831_v35, %v4825_v9  ;;  %v4834_v12 = vadd.f32 %v4832_v5, %v4826_v26  ;;  %v4870_v32 = vrot.slane %v10153_v7, %v6316_v44  ;;  %v10908_v5 = vld [vmem:[#allocation14_spill] sm:$0xff] }
 0x305   : > { %v4878_v13 = vrot.slane %v10153_v7, %v6318_v45  ;;  %v4886_v10 = vrot.slane %v10153_v7, %v6320_v46  ;;  %v4894_v30 = vrot.slane %v10153_v7, %v6322_v47  ;;  %v4910_v21 = vrot.slane %v10907_v1, %v6308_v40  ;;  %v10912_v15 = vld [vmem:[#allocation18_spill] sm:$0xff] }
 0x306   : > { %v4916_v24 = vrot.slane %v10907_v1, %v6310_v41  ;;  %v4841_v14 = vadd.f32 %v4839_v22, %v4833_v61  ;;  %v4842_v35 = vadd.f32 %v4840_v53, %v4834_v12  ;;  %v4871_v28 = vmul.f32 %v10908_v5, %v4870_v32  ;;  %v10914_v60 = vld [vmem:[#allocation6_spill] sm:$0xff]  ;;  %v10916_v22 = vld [vmem:[#allocation21_spill] sm:$0xff]  ;;  %v10918_v5 = vld [vmem:[#allocation23_spill] sm:$0xff] }
 0x307   : > { %v4872_v18 = vmul.f32 %v10909_v27, %v4870_v32  ;;  %v4879_v0 = vmul.f32 %v10910_v59, %v4878_v13  ;;  %v4880_v39 = vmul.f32 %v10911_v54, %v4878_v13  ;;  %v4887_v38 = vmul.f32 %v10912_v15, %v4886_v10  ;;  %v10917_v61 = vld [vmem:[#allocation22_spill] sm:$0xff] }
 0x308   : > { %v4888_v7 = vmul.f32 %v10913_v8, %v4886_v10  ;;  %v4849_v9 = vadd.f32 %v4847_v52, %v4841_v14  ;;  %v4850_v26 = vadd.f32 %v4848_v62, %v4842_v35  ;;  %v4895_v4 = vmul.f32 %v10914_v60, %v4894_v30 }
 0x309   : > { %v4896_v57 = vmul.f32 %v10915_v11, %v4894_v30  ;;  %v4911_v53 = vmul.f32 %v10916_v22, %v4910_v21  ;;  %v4912_v12 = vmul.f32 %v10917_v61, %v4910_v21  ;;  %v4917_v32 = vmul.f32 %v10918_v5, %v4916_v24 }
 0x30a   : > { %v4918_v59 = vmul.f32 %v10905_v51, %v4916_v24  ;;  %v4857_v27 = vadd.f32 %v4855_v23, %v4849_v9  ;;  %v4858_v13 = vadd.f32 %v4856_v58, %v4850_v26  ;;  %v4924_v15 = vrot.slane %v10907_v1, %v6312_v42 }
 0x30b   : > { %v4932_v52 = vrot.slane %v10907_v1, %v6314_v43  ;;  %v4919_v62 = vadd.f32 %v4917_v32, %v4911_v53  ;;  %v4940_v30 = vrot.slane %v10907_v1, %v6316_v44  ;;  %v4948_v21 = vrot.slane %v10907_v1, %v6318_v45 }
 0x30c   : > { %v4920_v10 = vadd.f32 %v4918_v59, %v4912_v12  ;;  %v4865_v14 = vadd.f32 %v4863_v49, %v4857_v27  ;;  %v4866_v35 = vadd.f32 %v4864_v37, %v4858_v13  ;;  %v4925_v24 = vmul.f32 %v10887_v6, %v4924_v15 }
 0x30d   : > { %v4926_v23 = vmul.f32 %v9767_v34, %v4924_v15  ;;  %v4933_v58 = vmul.f32 %v9775_v19, %v4932_v52  ;;  %v4934_v9 = vmul.f32 %v9783_v2, %v4932_v52  ;;  %v4941_v26 = vmul.f32 %v9791_v48, %v4940_v30 }
 0x30e   : > { %v4942_v59 = vmul.f32 %v9799_v56, %v4940_v30  ;;  %v4873_v53 = vadd.f32 %v4871_v28, %v4865_v14  ;;  %v4874_v12 = vadd.f32 %v4872_v18, %v4866_v35  ;;  %v4927_v32 = vadd.f32 %v4925_v24, %v4919_v62  ;;  %v10919_v24 = vld [vmem:[#allocation7_spill] sm:$0xff] }
 0x30f   : > { %v4928_v11 = vadd.f32 %v4926_v23, %v4920_v10  ;;  %v4949_v51 = vmul.f32 %v9803_v17, %v4948_v21  ;;  %v4950_v49 = vmul.f32 %v9807_v25, %v4948_v21  ;;  %v4956_v37 = vrot.slane %v10907_v1, %v6320_v46 }
 0x310   : > { %v4964_v27 = vrot.slane %v10907_v1, %v6322_v47  ;;  %v4881_v15 = vadd.f32 %v4879_v0, %v4873_v53  ;;  %v4882_v13 = vadd.f32 %v4880_v39, %v4874_v12  ;;  %v4935_v52 = vadd.f32 %v4933_v58, %v4927_v32 }
 0x311   : > { %v4936_v48 = vadd.f32 %v4934_v9, %v4928_v11  ;;  %v4957_v30 = vmul.f32 %v9813_v3, %v4956_v37  ;;  %v4958_v28 = vmul.f32 %v9819_v55, %v4956_v37  ;;  %v4972_v1 = vrot.slane %v10919_v24, %v6308_v40  ;;  %v5816_v37 = vld [vmem:[%s7355_s5 + $0x70] sm:$0xff]  }
 0x312   : > { %v4965_v18 = vmul.f32 %v9825_v16, %v4964_v27  ;;  %v4966_v62 = vmul.f32 %v9831_v31, %v4964_v27  ;;  %v4889_v10 = vadd.f32 %v4887_v38, %v4881_v15  ;;  %v4890_v21 = vadd.f32 %v4888_v7, %v4882_v13  ;;  %v10920_v27 = vld [vmem:[#allocation25_spill] sm:$0xff]  ;;  %v10921_v15 = vld [vmem:[#allocation11_spill] sm:$0xff] }
 0x313   : > { %v4943_v14 = vadd.f32 %v4941_v26, %v4935_v52  ;;  %v4944_v35 = vadd.f32 %v4942_v59, %v4936_v48  ;;  %v4980_v0 = vrot.slane %v10919_v24, %v6310_v41  ;;  %v4988_v11 = vrot.slane %v10919_v24, %v6312_v42 }
 0x314   : > { %v4996_v39 = vrot.slane %v10919_v24, %v6314_v43  ;;  %v4897_v23 = vadd.f32 %v4895_v4, %v4889_v10  ;;  %v4898_v58 = vadd.f32 %v4896_v57, %v4890_v21  ;;  %v4973_v48 = vmul.f32 %v9837_v36, %v4972_v1 }
 0x315   : > { %v4951_v38 = vadd.f32 %v4949_v51, %v4943_v14  ;;  %v4952_v7 = vadd.f32 %v4950_v49, %v4944_v35  ;;  %v4974_v9 = vmul.f32 %v9844_v20, %v4972_v1  ;;  %v4981_v26 = vmul.f32 %v9849_v50, %v4980_v0  ;;  %v10922_v49 = vld [vmem:[#allocation13_spill] sm:$0xff] }
 0x316   : > { %v4899_v59 = vmul.f32 %v4897_v23, %v10008_v29  ;;  %v4900_v53 = vmul.f32 %v4898_v58, %v10889_v63  ;;  %v4982_v4 = vmul.f32 %v9854_v33, %v4980_v0  ;;  %v4989_v57 = vmul.f32 %v10920_v27, %v4988_v11  ;;  %v10924_v58 = vld [vmem:[#allocation14_spill] sm:$0xff] }
 0x317   : > { %v4959_v12 = vadd.f32 %v4957_v30, %v4951_v38  ;;  %v4960_v32 = vadd.f32 %v4958_v28, %v4952_v7  ;;  %v4990_v51 = vmul.f32 %v10921_v15, %v4988_v11  ;;  %v4997_v13 = vmul.f32 %v10922_v49, %v4996_v39  ;;  %v10923_v28 = vld [vmem:[#allocation8_spill] sm:$0xff]  ;;  %v10925_v38 = vld [vmem:[#allocation15_spill] sm:$0xff] }
 0x318   : > { %4901 = vst [vmem:[%s7963_s15 + $0xc0] sm:$0xff] %v4899_v59  ;;  %4902 = vst [vmem:[%s7963_s15 + $0xc8] sm:$0xff] %v4900_v53  ;;  %v5004_v21 = vrot.slane %v10919_v24, %v6316_v44  ;;  %v5012_v30 = vrot.slane %v10919_v24, %v6318_v45  ;;  %v4998_v14 = vmul.f32 %v10923_v28, %v4996_v39  ;;  %v5767_v0 = vunpack.c.l.bf16 %v5816_v37  ;;  %v10926_v59 = vld [vmem:[#allocation16_spill] sm:$0xff]  ;;  %v10927_v39 = vld [vmem:[#allocation18_spill] sm:$0xff] }
 0x319   : > { %v4967_v52 = vadd.f32 %v4965_v18, %v4959_v12  ;;  %v4968_v10 = vadd.f32 %v4966_v62, %v4960_v32  ;;  %v5020_v35 = vrot.slane %v10919_v24, %v6320_v46  ;;  %v5028_v1 = vrot.slane %v10919_v24, %v6322_v47 }
 0x31a   : > { %v5005_v18 = vmul.f32 %v10924_v58, %v5004_v21  ;;  %v10285_v62 = vunpack.c.h.bf16 %v5816_v37  ;;  %v5006_v7 = vmul.f32 %v10925_v38, %v5004_v21  ;;  %v5013_v53 = vmul.f32 %v10926_v59, %v5012_v30  ;;  %v10929_v58 = vld [vmem:[#allocation20_spill] sm:$0xff] }
 0x31b   : > { %v4975_v11 = vadd.f32 %v4973_v48, %v4967_v52  ;;  %v4976_v23 = vadd.f32 %v4974_v9, %v4968_v10  ;;  %v5014_v12 = vmul.f32 %v10911_v54, %v5012_v30  ;;  %v5021_v32 = vmul.f32 %v10927_v39, %v5020_v35 }
 0x31c   : > { %v5022_v15 = vmul.f32 %v10913_v8, %v5020_v35  ;;  %v5029_v24 = vmul.f32 %v10914_v60, %v5028_v1  ;;  %v5044_v48 = vrot.slane %v5767_v0, %v6308_v40  ;;  %v5050_v9 = vrot.slane %v5767_v0, %v6310_v41 }
 0x31d   : > { %v4983_v28 = vadd.f32 %v4981_v26, %v4975_v11  ;;  %v4984_v49 = vadd.f32 %v4982_v4, %v4976_v23  ;;  %v5058_v37 = vrot.slane %v5767_v0, %v6312_v42  ;;  %v5066_v52 = vrot.slane %v5767_v0, %v6314_v43  ;;  %v10928_v11 = vld [vmem:[#allocation24_spill] sm:$0xff] }
 0x31e   : > { %v5074_v30 = vrot.slane %v5767_v0, %v6316_v44  ;;  %v5082_v39 = vrot.slane %v5767_v0, %v6318_v45  ;;  %v5045_v26 = vmul.f32 %v10916_v22, %v5044_v48  ;;  %v5046_v4 = vmul.f32 %v10917_v61, %v5044_v48  ;;  %v10930_v61 = vld [vmem:[#allocation12_spill] sm:$0xff] }
 0x31f   : > { %v4991_v10 = vadd.f32 %v4989_v57, %v4983_v28  ;;  %v4992_v21 = vadd.f32 %v4990_v51, %v4984_v49  ;;  %v5051_v35 = vmul.f32 %v10918_v5, %v5050_v9  ;;  %v5052_v23 = vmul.f32 %v10928_v11, %v5050_v9 }
 0x320   : > { %v5059_v54 = vmul.f32 %v10887_v6, %v5058_v37  ;;  %v5060_v59 = vmul.f32 %v9767_v34, %v5058_v37  ;;  %v5067_v49 = vmul.f32 %v9775_v19, %v5066_v52  ;;  %v5068_v28 = vmul.f32 %v9783_v2, %v5066_v52 }
 0x321   : > { %v4999_v60 = vadd.f32 %v4997_v13, %v4991_v10  ;;  %v5000_v8 = vadd.f32 %v4998_v14, %v4992_v21  ;;  %v5053_v57 = vadd.f32 %v5051_v35, %v5045_v26  ;;  %v5054_v51 = vadd.f32 %v5052_v23, %v5046_v4 }
 0x322   : > { %v5030_v48 = vmul.f32 %v10929_v58, %v5028_v1  ;;  %v5075_v5 = vmul.f32 %v10930_v61, %v5074_v30  ;;  %v5076_v13 = vmul.f32 %v9799_v56, %v5074_v30  ;;  %v5083_v14 = vmul.f32 %v9803_v17, %v5082_v39 }
 0x323   : > { %v5007_v38 = vadd.f32 %v5005_v18, %v4999_v60  ;;  %v5008_v22 = vadd.f32 %v5006_v7, %v5000_v8  ;;  %v5061_v27 = vadd.f32 %v5059_v54, %v5053_v57  ;;  %v5062_v9 = vadd.f32 %v5060_v59, %v5054_v51 }
 0x324   : > { %v5090_v21 = vrot.slane %v5767_v0, %v6320_v46  ;;  %v5098_v26 = vrot.slane %v5767_v0, %v6322_v47  ;;  %v5084_v60 = vmul.f32 %v9807_v25, %v5082_v39  ;;  %v5106_v8 = vrot.slane %v10285_v62, %v6308_v40 }
 0x325   : > { %v5015_v10 = vadd.f32 %v5013_v53, %v5007_v38  ;;  %v5016_v37 = vadd.f32 %v5014_v12, %v5008_v22  ;;  %v5069_v4 = vadd.f32 %v5067_v49, %v5061_v27  ;;  %v5070_v52 = vadd.f32 %v5068_v28, %v5062_v9 }
 0x326   : > { %v5091_v59 = vmul.f32 %v9813_v3, %v5090_v21  ;;  %v5092_v38 = vmul.f32 %v9819_v55, %v5090_v21  ;;  %v5099_v27 = vmul.f32 %v9825_v16, %v5098_v26  ;;  %v5114_v0 = vrot.slane %v10285_v62, %v6310_v41 }
 0x327   : > { %v5023_v1 = vadd.f32 %v5021_v32, %v5015_v10  ;;  %v5024_v54 = vadd.f32 %v5022_v15, %v5016_v37  ;;  %v5077_v18 = vadd.f32 %v5075_v5, %v5069_v4  ;;  %v5078_v7 = vadd.f32 %v5076_v13, %v5070_v52  ;;  %v5817_v13 = vld [vmem:[%s7355_s5 + $0x78] sm:$0xff]  }
 0x328   : > { %v5100_v15 = vmul.f32 %v9831_v31, %v5098_v26  ;;  %v5107_v5 = vmul.f32 %v9837_v36, %v5106_v8  ;;  %v5130_v35 = vrot.slane %v10285_v62, %v6314_v43  ;;  %v5108_v51 = vmul.f32 %v9844_v20, %v5106_v8  ;;  %v10931_v37 = vld [vmem:[#allocation25_spill] sm:$0xff]  ;;  %v10932_v26 = vld [vmem:[#allocation11_spill] sm:$0xff]  ;;  %v10934_v8 = vld [vmem:[#allocation8_spill] sm:$0xff] }
 0x329   : > { %v5031_v22 = vadd.f32 %v5029_v24, %v5023_v1  ;;  %v5032_v53 = vadd.f32 %v5030_v48, %v5024_v54  ;;  %v5085_v12 = vadd.f32 %v5083_v14, %v5077_v18  ;;  %v5086_v39 = vadd.f32 %v5084_v60, %v5078_v7  ;;  %v10933_v52 = vld [vmem:[#allocation13_spill] sm:$0xff]  ;;  %v10935_v54 = vld [vmem:[#allocation14_spill] sm:$0xff] }
 0x32a   : > { %v5122_v24 = vrot.slane %v10285_v62, %v6312_v42  ;;  %v5138_v49 = vrot.slane %v10285_v62, %v6316_v44  ;;  %v5115_v28 = vmul.f32 %v9849_v50, %v5114_v0  ;;  %v5116_v48 = vmul.f32 %v9854_v33, %v5114_v0 }
 0x32b   : > { %v5033_v32 = vmul.f32 %v5031_v22, %v10008_v29  ;;  %v5034_v30 = vmul.f32 %v5032_v53, %v10889_v63  ;;  %v5093_v23 = vadd.f32 %v5091_v59, %v5085_v12  ;;  %v5094_v57 = vadd.f32 %v5092_v38, %v5086_v39  ;;  %v10936_v22 = vld [vmem:[#allocation15_spill] sm:$0xff]  ;;  %v10938_v39 = vld [vmem:[#allocation17_spill] sm:$0xff] }
 0x32c   : > { %v5146_v9 = vrot.slane %v10285_v62, %v6318_v45  ;;  %v5123_v21 = vmul.f32 %v10931_v37, %v5122_v24  ;;  %v5124_v4 = vmul.f32 %v10932_v26, %v5122_v24  ;;  %v5131_v60 = vmul.f32 %v10933_v52, %v5130_v35  ;;  %v10943_v52 = vld [vmem:[#allocation19_spill] sm:$0xff] }
 0x32d   : > { %5035 = vst [vmem:[%s7963_s15 + $0xd0] sm:$0xff] %v5033_v32  ;;  %5036 = vst [vmem:[%s7963_s15 + $0xd8] sm:$0xff] %v5034_v30  ;;  %v5101_v14 = vadd.f32 %v5099_v27, %v5093_v23  ;;  %v5102_v10 = vadd.f32 %v5100_v15, %v5094_v57  ;;  %v5132_v1 = vmul.f32 %v10934_v8, %v5130_v35  ;;  %v5771_v0 = vunpack.c.l.bf16 %v5817_v13  ;;  %v10937_v27 = vld [vmem:[#allocation16_spill] sm:$0xff] }
 0x32e   : > { %v5139_v18 = vmul.f32 %v10935_v54, %v5138_v49  ;;  %v5154_v7 = vrot.slane %v10285_v62, %v6320_v46  ;;  %v5140_v53 = vmul.f32 %v10936_v22, %v5138_v49  ;;  %v5147_v12 = vmul.f32 %v10937_v27, %v5146_v9  ;;  %v10940_v27 = vld [vmem:[#allocation21_spill] sm:$0xff] }
 0x32f   : > { %v5109_v59 = vadd.f32 %v5107_v5, %v5101_v14  ;;  %v5110_v38 = vadd.f32 %v5108_v51, %v5102_v10  ;;  %v5148_v15 = vmul.f32 %v10938_v39, %v5146_v9  ;;  %v5162_v32 = vrot.slane %v10285_v62, %v6322_v47  ;;  %v10939_v5 = vld [vmem:[#allocation18_spill] sm:$0xff] }
 0x330   : > { %v10351_v30 = vunpack.c.h.bf16 %v5817_v13  ;;  %v5178_v23 = vrot.slane %v5771_v0, %v6308_v40  ;;  %v5184_v57 = vrot.slane %v5771_v0, %v6310_v41  ;;  %v5155_v51 = vmul.f32 %v10939_v5, %v5154_v7  ;;  %v10941_v13 = vld [vmem:[#allocation22_spill] sm:$0xff] }
 0x331   : > { %v5117_v24 = vadd.f32 %v5115_v28, %v5109_v59  ;;  %v5118_v35 = vadd.f32 %v5116_v48, %v5110_v38  ;;  %v5192_v49 = vrot.slane %v5771_v0, %v6312_v42  ;;  %v5200_v14 = vrot.slane %v5771_v0, %v6314_v43  ;;  %v10942_v28 = vld [vmem:[#allocation23_spill] sm:$0xff] }
 0x332   : > { %v5208_v10 = vrot.slane %v5771_v0, %v6316_v44  ;;  %v5179_v62 = vmul.f32 %v10940_v27, %v5178_v23  ;;  %v5180_v22 = vmul.f32 %v10941_v13, %v5178_v23  ;;  %v5185_v48 = vmul.f32 %v10942_v28, %v5184_v57  ;;  %v10944_v13 = vld [vmem:[#allocation6_spill] sm:$0xff] }
 0x333   : > { %v5125_v9 = vadd.f32 %v5123_v21, %v5117_v24  ;;  %v5126_v39 = vadd.f32 %v5124_v4, %v5118_v35  ;;  %v5186_v59 = vmul.f32 %v10928_v11, %v5184_v57  ;;  %v5193_v38 = vmul.f32 %v10887_v6, %v5192_v49 }
 0x334   : > { %v5194_v5 = vmul.f32 %v9767_v34, %v5192_v49  ;;  %v5156_v26 = vmul.f32 %v10943_v52, %v5154_v7  ;;  %v5216_v37 = vrot.slane %v5771_v0, %v6318_v45  ;;  %v5187_v21 = vadd.f32 %v5185_v48, %v5179_v62 }
 0x335   : > { %v5133_v54 = vadd.f32 %v5131_v60, %v5125_v9  ;;  %v5134_v8 = vadd.f32 %v5132_v1, %v5126_v39  ;;  %v5188_v4 = vadd.f32 %v5186_v59, %v5180_v22  ;;  %v5201_v27 = vmul.f32 %v9775_v19, %v5200_v14 }
 0x336   : > { %v5202_v24 = vmul.f32 %v9783_v2, %v5200_v14  ;;  %v5163_v11 = vmul.f32 %v10944_v13, %v5162_v32  ;;  %v5209_v6 = vmul.f32 %v10930_v61, %v5208_v10  ;;  %v5195_v57 = vadd.f32 %v5193_v38, %v5187_v21 }
 0x337   : > { %v5141_v35 = vadd.f32 %v5139_v18, %v5133_v54  ;;  %v5142_v23 = vadd.f32 %v5140_v53, %v5134_v8  ;;  %v5196_v34 = vadd.f32 %v5194_v5, %v5188_v4  ;;  %v5210_v60 = vmul.f32 %v9799_v56, %v5208_v10  ;;  %v10946_v4 = vld [vmem:[#allocation11_spill] sm:$0xff] }
 0x338   : > { %v5224_v1 = vrot.slane %v5771_v0, %v6320_v46  ;;  %v5164_v22 = vmul.f32 %v10929_v58, %v5162_v32  ;;  %v5217_v19 = vmul.f32 %v9803_v17, %v5216_v37  ;;  %v5203_v49 = vadd.f32 %v5201_v27, %v5195_v57 }
 0x339   : > { %v5149_v7 = vadd.f32 %v5147_v12, %v5141_v35  ;;  %v5150_v39 = vadd.f32 %v5148_v15, %v5142_v23  ;;  %v5204_v2 = vadd.f32 %v5202_v24, %v5196_v34  ;;  %v5218_v8 = vmul.f32 %v9807_v25, %v5216_v37  ;;  %v10947_v35 = vld [vmem:[#allocation13_spill] sm:$0xff] }
 0x33a   : > { %v5232_v54 = vrot.slane %v5771_v0, %v6322_v47  ;;  %v5240_v53 = vrot.slane %v10351_v30, %v6308_v40  ;;  %v5211_v56 = vadd.f32 %v5209_v6, %v5203_v49  ;;  %v5225_v12 = vmul.f32 %v9813_v3, %v5224_v1  ;;  %v10949_v6 = vld [vmem:[#allocation14_spill] sm:$0xff] }
 0x33b   : > { %v5157_v18 = vadd.f32 %v5155_v51, %v5149_v7  ;;  %v5158_v61 = vadd.f32 %v5156_v26, %v5150_v39  ;;  %v5212_v5 = vadd.f32 %v5210_v60, %v5204_v2  ;;  %v5226_v15 = vmul.f32 %v9819_v55, %v5224_v1  ;;  %v10951_v7 = vld [vmem:[#allocation16_spill] sm:$0xff] }
 0x33c   : > { %v5248_v25 = vrot.slane %v10351_v30, %v6310_v41  ;;  %v5219_v37 = vadd.f32 %v5217_v19, %v5211_v56  ;;  %v5233_v26 = vmul.f32 %v9825_v16, %v5232_v54  ;;  %v5234_v51 = vmul.f32 %v9831_v31, %v5232_v54 }
 0x33d   : > { %v5165_v17 = vadd.f32 %v5163_v11, %v5157_v18  ;;  %v5166_v32 = vadd.f32 %v5164_v22, %v5158_v61  ;;  %v5220_v0 = vadd.f32 %v5218_v8, %v5212_v5  ;;  %v5241_v3 = vmul.f32 %v9837_v36, %v5240_v53  ;;  %v10953_v18 = vld [vmem:[#allocation18_spill] sm:$0xff] }
 0x33e   : > { %v5227_v10 = vadd.f32 %v5225_v12, %v5219_v37  ;;  %v5242_v9 = vmul.f32 %v9844_v20, %v5240_v53  ;;  %v5256_v62 = vrot.slane %v10351_v30, %v6312_v42  ;;  %v5249_v41 = vmul.f32 %v9849_v50, %v5248_v25  ;;  %v10945_v20 = vld [vmem:[#allocation25_spill] sm:$0xff] }
 0x33f   : > { %v5167_v40 = vmul.f32 %v5165_v17, %v10008_v29  ;;  %v5168_v14 = vmul.f32 %v5166_v32, %v10889_v63  ;;  %v5228_v55 = vadd.f32 %v5226_v15, %v5220_v0  ;;  %v5250_v31 = vmul.f32 %v9854_v33, %v5248_v25  ;;  %v10948_v33 = vld [vmem:[#allocation8_spill] sm:$0xff] }
 0x340   : > { %v5235_v16 = vadd.f32 %v5233_v26, %v5227_v10  ;;  %v5264_v48 = vrot.slane %v10351_v30, %v6314_v43  ;;  %v5272_v36 = vrot.slane %v10351_v30, %v6316_v44  ;;  %v5257_v21 = vmul.f32 %v10945_v20, %v5256_v62  ;;  %v10950_v44 = vld [vmem:[#allocation15_spill] sm:$0xff]  ;;  %v5415_v0 = vld [vmem:[%s7963_s15 + $0x30] sm:$0xff] (%p6063_p5)  ;;  %v5417_v26 = vld [vmem:[%s7963_s15 + $0x38] sm:$0xff] (%p6063_p5) }
 0x341   : > { %5169 = vst [vmem:[%s7963_s15 + $0xe0] sm:$0xff] %v5167_v40  ;;  %5170 = vst [vmem:[%s7963_s15 + $0xe8] sm:$0xff] %v5168_v14  ;;  %v5236_v28 = vadd.f32 %v5234_v51, %v5228_v55  ;;  %v5258_v42 = vmul.f32 %v10946_v4, %v5256_v62  ;;  %v5280_v27 = vrot.slane %v10351_v30, %v6318_v45  ;;  %v10952_v45 = vld [vmem:[#allocation17_spill] sm:$0xff]  ;;  %v5419_v51 = vld [vmem:[%s7963_s15 + $0x40] sm:$0xff] (%p6063_p5) }
 0x342   : > { %v5243_v59 = vadd.f32 %v5241_v3, %v5235_v16  ;;  %v5265_v23 = vmul.f32 %v10947_v35, %v5264_v48  ;;  %v5266_v11 = vmul.f32 %v10948_v33, %v5264_v48  ;;  %v5273_v43 = vmul.f32 %v10949_v6, %v5272_v36  ;;  %5416 = vst [vmem:[%s10431_s24 + $0x60] sm:$0xff] (%p6063_p5), %v5415_v0  ;;  %v5421_v40 = vld [vmem:[%s7963_s15 + $0x48] sm:$0xff] (%p6063_p5)  ;;  %v5423_v14 = vld [vmem:[%s7963_s15 + $0x50] sm:$0xff] (%p6063_p5)  ;;  %v5425_v3 = vld [vmem:[%s7963_s15 + $0x58] sm:$0xff] (%p6063_p5) }
 0x343   : > { %v5244_v38 = vadd.f32 %v5242_v9, %v5236_v28  ;;  %v5274_v60 = vmul.f32 %v10950_v44, %v5272_v36  ;;  %v5288_v1 = vrot.slane %v10351_v30, %v6320_v46  ;;  %v5281_v39 = vmul.f32 %v10951_v7, %v5280_v27  ;;  %5418 = vst [vmem:[%s10431_s24 + $0x70] sm:$0xff] (%p6063_p5), %v5417_v26  ;;  %v5427_v10 = vld [vmem:[%s7963_s15 + $0x60] sm:$0xff] (%p6063_p5)  ;;  %v5429_v55 = vld [vmem:[%s7963_s15 + $0x68] sm:$0xff] (%p6063_p5)  ;;  %v5431_v9 = vld [vmem:[%s7963_s15 + $0x70] sm:$0xff] (%p6063_p5) }
 0x344   : > { %v5251_v50 = vadd.f32 %v5249_v41, %v5243_v59  ;;  %v5282_v49 = vmul.f32 %v10952_v45, %v5280_v27  ;;  %v5296_v2 = vrot.slane %v10351_v30, %v6322_v47  ;;  %v5411_v30 = vld [vmem:[%s7963_s15 + $0x20] sm:$0xff] (%p6063_p5)  ;;  %5420 = vst [vmem:[%s10431_s24 + $0x80] sm:$0xff] (%p6063_p5), %v5419_v51  ;;  %5422 = vst [vmem:[%s10431_s24 + $0x90] sm:$0xff] (%p6063_p5), %v5421_v40  ;;  %v5433_v62 = vld [vmem:[%s7963_s15 + $0x78] sm:$0xff] (%p6063_p5) }
 0x345   : > { %v5252_v24 = vadd.f32 %v5250_v31, %v5244_v38  ;;  %v5289_v61 = vmul.f32 %v10953_v18, %v5288_v1  ;;  %v5290_v53 = vmul.f32 %v10943_v52, %v5288_v1  ;;  %v5409_v52 = vld [vmem:[%s7963_s15 + $0x18] sm:$0xff] (%p6063_p5)  ;;  %5412 = vst [vmem:[%s10431_s24 + $0x40] sm:$0xff] (%p6063_p5), %v5411_v30  ;;  %5424 = vst [vmem:[%s10431_s24 + $0xa0] sm:$0xff] (%p6063_p5), %v5423_v14  ;;  %v5435_v41 = vld [vmem:[%s7963_s15 + $0x80] sm:$0xff] (%p6063_p5) }
 0x346   : > { %v5259_v57 = vadd.f32 %v5257_v21, %v5251_v50  ;;  %v5297_v46 = vmul.f32 %v10944_v13, %v5296_v2  ;;  %v5298_v12 = vmul.f32 %v10929_v58, %v5296_v2  ;;  %v5405_v58 = vld [vmem:[%s7963_s15 + $0x8] sm:$0xff] (%p6063_p5)  ;;  %5410 = vst [vmem:[%s10431_s24 + $0x30] sm:$0xff] (%p6063_p5), %v5409_v52  ;;  %5426 = vst [vmem:[%s10431_s24 + $0xb0] sm:$0xff] (%p6063_p5), %v5425_v3  ;;  %v5439_v28 = vld [vmem:[%s7963_s15 + $0x90] sm:$0xff] (%p6063_p5) }
 0x347   : > { %v5260_v34 = vadd.f32 %v5258_v42, %v5252_v24  ;;  %v5413_v13 = vld [vmem:[%s7963_s15 + $0x28] sm:$0xff] (%p6063_p5)  ;;  %5406 = vst [vmem:[%s10431_s24 + $0x10] sm:$0xff] (%p6063_p5), %v5405_v58  ;;  %5428 = vst [vmem:[%s10431_s24 + $0xc0] sm:$0xff] (%p6063_p5), %v5427_v10  ;;  %v5441_v31 = vld [vmem:[%s7963_s15 + $0x98] sm:$0xff] (%p6063_p5) }
 0x348   : > { %v5267_v22 = vadd.f32 %v5265_v23, %v5259_v57  ;;  %5414 = vst [vmem:[%s10431_s24 + $0x50] sm:$0xff] (%p6063_p5), %v5413_v13  ;;  %5430 = vst [vmem:[%s10431_s24 + $0xd0] sm:$0xff] (%p6063_p5), %v5429_v55  ;;  %v5437_v16 = vld [vmem:[%s7963_s15 + $0x88] sm:$0xff] (%p6063_p5)  ;;  %v5443_v48 = vld [vmem:[%s7963_s15 + $0xa0] sm:$0xff] (%p6063_p5) }
 0x349   : > { %v5268_v19 = vadd.f32 %v5266_v11, %v5260_v34  ;;  %5432 = vst [vmem:[%s10431_s24 + $0xe0] sm:$0xff] (%p6063_p5), %v5431_v9  ;;  %5434 = vst [vmem:[%s10431_s24 + $0xf0] sm:$0xff] (%p6063_p5), %v5433_v62  ;;  %v5445_v36 = vld [vmem:[%s7963_s15 + $0xa8] sm:$0xff] (%p6063_p5)  ;;  %v5447_v59 = vld [vmem:[%s7963_s15 + $0xb0] sm:$0xff] (%p6063_p5) }
 0x34a   : > { %v5275_v8 = vadd.f32 %v5273_v43, %v5267_v22  ;;  %5436 = vst [vmem:[%s10431_s24 + $0x100] sm:$0xff] (%p6063_p5), %v5435_v41  ;;  %5438 = vst [vmem:[%s10431_s24 + $0x110] sm:$0xff] (%p6063_p5), %v5437_v16  ;;  %v5449_v38 = vld [vmem:[%s7963_s15 + $0xb8] sm:$0xff] (%p6063_p5)  ;;  %v5451_v20 = vld [vmem:[%s7963_s15 + $0xc0] sm:$0xff] (%p6063_p5) }
 0x34b   : > { %v5276_v54 = vadd.f32 %v5274_v60, %v5268_v19  ;;  %5440 = vst [vmem:[%s10431_s24 + $0x120] sm:$0xff] (%p6063_p5), %v5439_v28  ;;  %5442 = vst [vmem:[%s10431_s24 + $0x130] sm:$0xff] (%p6063_p5), %v5441_v31  ;;  %v5453_v21 = vld [vmem:[%s7963_s15 + $0xc8] sm:$0xff] (%p6063_p5)  ;;  %v5455_v4 = vld [vmem:[%s7963_s15 + $0xd0] sm:$0xff] (%p6063_p5) }
 0x34c   : > { %v5283_v56 = vadd.f32 %v5281_v39, %v5275_v8  ;;  %5444 = vst [vmem:[%s10431_s24 + $0x140] sm:$0xff] (%p6063_p5), %v5443_v48  ;;  %5446 = vst [vmem:[%s10431_s24 + $0x150] sm:$0xff] (%p6063_p5), %v5445_v36  ;;  %v5457_v42 = vld [vmem:[%s7963_s15 + $0xd8] sm:$0xff] (%p6063_p5)  ;;  %v5459_v27 = vld [vmem:[%s7963_s15 + $0xe0] sm:$0xff] (%p6063_p5) }
 0x34d   : > { %v5284_v5 = vadd.f32 %v5282_v49, %v5276_v54  ;;  %5448 = vst [vmem:[%s10431_s24 + $0x160] sm:$0xff] (%p6063_p5), %v5447_v59  ;;  %5450 = vst [vmem:[%s10431_s24 + $0x170] sm:$0xff] (%p6063_p5), %v5449_v38  ;;  %v5461_v50 = vld [vmem:[%s7963_s15 + $0xe8] sm:$0xff] (%p6063_p5) }
 0x34e   : > { %v5291_v15 = vadd.f32 %v5289_v61, %v5283_v56  ;;  %5452 = vst [vmem:[%s10431_s24 + $0x180] sm:$0xff] (%p6063_p5), %v5451_v20  ;;  %5454 = vst [vmem:[%s10431_s24 + $0x190] sm:$0xff] (%p6063_p5), %v5453_v21 }
 0x34f   : > { %v5292_v17 = vadd.f32 %v5290_v53, %v5284_v5  ;;  %5311 = sbr.rel (!%p6063_p5) target bundleno = 862 (0x35e), region = 163  ;;  %5456 = vst [vmem:[%s10431_s24 + $0x1a0] sm:$0xff] (%p6063_p5), %v5455_v4  ;;  %5458 = vst [vmem:[%s10431_s24 + $0x1b0] sm:$0xff] (%p6063_p5), %v5457_v42 }
 0x350   : > { %v5299_v32 = vadd.f32 %v5297_v46, %v5291_v15  ;;  %5460 = vst [vmem:[%s10431_s24 + $0x1c0] sm:$0xff] (%p6063_p5), %v5459_v27  ;;  %5462 = vst [vmem:[%s10431_s24 + $0x1d0] sm:$0xff] (%p6063_p5), %v5461_v50 }
 0x351   : > { %v5300_v25 = vadd.f32 %v5298_v12, %v5292_v17 }
 0x352   : > { %v5301_v37 = vmul.f32 %v5299_v32, %v10008_v29  ;;  %v5403_v29 = vld [vmem:[%s7963_s15] sm:$0xff] (%p6063_p5) }
 0x353   : > { %v5302_v47 = vmul.f32 %v5300_v25, %v10889_v63  ;;  %v5407_v63 = vld [vmem:[%s7963_s15 + $0x10] sm:$0xff] (%p6063_p5)  ;;  %5404 = vst [vmem:[%s10431_s24] sm:$0xff] (%p6063_p5), %v5403_v29 }
 0x354   : > { %5303 = vst [vmem:[%s7963_s15 + $0xf0] sm:$0xff] %v5301_v37  ;;  %5408 = vst [vmem:[%s10431_s24 + $0x20] sm:$0xff] (%p6063_p5), %v5407_v63 }
 0x355   : > { %5304 = vst [vmem:[%s7963_s15 + $0xf8] sm:$0xff] %v5302_v47 }
 0x35b   : > { %v5463_v24 = vld [vmem:[%s7963_s15 + $0xf0] sm:$0xff] }
 0x35c   : > { %v5465_v35 = vld [vmem:[%s7963_s15 + $0xf8] sm:$0xff]  ;;  %5464 = vst [vmem:[%s10431_s24 + $0x1e0] sm:$0xff] %v5463_v24 }
 0x35d   : > { %5466 = vst [vmem:[%s10431_s24 + $0x1f0] sm:$0xff] %v5465_v35 }
 0x35e PF: > { %p11_p10 = scmp.ge.s32.totalorder %s6046_s19, 4   ;;  %s10954_s15 = smov %s5998_s16 }
 0x35f   : > { %s10955_s16 = smov %s6057_s22  ;;  %s10956_s17 = smov %s6046_s19 }
 0x360   :  { %13 = sbr.rel (!%p11_p10) target bundleno = 2 (0x2), region = 248 }

</bundles_post_ra>
